<compile_context>
chip_gen: v5e
topology: v5e:2x2
jax: 0.10.0
libtpu: 0.0.40
codegen_flags: <defaults>
</compile_context>

<pallas_src>
import jax
import jax.numpy as jnp
import numpy as np
from jax.experimental import pallas as pl
from jax.experimental.pallas import tpu as pltpu


# ----------------------------- static geometry ------------------------------
# Example shape: x = (N=2, Cin=4, H=16, W=16), PyTorch NCHW.
N = 2
CIN = 4
H = W = 16

HP1 = H + 2                      # 18: padded 16x16 grid (pad=1)
WP1 = W + 2                      # 18
B1 = HP1 * WP1                   # 324 padded positions per image
G1 = N * B1                      # 648 rows: flat padded h_act grid
TAP1_MAX = 2 * WP1 + 2           # 38: largest 3x3 tap offset on grid 1

H2 = W2 = 8                      # block output spatial (stride 2)
HP3 = H2 + 2                     # 10: padded 8x8 grid (pad=1)
WP3 = W2 + 2                     # 10
B3 = HP3 * WP3                   # 100
G3 = N * B3                      # 200
TAP3_MAX = 2 * WP3 + 2           # 22

Q3_MAX = (N - 1) * B3 + (H2 - 1) * WP3 + (W2 - 1)       # 177: last valid out row
D3_ROWS = ((Q3_MAX + 1 + 7) // 8) * 8                   # 184: blk_conv2 out rows
G3P = ((D3_ROWS + TAP3_MAX + 7) // 8) * 8               # 208: padded grid-3 rows

C1 = 16                          # stem channels
C2 = 32                          # block channels
NUM_CLASSES = 10
K1 = 9 * CIN                     # 36  packed contraction, conv1
K2 = 9 * C1                      # 144 packed contraction, blk_conv1
K3 = 9 * C2                      # 288 packed contraction, blk_conv2

CH3 = (96, 88)                   # blk_conv2 row chunks (multiples of 8)

# ---- static bounds: every in-kernel slice is provably in range --------------
assert G3P >= G3
assert D3_ROWS + TAP3_MAX <= G3P                                      # conv2 reads
assert (N - 1) * B1 + 2 * (H2 - 1) * WP1 + TAP1_MAX + 2 * (W2 - 1) < G1
assert (N - 1) * B1 + (2 * (H2 - 1) + 1) * WP1 + 1 + 2 * (W2 - 1) < G1
assert (N - 1) * B3 + H2 * WP3 + 1 + (W2 - 1) < G3P                   # p3a stores
assert (N - 1) * B3 + (H2 - 1) * WP3 + (W2 - 1) < D3_ROWS             # p3s / pool
assert sum(CH3) == D3_ROWS and all(c % 8 == 0 for c in CH3)


# ------------------------------- fused kernel --------------------------------

def _fused_wrn_kernel(a1_ref, w1_ref, sb1_ref, mask1_ref,
                      w2_ref, wsc_ref, sb2_ref,
                      w3_ref, sbf_ref, pool_ref, wfc_ref, bfc_ref,
                      out_ref,
                      p2_ref, p3a_ref, p3s_ref):
    f32 = jnp.float32
    bf16 = jnp.bfloat16

    # --- conv1 (3x3/s1/p1, 4->16): ONE packed K=36 bf16 matmul over the whole
    #     padded grid; BN1 + ReLU + padding-ring mask fused into the single
    #     p2 write (no tap-by-tap scratch RMW).
    h = jnp.dot(a1_ref[...], w1_ref[...], preferred_element_type=f32)   # (648,16)
    p2_ref[...] = (jnp.maximum(h * sb1_ref[0:1, :] + sb1_ref[1:2, :], 0.0)
                   * mask1_ref[...])

    # --- padded grid 3 and shortcut buffer must be finite zeros everywhere the
    #     loop below does not write (padding ring + alignment tail rows).
    p3a_ref[...] = jnp.zeros_like(p3a_ref)
    p3s_ref[...] = jnp.zeros_like(p3s_ref)

    # --- blk_conv1 (3x3/s2/p1, 16->32) evaluated ONLY at the N*8*8 stride-2
    #     centres using sublane-strided slices of p2 (no dense stride-1 pass,
    #     no 0/1 selection matmul).  BN2 + ReLU is fused into the scatter into
    #     the zero-padded 10x10 grid.  The 1x1/s2 shortcut samples the same
    #     centres and shares the loop.
    s2, b2 = sb2_ref[0:1, :], sb2_ref[1:2, :]
    for n in range(N):
        for ho in range(H2):
            src = n * B1 + 2 * ho * WP1            # p2 row of (centre - shift)
            taps = [p2_ref[pl.ds(src + i * WP1 + j, W2, stride=2), :]
                    for i in range(3) for j in range(3)]
            lhs = jnp.concatenate(taps, axis=-1).astype(bf16)       # (8, 144)
            conv = jnp.dot(lhs, w2_ref[...], preferred_element_type=f32)
            dst = n * B3 + (ho + 1) * WP3 + 1
            p3a_ref[dst:dst + W2, :] = jnp.maximum(conv * s2 + b2, 0.0)

            cent = p2_ref[pl.ds(n * B1 + (2 * ho + 1) * WP1 + 1, W2, stride=2), :]
            sc = jnp.dot(cent.astype(bf16), wsc_ref[...],
                         preferred_element_type=f32)                # (8, 32)
            base = n * B3 + ho * WP3
            p3s_ref[base:base + W2, :] = sc

    # --- blk_conv2 (3x3/s1/p1, 32->32): packed-tap K=288 bf16 matmul, chunked
    #     over rows; residual add + final BN/ReLU + partial global-average-pool
    #     fused per chunk so only the (2, 32) pooled features stay live.
    feats = jnp.zeros((N, C2), f32)
    c0 = 0
    for cs in CH3:
        lhs = jnp.concatenate(
            [p3a_ref[c0 + i * WP3 + j: c0 + i * WP3 + j + cs, :]
             for i in range(3) for j in range(3)],
            axis=-1).astype(bf16)                                   # (cs, 288)
        d3 = jnp.dot(lhs, w3_ref[...], preferred_element_type=f32)  # (cs, 32)
        act = jnp.maximum((d3 + p3s_ref[c0:c0 + cs, :]) * sbf_ref[0:1, :]
                          + sbf_ref[1:2, :], 0.0)
        feats = feats + jnp.dot(pool_ref[:, c0:c0 + cs], act,
                                preferred_element_type=f32)         # (2, 32)
        c0 += cs

    # --- linear classification head (32 -> 10); only (2,10) leaves VMEM.
    out_ref[...] = (jnp.dot(feats, wfc_ref[...], preferred_element_type=f32)
                    + bfc_ref[...])


# --------------------- one-time parameter / constant prep --------------------

def bn_fold(gamma, beta, mean, var, eps=1e-5):
    """Fold eval-mode BatchNorm into a stacked (scale, bias) pair: (2, C)."""
    scale = gamma / jnp.sqrt(var + eps)
    bias = beta - mean * scale
    return jnp.stack([scale, bias], axis=0).astype(jnp.float32)


def _packed_conv_w(w_oihw, dtype):
    """PyTorch (Cout,Cin,kh,kw) -> packed (kh*kw*Cin, Cout), tap-major."""
    cout, cin, kh, kw = w_oihw.shape
    w = jnp.transpose(w_oihw, (2, 3, 1, 0)).reshape(kh * kw * cin, cout)
    return w.astype(dtype)


def prepare_params(params):
    """Fold BN, pack conv weights tap-major (bf16 MXU operands), and build the
    tiny geometry constants (ring mask, pooling matrix).  Runs once."""
    # interior mask for the 18x18 padded grid (zero the padding ring after BN)
    m1 = np.zeros((G1, 1), np.float32)
    for n in range(N):
        for h in range(1, H + 1):
            for w in range(1, W + 1):
                m1[n * B1 + h * WP1 + w, 0] = 1.0

    # global-average-pool matrix (1/64 over the valid 8x8 positions per image)
    pool = np.zeros((N, D3_ROWS), np.float32)
    for n in range(N):
        for ho in range(H2):
            for wo in range(W2):
                pool[n, n * B3 + ho * WP3 + wo] = 1.0 / (H2 * W2)

    return dict(
        w1=_packed_conv_w(params['conv1'], jnp.bfloat16),       # (36, 16)
        w2=_packed_conv_w(params['blk_conv1'], jnp.bfloat16),   # (144, 32)
        w3=_packed_conv_w(params['blk_conv2'], jnp.bfloat16),   # (288, 32)
        wsc=jnp.transpose(params['blk_sc'][:, :, 0, 0]).astype(jnp.bfloat16),
        sb1=bn_fold(**params['bn1']),
        sb2=bn_fold(**params['bn2']),
        sbf=bn_fold(**params['bn_final']),
        wfc=params['fc_w'].astype(jnp.float32),                 # (32, 10)
        bfc=params['fc_b'].reshape(1, NUM_CLASSES).astype(jnp.float32),
        mask1=jnp.asarray(m1),
        pool=jnp.asarray(pool),
    )


# ------------------------------ forward pass ---------------------------------

@jax.jit
def wide_resnet_contrastive_forward(prep, x_nchw):
    """forward(x) = classification_head(encoder(x)) — one fused Pallas kernel.

    Host glue is layout plumbing only: NCHW->NHWC, pad, and the 9-tap shift
    stack for conv1 so its MXU operand arrives lane-dense and bf16."""
    x = jnp.transpose(x_nchw, (0, 2, 3, 1)).astype(jnp.float32)      # (2,16,16,4)
    xpp = jnp.pad(x, ((0, 0), (2, 2), (2, 2), (0, 0)))               # (2,20,20,4)
    a1 = jnp.concatenate(
        [xpp[:, i:i + HP1, j:j + WP1, :] for i in range(3) for j in range(3)],
        axis=-1).reshape(G1, K1).astype(jnp.bfloat16)                # (648, 36)

    return pl.pallas_call(
        _fused_wrn_kernel,
        out_shape=jax.ShapeDtypeStruct((N, NUM_CLASSES), jnp.float32),
        scratch_shapes=[
            pltpu.VMEM((G1, C1), jnp.float32),        # p2 : padded h_act grid
            pltpu.VMEM((G3P, C2), jnp.float32),       # p3a: padded block act
            pltpu.VMEM((D3_ROWS, C2), jnp.float32),   # p3s: shortcut (d3-aligned)
        ],
    )(a1, prep['w1'], prep['sb1'], prep['mask1'],
      prep['w2'], prep['wsc'], prep['sb2'],
      prep['w3'], prep['sbf'], prep['pool'], prep['wfc'], prep['bfc'])


# ------------------------------ parameters -----------------------------------

def init_params(key):
    ks = jax.random.split(key, 9)

    def conv_w(k, cout, cin, kh, kw):
        fan_in = cin * kh * kw
        return (jax.random.normal(k, (cout, cin, kh, kw), jnp.float32)
                * (2.0 / fan_in) ** 0.5)

    def bn_p(k, c):
        k1, k2, k3, k4 = jax.random.split(k, 4)
        return dict(gamma=1.0 + 0.1 * jax.random.normal(k1, (c,), jnp.float32),
                    beta=0.1 * jax.random.normal(k2, (c,), jnp.float32),
                    mean=0.1 * jax.random.normal(k3, (c,), jnp.float32),
                    var=1.0 + 0.1 * jax.random.uniform(k4, (c,), jnp.float32))

    return dict(
        conv1=conv_w(ks[0], C1, CIN, 3, 3),       # stem: 4 -> 16
        bn1=bn_p(ks[1], C1),
        blk_conv1=conv_w(ks[2], C2, C1, 3, 3),    # block conv1 (stride 2)
        bn2=bn_p(ks[3], C2),
        blk_conv2=conv_w(ks[4], C2, C2, 3, 3),    # block conv2
        blk_sc=conv_w(ks[5], C2, C1, 1, 1),       # 1x1 shortcut (stride 2)
        bn_final=bn_p(ks[6], C2),
        fc_w=jax.random.normal(ks[7], (C2, NUM_CLASSES), jnp.float32)
             * (1.0 / C2) ** 0.5,
        fc_b=0.01 * jax.random.normal(ks[8], (NUM_CLASSES,), jnp.float32),
    )


# ------------------------ pure-JAX reference (check) --------------------------

def _reference_forward(params, x_nchw):
    x = jnp.transpose(x_nchw, (0, 2, 3, 1)).astype(jnp.float32)

    def conv(x, w_oihw, stride, pad):
        w = jnp.transpose(w_oihw, (2, 3, 1, 0))   # HWIO
        return jax.lax.conv_general_dilated(
            x, w, window_strides=(stride, stride),
            padding=[(pad, pad), (pad, pad)],
            dimension_numbers=('NHWC', 'HWIO', 'NHWC'))

    def bn_relu(x, p):
        s = p['gamma'] / jnp.sqrt(p['var'] + 1e-5)
        b = p['beta'] - p['mean'] * s
        return jnp.maximum(x * s + b, 0.0)

    h = conv(x, params['conv1'], 1, 1)
    h_act = bn_relu(h, params['bn1'])
    out = conv(h_act, params['blk_conv1'], 2, 1)
    out = bn_relu(out, params['bn2'])
    out = conv(out, params['blk_conv2'], 1, 1)
    sc = conv(h_act, params['blk_sc'], 2, 0)
    out = bn_relu(out + sc, params['bn_final'])
    feats = jnp.mean(out, axis=(1, 2))
    return feats @ params['fc_w'] + params['fc_b']


# --------------------------------- main ---------------------------------------

if __name__ == "__main__":
    x = jax.random.normal(jax.random.PRNGKey(0), (N, CIN, H, W), jnp.float32)
    params = init_params(jax.random.PRNGKey(42))
    prep = prepare_params(params)

    logits = wide_resnet_contrastive_forward(prep, x)
    jax.block_until_ready(logits)

    assert logits.shape == (N, NUM_CLASSES), logits.shape
    assert logits.dtype == jnp.float32
    assert bool(jnp.all(jnp.isfinite(logits)))

    # correctness check against a plain-JAX reference (bf16 MXU operands with
    # f32 accumulation -> expected drift well under this tolerance)
    ref = _reference_forward(params, x)
    err = float(jnp.max(jnp.abs(logits - ref)))
    assert err < 5e-2, f"max |pallas - reference| = {err}"

    print("KERNEL_OK")
</pallas_src>

<mosaic_0001>
module attributes {stable_mosaic.version = 11 : i64} {
  func.func @_fused_wrn_kernel(%arg0: memref<648x36xbf16, #tpu.memory_space<vmem>>, %arg1: memref<36x16xbf16, #tpu.memory_space<vmem>>, %arg2: memref<2x16xf32, #tpu.memory_space<vmem>>, %arg3: memref<648x1xf32, #tpu.memory_space<vmem>>, %arg4: memref<144x32xbf16, #tpu.memory_space<vmem>>, %arg5: memref<16x32xbf16, #tpu.memory_space<vmem>>, %arg6: memref<2x32xf32, #tpu.memory_space<vmem>>, %arg7: memref<288x32xbf16, #tpu.memory_space<vmem>>, %arg8: memref<2x32xf32, #tpu.memory_space<vmem>>, %arg9: memref<2x184xf32, #tpu.memory_space<vmem>>, %arg10: memref<32x10xf32, #tpu.memory_space<vmem>>, %arg11: memref<1x10xf32, #tpu.memory_space<vmem>>, %arg12: memref<2x10xf32, #tpu.memory_space<vmem>>, %arg13: memref<648x16xf32, #tpu.memory_space<vmem>>, %arg14: memref<208x32xf32, #tpu.memory_space<vmem>>, %arg15: memref<184x32xf32, #tpu.memory_space<vmem>>) attributes {dimension_semantics = [], scalar_prefetch = 0 : i64, scratch_operands = 3 : i64, tpu.core_type = #tpu.core_type<tc>} {
    %c0 = arith.constant 0 : index
    %c0_0 = arith.constant 0 : index
    %0 = vector.load %arg0[%c0, %c0_0] : memref<648x36xbf16, #tpu.memory_space<vmem>>, vector<648x36xbf16>
    %c0_1 = arith.constant 0 : index
    %c0_2 = arith.constant 0 : index
    %1 = vector.load %arg1[%c0_1, %c0_2] : memref<36x16xbf16, #tpu.memory_space<vmem>>, vector<36x16xbf16>
    %cst = arith.constant dense<0.000000e+00> : vector<648x16xf32>
    %2 = tpu.matmul %0, %1, %cst {dimension_numbers = #tpu.dot_dimension_numbers<[1], [0], [0], [1], [0, 0, 1, 1], [], []>} : vector<648x36xbf16>, vector<36x16xbf16>, vector<648x16xf32> -> vector<648x16xf32>
    %c0_3 = arith.constant 0 : index
    %c0_4 = arith.constant 0 : index
    %3 = vector.load %arg2[%c0_3, %c0_4] : memref<2x16xf32, #tpu.memory_space<vmem>>, vector<1x16xf32>
    %4 = vector.broadcast %3 : vector<1x16xf32> to vector<648x16xf32>
    %5 = arith.mulf %2, %4 : vector<648x16xf32>
    %c1 = arith.constant 1 : index
    %c0_5 = arith.constant 0 : index
    %6 = vector.load %arg2[%c1, %c0_5] : memref<2x16xf32, #tpu.memory_space<vmem>>, vector<1x16xf32>
    %7 = vector.broadcast %6 : vector<1x16xf32> to vector<648x16xf32>
    %8 = arith.addf %5, %7 : vector<648x16xf32>
    %cst_6 = arith.constant 0.000000e+00 : f32
    %9 = vector.broadcast %cst_6 : f32 to vector<648x16xf32>
    %10 = arith.maximumf %8, %9 : vector<648x16xf32>
    %c0_7 = arith.constant 0 : index
    %c0_8 = arith.constant 0 : index
    %11 = vector.load %arg3[%c0_7, %c0_8] : memref<648x1xf32, #tpu.memory_space<vmem>>, vector<648x1xf32>
    %12 = vector.broadcast %11 : vector<648x1xf32> to vector<648x16xf32>
    %13 = arith.mulf %10, %12 : vector<648x16xf32>
    %c0_9 = arith.constant 0 : index
    %c0_10 = arith.constant 0 : index
    %14 = vector.load %arg13[%c0_9, %c0_10] : memref<648x16xf32, #tpu.memory_space<vmem>>, vector<648x16xf32>
    tpu.vector_store %arg13[%c0_9, %c0_10], %13 {strides = array<i32>} : memref<648x16xf32, #tpu.memory_space<vmem>>, vector<648x16xf32>,
    %cst_11 = arith.constant 0.000000e+00 : f32
    %15 = vector.broadcast %cst_11 : f32 to vector<208x32xf32>
    %c0_12 = arith.constant 0 : index
    %c0_13 = arith.constant 0 : index
    %16 = vector.load %arg14[%c0_12, %c0_13] : memref<208x32xf32, #tpu.memory_space<vmem>>, vector<208x32xf32>
    tpu.vector_store %arg14[%c0_12, %c0_13], %15 {strides = array<i32>} : memref<208x32xf32, #tpu.memory_space<vmem>>, vector<208x32xf32>,
    %cst_14 = arith.constant 0.000000e+00 : f32
    %17 = vector.broadcast %cst_14 : f32 to vector<184x32xf32>
    %c0_15 = arith.constant 0 : index
    %c0_16 = arith.constant 0 : index
    %18 = vector.load %arg15[%c0_15, %c0_16] : memref<184x32xf32, #tpu.memory_space<vmem>>, vector<184x32xf32>
    tpu.vector_store %arg15[%c0_15, %c0_16], %17 {strides = array<i32>} : memref<184x32xf32, #tpu.memory_space<vmem>>, vector<184x32xf32>,
    %c0_17 = arith.constant 0 : index
    %c0_18 = arith.constant 0 : index
    %19 = vector.load %arg6[%c0_17, %c0_18] : memref<2x32xf32, #tpu.memory_space<vmem>>, vector<1x32xf32>
    %c1_19 = arith.constant 1 : index
    %c0_20 = arith.constant 0 : index
    %20 = vector.load %arg6[%c1_19, %c0_20] : memref<2x32xf32, #tpu.memory_space<vmem>>, vector<1x32xf32>
    %c0_21 = arith.constant 0 : index
    %c0_22 = arith.constant 0 : index
    %21 = tpu.strided_load %arg13[%c0_21, %c0_22] {strides = array<i32: 2, 1>} : memref<648x16xf32, #tpu.memory_space<vmem>>, vector<8x16xf32>
    %c1_23 = arith.constant 1 : index
    %c0_24 = arith.constant 0 : index
    %22 = tpu.strided_load %arg13[%c1_23, %c0_24] {strides = array<i32: 2, 1>} : memref<648x16xf32, #tpu.memory_space<vmem>>, vector<8x16xf32>
    %c2 = arith.constant 2 : index
    %c0_25 = arith.constant 0 : index
    %23 = tpu.strided_load %arg13[%c2, %c0_25] {strides = array<i32: 2, 1>} : memref<648x16xf32, #tpu.memory_space<vmem>>, vector<8x16xf32>
    %c18 = arith.constant 18 : index
    %c0_26 = arith.constant 0 : index
    %24 = tpu.strided_load %arg13[%c18, %c0_26] {strides = array<i32: 2, 1>} : memref<648x16xf32, #tpu.memory_space<vmem>>, vector<8x16xf32>
    %c19 = arith.constant 19 : index
    %c0_27 = arith.constant 0 : index
    %25 = tpu.strided_load %arg13[%c19, %c0_27] {strides = array<i32: 2, 1>} : memref<648x16xf32, #tpu.memory_space<vmem>>, vector<8x16xf32>
    %c20 = arith.constant 20 : index
    %c0_28 = arith.constant 0 : index
    %26 = tpu.strided_load %arg13[%c20, %c0_28] {strides = array<i32: 2, 1>} : memref<648x16xf32, #tpu.memory_space<vmem>>, vector<8x16xf32>
    %c36 = arith.constant 36 : index
    %c0_29 = arith.constant 0 : index
    %27 = tpu.strided_load %arg13[%c36, %c0_29] {strides = array<i32: 2, 1>} : memref<648x16xf32, #tpu.memory_space<vmem>>, vector<8x16xf32>
    %c37 = arith.constant 37 : index
    %c0_30 = arith.constant 0 : index
    %28 = tpu.strided_load %arg13[%c37, %c0_30] {strides = array<i32: 2, 1>} : memref<648x16xf32, #tpu.memory_space<vmem>>, vector<8x16xf32>
    %c38 = arith.constant 38 : index
    %c0_31 = arith.constant 0 : index
    %29 = tpu.strided_load %arg13[%c38, %c0_31] {strides = array<i32: 2, 1>} : memref<648x16xf32, #tpu.memory_space<vmem>>, vector<8x16xf32>
    %30 = tpu.concatenate %21, %22, %23, %24, %25, %26, %27, %28, %29 in 1 : vector<8x16xf32>, vector<8x16xf32>, vector<8x16xf32>, vector<8x16xf32>, vector<8x16xf32>, vector<8x16xf32>, vector<8x16xf32>, vector<8x16xf32>, vector<8x16xf32> -> vector<8x144xf32>
    %31 = arith.truncf %30 : vector<8x144xf32> to vector<8x144xbf16>
    %c0_32 = arith.constant 0 : index
    %c0_33 = arith.constant 0 : index
    %32 = vector.load %arg4[%c0_32, %c0_33] : memref<144x32xbf16, #tpu.memory_space<vmem>>, vector<144x32xbf16>
    %cst_34 = arith.constant dense<0.000000e+00> : vector<8x32xf32>
    %33 = tpu.matmul %31, %32, %cst_34 {dimension_numbers = #tpu.dot_dimension_numbers<[1], [0], [0], [1], [0, 0, 1, 1], [], []>} : vector<8x144xbf16>, vector<144x32xbf16>, vector<8x32xf32> -> vector<8x32xf32>
    %34 = vector.broadcast %19 : vector<1x32xf32> to vector<8x32xf32>
    %35 = arith.mulf %33, %34 : vector<8x32xf32>
    %36 = vector.broadcast %20 : vector<1x32xf32> to vector<8x32xf32>
    %37 = arith.addf %35, %36 : vector<8x32xf32>
    %cst_35 = arith.constant 0.000000e+00 : f32
    %38 = vector.broadcast %cst_35 : f32 to vector<8x32xf32>
    %39 = arith.maximumf %37, %38 : vector<8x32xf32>
    %c11 = arith.constant 11 : index
    %c0_36 = arith.constant 0 : index
    %40 = vector.load %arg14[%c11, %c0_36] : memref<208x32xf32, #tpu.memory_space<vmem>>, vector<8x32xf32>
    tpu.vector_store %arg14[%c11, %c0_36], %39 {strides = array<i32>} : memref<208x32xf32, #tpu.memory_space<vmem>>, vector<8x32xf32>,
    %c19_37 = arith.constant 19 : index
    %c0_38 = arith.constant 0 : index
    %41 = tpu.strided_load %arg13[%c19_37, %c0_38] {strides = array<i32: 2, 1>} : memref<648x16xf32, #tpu.memory_space<vmem>>, vector<8x16xf32>
    %42 = arith.truncf %41 : vector<8x16xf32> to vector<8x16xbf16>
    %c0_39 = arith.constant 0 : index
    %c0_40 = arith.constant 0 : index
    %43 = vector.load %arg5[%c0_39, %c0_40] : memref<16x32xbf16, #tpu.memory_space<vmem>>, vector<16x32xbf16>
    %cst_41 = arith.constant dense<0.000000e+00> : vector<8x32xf32>
    %44 = tpu.matmul %42, %43, %cst_41 {dimension_numbers = #tpu.dot_dimension_numbers<[1], [0], [0], [1], [0, 0, 1, 1], [], []>} : vector<8x16xbf16>, vector<16x32xbf16>, vector<8x32xf32> -> vector<8x32xf32>
    %c0_42 = arith.constant 0 : index
    %c0_43 = arith.constant 0 : index
    %45 = vector.load %arg15[%c0_42, %c0_43] : memref<184x32xf32, #tpu.memory_space<vmem>>, vector<8x32xf32>
    tpu.vector_store %arg15[%c0_42, %c0_43], %44 {strides = array<i32>} : memref<184x32xf32, #tpu.memory_space<vmem>>, vector<8x32xf32>,
    %c36_44 = arith.constant 36 : index
    %c0_45 = arith.constant 0 : index
    %46 = tpu.strided_load %arg13[%c36_44, %c0_45] {strides = array<i32: 2, 1>} : memref<648x16xf32, #tpu.memory_space<vmem>>, vector<8x16xf32>
    %c37_46 = arith.constant 37 : index
    %c0_47 = arith.constant 0 : index
    %47 = tpu.strided_load %arg13[%c37_46, %c0_47] {strides = array<i32: 2, 1>} : memref<648x16xf32, #tpu.memory_space<vmem>>, vector<8x16xf32>
    %c38_48 = arith.constant 38 : index
    %c0_49 = arith.constant 0 : index
    %48 = tpu.strided_load %arg13[%c38_48, %c0_49] {strides = array<i32: 2, 1>} : memref<648x16xf32, #tpu.memory_space<vmem>>, vector<8x16xf32>
    %c54 = arith.constant 54 : index
    %c0_50 = arith.constant 0 : index
    %49 = tpu.strided_load %arg13[%c54, %c0_50] {strides = array<i32: 2, 1>} : memref<648x16xf32, #tpu.memory_space<vmem>>, vector<8x16xf32>
    %c55 = arith.constant 55 : index
    %c0_51 = arith.constant 0 : index
    %50 = tpu.strided_load %arg13[%c55, %c0_51] {strides = array<i32: 2, 1>} : memref<648x16xf32, #tpu.memory_space<vmem>>, vector<8x16xf32>
    %c56 = arith.constant 56 : index
    %c0_52 = arith.constant 0 : index
    %51 = tpu.strided_load %arg13[%c56, %c0_52] {strides = array<i32: 2, 1>} : memref<648x16xf32, #tpu.memory_space<vmem>>, vector<8x16xf32>
    %c72 = arith.constant 72 : index
    %c0_53 = arith.constant 0 : index
    %52 = tpu.strided_load %arg13[%c72, %c0_53] {strides = array<i32: 2, 1>} : memref<648x16xf32, #tpu.memory_space<vmem>>, vector<8x16xf32>
    %c73 = arith.constant 73 : index
    %c0_54 = arith.constant 0 : index
    %53 = tpu.strided_load %arg13[%c73, %c0_54] {strides = array<i32: 2, 1>} : memref<648x16xf32, #tpu.memory_space<vmem>>, vector<8x16xf32>
    %c74 = arith.constant 74 : index
    %c0_55 = arith.constant 0 : index
    %54 = tpu.strided_load %arg13[%c74, %c0_55] {strides = array<i32: 2, 1>} : memref<648x16xf32, #tpu.memory_space<vmem>>, vector<8x16xf32>
    %55 = tpu.concatenate %46, %47, %48, %49, %50, %51, %52, %53, %54 in 1 : vector<8x16xf32>, vector<8x16xf32>, vector<8x16xf32>, vector<8x16xf32>, vector<8x16xf32>, vector<8x16xf32>, vector<8x16xf32>, vector<8x16xf32>, vector<8x16xf32> -> vector<8x144xf32>
    %56 = arith.truncf %55 : vector<8x144xf32> to vector<8x144xbf16>
    %c0_56 = arith.constant 0 : index
    %c0_57 = arith.constant 0 : index
    %57 = vector.load %arg4[%c0_56, %c0_57] : memref<144x32xbf16, #tpu.memory_space<vmem>>, vector<144x32xbf16>
    %cst_58 = arith.constant dense<0.000000e+00> : vector<8x32xf32>
    %58 = tpu.matmul %56, %57, %cst_58 {dimension_numbers = #tpu.dot_dimension_numbers<[1], [0], [0], [1], [0, 0, 1, 1], [], []>} : vector<8x144xbf16>, vector<144x32xbf16>, vector<8x32xf32> -> vector<8x32xf32>
    %59 = vector.broadcast %19 : vector<1x32xf32> to vector<8x32xf32>
    %60 = arith.mulf %58, %59 : vector<8x32xf32>
    %61 = vector.broadcast %20 : vector<1x32xf32> to vector<8x32xf32>
    %62 = arith.addf %60, %61 : vector<8x32xf32>
    %cst_59 = arith.constant 0.000000e+00 : f32
    %63 = vector.broadcast %cst_59 : f32 to vector<8x32xf32>
    %64 = arith.maximumf %62, %63 : vector<8x32xf32>
    %c21 = arith.constant 21 : index
    %c0_60 = arith.constant 0 : index
    %65 = vector.load %arg14[%c21, %c0_60] : memref<208x32xf32, #tpu.memory_space<vmem>>, vector<8x32xf32>
    tpu.vector_store %arg14[%c21, %c0_60], %64 {strides = array<i32>} : memref<208x32xf32, #tpu.memory_space<vmem>>, vector<8x32xf32>,
    %c55_61 = arith.constant 55 : index
    %c0_62 = arith.constant 0 : index
    %66 = tpu.strided_load %arg13[%c55_61, %c0_62] {strides = array<i32: 2, 1>} : memref<648x16xf32, #tpu.memory_space<vmem>>, vector<8x16xf32>
    %67 = arith.truncf %66 : vector<8x16xf32> to vector<8x16xbf16>
    %c0_63 = arith.constant 0 : index
    %c0_64 = arith.constant 0 : index
    %68 = vector.load %arg5[%c0_63, %c0_64] : memref<16x32xbf16, #tpu.memory_space<vmem>>, vector<16x32xbf16>
    %cst_65 = arith.constant dense<0.000000e+00> : vector<8x32xf32>
    %69 = tpu.matmul %67, %68, %cst_65 {dimension_numbers = #tpu.dot_dimension_numbers<[1], [0], [0], [1], [0, 0, 1, 1], [], []>} : vector<8x16xbf16>, vector<16x32xbf16>, vector<8x32xf32> -> vector<8x32xf32>
    %c10 = arith.constant 10 : index
    %c0_66 = arith.constant 0 : index
    %70 = vector.load %arg15[%c10, %c0_66] : memref<184x32xf32, #tpu.memory_space<vmem>>, vector<8x32xf32>
    tpu.vector_store %arg15[%c10, %c0_66], %69 {strides = array<i32>} : memref<184x32xf32, #tpu.memory_space<vmem>>, vector<8x32xf32>,
    %c72_67 = arith.constant 72 : index
    %c0_68 = arith.constant 0 : index
    %71 = tpu.strided_load %arg13[%c72_67, %c0_68] {strides = array<i32: 2, 1>} : memref<648x16xf32, #tpu.memory_space<vmem>>, vector<8x16xf32>
    %c73_69 = arith.constant 73 : index
    %c0_70 = arith.constant 0 : index
    %72 = tpu.strided_load %arg13[%c73_69, %c0_70] {strides = array<i32: 2, 1>} : memref<648x16xf32, #tpu.memory_space<vmem>>, vector<8x16xf32>
    %c74_71 = arith.constant 74 : index
    %c0_72 = arith.constant 0 : index
    %73 = tpu.strided_load %arg13[%c74_71, %c0_72] {strides = array<i32: 2, 1>} : memref<648x16xf32, #tpu.memory_space<vmem>>, vector<8x16xf32>
    %c90 = arith.constant 90 : index
    %c0_73 = arith.constant 0 : index
    %74 = tpu.strided_load %arg13[%c90, %c0_73] {strides = array<i32: 2, 1>} : memref<648x16xf32, #tpu.memory_space<vmem>>, vector<8x16xf32>
    %c91 = arith.constant 91 : index
    %c0_74 = arith.constant 0 : index
    %75 = tpu.strided_load %arg13[%c91, %c0_74] {strides = array<i32: 2, 1>} : memref<648x16xf32, #tpu.memory_space<vmem>>, vector<8x16xf32>
    %c92 = arith.constant 92 : index
    %c0_75 = arith.constant 0 : index
    %76 = tpu.strided_load %arg13[%c92, %c0_75] {strides = array<i32: 2, 1>} : memref<648x16xf32, #tpu.memory_space<vmem>>, vector<8x16xf32>
    %c108 = arith.constant 108 : index
    %c0_76 = arith.constant 0 : index
    %77 = tpu.strided_load %arg13[%c108, %c0_76] {strides = array<i32: 2, 1>} : memref<648x16xf32, #tpu.memory_space<vmem>>, vector<8x16xf32>
    %c109 = arith.constant 109 : index
    %c0_77 = arith.constant 0 : index
    %78 = tpu.strided_load %arg13[%c109, %c0_77] {strides = array<i32: 2, 1>} : memref<648x16xf32, #tpu.memory_space<vmem>>, vector<8x16xf32>
    %c110 = arith.constant 110 : index
    %c0_78 = arith.constant 0 : index
    %79 = tpu.strided_load %arg13[%c110, %c0_78] {strides = array<i32: 2, 1>} : memref<648x16xf32, #tpu.memory_space<vmem>>, vector<8x16xf32>
    %80 = tpu.concatenate %71, %72, %73, %74, %75, %76, %77, %78, %79 in 1 : vector<8x16xf32>, vector<8x16xf32>, vector<8x16xf32>, vector<8x16xf32>, vector<8x16xf32>, vector<8x16xf32>, vector<8x16xf32>, vector<8x16xf32>, vector<8x16xf32> -> vector<8x144xf32>
    %81 = arith.truncf %80 : vector<8x144xf32> to vector<8x144xbf16>
    %c0_79 = arith.constant 0 : index
    %c0_80 = arith.constant 0 : index
    %82 = vector.load %arg4[%c0_79, %c0_80] : memref<144x32xbf16, #tpu.memory_space<vmem>>, vector<144x32xbf16>
    %cst_81 = arith.constant dense<0.000000e+00> : vector<8x32xf32>
    %83 = tpu.matmul %81, %82, %cst_81 {dimension_numbers = #tpu.dot_dimension_numbers<[1], [0], [0], [1], [0, 0, 1, 1], [], []>} : vector<8x144xbf16>, vector<144x32xbf16>, vector<8x32xf32> -> vector<8x32xf32>
    %84 = vector.broadcast %19 : vector<1x32xf32> to vector<8x32xf32>
    %85 = arith.mulf %83, %84 : vector<8x32xf32>
    %86 = vector.broadcast %20 : vector<1x32xf32> to vector<8x32xf32>
    %87 = arith.addf %85, %86 : vector<8x32xf32>
    %cst_82 = arith.constant 0.000000e+00 : f32
    %88 = vector.broadcast %cst_82 : f32 to vector<8x32xf32>
    %89 = arith.maximumf %87, %88 : vector<8x32xf32>
    %c31 = arith.constant 31 : index
    %c0_83 = arith.constant 0 : index
    %90 = vector.load %arg14[%c31, %c0_83] : memref<208x32xf32, #tpu.memory_space<vmem>>, vector<8x32xf32>
    tpu.vector_store %arg14[%c31, %c0_83], %89 {strides = array<i32>} : memref<208x32xf32, #tpu.memory_space<vmem>>, vector<8x32xf32>,
    %c91_84 = arith.constant 91 : index
    %c0_85 = arith.constant 0 : index
    %91 = tpu.strided_load %arg13[%c91_84, %c0_85] {strides = array<i32: 2, 1>} : memref<648x16xf32, #tpu.memory_space<vmem>>, vector<8x16xf32>
    %92 = arith.truncf %91 : vector<8x16xf32> to vector<8x16xbf16>
    %c0_86 = arith.constant 0 : index
    %c0_87 = arith.constant 0 : index
    %93 = vector.load %arg5[%c0_86, %c0_87] : memref<16x32xbf16, #tpu.memory_space<vmem>>, vector<16x32xbf16>
    %cst_88 = arith.constant dense<0.000000e+00> : vector<8x32xf32>
    %94 = tpu.matmul %92, %93, %cst_88 {dimension_numbers = #tpu.dot_dimension_numbers<[1], [0], [0], [1], [0, 0, 1, 1], [], []>} : vector<8x16xbf16>, vector<16x32xbf16>, vector<8x32xf32> -> vector<8x32xf32>
    %c20_89 = arith.constant 20 : index
    %c0_90 = arith.constant 0 : index
    %95 = vector.load %arg15[%c20_89, %c0_90] : memref<184x32xf32, #tpu.memory_space<vmem>>, vector<8x32xf32>
    tpu.vector_store %arg15[%c20_89, %c0_90], %94 {strides = array<i32>} : memref<184x32xf32, #tpu.memory_space<vmem>>, vector<8x32xf32>,
    %c108_91 = arith.constant 108 : index
    %c0_92 = arith.constant 0 : index
    %96 = tpu.strided_load %arg13[%c108_91, %c0_92] {strides = array<i32: 2, 1>} : memref<648x16xf32, #tpu.memory_space<vmem>>, vector<8x16xf32>
    %c109_93 = arith.constant 109 : index
    %c0_94 = arith.constant 0 : index
    %97 = tpu.strided_load %arg13[%c109_93, %c0_94] {strides = array<i32: 2, 1>} : memref<648x16xf32, #tpu.memory_space<vmem>>, vector<8x16xf32>
    %c110_95 = arith.constant 110 : index
    %c0_96 = arith.constant 0 : index
    %98 = tpu.strided_load %arg13[%c110_95, %c0_96] {strides = array<i32: 2, 1>} : memref<648x16xf32, #tpu.memory_space<vmem>>, vector<8x16xf32>
    %c126 = arith.constant 126 : index
    %c0_97 = arith.constant 0 : index
    %99 = tpu.strided_load %arg13[%c126, %c0_97] {strides = array<i32: 2, 1>} : memref<648x16xf32, #tpu.memory_space<vmem>>, vector<8x16xf32>
    %c127 = arith.constant 127 : index
    %c0_98 = arith.constant 0 : index
    %100 = tpu.strided_load %arg13[%c127, %c0_98] {strides = array<i32: 2, 1>} : memref<648x16xf32, #tpu.memory_space<vmem>>, vector<8x16xf32>
    %c128 = arith.constant 128 : index
    %c0_99 = arith.constant 0 : index
    %101 = tpu.strided_load %arg13[%c128, %c0_99] {strides = array<i32: 2, 1>} : memref<648x16xf32, #tpu.memory_space<vmem>>, vector<8x16xf32>
    %c144 = arith.constant 144 : index
    %c0_100 = arith.constant 0 : index
    %102 = tpu.strided_load %arg13[%c144, %c0_100] {strides = array<i32: 2, 1>} : memref<648x16xf32, #tpu.memory_space<vmem>>, vector<8x16xf32>
    %c145 = arith.constant 145 : index
    %c0_101 = arith.constant 0 : index
    %103 = tpu.strided_load %arg13[%c145, %c0_101] {strides = array<i32: 2, 1>} : memref<648x16xf32, #tpu.memory_space<vmem>>, vector<8x16xf32>
    %c146 = arith.constant 146 : index
    %c0_102 = arith.constant 0 : index
    %104 = tpu.strided_load %arg13[%c146, %c0_102] {strides = array<i32: 2, 1>} : memref<648x16xf32, #tpu.memory_space<vmem>>, vector<8x16xf32>
    %105 = tpu.concatenate %96, %97, %98, %99, %100, %101, %102, %103, %104 in 1 : vector<8x16xf32>, vector<8x16xf32>, vector<8x16xf32>, vector<8x16xf32>, vector<8x16xf32>, vector<8x16xf32>, vector<8x16xf32>, vector<8x16xf32>, vector<8x16xf32> -> vector<8x144xf32>
    %106 = arith.truncf %105 : vector<8x144xf32> to vector<8x144xbf16>
    %c0_103 = arith.constant 0 : index
    %c0_104 = arith.constant 0 : index
    %107 = vector.load %arg4[%c0_103, %c0_104] : memref<144x32xbf16, #tpu.memory_space<vmem>>, vector<144x32xbf16>
    %cst_105 = arith.constant dense<0.000000e+00> : vector<8x32xf32>
    %108 = tpu.matmul %106, %107, %cst_105 {dimension_numbers = #tpu.dot_dimension_numbers<[1], [0], [0], [1], [0, 0, 1, 1], [], []>} : vector<8x144xbf16>, vector<144x32xbf16>, vector<8x32xf32> -> vector<8x32xf32>
    %109 = vector.broadcast %19 : vector<1x32xf32> to vector<8x32xf32>
    %110 = arith.mulf %108, %109 : vector<8x32xf32>
    %111 = vector.broadcast %20 : vector<1x32xf32> to vector<8x32xf32>
    %112 = arith.addf %110, %111 : vector<8x32xf32>
    %cst_106 = arith.constant 0.000000e+00 : f32
    %113 = vector.broadcast %cst_106 : f32 to vector<8x32xf32>
    %114 = arith.maximumf %112, %113 : vector<8x32xf32>
    %c41 = arith.constant 41 : index
    %c0_107 = arith.constant 0 : index
    %115 = vector.load %arg14[%c41, %c0_107] : memref<208x32xf32, #tpu.memory_space<vmem>>, vector<8x32xf32>
    tpu.vector_store %arg14[%c41, %c0_107], %114 {strides = array<i32>} : memref<208x32xf32, #tpu.memory_space<vmem>>, vector<8x32xf32>,
    %c127_108 = arith.constant 127 : index
    %c0_109 = arith.constant 0 : index
    %116 = tpu.strided_load %arg13[%c127_108, %c0_109] {strides = array<i32: 2, 1>} : memref<648x16xf32, #tpu.memory_space<vmem>>, vector<8x16xf32>
    %117 = arith.truncf %116 : vector<8x16xf32> to vector<8x16xbf16>
    %c0_110 = arith.constant 0 : index
    %c0_111 = arith.constant 0 : index
    %118 = vector.load %arg5[%c0_110, %c0_111] : memref<16x32xbf16, #tpu.memory_space<vmem>>, vector<16x32xbf16>
    %cst_112 = arith.constant dense<0.000000e+00> : vector<8x32xf32>
    %119 = tpu.matmul %117, %118, %cst_112 {dimension_numbers = #tpu.dot_dimension_numbers<[1], [0], [0], [1], [0, 0, 1, 1], [], []>} : vector<8x16xbf16>, vector<16x32xbf16>, vector<8x32xf32> -> vector<8x32xf32>
    %c30 = arith.constant 30 : index
    %c0_113 = arith.constant 0 : index
    %120 = vector.load %arg15[%c30, %c0_113] : memref<184x32xf32, #tpu.memory_space<vmem>>, vector<8x32xf32>
    tpu.vector_store %arg15[%c30, %c0_113], %119 {strides = array<i32>} : memref<184x32xf32, #tpu.memory_space<vmem>>, vector<8x32xf32>,
    %c144_114 = arith.constant 144 : index
    %c0_115 = arith.constant 0 : index
    %121 = tpu.strided_load %arg13[%c144_114, %c0_115] {strides = array<i32: 2, 1>} : memref<648x16xf32, #tpu.memory_space<vmem>>, vector<8x16xf32>
    %c145_116 = arith.constant 145 : index
    %c0_117 = arith.constant 0 : index
    %122 = tpu.strided_load %arg13[%c145_116, %c0_117] {strides = array<i32: 2, 1>} : memref<648x16xf32, #tpu.memory_space<vmem>>, vector<8x16xf32>
    %c146_118 = arith.constant 146 : index
    %c0_119 = arith.constant 0 : index
    %123 = tpu.strided_load %arg13[%c146_118, %c0_119] {strides = array<i32: 2, 1>} : memref<648x16xf32, #tpu.memory_space<vmem>>, vector<8x16xf32>
    %c162 = arith.constant 162 : index
    %c0_120 = arith.constant 0 : index
    %124 = tpu.strided_load %arg13[%c162, %c0_120] {strides = array<i32: 2, 1>} : memref<648x16xf32, #tpu.memory_space<vmem>>, vector<8x16xf32>
    %c163 = arith.constant 163 : index
    %c0_121 = arith.constant 0 : index
    %125 = tpu.strided_load %arg13[%c163, %c0_121] {strides = array<i32: 2, 1>} : memref<648x16xf32, #tpu.memory_space<vmem>>, vector<8x16xf32>
    %c164 = arith.constant 164 : index
    %c0_122 = arith.constant 0 : index
    %126 = tpu.strided_load %arg13[%c164, %c0_122] {strides = array<i32: 2, 1>} : memref<648x16xf32, #tpu.memory_space<vmem>>, vector<8x16xf32>
    %c180 = arith.constant 180 : index
    %c0_123 = arith.constant 0 : index
    %127 = tpu.strided_load %arg13[%c180, %c0_123] {strides = array<i32: 2, 1>} : memref<648x16xf32, #tpu.memory_space<vmem>>, vector<8x16xf32>
    %c181 = arith.constant 181 : index
    %c0_124 = arith.constant 0 : index
    %128 = tpu.strided_load %arg13[%c181, %c0_124] {strides = array<i32: 2, 1>} : memref<648x16xf32, #tpu.memory_space<vmem>>, vector<8x16xf32>
    %c182 = arith.constant 182 : index
    %c0_125 = arith.constant 0 : index
    %129 = tpu.strided_load %arg13[%c182, %c0_125] {strides = array<i32: 2, 1>} : memref<648x16xf32, #tpu.memory_space<vmem>>, vector<8x16xf32>
    %130 = tpu.concatenate %121, %122, %123, %124, %125, %126, %127, %128, %129 in 1 : vector<8x16xf32>, vector<8x16xf32>, vector<8x16xf32>, vector<8x16xf32>, vector<8x16xf32>, vector<8x16xf32>, vector<8x16xf32>, vector<8x16xf32>, vector<8x16xf32> -> vector<8x144xf32>
    %131 = arith.truncf %130 : vector<8x144xf32> to vector<8x144xbf16>
    %c0_126 = arith.constant 0 : index
    %c0_127 = arith.constant 0 : index
    %132 = vector.load %arg4[%c0_126, %c0_127] : memref<144x32xbf16, #tpu.memory_space<vmem>>, vector<144x32xbf16>
    %cst_128 = arith.constant dense<0.000000e+00> : vector<8x32xf32>
    %133 = tpu.matmul %131, %132, %cst_128 {dimension_numbers = #tpu.dot_dimension_numbers<[1], [0], [0], [1], [0, 0, 1, 1], [], []>} : vector<8x144xbf16>, vector<144x32xbf16>, vector<8x32xf32> -> vector<8x32xf32>
    %134 = vector.broadcast %19 : vector<1x32xf32> to vector<8x32xf32>
    %135 = arith.mulf %133, %134 : vector<8x32xf32>
    %136 = vector.broadcast %20 : vector<1x32xf32> to vector<8x32xf32>
    %137 = arith.addf %135, %136 : vector<8x32xf32>
    %cst_129 = arith.constant 0.000000e+00 : f32
    %138 = vector.broadcast %cst_129 : f32 to vector<8x32xf32>
    %139 = arith.maximumf %137, %138 : vector<8x32xf32>
    %c51 = arith.constant 51 : index
    %c0_130 = arith.constant 0 : index
    %140 = vector.load %arg14[%c51, %c0_130] : memref<208x32xf32, #tpu.memory_space<vmem>>, vector<8x32xf32>
    tpu.vector_store %arg14[%c51, %c0_130], %139 {strides = array<i32>} : memref<208x32xf32, #tpu.memory_space<vmem>>, vector<8x32xf32>,
    %c163_131 = arith.constant 163 : index
    %c0_132 = arith.constant 0 : index
    %141 = tpu.strided_load %arg13[%c163_131, %c0_132] {strides = array<i32: 2, 1>} : memref<648x16xf32, #tpu.memory_space<vmem>>, vector<8x16xf32>
    %142 = arith.truncf %141 : vector<8x16xf32> to vector<8x16xbf16>
    %c0_133 = arith.constant 0 : index
    %c0_134 = arith.constant 0 : index
    %143 = vector.load %arg5[%c0_133, %c0_134] : memref<16x32xbf16, #tpu.memory_space<vmem>>, vector<16x32xbf16>
    %cst_135 = arith.constant dense<0.000000e+00> : vector<8x32xf32>
    %144 = tpu.matmul %142, %143, %cst_135 {dimension_numbers = #tpu.dot_dimension_numbers<[1], [0], [0], [1], [0, 0, 1, 1], [], []>} : vector<8x16xbf16>, vector<16x32xbf16>, vector<8x32xf32> -> vector<8x32xf32>
    %c40 = arith.constant 40 : index
    %c0_136 = arith.constant 0 : index
    %145 = vector.load %arg15[%c40, %c0_136] : memref<184x32xf32, #tpu.memory_space<vmem>>, vector<8x32xf32>
    tpu.vector_store %arg15[%c40, %c0_136], %144 {strides = array<i32>} : memref<184x32xf32, #tpu.memory_space<vmem>>, vector<8x32xf32>,
    %c180_137 = arith.constant 180 : index
    %c0_138 = arith.constant 0 : index
    %146 = tpu.strided_load %arg13[%c180_137, %c0_138] {strides = array<i32: 2, 1>} : memref<648x16xf32, #tpu.memory_space<vmem>>, vector<8x16xf32>
    %c181_139 = arith.constant 181 : index
    %c0_140 = arith.constant 0 : index
    %147 = tpu.strided_load %arg13[%c181_139, %c0_140] {strides = array<i32: 2, 1>} : memref<648x16xf32, #tpu.memory_space<vmem>>, vector<8x16xf32>
    %c182_141 = arith.constant 182 : index
    %c0_142 = arith.constant 0 : index
    %148 = tpu.strided_load %arg13[%c182_141, %c0_142] {strides = array<i32: 2, 1>} : memref<648x16xf32, #tpu.memory_space<vmem>>, vector<8x16xf32>
    %c198 = arith.constant 198 : index
    %c0_143 = arith.constant 0 : index
    %149 = tpu.strided_load %arg13[%c198, %c0_143] {strides = array<i32: 2, 1>} : memref<648x16xf32, #tpu.memory_space<vmem>>, vector<8x16xf32>
    %c199 = arith.constant 199 : index
    %c0_144 = arith.constant 0 : index
    %150 = tpu.strided_load %arg13[%c199, %c0_144] {strides = array<i32: 2, 1>} : memref<648x16xf32, #tpu.memory_space<vmem>>, vector<8x16xf32>
    %c200 = arith.constant 200 : index
    %c0_145 = arith.constant 0 : index
    %151 = tpu.strided_load %arg13[%c200, %c0_145] {strides = array<i32: 2, 1>} : memref<648x16xf32, #tpu.memory_space<vmem>>, vector<8x16xf32>
    %c216 = arith.constant 216 : index
    %c0_146 = arith.constant 0 : index
    %152 = tpu.strided_load %arg13[%c216, %c0_146] {strides = array<i32: 2, 1>} : memref<648x16xf32, #tpu.memory_space<vmem>>, vector<8x16xf32>
    %c217 = arith.constant 217 : index
    %c0_147 = arith.constant 0 : index
    %153 = tpu.strided_load %arg13[%c217, %c0_147] {strides = array<i32: 2, 1>} : memref<648x16xf32, #tpu.memory_space<vmem>>, vector<8x16xf32>
    %c218 = arith.constant 218 : index
    %c0_148 = arith.constant 0 : index
    %154 = tpu.strided_load %arg13[%c218, %c0_148] {strides = array<i32: 2, 1>} : memref<648x16xf32, #tpu.memory_space<vmem>>, vector<8x16xf32>
    %155 = tpu.concatenate %146, %147, %148, %149, %150, %151, %152, %153, %154 in 1 : vector<8x16xf32>, vector<8x16xf32>, vector<8x16xf32>, vector<8x16xf32>, vector<8x16xf32>, vector<8x16xf32>, vector<8x16xf32>, vector<8x16xf32>, vector<8x16xf32> -> vector<8x144xf32>
    %156 = arith.truncf %155 : vector<8x144xf32> to vector<8x144xbf16>
    %c0_149 = arith.constant 0 : index
    %c0_150 = arith.constant 0 : index
    %157 = vector.load %arg4[%c0_149, %c0_150] : memref<144x32xbf16, #tpu.memory_space<vmem>>, vector<144x32xbf16>
    %cst_151 = arith.constant dense<0.000000e+00> : vector<8x32xf32>
    %158 = tpu.matmul %156, %157, %cst_151 {dimension_numbers = #tpu.dot_dimension_numbers<[1], [0], [0], [1], [0, 0, 1, 1], [], []>} : vector<8x144xbf16>, vector<144x32xbf16>, vector<8x32xf32> -> vector<8x32xf32>
    %159 = vector.broadcast %19 : vector<1x32xf32> to vector<8x32xf32>
    %160 = arith.mulf %158, %159 : vector<8x32xf32>
    %161 = vector.broadcast %20 : vector<1x32xf32> to vector<8x32xf32>
    %162 = arith.addf %160, %161 : vector<8x32xf32>
    %cst_152 = arith.constant 0.000000e+00 : f32
    %163 = vector.broadcast %cst_152 : f32 to vector<8x32xf32>
    %164 = arith.maximumf %162, %163 : vector<8x32xf32>
    %c61 = arith.constant 61 : index
    %c0_153 = arith.constant 0 : index
    %165 = vector.load %arg14[%c61, %c0_153] : memref<208x32xf32, #tpu.memory_space<vmem>>, vector<8x32xf32>
    tpu.vector_store %arg14[%c61, %c0_153], %164 {strides = array<i32>} : memref<208x32xf32, #tpu.memory_space<vmem>>, vector<8x32xf32>,
    %c199_154 = arith.constant 199 : index
    %c0_155 = arith.constant 0 : index
    %166 = tpu.strided_load %arg13[%c199_154, %c0_155] {strides = array<i32: 2, 1>} : memref<648x16xf32, #tpu.memory_space<vmem>>, vector<8x16xf32>
    %167 = arith.truncf %166 : vector<8x16xf32> to vector<8x16xbf16>
    %c0_156 = arith.constant 0 : index
    %c0_157 = arith.constant 0 : index
    %168 = vector.load %arg5[%c0_156, %c0_157] : memref<16x32xbf16, #tpu.memory_space<vmem>>, vector<16x32xbf16>
    %cst_158 = arith.constant dense<0.000000e+00> : vector<8x32xf32>
    %169 = tpu.matmul %167, %168, %cst_158 {dimension_numbers = #tpu.dot_dimension_numbers<[1], [0], [0], [1], [0, 0, 1, 1], [], []>} : vector<8x16xbf16>, vector<16x32xbf16>, vector<8x32xf32> -> vector<8x32xf32>
    %c50 = arith.constant 50 : index
    %c0_159 = arith.constant 0 : index
    %170 = vector.load %arg15[%c50, %c0_159] : memref<184x32xf32, #tpu.memory_space<vmem>>, vector<8x32xf32>
    tpu.vector_store %arg15[%c50, %c0_159], %169 {strides = array<i32>} : memref<184x32xf32, #tpu.memory_space<vmem>>, vector<8x32xf32>,
    %c216_160 = arith.constant 216 : index
    %c0_161 = arith.constant 0 : index
    %171 = tpu.strided_load %arg13[%c216_160, %c0_161] {strides = array<i32: 2, 1>} : memref<648x16xf32, #tpu.memory_space<vmem>>, vector<8x16xf32>
    %c217_162 = arith.constant 217 : index
    %c0_163 = arith.constant 0 : index
    %172 = tpu.strided_load %arg13[%c217_162, %c0_163] {strides = array<i32: 2, 1>} : memref<648x16xf32, #tpu.memory_space<vmem>>, vector<8x16xf32>
    %c218_164 = arith.constant 218 : index
    %c0_165 = arith.constant 0 : index
    %173 = tpu.strided_load %arg13[%c218_164, %c0_165] {strides = array<i32: 2, 1>} : memref<648x16xf32, #tpu.memory_space<vmem>>, vector<8x16xf32>
    %c234 = arith.constant 234 : index
    %c0_166 = arith.constant 0 : index
    %174 = tpu.strided_load %arg13[%c234, %c0_166] {strides = array<i32: 2, 1>} : memref<648x16xf32, #tpu.memory_space<vmem>>, vector<8x16xf32>
    %c235 = arith.constant 235 : index
    %c0_167 = arith.constant 0 : index
    %175 = tpu.strided_load %arg13[%c235, %c0_167] {strides = array<i32: 2, 1>} : memref<648x16xf32, #tpu.memory_space<vmem>>, vector<8x16xf32>
    %c236 = arith.constant 236 : index
    %c0_168 = arith.constant 0 : index
    %176 = tpu.strided_load %arg13[%c236, %c0_168] {strides = array<i32: 2, 1>} : memref<648x16xf32, #tpu.memory_space<vmem>>, vector<8x16xf32>
    %c252 = arith.constant 252 : index
    %c0_169 = arith.constant 0 : index
    %177 = tpu.strided_load %arg13[%c252, %c0_169] {strides = array<i32: 2, 1>} : memref<648x16xf32, #tpu.memory_space<vmem>>, vector<8x16xf32>
    %c253 = arith.constant 253 : index
    %c0_170 = arith.constant 0 : index
    %178 = tpu.strided_load %arg13[%c253, %c0_170] {strides = array<i32: 2, 1>} : memref<648x16xf32, #tpu.memory_space<vmem>>, vector<8x16xf32>
    %c254 = arith.constant 254 : index
    %c0_171 = arith.constant 0 : index
    %179 = tpu.strided_load %arg13[%c254, %c0_171] {strides = array<i32: 2, 1>} : memref<648x16xf32, #tpu.memory_space<vmem>>, vector<8x16xf32>
    %180 = tpu.concatenate %171, %172, %173, %174, %175, %176, %177, %178, %179 in 1 : vector<8x16xf32>, vector<8x16xf32>, vector<8x16xf32>, vector<8x16xf32>, vector<8x16xf32>, vector<8x16xf32>, vector<8x16xf32>, vector<8x16xf32>, vector<8x16xf32> -> vector<8x144xf32>
    %181 = arith.truncf %180 : vector<8x144xf32> to vector<8x144xbf16>
    %c0_172 = arith.constant 0 : index
    %c0_173 = arith.constant 0 : index
    %182 = vector.load %arg4[%c0_172, %c0_173] : memref<144x32xbf16, #tpu.memory_space<vmem>>, vector<144x32xbf16>
    %cst_174 = arith.constant dense<0.000000e+00> : vector<8x32xf32>
    %183 = tpu.matmul %181, %182, %cst_174 {dimension_numbers = #tpu.dot_dimension_numbers<[1], [0], [0], [1], [0, 0, 1, 1], [], []>} : vector<8x144xbf16>, vector<144x32xbf16>, vector<8x32xf32> -> vector<8x32xf32>
    %184 = vector.broadcast %19 : vector<1x32xf32> to vector<8x32xf32>
    %185 = arith.mulf %183, %184 : vector<8x32xf32>
    %186 = vector.broadcast %20 : vector<1x32xf32> to vector<8x32xf32>
    %187 = arith.addf %185, %186 : vector<8x32xf32>
    %cst_175 = arith.constant 0.000000e+00 : f32
    %188 = vector.broadcast %cst_175 : f32 to vector<8x32xf32>
    %189 = arith.maximumf %187, %188 : vector<8x32xf32>
    %c71 = arith.constant 71 : index
    %c0_176 = arith.constant 0 : index
    %190 = vector.load %arg14[%c71, %c0_176] : memref<208x32xf32, #tpu.memory_space<vmem>>, vector<8x32xf32>
    tpu.vector_store %arg14[%c71, %c0_176], %189 {strides = array<i32>} : memref<208x32xf32, #tpu.memory_space<vmem>>, vector<8x32xf32>,
    %c235_177 = arith.constant 235 : index
    %c0_178 = arith.constant 0 : index
    %191 = tpu.strided_load %arg13[%c235_177, %c0_178] {strides = array<i32: 2, 1>} : memref<648x16xf32, #tpu.memory_space<vmem>>, vector<8x16xf32>
    %192 = arith.truncf %191 : vector<8x16xf32> to vector<8x16xbf16>
    %c0_179 = arith.constant 0 : index
    %c0_180 = arith.constant 0 : index
    %193 = vector.load %arg5[%c0_179, %c0_180] : memref<16x32xbf16, #tpu.memory_space<vmem>>, vector<16x32xbf16>
    %cst_181 = arith.constant dense<0.000000e+00> : vector<8x32xf32>
    %194 = tpu.matmul %192, %193, %cst_181 {dimension_numbers = #tpu.dot_dimension_numbers<[1], [0], [0], [1], [0, 0, 1, 1], [], []>} : vector<8x16xbf16>, vector<16x32xbf16>, vector<8x32xf32> -> vector<8x32xf32>
    %c60 = arith.constant 60 : index
    %c0_182 = arith.constant 0 : index
    %195 = vector.load %arg15[%c60, %c0_182] : memref<184x32xf32, #tpu.memory_space<vmem>>, vector<8x32xf32>
    tpu.vector_store %arg15[%c60, %c0_182], %194 {strides = array<i32>} : memref<184x32xf32, #tpu.memory_space<vmem>>, vector<8x32xf32>,
    %c252_183 = arith.constant 252 : index
    %c0_184 = arith.constant 0 : index
    %196 = tpu.strided_load %arg13[%c252_183, %c0_184] {strides = array<i32: 2, 1>} : memref<648x16xf32, #tpu.memory_space<vmem>>, vector<8x16xf32>
    %c253_185 = arith.constant 253 : index
    %c0_186 = arith.constant 0 : index
    %197 = tpu.strided_load %arg13[%c253_185, %c0_186] {strides = array<i32: 2, 1>} : memref<648x16xf32, #tpu.memory_space<vmem>>, vector<8x16xf32>
    %c254_187 = arith.constant 254 : index
    %c0_188 = arith.constant 0 : index
    %198 = tpu.strided_load %arg13[%c254_187, %c0_188] {strides = array<i32: 2, 1>} : memref<648x16xf32, #tpu.memory_space<vmem>>, vector<8x16xf32>
    %c270 = arith.constant 270 : index
    %c0_189 = arith.constant 0 : index
    %199 = tpu.strided_load %arg13[%c270, %c0_189] {strides = array<i32: 2, 1>} : memref<648x16xf32, #tpu.memory_space<vmem>>, vector<8x16xf32>
    %c271 = arith.constant 271 : index
    %c0_190 = arith.constant 0 : index
    %200 = tpu.strided_load %arg13[%c271, %c0_190] {strides = array<i32: 2, 1>} : memref<648x16xf32, #tpu.memory_space<vmem>>, vector<8x16xf32>
    %c272 = arith.constant 272 : index
    %c0_191 = arith.constant 0 : index
    %201 = tpu.strided_load %arg13[%c272, %c0_191] {strides = array<i32: 2, 1>} : memref<648x16xf32, #tpu.memory_space<vmem>>, vector<8x16xf32>
    %c288 = arith.constant 288 : index
    %c0_192 = arith.constant 0 : index
    %202 = tpu.strided_load %arg13[%c288, %c0_192] {strides = array<i32: 2, 1>} : memref<648x16xf32, #tpu.memory_space<vmem>>, vector<8x16xf32>
    %c289 = arith.constant 289 : index
    %c0_193 = arith.constant 0 : index
    %203 = tpu.strided_load %arg13[%c289, %c0_193] {strides = array<i32: 2, 1>} : memref<648x16xf32, #tpu.memory_space<vmem>>, vector<8x16xf32>
    %c290 = arith.constant 290 : index
    %c0_194 = arith.constant 0 : index
    %204 = tpu.strided_load %arg13[%c290, %c0_194] {strides = array<i32: 2, 1>} : memref<648x16xf32, #tpu.memory_space<vmem>>, vector<8x16xf32>
    %205 = tpu.concatenate %196, %197, %198, %199, %200, %201, %202, %203, %204 in 1 : vector<8x16xf32>, vector<8x16xf32>, vector<8x16xf32>, vector<8x16xf32>, vector<8x16xf32>, vector<8x16xf32>, vector<8x16xf32>, vector<8x16xf32>, vector<8x16xf32> -> vector<8x144xf32>
    %206 = arith.truncf %205 : vector<8x144xf32> to vector<8x144xbf16>
    %c0_195 = arith.constant 0 : index
    %c0_196 = arith.constant 0 : index
    %207 = vector.load %arg4[%c0_195, %c0_196] : memref<144x32xbf16, #tpu.memory_space<vmem>>, vector<144x32xbf16>
    %cst_197 = arith.constant dense<0.000000e+00> : vector<8x32xf32>
    %208 = tpu.matmul %206, %207, %cst_197 {dimension_numbers = #tpu.dot_dimension_numbers<[1], [0], [0], [1], [0, 0, 1, 1], [], []>} : vector<8x144xbf16>, vector<144x32xbf16>, vector<8x32xf32> -> vector<8x32xf32>
    %209 = vector.broadcast %19 : vector<1x32xf32> to vector<8x32xf32>
    %210 = arith.mulf %208, %209 : vector<8x32xf32>
    %211 = vector.broadcast %20 : vector<1x32xf32> to vector<8x32xf32>
    %212 = arith.addf %210, %211 : vector<8x32xf32>
    %cst_198 = arith.constant 0.000000e+00 : f32
    %213 = vector.broadcast %cst_198 : f32 to vector<8x32xf32>
    %214 = arith.maximumf %212, %213 : vector<8x32xf32>
    %c81 = arith.constant 81 : index
    %c0_199 = arith.constant 0 : index
    %215 = vector.load %arg14[%c81, %c0_199] : memref<208x32xf32, #tpu.memory_space<vmem>>, vector<8x32xf32>
    tpu.vector_store %arg14[%c81, %c0_199], %214 {strides = array<i32>} : memref<208x32xf32, #tpu.memory_space<vmem>>, vector<8x32xf32>,
    %c271_200 = arith.constant 271 : index
    %c0_201 = arith.constant 0 : index
    %216 = tpu.strided_load %arg13[%c271_200, %c0_201] {strides = array<i32: 2, 1>} : memref<648x16xf32, #tpu.memory_space<vmem>>, vector<8x16xf32>
    %217 = arith.truncf %216 : vector<8x16xf32> to vector<8x16xbf16>
    %c0_202 = arith.constant 0 : index
    %c0_203 = arith.constant 0 : index
    %218 = vector.load %arg5[%c0_202, %c0_203] : memref<16x32xbf16, #tpu.memory_space<vmem>>, vector<16x32xbf16>
    %cst_204 = arith.constant dense<0.000000e+00> : vector<8x32xf32>
    %219 = tpu.matmul %217, %218, %cst_204 {dimension_numbers = #tpu.dot_dimension_numbers<[1], [0], [0], [1], [0, 0, 1, 1], [], []>} : vector<8x16xbf16>, vector<16x32xbf16>, vector<8x32xf32> -> vector<8x32xf32>
    %c70 = arith.constant 70 : index
    %c0_205 = arith.constant 0 : index
    %220 = vector.load %arg15[%c70, %c0_205] : memref<184x32xf32, #tpu.memory_space<vmem>>, vector<8x32xf32>
    tpu.vector_store %arg15[%c70, %c0_205], %219 {strides = array<i32>} : memref<184x32xf32, #tpu.memory_space<vmem>>, vector<8x32xf32>,
    %c324 = arith.constant 324 : index
    %c0_206 = arith.constant 0 : index
    %221 = tpu.strided_load %arg13[%c324, %c0_206] {strides = array<i32: 2, 1>} : memref<648x16xf32, #tpu.memory_space<vmem>>, vector<8x16xf32>
    %c325 = arith.constant 325 : index
    %c0_207 = arith.constant 0 : index
    %222 = tpu.strided_load %arg13[%c325, %c0_207] {strides = array<i32: 2, 1>} : memref<648x16xf32, #tpu.memory_space<vmem>>, vector<8x16xf32>
    %c326 = arith.constant 326 : index
    %c0_208 = arith.constant 0 : index
    %223 = tpu.strided_load %arg13[%c326, %c0_208] {strides = array<i32: 2, 1>} : memref<648x16xf32, #tpu.memory_space<vmem>>, vector<8x16xf32>
    %c342 = arith.constant 342 : index
    %c0_209 = arith.constant 0 : index
    %224 = tpu.strided_load %arg13[%c342, %c0_209] {strides = array<i32: 2, 1>} : memref<648x16xf32, #tpu.memory_space<vmem>>, vector<8x16xf32>
    %c343 = arith.constant 343 : index
    %c0_210 = arith.constant 0 : index
    %225 = tpu.strided_load %arg13[%c343, %c0_210] {strides = array<i32: 2, 1>} : memref<648x16xf32, #tpu.memory_space<vmem>>, vector<8x16xf32>
    %c344 = arith.constant 344 : index
    %c0_211 = arith.constant 0 : index
    %226 = tpu.strided_load %arg13[%c344, %c0_211] {strides = array<i32: 2, 1>} : memref<648x16xf32, #tpu.memory_space<vmem>>, vector<8x16xf32>
    %c360 = arith.constant 360 : index
    %c0_212 = arith.constant 0 : index
    %227 = tpu.strided_load %arg13[%c360, %c0_212] {strides = array<i32: 2, 1>} : memref<648x16xf32, #tpu.memory_space<vmem>>, vector<8x16xf32>
    %c361 = arith.constant 361 : index
    %c0_213 = arith.constant 0 : index
    %228 = tpu.strided_load %arg13[%c361, %c0_213] {strides = array<i32: 2, 1>} : memref<648x16xf32, #tpu.memory_space<vmem>>, vector<8x16xf32>
    %c362 = arith.constant 362 : index
    %c0_214 = arith.constant 0 : index
    %229 = tpu.strided_load %arg13[%c362, %c0_214] {strides = array<i32: 2, 1>} : memref<648x16xf32, #tpu.memory_space<vmem>>, vector<8x16xf32>
    %230 = tpu.concatenate %221, %222, %223, %224, %225, %226, %227, %228, %229 in 1 : vector<8x16xf32>, vector<8x16xf32>, vector<8x16xf32>, vector<8x16xf32>, vector<8x16xf32>, vector<8x16xf32>, vector<8x16xf32>, vector<8x16xf32>, vector<8x16xf32> -> vector<8x144xf32>
    %231 = arith.truncf %230 : vector<8x144xf32> to vector<8x144xbf16>
    %c0_215 = arith.constant 0 : index
    %c0_216 = arith.constant 0 : index
    %232 = vector.load %arg4[%c0_215, %c0_216] : memref<144x32xbf16, #tpu.memory_space<vmem>>, vector<144x32xbf16>
    %cst_217 = arith.constant dense<0.000000e+00> : vector<8x32xf32>
    %233 = tpu.matmul %231, %232, %cst_217 {dimension_numbers = #tpu.dot_dimension_numbers<[1], [0], [0], [1], [0, 0, 1, 1], [], []>} : vector<8x144xbf16>, vector<144x32xbf16>, vector<8x32xf32> -> vector<8x32xf32>
    %234 = vector.broadcast %19 : vector<1x32xf32> to vector<8x32xf32>
    %235 = arith.mulf %233, %234 : vector<8x32xf32>
    %236 = vector.broadcast %20 : vector<1x32xf32> to vector<8x32xf32>
    %237 = arith.addf %235, %236 : vector<8x32xf32>
    %cst_218 = arith.constant 0.000000e+00 : f32
    %238 = vector.broadcast %cst_218 : f32 to vector<8x32xf32>
    %239 = arith.maximumf %237, %238 : vector<8x32xf32>
    %c111 = arith.constant 111 : index
    %c0_219 = arith.constant 0 : index
    %240 = vector.load %arg14[%c111, %c0_219] : memref<208x32xf32, #tpu.memory_space<vmem>>, vector<8x32xf32>
    tpu.vector_store %arg14[%c111, %c0_219], %239 {strides = array<i32>} : memref<208x32xf32, #tpu.memory_space<vmem>>, vector<8x32xf32>,
    %c343_220 = arith.constant 343 : index
    %c0_221 = arith.constant 0 : index
    %241 = tpu.strided_load %arg13[%c343_220, %c0_221] {strides = array<i32: 2, 1>} : memref<648x16xf32, #tpu.memory_space<vmem>>, vector<8x16xf32>
    %242 = arith.truncf %241 : vector<8x16xf32> to vector<8x16xbf16>
    %c0_222 = arith.constant 0 : index
    %c0_223 = arith.constant 0 : index
    %243 = vector.load %arg5[%c0_222, %c0_223] : memref<16x32xbf16, #tpu.memory_space<vmem>>, vector<16x32xbf16>
    %cst_224 = arith.constant dense<0.000000e+00> : vector<8x32xf32>
    %244 = tpu.matmul %242, %243, %cst_224 {dimension_numbers = #tpu.dot_dimension_numbers<[1], [0], [0], [1], [0, 0, 1, 1], [], []>} : vector<8x16xbf16>, vector<16x32xbf16>, vector<8x32xf32> -> vector<8x32xf32>
    %c100 = arith.constant 100 : index
    %c0_225 = arith.constant 0 : index
    %245 = vector.load %arg15[%c100, %c0_225] : memref<184x32xf32, #tpu.memory_space<vmem>>, vector<8x32xf32>
    tpu.vector_store %arg15[%c100, %c0_225], %244 {strides = array<i32>} : memref<184x32xf32, #tpu.memory_space<vmem>>, vector<8x32xf32>,
    %c360_226 = arith.constant 360 : index
    %c0_227 = arith.constant 0 : index
    %246 = tpu.strided_load %arg13[%c360_226, %c0_227] {strides = array<i32: 2, 1>} : memref<648x16xf32, #tpu.memory_space<vmem>>, vector<8x16xf32>
    %c361_228 = arith.constant 361 : index
    %c0_229 = arith.constant 0 : index
    %247 = tpu.strided_load %arg13[%c361_228, %c0_229] {strides = array<i32: 2, 1>} : memref<648x16xf32, #tpu.memory_space<vmem>>, vector<8x16xf32>
    %c362_230 = arith.constant 362 : index
    %c0_231 = arith.constant 0 : index
    %248 = tpu.strided_load %arg13[%c362_230, %c0_231] {strides = array<i32: 2, 1>} : memref<648x16xf32, #tpu.memory_space<vmem>>, vector<8x16xf32>
    %c378 = arith.constant 378 : index
    %c0_232 = arith.constant 0 : index
    %249 = tpu.strided_load %arg13[%c378, %c0_232] {strides = array<i32: 2, 1>} : memref<648x16xf32, #tpu.memory_space<vmem>>, vector<8x16xf32>
    %c379 = arith.constant 379 : index
    %c0_233 = arith.constant 0 : index
    %250 = tpu.strided_load %arg13[%c379, %c0_233] {strides = array<i32: 2, 1>} : memref<648x16xf32, #tpu.memory_space<vmem>>, vector<8x16xf32>
    %c380 = arith.constant 380 : index
    %c0_234 = arith.constant 0 : index
    %251 = tpu.strided_load %arg13[%c380, %c0_234] {strides = array<i32: 2, 1>} : memref<648x16xf32, #tpu.memory_space<vmem>>, vector<8x16xf32>
    %c396 = arith.constant 396 : index
    %c0_235 = arith.constant 0 : index
    %252 = tpu.strided_load %arg13[%c396, %c0_235] {strides = array<i32: 2, 1>} : memref<648x16xf32, #tpu.memory_space<vmem>>, vector<8x16xf32>
    %c397 = arith.constant 397 : index
    %c0_236 = arith.constant 0 : index
    %253 = tpu.strided_load %arg13[%c397, %c0_236] {strides = array<i32: 2, 1>} : memref<648x16xf32, #tpu.memory_space<vmem>>, vector<8x16xf32>
    %c398 = arith.constant 398 : index
    %c0_237 = arith.constant 0 : index
    %254 = tpu.strided_load %arg13[%c398, %c0_237] {strides = array<i32: 2, 1>} : memref<648x16xf32, #tpu.memory_space<vmem>>, vector<8x16xf32>
    %255 = tpu.concatenate %246, %247, %248, %249, %250, %251, %252, %253, %254 in 1 : vector<8x16xf32>, vector<8x16xf32>, vector<8x16xf32>, vector<8x16xf32>, vector<8x16xf32>, vector<8x16xf32>, vector<8x16xf32>, vector<8x16xf32>, vector<8x16xf32> -> vector<8x144xf32>
    %256 = arith.truncf %255 : vector<8x144xf32> to vector<8x144xbf16>
    %c0_238 = arith.constant 0 : index
    %c0_239 = arith.constant 0 : index
    %257 = vector.load %arg4[%c0_238, %c0_239] : memref<144x32xbf16, #tpu.memory_space<vmem>>, vector<144x32xbf16>
    %cst_240 = arith.constant dense<0.000000e+00> : vector<8x32xf32>
    %258 = tpu.matmul %256, %257, %cst_240 {dimension_numbers = #tpu.dot_dimension_numbers<[1], [0], [0], [1], [0, 0, 1, 1], [], []>} : vector<8x144xbf16>, vector<144x32xbf16>, vector<8x32xf32> -> vector<8x32xf32>
    %259 = vector.broadcast %19 : vector<1x32xf32> to vector<8x32xf32>
    %260 = arith.mulf %258, %259 : vector<8x32xf32>
    %261 = vector.broadcast %20 : vector<1x32xf32> to vector<8x32xf32>
    %262 = arith.addf %260, %261 : vector<8x32xf32>
    %cst_241 = arith.constant 0.000000e+00 : f32
    %263 = vector.broadcast %cst_241 : f32 to vector<8x32xf32>
    %264 = arith.maximumf %262, %263 : vector<8x32xf32>
    %c121 = arith.constant 121 : index
    %c0_242 = arith.constant 0 : index
    %265 = vector.load %arg14[%c121, %c0_242] : memref<208x32xf32, #tpu.memory_space<vmem>>, vector<8x32xf32>
    tpu.vector_store %arg14[%c121, %c0_242], %264 {strides = array<i32>} : memref<208x32xf32, #tpu.memory_space<vmem>>, vector<8x32xf32>,
    %c379_243 = arith.constant 379 : index
    %c0_244 = arith.constant 0 : index
    %266 = tpu.strided_load %arg13[%c379_243, %c0_244] {strides = array<i32: 2, 1>} : memref<648x16xf32, #tpu.memory_space<vmem>>, vector<8x16xf32>
    %267 = arith.truncf %266 : vector<8x16xf32> to vector<8x16xbf16>
    %c0_245 = arith.constant 0 : index
    %c0_246 = arith.constant 0 : index
    %268 = vector.load %arg5[%c0_245, %c0_246] : memref<16x32xbf16, #tpu.memory_space<vmem>>, vector<16x32xbf16>
    %cst_247 = arith.constant dense<0.000000e+00> : vector<8x32xf32>
    %269 = tpu.matmul %267, %268, %cst_247 {dimension_numbers = #tpu.dot_dimension_numbers<[1], [0], [0], [1], [0, 0, 1, 1], [], []>} : vector<8x16xbf16>, vector<16x32xbf16>, vector<8x32xf32> -> vector<8x32xf32>
    %c110_248 = arith.constant 110 : index
    %c0_249 = arith.constant 0 : index
    %270 = vector.load %arg15[%c110_248, %c0_249] : memref<184x32xf32, #tpu.memory_space<vmem>>, vector<8x32xf32>
    tpu.vector_store %arg15[%c110_248, %c0_249], %269 {strides = array<i32>} : memref<184x32xf32, #tpu.memory_space<vmem>>, vector<8x32xf32>,
    %c396_250 = arith.constant 396 : index
    %c0_251 = arith.constant 0 : index
    %271 = tpu.strided_load %arg13[%c396_250, %c0_251] {strides = array<i32: 2, 1>} : memref<648x16xf32, #tpu.memory_space<vmem>>, vector<8x16xf32>
    %c397_252 = arith.constant 397 : index
    %c0_253 = arith.constant 0 : index
    %272 = tpu.strided_load %arg13[%c397_252, %c0_253] {strides = array<i32: 2, 1>} : memref<648x16xf32, #tpu.memory_space<vmem>>, vector<8x16xf32>
    %c398_254 = arith.constant 398 : index
    %c0_255 = arith.constant 0 : index
    %273 = tpu.strided_load %arg13[%c398_254, %c0_255] {strides = array<i32: 2, 1>} : memref<648x16xf32, #tpu.memory_space<vmem>>, vector<8x16xf32>
    %c414 = arith.constant 414 : index
    %c0_256 = arith.constant 0 : index
    %274 = tpu.strided_load %arg13[%c414, %c0_256] {strides = array<i32: 2, 1>} : memref<648x16xf32, #tpu.memory_space<vmem>>, vector<8x16xf32>
    %c415 = arith.constant 415 : index
    %c0_257 = arith.constant 0 : index
    %275 = tpu.strided_load %arg13[%c415, %c0_257] {strides = array<i32: 2, 1>} : memref<648x16xf32, #tpu.memory_space<vmem>>, vector<8x16xf32>
    %c416 = arith.constant 416 : index
    %c0_258 = arith.constant 0 : index
    %276 = tpu.strided_load %arg13[%c416, %c0_258] {strides = array<i32: 2, 1>} : memref<648x16xf32, #tpu.memory_space<vmem>>, vector<8x16xf32>
    %c432 = arith.constant 432 : index
    %c0_259 = arith.constant 0 : index
    %277 = tpu.strided_load %arg13[%c432, %c0_259] {strides = array<i32: 2, 1>} : memref<648x16xf32, #tpu.memory_space<vmem>>, vector<8x16xf32>
    %c433 = arith.constant 433 : index
    %c0_260 = arith.constant 0 : index
    %278 = tpu.strided_load %arg13[%c433, %c0_260] {strides = array<i32: 2, 1>} : memref<648x16xf32, #tpu.memory_space<vmem>>, vector<8x16xf32>
    %c434 = arith.constant 434 : index
    %c0_261 = arith.constant 0 : index
    %279 = tpu.strided_load %arg13[%c434, %c0_261] {strides = array<i32: 2, 1>} : memref<648x16xf32, #tpu.memory_space<vmem>>, vector<8x16xf32>
    %280 = tpu.concatenate %271, %272, %273, %274, %275, %276, %277, %278, %279 in 1 : vector<8x16xf32>, vector<8x16xf32>, vector<8x16xf32>, vector<8x16xf32>, vector<8x16xf32>, vector<8x16xf32>, vector<8x16xf32>, vector<8x16xf32>, vector<8x16xf32> -> vector<8x144xf32>
    %281 = arith.truncf %280 : vector<8x144xf32> to vector<8x144xbf16>
    %c0_262 = arith.constant 0 : index
    %c0_263 = arith.constant 0 : index
    %282 = vector.load %arg4[%c0_262, %c0_263] : memref<144x32xbf16, #tpu.memory_space<vmem>>, vector<144x32xbf16>
    %cst_264 = arith.constant dense<0.000000e+00> : vector<8x32xf32>
    %283 = tpu.matmul %281, %282, %cst_264 {dimension_numbers = #tpu.dot_dimension_numbers<[1], [0], [0], [1], [0, 0, 1, 1], [], []>} : vector<8x144xbf16>, vector<144x32xbf16>, vector<8x32xf32> -> vector<8x32xf32>
    %284 = vector.broadcast %19 : vector<1x32xf32> to vector<8x32xf32>
    %285 = arith.mulf %283, %284 : vector<8x32xf32>
    %286 = vector.broadcast %20 : vector<1x32xf32> to vector<8x32xf32>
    %287 = arith.addf %285, %286 : vector<8x32xf32>
    %cst_265 = arith.constant 0.000000e+00 : f32
    %288 = vector.broadcast %cst_265 : f32 to vector<8x32xf32>
    %289 = arith.maximumf %287, %288 : vector<8x32xf32>
    %c131 = arith.constant 131 : index
    %c0_266 = arith.constant 0 : index
    %290 = vector.load %arg14[%c131, %c0_266] : memref<208x32xf32, #tpu.memory_space<vmem>>, vector<8x32xf32>
    tpu.vector_store %arg14[%c131, %c0_266], %289 {strides = array<i32>} : memref<208x32xf32, #tpu.memory_space<vmem>>, vector<8x32xf32>,
    %c415_267 = arith.constant 415 : index
    %c0_268 = arith.constant 0 : index
    %291 = tpu.strided_load %arg13[%c415_267, %c0_268] {strides = array<i32: 2, 1>} : memref<648x16xf32, #tpu.memory_space<vmem>>, vector<8x16xf32>
    %292 = arith.truncf %291 : vector<8x16xf32> to vector<8x16xbf16>
    %c0_269 = arith.constant 0 : index
    %c0_270 = arith.constant 0 : index
    %293 = vector.load %arg5[%c0_269, %c0_270] : memref<16x32xbf16, #tpu.memory_space<vmem>>, vector<16x32xbf16>
    %cst_271 = arith.constant dense<0.000000e+00> : vector<8x32xf32>
    %294 = tpu.matmul %292, %293, %cst_271 {dimension_numbers = #tpu.dot_dimension_numbers<[1], [0], [0], [1], [0, 0, 1, 1], [], []>} : vector<8x16xbf16>, vector<16x32xbf16>, vector<8x32xf32> -> vector<8x32xf32>
    %c120 = arith.constant 120 : index
    %c0_272 = arith.constant 0 : index
    %295 = vector.load %arg15[%c120, %c0_272] : memref<184x32xf32, #tpu.memory_space<vmem>>, vector<8x32xf32>
    tpu.vector_store %arg15[%c120, %c0_272], %294 {strides = array<i32>} : memref<184x32xf32, #tpu.memory_space<vmem>>, vector<8x32xf32>,
    %c432_273 = arith.constant 432 : index
    %c0_274 = arith.constant 0 : index
    %296 = tpu.strided_load %arg13[%c432_273, %c0_274] {strides = array<i32: 2, 1>} : memref<648x16xf32, #tpu.memory_space<vmem>>, vector<8x16xf32>
    %c433_275 = arith.constant 433 : index
    %c0_276 = arith.constant 0 : index
    %297 = tpu.strided_load %arg13[%c433_275, %c0_276] {strides = array<i32: 2, 1>} : memref<648x16xf32, #tpu.memory_space<vmem>>, vector<8x16xf32>
    %c434_277 = arith.constant 434 : index
    %c0_278 = arith.constant 0 : index
    %298 = tpu.strided_load %arg13[%c434_277, %c0_278] {strides = array<i32: 2, 1>} : memref<648x16xf32, #tpu.memory_space<vmem>>, vector<8x16xf32>
    %c450 = arith.constant 450 : index
    %c0_279 = arith.constant 0 : index
    %299 = tpu.strided_load %arg13[%c450, %c0_279] {strides = array<i32: 2, 1>} : memref<648x16xf32, #tpu.memory_space<vmem>>, vector<8x16xf32>
    %c451 = arith.constant 451 : index
    %c0_280 = arith.constant 0 : index
    %300 = tpu.strided_load %arg13[%c451, %c0_280] {strides = array<i32: 2, 1>} : memref<648x16xf32, #tpu.memory_space<vmem>>, vector<8x16xf32>
    %c452 = arith.constant 452 : index
    %c0_281 = arith.constant 0 : index
    %301 = tpu.strided_load %arg13[%c452, %c0_281] {strides = array<i32: 2, 1>} : memref<648x16xf32, #tpu.memory_space<vmem>>, vector<8x16xf32>
    %c468 = arith.constant 468 : index
    %c0_282 = arith.constant 0 : index
    %302 = tpu.strided_load %arg13[%c468, %c0_282] {strides = array<i32: 2, 1>} : memref<648x16xf32, #tpu.memory_space<vmem>>, vector<8x16xf32>
    %c469 = arith.constant 469 : index
    %c0_283 = arith.constant 0 : index
    %303 = tpu.strided_load %arg13[%c469, %c0_283] {strides = array<i32: 2, 1>} : memref<648x16xf32, #tpu.memory_space<vmem>>, vector<8x16xf32>
    %c470 = arith.constant 470 : index
    %c0_284 = arith.constant 0 : index
    %304 = tpu.strided_load %arg13[%c470, %c0_284] {strides = array<i32: 2, 1>} : memref<648x16xf32, #tpu.memory_space<vmem>>, vector<8x16xf32>
    %305 = tpu.concatenate %296, %297, %298, %299, %300, %301, %302, %303, %304 in 1 : vector<8x16xf32>, vector<8x16xf32>, vector<8x16xf32>, vector<8x16xf32>, vector<8x16xf32>, vector<8x16xf32>, vector<8x16xf32>, vector<8x16xf32>, vector<8x16xf32> -> vector<8x144xf32>
    %306 = arith.truncf %305 : vector<8x144xf32> to vector<8x144xbf16>
    %c0_285 = arith.constant 0 : index
    %c0_286 = arith.constant 0 : index
    %307 = vector.load %arg4[%c0_285, %c0_286] : memref<144x32xbf16, #tpu.memory_space<vmem>>, vector<144x32xbf16>
    %cst_287 = arith.constant dense<0.000000e+00> : vector<8x32xf32>
    %308 = tpu.matmul %306, %307, %cst_287 {dimension_numbers = #tpu.dot_dimension_numbers<[1], [0], [0], [1], [0, 0, 1, 1], [], []>} : vector<8x144xbf16>, vector<144x32xbf16>, vector<8x32xf32> -> vector<8x32xf32>
    %309 = vector.broadcast %19 : vector<1x32xf32> to vector<8x32xf32>
    %310 = arith.mulf %308, %309 : vector<8x32xf32>
    %311 = vector.broadcast %20 : vector<1x32xf32> to vector<8x32xf32>
    %312 = arith.addf %310, %311 : vector<8x32xf32>
    %cst_288 = arith.constant 0.000000e+00 : f32
    %313 = vector.broadcast %cst_288 : f32 to vector<8x32xf32>
    %314 = arith.maximumf %312, %313 : vector<8x32xf32>
    %c141 = arith.constant 141 : index
    %c0_289 = arith.constant 0 : index
    %315 = vector.load %arg14[%c141, %c0_289] : memref<208x32xf32, #tpu.memory_space<vmem>>, vector<8x32xf32>
    tpu.vector_store %arg14[%c141, %c0_289], %314 {strides = array<i32>} : memref<208x32xf32, #tpu.memory_space<vmem>>, vector<8x32xf32>,
    %c451_290 = arith.constant 451 : index
    %c0_291 = arith.constant 0 : index
    %316 = tpu.strided_load %arg13[%c451_290, %c0_291] {strides = array<i32: 2, 1>} : memref<648x16xf32, #tpu.memory_space<vmem>>, vector<8x16xf32>
    %317 = arith.truncf %316 : vector<8x16xf32> to vector<8x16xbf16>
    %c0_292 = arith.constant 0 : index
    %c0_293 = arith.constant 0 : index
    %318 = vector.load %arg5[%c0_292, %c0_293] : memref<16x32xbf16, #tpu.memory_space<vmem>>, vector<16x32xbf16>
    %cst_294 = arith.constant dense<0.000000e+00> : vector<8x32xf32>
    %319 = tpu.matmul %317, %318, %cst_294 {dimension_numbers = #tpu.dot_dimension_numbers<[1], [0], [0], [1], [0, 0, 1, 1], [], []>} : vector<8x16xbf16>, vector<16x32xbf16>, vector<8x32xf32> -> vector<8x32xf32>
    %c130 = arith.constant 130 : index
    %c0_295 = arith.constant 0 : index
    %320 = vector.load %arg15[%c130, %c0_295] : memref<184x32xf32, #tpu.memory_space<vmem>>, vector<8x32xf32>
    tpu.vector_store %arg15[%c130, %c0_295], %319 {strides = array<i32>} : memref<184x32xf32, #tpu.memory_space<vmem>>, vector<8x32xf32>,
    %c468_296 = arith.constant 468 : index
    %c0_297 = arith.constant 0 : index
    %321 = tpu.strided_load %arg13[%c468_296, %c0_297] {strides = array<i32: 2, 1>} : memref<648x16xf32, #tpu.memory_space<vmem>>, vector<8x16xf32>
    %c469_298 = arith.constant 469 : index
    %c0_299 = arith.constant 0 : index
    %322 = tpu.strided_load %arg13[%c469_298, %c0_299] {strides = array<i32: 2, 1>} : memref<648x16xf32, #tpu.memory_space<vmem>>, vector<8x16xf32>
    %c470_300 = arith.constant 470 : index
    %c0_301 = arith.constant 0 : index
    %323 = tpu.strided_load %arg13[%c470_300, %c0_301] {strides = array<i32: 2, 1>} : memref<648x16xf32, #tpu.memory_space<vmem>>, vector<8x16xf32>
    %c486 = arith.constant 486 : index
    %c0_302 = arith.constant 0 : index
    %324 = tpu.strided_load %arg13[%c486, %c0_302] {strides = array<i32: 2, 1>} : memref<648x16xf32, #tpu.memory_space<vmem>>, vector<8x16xf32>
    %c487 = arith.constant 487 : index
    %c0_303 = arith.constant 0 : index
    %325 = tpu.strided_load %arg13[%c487, %c0_303] {strides = array<i32: 2, 1>} : memref<648x16xf32, #tpu.memory_space<vmem>>, vector<8x16xf32>
    %c488 = arith.constant 488 : index
    %c0_304 = arith.constant 0 : index
    %326 = tpu.strided_load %arg13[%c488, %c0_304] {strides = array<i32: 2, 1>} : memref<648x16xf32, #tpu.memory_space<vmem>>, vector<8x16xf32>
    %c504 = arith.constant 504 : index
    %c0_305 = arith.constant 0 : index
    %327 = tpu.strided_load %arg13[%c504, %c0_305] {strides = array<i32: 2, 1>} : memref<648x16xf32, #tpu.memory_space<vmem>>, vector<8x16xf32>
    %c505 = arith.constant 505 : index
    %c0_306 = arith.constant 0 : index
    %328 = tpu.strided_load %arg13[%c505, %c0_306] {strides = array<i32: 2, 1>} : memref<648x16xf32, #tpu.memory_space<vmem>>, vector<8x16xf32>
    %c506 = arith.constant 506 : index
    %c0_307 = arith.constant 0 : index
    %329 = tpu.strided_load %arg13[%c506, %c0_307] {strides = array<i32: 2, 1>} : memref<648x16xf32, #tpu.memory_space<vmem>>, vector<8x16xf32>
    %330 = tpu.concatenate %321, %322, %323, %324, %325, %326, %327, %328, %329 in 1 : vector<8x16xf32>, vector<8x16xf32>, vector<8x16xf32>, vector<8x16xf32>, vector<8x16xf32>, vector<8x16xf32>, vector<8x16xf32>, vector<8x16xf32>, vector<8x16xf32> -> vector<8x144xf32>
    %331 = arith.truncf %330 : vector<8x144xf32> to vector<8x144xbf16>
    %c0_308 = arith.constant 0 : index
    %c0_309 = arith.constant 0 : index
    %332 = vector.load %arg4[%c0_308, %c0_309] : memref<144x32xbf16, #tpu.memory_space<vmem>>, vector<144x32xbf16>
    %cst_310 = arith.constant dense<0.000000e+00> : vector<8x32xf32>
    %333 = tpu.matmul %331, %332, %cst_310 {dimension_numbers = #tpu.dot_dimension_numbers<[1], [0], [0], [1], [0, 0, 1, 1], [], []>} : vector<8x144xbf16>, vector<144x32xbf16>, vector<8x32xf32> -> vector<8x32xf32>
    %334 = vector.broadcast %19 : vector<1x32xf32> to vector<8x32xf32>
    %335 = arith.mulf %333, %334 : vector<8x32xf32>
    %336 = vector.broadcast %20 : vector<1x32xf32> to vector<8x32xf32>
    %337 = arith.addf %335, %336 : vector<8x32xf32>
    %cst_311 = arith.constant 0.000000e+00 : f32
    %338 = vector.broadcast %cst_311 : f32 to vector<8x32xf32>
    %339 = arith.maximumf %337, %338 : vector<8x32xf32>
    %c151 = arith.constant 151 : index
    %c0_312 = arith.constant 0 : index
    %340 = vector.load %arg14[%c151, %c0_312] : memref<208x32xf32, #tpu.memory_space<vmem>>, vector<8x32xf32>
    tpu.vector_store %arg14[%c151, %c0_312], %339 {strides = array<i32>} : memref<208x32xf32, #tpu.memory_space<vmem>>, vector<8x32xf32>,
    %c487_313 = arith.constant 487 : index
    %c0_314 = arith.constant 0 : index
    %341 = tpu.strided_load %arg13[%c487_313, %c0_314] {strides = array<i32: 2, 1>} : memref<648x16xf32, #tpu.memory_space<vmem>>, vector<8x16xf32>
    %342 = arith.truncf %341 : vector<8x16xf32> to vector<8x16xbf16>
    %c0_315 = arith.constant 0 : index
    %c0_316 = arith.constant 0 : index
    %343 = vector.load %arg5[%c0_315, %c0_316] : memref<16x32xbf16, #tpu.memory_space<vmem>>, vector<16x32xbf16>
    %cst_317 = arith.constant dense<0.000000e+00> : vector<8x32xf32>
    %344 = tpu.matmul %342, %343, %cst_317 {dimension_numbers = #tpu.dot_dimension_numbers<[1], [0], [0], [1], [0, 0, 1, 1], [], []>} : vector<8x16xbf16>, vector<16x32xbf16>, vector<8x32xf32> -> vector<8x32xf32>
    %c140 = arith.constant 140 : index
    %c0_318 = arith.constant 0 : index
    %345 = vector.load %arg15[%c140, %c0_318] : memref<184x32xf32, #tpu.memory_space<vmem>>, vector<8x32xf32>
    tpu.vector_store %arg15[%c140, %c0_318], %344 {strides = array<i32>} : memref<184x32xf32, #tpu.memory_space<vmem>>, vector<8x32xf32>,
    %c504_319 = arith.constant 504 : index
    %c0_320 = arith.constant 0 : index
    %346 = tpu.strided_load %arg13[%c504_319, %c0_320] {strides = array<i32: 2, 1>} : memref<648x16xf32, #tpu.memory_space<vmem>>, vector<8x16xf32>
    %c505_321 = arith.constant 505 : index
    %c0_322 = arith.constant 0 : index
    %347 = tpu.strided_load %arg13[%c505_321, %c0_322] {strides = array<i32: 2, 1>} : memref<648x16xf32, #tpu.memory_space<vmem>>, vector<8x16xf32>
    %c506_323 = arith.constant 506 : index
    %c0_324 = arith.constant 0 : index
    %348 = tpu.strided_load %arg13[%c506_323, %c0_324] {strides = array<i32: 2, 1>} : memref<648x16xf32, #tpu.memory_space<vmem>>, vector<8x16xf32>
    %c522 = arith.constant 522 : index
    %c0_325 = arith.constant 0 : index
    %349 = tpu.strided_load %arg13[%c522, %c0_325] {strides = array<i32: 2, 1>} : memref<648x16xf32, #tpu.memory_space<vmem>>, vector<8x16xf32>
    %c523 = arith.constant 523 : index
    %c0_326 = arith.constant 0 : index
    %350 = tpu.strided_load %arg13[%c523, %c0_326] {strides = array<i32: 2, 1>} : memref<648x16xf32, #tpu.memory_space<vmem>>, vector<8x16xf32>
    %c524 = arith.constant 524 : index
    %c0_327 = arith.constant 0 : index
    %351 = tpu.strided_load %arg13[%c524, %c0_327] {strides = array<i32: 2, 1>} : memref<648x16xf32, #tpu.memory_space<vmem>>, vector<8x16xf32>
    %c540 = arith.constant 540 : index
    %c0_328 = arith.constant 0 : index
    %352 = tpu.strided_load %arg13[%c540, %c0_328] {strides = array<i32: 2, 1>} : memref<648x16xf32, #tpu.memory_space<vmem>>, vector<8x16xf32>
    %c541 = arith.constant 541 : index
    %c0_329 = arith.constant 0 : index
    %353 = tpu.strided_load %arg13[%c541, %c0_329] {strides = array<i32: 2, 1>} : memref<648x16xf32, #tpu.memory_space<vmem>>, vector<8x16xf32>
    %c542 = arith.constant 542 : index
    %c0_330 = arith.constant 0 : index
    %354 = tpu.strided_load %arg13[%c542, %c0_330] {strides = array<i32: 2, 1>} : memref<648x16xf32, #tpu.memory_space<vmem>>, vector<8x16xf32>
    %355 = tpu.concatenate %346, %347, %348, %349, %350, %351, %352, %353, %354 in 1 : vector<8x16xf32>, vector<8x16xf32>, vector<8x16xf32>, vector<8x16xf32>, vector<8x16xf32>, vector<8x16xf32>, vector<8x16xf32>, vector<8x16xf32>, vector<8x16xf32> -> vector<8x144xf32>
    %356 = arith.truncf %355 : vector<8x144xf32> to vector<8x144xbf16>
    %c0_331 = arith.constant 0 : index
    %c0_332 = arith.constant 0 : index
    %357 = vector.load %arg4[%c0_331, %c0_332] : memref<144x32xbf16, #tpu.memory_space<vmem>>, vector<144x32xbf16>
    %cst_333 = arith.constant dense<0.000000e+00> : vector<8x32xf32>
    %358 = tpu.matmul %356, %357, %cst_333 {dimension_numbers = #tpu.dot_dimension_numbers<[1], [0], [0], [1], [0, 0, 1, 1], [], []>} : vector<8x144xbf16>, vector<144x32xbf16>, vector<8x32xf32> -> vector<8x32xf32>
    %359 = vector.broadcast %19 : vector<1x32xf32> to vector<8x32xf32>
    %360 = arith.mulf %358, %359 : vector<8x32xf32>
    %361 = vector.broadcast %20 : vector<1x32xf32> to vector<8x32xf32>
    %362 = arith.addf %360, %361 : vector<8x32xf32>
    %cst_334 = arith.constant 0.000000e+00 : f32
    %363 = vector.broadcast %cst_334 : f32 to vector<8x32xf32>
    %364 = arith.maximumf %362, %363 : vector<8x32xf32>
    %c161 = arith.constant 161 : index
    %c0_335 = arith.constant 0 : index
    %365 = vector.load %arg14[%c161, %c0_335] : memref<208x32xf32, #tpu.memory_space<vmem>>, vector<8x32xf32>
    tpu.vector_store %arg14[%c161, %c0_335], %364 {strides = array<i32>} : memref<208x32xf32, #tpu.memory_space<vmem>>, vector<8x32xf32>,
    %c523_336 = arith.constant 523 : index
    %c0_337 = arith.constant 0 : index
    %366 = tpu.strided_load %arg13[%c523_336, %c0_337] {strides = array<i32: 2, 1>} : memref<648x16xf32, #tpu.memory_space<vmem>>, vector<8x16xf32>
    %367 = arith.truncf %366 : vector<8x16xf32> to vector<8x16xbf16>
    %c0_338 = arith.constant 0 : index
    %c0_339 = arith.constant 0 : index
    %368 = vector.load %arg5[%c0_338, %c0_339] : memref<16x32xbf16, #tpu.memory_space<vmem>>, vector<16x32xbf16>
    %cst_340 = arith.constant dense<0.000000e+00> : vector<8x32xf32>
    %369 = tpu.matmul %367, %368, %cst_340 {dimension_numbers = #tpu.dot_dimension_numbers<[1], [0], [0], [1], [0, 0, 1, 1], [], []>} : vector<8x16xbf16>, vector<16x32xbf16>, vector<8x32xf32> -> vector<8x32xf32>
    %c150 = arith.constant 150 : index
    %c0_341 = arith.constant 0 : index
    %370 = vector.load %arg15[%c150, %c0_341] : memref<184x32xf32, #tpu.memory_space<vmem>>, vector<8x32xf32>
    tpu.vector_store %arg15[%c150, %c0_341], %369 {strides = array<i32>} : memref<184x32xf32, #tpu.memory_space<vmem>>, vector<8x32xf32>,
    %c540_342 = arith.constant 540 : index
    %c0_343 = arith.constant 0 : index
    %371 = tpu.strided_load %arg13[%c540_342, %c0_343] {strides = array<i32: 2, 1>} : memref<648x16xf32, #tpu.memory_space<vmem>>, vector<8x16xf32>
    %c541_344 = arith.constant 541 : index
    %c0_345 = arith.constant 0 : index
    %372 = tpu.strided_load %arg13[%c541_344, %c0_345] {strides = array<i32: 2, 1>} : memref<648x16xf32, #tpu.memory_space<vmem>>, vector<8x16xf32>
    %c542_346 = arith.constant 542 : index
    %c0_347 = arith.constant 0 : index
    %373 = tpu.strided_load %arg13[%c542_346, %c0_347] {strides = array<i32: 2, 1>} : memref<648x16xf32, #tpu.memory_space<vmem>>, vector<8x16xf32>
    %c558 = arith.constant 558 : index
    %c0_348 = arith.constant 0 : index
    %374 = tpu.strided_load %arg13[%c558, %c0_348] {strides = array<i32: 2, 1>} : memref<648x16xf32, #tpu.memory_space<vmem>>, vector<8x16xf32>
    %c559 = arith.constant 559 : index
    %c0_349 = arith.constant 0 : index
    %375 = tpu.strided_load %arg13[%c559, %c0_349] {strides = array<i32: 2, 1>} : memref<648x16xf32, #tpu.memory_space<vmem>>, vector<8x16xf32>
    %c560 = arith.constant 560 : index
    %c0_350 = arith.constant 0 : index
    %376 = tpu.strided_load %arg13[%c560, %c0_350] {strides = array<i32: 2, 1>} : memref<648x16xf32, #tpu.memory_space<vmem>>, vector<8x16xf32>
    %c576 = arith.constant 576 : index
    %c0_351 = arith.constant 0 : index
    %377 = tpu.strided_load %arg13[%c576, %c0_351] {strides = array<i32: 2, 1>} : memref<648x16xf32, #tpu.memory_space<vmem>>, vector<8x16xf32>
    %c577 = arith.constant 577 : index
    %c0_352 = arith.constant 0 : index
    %378 = tpu.strided_load %arg13[%c577, %c0_352] {strides = array<i32: 2, 1>} : memref<648x16xf32, #tpu.memory_space<vmem>>, vector<8x16xf32>
    %c578 = arith.constant 578 : index
    %c0_353 = arith.constant 0 : index
    %379 = tpu.strided_load %arg13[%c578, %c0_353] {strides = array<i32: 2, 1>} : memref<648x16xf32, #tpu.memory_space<vmem>>, vector<8x16xf32>
    %380 = tpu.concatenate %371, %372, %373, %374, %375, %376, %377, %378, %379 in 1 : vector<8x16xf32>, vector<8x16xf32>, vector<8x16xf32>, vector<8x16xf32>, vector<8x16xf32>, vector<8x16xf32>, vector<8x16xf32>, vector<8x16xf32>, vector<8x16xf32> -> vector<8x144xf32>
    %381 = arith.truncf %380 : vector<8x144xf32> to vector<8x144xbf16>
    %c0_354 = arith.constant 0 : index
    %c0_355 = arith.constant 0 : index
    %382 = vector.load %arg4[%c0_354, %c0_355] : memref<144x32xbf16, #tpu.memory_space<vmem>>, vector<144x32xbf16>
    %cst_356 = arith.constant dense<0.000000e+00> : vector<8x32xf32>
    %383 = tpu.matmul %381, %382, %cst_356 {dimension_numbers = #tpu.dot_dimension_numbers<[1], [0], [0], [1], [0, 0, 1, 1], [], []>} : vector<8x144xbf16>, vector<144x32xbf16>, vector<8x32xf32> -> vector<8x32xf32>
    %384 = vector.broadcast %19 : vector<1x32xf32> to vector<8x32xf32>
    %385 = arith.mulf %383, %384 : vector<8x32xf32>
    %386 = vector.broadcast %20 : vector<1x32xf32> to vector<8x32xf32>
    %387 = arith.addf %385, %386 : vector<8x32xf32>
    %cst_357 = arith.constant 0.000000e+00 : f32
    %388 = vector.broadcast %cst_357 : f32 to vector<8x32xf32>
    %389 = arith.maximumf %387, %388 : vector<8x32xf32>
    %c171 = arith.constant 171 : index
    %c0_358 = arith.constant 0 : index
    %390 = vector.load %arg14[%c171, %c0_358] : memref<208x32xf32, #tpu.memory_space<vmem>>, vector<8x32xf32>
    tpu.vector_store %arg14[%c171, %c0_358], %389 {strides = array<i32>} : memref<208x32xf32, #tpu.memory_space<vmem>>, vector<8x32xf32>,
    %c559_359 = arith.constant 559 : index
    %c0_360 = arith.constant 0 : index
    %391 = tpu.strided_load %arg13[%c559_359, %c0_360] {strides = array<i32: 2, 1>} : memref<648x16xf32, #tpu.memory_space<vmem>>, vector<8x16xf32>
    %392 = arith.truncf %391 : vector<8x16xf32> to vector<8x16xbf16>
    %c0_361 = arith.constant 0 : index
    %c0_362 = arith.constant 0 : index
    %393 = vector.load %arg5[%c0_361, %c0_362] : memref<16x32xbf16, #tpu.memory_space<vmem>>, vector<16x32xbf16>
    %cst_363 = arith.constant dense<0.000000e+00> : vector<8x32xf32>
    %394 = tpu.matmul %392, %393, %cst_363 {dimension_numbers = #tpu.dot_dimension_numbers<[1], [0], [0], [1], [0, 0, 1, 1], [], []>} : vector<8x16xbf16>, vector<16x32xbf16>, vector<8x32xf32> -> vector<8x32xf32>
    %c160 = arith.constant 160 : index
    %c0_364 = arith.constant 0 : index
    %395 = vector.load %arg15[%c160, %c0_364] : memref<184x32xf32, #tpu.memory_space<vmem>>, vector<8x32xf32>
    tpu.vector_store %arg15[%c160, %c0_364], %394 {strides = array<i32>} : memref<184x32xf32, #tpu.memory_space<vmem>>, vector<8x32xf32>,
    %c576_365 = arith.constant 576 : index
    %c0_366 = arith.constant 0 : index
    %396 = tpu.strided_load %arg13[%c576_365, %c0_366] {strides = array<i32: 2, 1>} : memref<648x16xf32, #tpu.memory_space<vmem>>, vector<8x16xf32>
    %c577_367 = arith.constant 577 : index
    %c0_368 = arith.constant 0 : index
    %397 = tpu.strided_load %arg13[%c577_367, %c0_368] {strides = array<i32: 2, 1>} : memref<648x16xf32, #tpu.memory_space<vmem>>, vector<8x16xf32>
    %c578_369 = arith.constant 578 : index
    %c0_370 = arith.constant 0 : index
    %398 = tpu.strided_load %arg13[%c578_369, %c0_370] {strides = array<i32: 2, 1>} : memref<648x16xf32, #tpu.memory_space<vmem>>, vector<8x16xf32>
    %c594 = arith.constant 594 : index
    %c0_371 = arith.constant 0 : index
    %399 = tpu.strided_load %arg13[%c594, %c0_371] {strides = array<i32: 2, 1>} : memref<648x16xf32, #tpu.memory_space<vmem>>, vector<8x16xf32>
    %c595 = arith.constant 595 : index
    %c0_372 = arith.constant 0 : index
    %400 = tpu.strided_load %arg13[%c595, %c0_372] {strides = array<i32: 2, 1>} : memref<648x16xf32, #tpu.memory_space<vmem>>, vector<8x16xf32>
    %c596 = arith.constant 596 : index
    %c0_373 = arith.constant 0 : index
    %401 = tpu.strided_load %arg13[%c596, %c0_373] {strides = array<i32: 2, 1>} : memref<648x16xf32, #tpu.memory_space<vmem>>, vector<8x16xf32>
    %c612 = arith.constant 612 : index
    %c0_374 = arith.constant 0 : index
    %402 = tpu.strided_load %arg13[%c612, %c0_374] {strides = array<i32: 2, 1>} : memref<648x16xf32, #tpu.memory_space<vmem>>, vector<8x16xf32>
    %c613 = arith.constant 613 : index
    %c0_375 = arith.constant 0 : index
    %403 = tpu.strided_load %arg13[%c613, %c0_375] {strides = array<i32: 2, 1>} : memref<648x16xf32, #tpu.memory_space<vmem>>, vector<8x16xf32>
    %c614 = arith.constant 614 : index
    %c0_376 = arith.constant 0 : index
    %404 = tpu.strided_load %arg13[%c614, %c0_376] {strides = array<i32: 2, 1>} : memref<648x16xf32, #tpu.memory_space<vmem>>, vector<8x16xf32>
    %405 = tpu.concatenate %396, %397, %398, %399, %400, %401, %402, %403, %404 in 1 : vector<8x16xf32>, vector<8x16xf32>, vector<8x16xf32>, vector<8x16xf32>, vector<8x16xf32>, vector<8x16xf32>, vector<8x16xf32>, vector<8x16xf32>, vector<8x16xf32> -> vector<8x144xf32>
    %406 = arith.truncf %405 : vector<8x144xf32> to vector<8x144xbf16>
    %c0_377 = arith.constant 0 : index
    %c0_378 = arith.constant 0 : index
    %407 = vector.load %arg4[%c0_377, %c0_378] : memref<144x32xbf16, #tpu.memory_space<vmem>>, vector<144x32xbf16>
    %cst_379 = arith.constant dense<0.000000e+00> : vector<8x32xf32>
    %408 = tpu.matmul %406, %407, %cst_379 {dimension_numbers = #tpu.dot_dimension_numbers<[1], [0], [0], [1], [0, 0, 1, 1], [], []>} : vector<8x144xbf16>, vector<144x32xbf16>, vector<8x32xf32> -> vector<8x32xf32>
    %409 = vector.broadcast %19 : vector<1x32xf32> to vector<8x32xf32>
    %410 = arith.mulf %408, %409 : vector<8x32xf32>
    %411 = vector.broadcast %20 : vector<1x32xf32> to vector<8x32xf32>
    %412 = arith.addf %410, %411 : vector<8x32xf32>
    %cst_380 = arith.constant 0.000000e+00 : f32
    %413 = vector.broadcast %cst_380 : f32 to vector<8x32xf32>
    %414 = arith.maximumf %412, %413 : vector<8x32xf32>
    %c181_381 = arith.constant 181 : index
    %c0_382 = arith.constant 0 : index
    %415 = vector.load %arg14[%c181_381, %c0_382] : memref<208x32xf32, #tpu.memory_space<vmem>>, vector<8x32xf32>
    tpu.vector_store %arg14[%c181_381, %c0_382], %414 {strides = array<i32>} : memref<208x32xf32, #tpu.memory_space<vmem>>, vector<8x32xf32>,
    %c595_383 = arith.constant 595 : index
    %c0_384 = arith.constant 0 : index
    %416 = tpu.strided_load %arg13[%c595_383, %c0_384] {strides = array<i32: 2, 1>} : memref<648x16xf32, #tpu.memory_space<vmem>>, vector<8x16xf32>
    %417 = arith.truncf %416 : vector<8x16xf32> to vector<8x16xbf16>
    %c0_385 = arith.constant 0 : index
    %c0_386 = arith.constant 0 : index
    %418 = vector.load %arg5[%c0_385, %c0_386] : memref<16x32xbf16, #tpu.memory_space<vmem>>, vector<16x32xbf16>
    %cst_387 = arith.constant dense<0.000000e+00> : vector<8x32xf32>
    %419 = tpu.matmul %417, %418, %cst_387 {dimension_numbers = #tpu.dot_dimension_numbers<[1], [0], [0], [1], [0, 0, 1, 1], [], []>} : vector<8x16xbf16>, vector<16x32xbf16>, vector<8x32xf32> -> vector<8x32xf32>
    %c170 = arith.constant 170 : index
    %c0_388 = arith.constant 0 : index
    %420 = vector.load %arg15[%c170, %c0_388] : memref<184x32xf32, #tpu.memory_space<vmem>>, vector<8x32xf32>
    tpu.vector_store %arg15[%c170, %c0_388], %419 {strides = array<i32>} : memref<184x32xf32, #tpu.memory_space<vmem>>, vector<8x32xf32>,
    %cst_389 = arith.constant 0.000000e+00 : f32
    %421 = vector.broadcast %cst_389 : f32 to vector<2x32xf32>
    %c0_390 = arith.constant 0 : index
    %c0_391 = arith.constant 0 : index
    %422 = vector.load %arg14[%c0_390, %c0_391] : memref<208x32xf32, #tpu.memory_space<vmem>>, vector<96x32xf32>
    %c1_392 = arith.constant 1 : index
    %c0_393 = arith.constant 0 : index
    %423 = vector.load %arg14[%c1_392, %c0_393] : memref<208x32xf32, #tpu.memory_space<vmem>>, vector<96x32xf32>
    %c2_394 = arith.constant 2 : index
    %c0_395 = arith.constant 0 : index
    %424 = vector.load %arg14[%c2_394, %c0_395] : memref<208x32xf32, #tpu.memory_space<vmem>>, vector<96x32xf32>
    %c10_396 = arith.constant 10 : index
    %c0_397 = arith.constant 0 : index
    %425 = vector.load %arg14[%c10_396, %c0_397] : memref<208x32xf32, #tpu.memory_space<vmem>>, vector<96x32xf32>
    %c11_398 = arith.constant 11 : index
    %c0_399 = arith.constant 0 : index
    %426 = vector.load %arg14[%c11_398, %c0_399] : memref<208x32xf32, #tpu.memory_space<vmem>>, vector<96x32xf32>
    %c12 = arith.constant 12 : index
    %c0_400 = arith.constant 0 : index
    %427 = vector.load %arg14[%c12, %c0_400] : memref<208x32xf32, #tpu.memory_space<vmem>>, vector<96x32xf32>
    %c20_401 = arith.constant 20 : index
    %c0_402 = arith.constant 0 : index
    %428 = vector.load %arg14[%c20_401, %c0_402] : memref<208x32xf32, #tpu.memory_space<vmem>>, vector<96x32xf32>
    %c21_403 = arith.constant 21 : index
    %c0_404 = arith.constant 0 : index
    %429 = vector.load %arg14[%c21_403, %c0_404] : memref<208x32xf32, #tpu.memory_space<vmem>>, vector<96x32xf32>
    %c22 = arith.constant 22 : index
    %c0_405 = arith.constant 0 : index
    %430 = vector.load %arg14[%c22, %c0_405] : memref<208x32xf32, #tpu.memory_space<vmem>>, vector<96x32xf32>
    %431 = tpu.concatenate %422, %423, %424, %425, %426, %427, %428, %429, %430 in 1 : vector<96x32xf32>, vector<96x32xf32>, vector<96x32xf32>, vector<96x32xf32>, vector<96x32xf32>, vector<96x32xf32>, vector<96x32xf32>, vector<96x32xf32>, vector<96x32xf32> -> vector<96x288xf32>
    %432 = arith.truncf %431 : vector<96x288xf32> to vector<96x288xbf16>
    %c0_406 = arith.constant 0 : index
    %c0_407 = arith.constant 0 : index
    %433 = vector.load %arg7[%c0_406, %c0_407] : memref<288x32xbf16, #tpu.memory_space<vmem>>, vector<288x32xbf16>
    %cst_408 = arith.constant dense<0.000000e+00> : vector<96x32xf32>
    %434 = tpu.matmul %432, %433, %cst_408 {dimension_numbers = #tpu.dot_dimension_numbers<[1], [0], [0], [1], [0, 0, 1, 1], [], []>} : vector<96x288xbf16>, vector<288x32xbf16>, vector<96x32xf32> -> vector<96x32xf32>
    %c0_409 = arith.constant 0 : index
    %c0_410 = arith.constant 0 : index
    %435 = vector.load %arg15[%c0_409, %c0_410] : memref<184x32xf32, #tpu.memory_space<vmem>>, vector<96x32xf32>
    %436 = arith.addf %434, %435 : vector<96x32xf32>
    %c0_411 = arith.constant 0 : index
    %c0_412 = arith.constant 0 : index
    %437 = vector.load %arg8[%c0_411, %c0_412] : memref<2x32xf32, #tpu.memory_space<vmem>>, vector<1x32xf32>
    %438 = vector.broadcast %437 : vector<1x32xf32> to vector<96x32xf32>
    %439 = arith.mulf %436, %438 : vector<96x32xf32>
    %c1_413 = arith.constant 1 : index
    %c0_414 = arith.constant 0 : index
    %440 = vector.load %arg8[%c1_413, %c0_414] : memref<2x32xf32, #tpu.memory_space<vmem>>, vector<1x32xf32>
    %441 = vector.broadcast %440 : vector<1x32xf32> to vector<96x32xf32>
    %442 = arith.addf %439, %441 : vector<96x32xf32>
    %cst_415 = arith.constant 0.000000e+00 : f32
    %443 = vector.broadcast %cst_415 : f32 to vector<96x32xf32>
    %444 = arith.maximumf %442, %443 : vector<96x32xf32>
    %c0_416 = arith.constant 0 : index
    %c0_417 = arith.constant 0 : index
    %445 = vector.load %arg9[%c0_416, %c0_417] : memref<2x184xf32, #tpu.memory_space<vmem>>, vector<2x96xf32>
    %cst_418 = arith.constant dense<0.000000e+00> : vector<2x32xf32>
    %446 = tpu.matmul %445, %444, %cst_418 {dimension_numbers = #tpu.dot_dimension_numbers<[1], [0], [0], [1], [0, 0, 1, 1], [], []>} : vector<2x96xf32>, vector<96x32xf32>, vector<2x32xf32> -> vector<2x32xf32>
    %447 = arith.addf %421, %446 : vector<2x32xf32>
    %c96 = arith.constant 96 : index
    %c0_419 = arith.constant 0 : index
    %448 = vector.load %arg14[%c96, %c0_419] : memref<208x32xf32, #tpu.memory_space<vmem>>, vector<88x32xf32>
    %c97 = arith.constant 97 : index
    %c0_420 = arith.constant 0 : index
    %449 = vector.load %arg14[%c97, %c0_420] : memref<208x32xf32, #tpu.memory_space<vmem>>, vector<88x32xf32>
    %c98 = arith.constant 98 : index
    %c0_421 = arith.constant 0 : index
    %450 = vector.load %arg14[%c98, %c0_421] : memref<208x32xf32, #tpu.memory_space<vmem>>, vector<88x32xf32>
    %c106 = arith.constant 106 : index
    %c0_422 = arith.constant 0 : index
    %451 = vector.load %arg14[%c106, %c0_422] : memref<208x32xf32, #tpu.memory_space<vmem>>, vector<88x32xf32>
    %c107 = arith.constant 107 : index
    %c0_423 = arith.constant 0 : index
    %452 = vector.load %arg14[%c107, %c0_423] : memref<208x32xf32, #tpu.memory_space<vmem>>, vector<88x32xf32>
    %c108_424 = arith.constant 108 : index
    %c0_425 = arith.constant 0 : index
    %453 = vector.load %arg14[%c108_424, %c0_425] : memref<208x32xf32, #tpu.memory_space<vmem>>, vector<88x32xf32>
    %c116 = arith.constant 116 : index
    %c0_426 = arith.constant 0 : index
    %454 = vector.load %arg14[%c116, %c0_426] : memref<208x32xf32, #tpu.memory_space<vmem>>, vector<88x32xf32>
    %c117 = arith.constant 117 : index
    %c0_427 = arith.constant 0 : index
    %455 = vector.load %arg14[%c117, %c0_427] : memref<208x32xf32, #tpu.memory_space<vmem>>, vector<88x32xf32>
    %c118 = arith.constant 118 : index
    %c0_428 = arith.constant 0 : index
    %456 = vector.load %arg14[%c118, %c0_428] : memref<208x32xf32, #tpu.memory_space<vmem>>, vector<88x32xf32>
    %457 = tpu.concatenate %448, %449, %450, %451, %452, %453, %454, %455, %456 in 1 : vector<88x32xf32>, vector<88x32xf32>, vector<88x32xf32>, vector<88x32xf32>, vector<88x32xf32>, vector<88x32xf32>, vector<88x32xf32>, vector<88x32xf32>, vector<88x32xf32> -> vector<88x288xf32>
    %458 = arith.truncf %457 : vector<88x288xf32> to vector<88x288xbf16>
    %c0_429 = arith.constant 0 : index
    %c0_430 = arith.constant 0 : index
    %459 = vector.load %arg7[%c0_429, %c0_430] : memref<288x32xbf16, #tpu.memory_space<vmem>>, vector<288x32xbf16>
    %cst_431 = arith.constant dense<0.000000e+00> : vector<88x32xf32>
    %460 = tpu.matmul %458, %459, %cst_431 {dimension_numbers = #tpu.dot_dimension_numbers<[1], [0], [0], [1], [0, 0, 1, 1], [], []>} : vector<88x288xbf16>, vector<288x32xbf16>, vector<88x32xf32> -> vector<88x32xf32>
    %c96_432 = arith.constant 96 : index
    %c0_433 = arith.constant 0 : index
    %461 = vector.load %arg15[%c96_432, %c0_433] : memref<184x32xf32, #tpu.memory_space<vmem>>, vector<88x32xf32>
    %462 = arith.addf %460, %461 : vector<88x32xf32>
    %c0_434 = arith.constant 0 : index
    %c0_435 = arith.constant 0 : index
    %463 = vector.load %arg8[%c0_434, %c0_435] : memref<2x32xf32, #tpu.memory_space<vmem>>, vector<1x32xf32>
    %464 = vector.broadcast %463 : vector<1x32xf32> to vector<88x32xf32>
    %465 = arith.mulf %462, %464 : vector<88x32xf32>
    %c1_436 = arith.constant 1 : index
    %c0_437 = arith.constant 0 : index
    %466 = vector.load %arg8[%c1_436, %c0_437] : memref<2x32xf32, #tpu.memory_space<vmem>>, vector<1x32xf32>
    %467 = vector.broadcast %466 : vector<1x32xf32> to vector<88x32xf32>
    %468 = arith.addf %465, %467 : vector<88x32xf32>
    %cst_438 = arith.constant 0.000000e+00 : f32
    %469 = vector.broadcast %cst_438 : f32 to vector<88x32xf32>
    %470 = arith.maximumf %468, %469 : vector<88x32xf32>
    %c0_439 = arith.constant 0 : index
    %c96_440 = arith.constant 96 : index
    %471 = vector.load %arg9[%c0_439, %c96_440] : memref<2x184xf32, #tpu.memory_space<vmem>>, vector<2x88xf32>
    %cst_441 = arith.constant dense<0.000000e+00> : vector<2x32xf32>
    %472 = tpu.matmul %471, %470, %cst_441 {dimension_numbers = #tpu.dot_dimension_numbers<[1], [0], [0], [1], [0, 0, 1, 1], [], []>} : vector<2x88xf32>, vector<88x32xf32>, vector<2x32xf32> -> vector<2x32xf32>
    %473 = arith.addf %447, %472 : vector<2x32xf32>
    %c0_442 = arith.constant 0 : index
    %c0_443 = arith.constant 0 : index
    %474 = vector.load %arg10[%c0_442, %c0_443] : memref<32x10xf32, #tpu.memory_space<vmem>>, vector<32x10xf32>
    %cst_444 = arith.constant dense<0.000000e+00> : vector<2x10xf32>
    %475 = tpu.matmul %473, %474, %cst_444 {dimension_numbers = #tpu.dot_dimension_numbers<[1], [0], [0], [1], [0, 0, 1, 1], [], []>} : vector<2x32xf32>, vector<32x10xf32>, vector<2x10xf32> -> vector<2x10xf32>
    %c0_445 = arith.constant 0 : index
    %c0_446 = arith.constant 0 : index
    %476 = vector.load %arg11[%c0_445, %c0_446] : memref<1x10xf32, #tpu.memory_space<vmem>>, vector<1x10xf32>
    %477 = vector.broadcast %476 : vector<1x10xf32> to vector<2x10xf32>
    %478 = arith.addf %475, %477 : vector<2x10xf32>
    %c0_447 = arith.constant 0 : index
    %c0_448 = arith.constant 0 : index
    %479 = vector.load %arg12[%c0_447, %c0_448] : memref<2x10xf32, #tpu.memory_space<vmem>>, vector<2x10xf32>
    tpu.vector_store %arg12[%c0_447, %c0_448], %478 {strides = array<i32>} : memref<2x10xf32, #tpu.memory_space<vmem>>, vector<2x10xf32>,
    return
  }
}

</mosaic_0001>

<bundles_post_ra>
// kernel: wide_resnet_contrastive_forward.1
= control target key start
LH: loop header
LB: loop body
LE: loop exit
PB: predicated region body
PF: predicated region fallthrough
CT: control target
= control target key end

     0   :  { %vm471_vm0 = vcmask 1041408   ;;  %v7934_v3 = vmov 0   ;;  %s10429_s0 = inlined_call_operand.vmem [shape: bf16[648,36], index: 0, kind: input, shape index: {}]   ;;  %s10430_s1 = inlined_call_operand.vmem [shape: bf16[36,16], index: 1, kind: input, shape index: {}]   ;;  %s10431_s2 = inlined_call_operand.vmem [shape: f32[2,16], index: 2, kind: input, shape index: {}]   ;;  %s10432_s3 = inlined_call_operand.vmem [shape: f32[648,1], index: 3, kind: input, shape index: {}]   ;;  %s10433_s4 = inlined_call_operand.vmem [shape: bf16[144,32], index: 4, kind: input, shape index: {}]   ;;  %s10434_s5 = inlined_call_operand.vmem [shape: bf16[16,32], index: 5, kind: input, shape index: {}]   ;;  %s10435_s6 = inlined_call_operand.vmem [shape: f32[2,32], index: 6, kind: input, shape index: {}]   ;;  %s10436_s7 = inlined_call_operand.vmem [shape: bf16[288,32], index: 7, kind: input, shape index: {}]   ;;  %s10437_s8 = inlined_call_operand.vmem [shape: f32[2,32], index: 8, kind: input, shape index: {}]   ;;  %s10438_s9 = inlined_call_operand.vmem [shape: f32[2,184], index: 9, kind: input, shape index: {}]   ;;  %s10439_s10 = inlined_call_operand.vmem [shape: f32[32,10], index: 10, kind: input, shape index: {}]   ;;  %s10440_s11 = inlined_call_operand.vmem [shape: f32[1,10], index: 11, kind: input, shape index: {}]   ;;  %s10441_s12 = inlined_call_operand.hbm [shape: f32[2,10], index: 12, kind: output, shape index: {}]  }
   0x1   :  { %v128_v0 = vld [vmem:[%s10430_s1 + $0x10] sm:$0x3]  ;;  %v935_v2 = vld [vmem:[%s10432_s3] sm:$0xff]  ;;  %7261 = vset.pattern.permute.xlu0 %v7934_v3  ;;  %7262 = vset.pattern.permute.xlu1 %v7934_v3 }
   0x2   :  { %v341_v1 = vunpack.c.l.b16 %v128_v0  ;;  %1018 = vperm.xlu0 %7261, %v935_v2   ;;  %7263 = vset.pattern.permute.xlu2 %v7934_v3 }
   0x4   :  { %v344_v4 = vpack.c.b16 %v341_v1, %v341_v1 }
   0x6   :  { %v473_v5 = vsel %vm471_vm0, %v344_v4, 0 }
   0x7   :  { %17 = vsyncpa [#allocation6], 0  ;;  %480 = vmatpush.bf16.msra.mxu0 %v473_v5  ;;  %v7063_v6 = vld [vmem:[%s10430_s1 + $0x8] sm:$0xff]  ;;  %7244 = vmatpush.bf16.msra.mxu3 %v473_v5  ;;  %v7062_v8 = vld [vmem:[%s10430_s1] sm:$0xff]  ;;  %vm347_vm1 = vcmask 293888   ;;  %vm1502_vm2 = vcmask 130048  }
   0x8   :  { %7243 = vmatpush.bf16.msra.mxu2 %v473_v5  ;;  %7242 = vmatpush.bf16.msra.mxu1 %v473_v5  ;;  %v936_v7 = vld [vmem:[%s10432_s3 + $0x8] sm:$0xff]  ;;  %v7022_v9 = vld [vmem:[%s10429_s0] sm:$0xff]  ;;  %v937_v10 = vld [vmem:[%s10432_s3 + $0x10] sm:$0xff]  ;;  %s7935_s23 = smov 32   ;;  %s7936_s24 = smov 16   ;;  %vm1584_vm3 = vcmask 261120  }
   0x9   :  { %v939_v11 = vld [vmem:[%s10432_s3 + $0x20] sm:$0xff]  ;;  %1028 = vperm.xlu1 %7262, %v937_v10   ;;  %v938_v12 = vld [vmem:[%s10432_s3 + $0x18] sm:$0xff]  ;;  %v7023_v13 = vld [vmem:[%s10429_s0 + $0x8] sm:$0xff]  ;;  %s7937_s29 = smov 80   ;;  %s7938_s30 = smov 64   ;;  %vm1683_vm4 = vcmask 392192  }
   0xa   :  { %1023 = vperm.xlu0 %7261, %v936_v7   ;;  %1038 = vperm.xlu2 %7263, %v939_v11   ;;  %v940_v14 = vld [vmem:[%s10432_s3 + $0x28] sm:$0xff]  ;;  %v942_v15 = vld [vmem:[%s10432_s3 + $0x38] sm:$0xff]  ;;  %v943_v16 = vld [vmem:[%s10432_s3 + $0x40] sm:$0xff]  ;;  %s7939_s13 = smov 48   ;;  %s7940_s17 = smov 112   ;;  %vm1685_vm5 = vcmask 523264  }
   0xb   :  { %481 = vmatpush.bf16.msra.mxu0 %v7063_v6  ;;  %7247 = vmatpush.bf16.msra.mxu3 %v7063_v6  ;;  %v7024_v17 = vld [vmem:[%s10429_s0 + $0x10] sm:$0xff]  ;;  %v946_v19 = vld [vmem:[%s10432_s3 + $0x58] sm:$0xff]  ;;  %v944_v22 = vld [vmem:[%s10432_s3 + $0x48] sm:$0xff]  ;;  %s7941_s18 = smov 96   ;;  %vm1687_vm6 = vcmask 654336   ;;  %vm1689_vm7 = vcmask 785408  }
   0xc   :  { %7246 = vmatpush.bf16.msra.mxu2 %v7063_v6  ;;  %7245 = vmatpush.bf16.msra.mxu1 %v7063_v6  ;;  %v941_v18 = vld [vmem:[%s10432_s3 + $0x30] sm:$0xff]  ;;  %v948_v23 = vld [vmem:[%s10432_s3 + $0x68] sm:$0xff]  ;;  %v7025_v24 = vld [vmem:[%s10429_s0 + $0x18] sm:$0xff]  ;;  %vm1691_vm8 = vcmask 916480   ;;  %vm5959_vm9 = vcmask 719872   ;;  %s6045_s14 = sshll.u32 %s10441_s12, 4  ;;  %s6046_s14 = int_to_ptr.hbm [resolvable:$true] %s6045_s14 }
   0xd   :  { %v945_v20 = vld [vmem:[%s10432_s3 + $0x50] sm:$0xff]  ;;  %v952_v25 = vld [vmem:[%s10432_s3 + $0x88] sm:$0xff]  ;;  %v951_v26 = vld [vmem:[%s10432_s3 + $0x80] sm:$0xff]  ;;  %vm6036_vm10 = vcmask 74752  }
   0xe   :  { %v949_v21 = vld [vmem:[%s10432_s3 + $0x70] sm:$0xff]  ;;  %v947_v27 = vld [vmem:[%s10432_s3 + $0x60] sm:$0xff]  ;;  %v950_v29 = vld [vmem:[%s10432_s3 + $0x78] sm:$0xff] }
   0xf   :  { %482 = vmatpush.bf16.msra.mxu0 %v7062_v8  ;;  %7250 = vmatpush.bf16.msra.mxu3 %v7062_v8  ;;  %v955_v28 = vld [vmem:[%s10432_s3 + $0xa0] sm:$0xff]  ;;  %v954_v30 = vld [vmem:[%s10432_s3 + $0x98] sm:$0xff]  ;;  %v957_v33 = vld [vmem:[%s10432_s3 + $0xb0] sm:$0xff] }
  0x10   :  { %7249 = vmatpush.bf16.msra.mxu2 %v7062_v8  ;;  %7248 = vmatpush.bf16.msra.mxu1 %v7062_v8  ;;  %v7026_v31 = vld [vmem:[%s10429_s0 + $0x20] sm:$0xff]  ;;  %v958_v32 = vld [vmem:[%s10432_s3 + $0xb8] sm:$0xff]  ;;  %v953_v34 = vld [vmem:[%s10432_s3 + $0x90] sm:$0xff] }
  0x11   :  { %1033 = vperm.xlu1 %7262, %v938_v12   ;;  %v961_v35 = vld [vmem:[%s10432_s3 + $0xd0] sm:$0xff]  ;;  %v956_v36 = vld [vmem:[%s10432_s3 + $0xa8] sm:$0xff]  ;;  %v963_v40 = vld [vmem:[%s10432_s3 + $0xe0] sm:$0xff] }
  0x12   :  { %6222 = vmatmul.msk.bf16.vlgmr.msra.gmra.mxu0 %vm347_vm1, %v7022_v9  ;;  %1043 = vperm.xlu2 %7263, %v940_v14   ;;  %v960_v37 = vld [vmem:[%s10432_s3 + $0xc8] sm:$0xff]  ;;  %v959_v41 = vld [vmem:[%s10432_s3 + $0xc0] sm:$0xff]  ;;  %v7028_v42 = vld [vmem:[%s10429_s0 + $0x30] sm:$0xff] }
  0x13   :  { %1048 = vperm.xlu0 %7261, %v941_v18   ;;  %v7027_v38 = vld [vmem:[%s10429_s0 + $0x28] sm:$0xff]  ;;  %v967_v43 = vld [vmem:[%s10432_s3 + $0x100] sm:$0xff]  ;;  %v966_v44 = vld [vmem:[%s10432_s3 + $0xf8] sm:$0xff] }
  0x14   :  { %v964_v39 = vld [vmem:[%s10432_s3 + $0xe8] sm:$0xff]  ;;  %v962_v45 = vld [vmem:[%s10432_s3 + $0xd8] sm:$0xff]  ;;  %v969_v47 = vld [vmem:[%s10432_s3 + $0x110] sm:$0xff] }
  0x15   :  { %v970_v46 = vld [vmem:[%s10432_s3 + $0x118] sm:$0xff]  ;;  %v965_v48 = vld [vmem:[%s10432_s3 + $0xf0] sm:$0xff]  ;;  %v972_v51 = vld [vmem:[%s10432_s3 + $0x128] sm:$0xff] }
  0x16   :  { %v7029_v49 = vld [vmem:[%s10429_s0 + $0x38] sm:$0xff]  ;;  %v973_v50 = vld [vmem:[%s10432_s3 + $0x130] sm:$0xff]  ;;  %v968_v52 = vld [vmem:[%s10432_s3 + $0x108] sm:$0xff] }
  0x17   :  { %v976_v53 = vld [vmem:[%s10432_s3 + $0x148] sm:$0xff]  ;;  %v975_v54 = vld [vmem:[%s10432_s3 + $0x140] sm:$0xff]  ;;  %v978_v2 = vld [vmem:[%s10432_s3 + $0x158] sm:$0xff] }
  0x18   :  { %v971_v55 = vld [vmem:[%s10432_s3 + $0x120] sm:$0xff]  ;;  %v974_v3 = vld [vmem:[%s10432_s3 + $0x138] sm:$0xff]  ;;  %v981_v10 = vld [vmem:[%s10432_s3 + $0x170] sm:$0xff] }
  0x19   :  { %1053 = vperm.xlu1 %7262, %v942_v15   ;;  %v8176_v56 = vld [vmem:[%s10431_s2] ss:$0 sm:$0xff]  ;;  %v8184_v58 = vld [vmem:[%s10431_s2 + $0x1] ss:$0 sm:$0xff]  ;;  %v982_v9 = vld [vmem:[%s10432_s3 + $0x178] sm:$0xff] }
  0x1a   :  { %1058 = vperm.xlu2 %7263, %v943_v16   ;;  %v123_v57 = vld [vmem:[%s10429_s0 + $0x140] sm:$0xf]  ;;  %v977_v11 = vld [vmem:[%s10432_s3 + $0x150] sm:$0xff] }
  0x1b   :  { %1063 = vperm.xlu0 %7261, %v944_v22   ;;  %v7030_v59 = vld [vmem:[%s10429_s0 + $0x40] sm:$0xff]  ;;  %v290_v60 = vunpack.c.l.b16 %v123_v57  ;;  %v985_v22 = vld [vmem:[%s10432_s3 + $0x190] sm:$0xff] }
  0x1c   :  { %v979_v1 = vld [vmem:[%s10432_s3 + $0x160] sm:$0xff] }
  0x1d   :  { %v331_v63 = vpack.c.b16 %v290_v60, %v290_v60  ;;  %v7073_v15 = vld [vmem:[%s10434_s5] sm:$0xff] }
  0x1e   :  { %1822 = vmatpush.bf16.msrb.mxu3 %v7073_v15 }
  0x1f   :  { %6262 = vmatmul.msk.bf16.vlgmr.msra.gmra.mxu3 %vm347_vm1, %v331_v63 }
  0x21   :  { %1068 = vperm.xlu1 %7262, %v945_v20   ;;  %v7061_v20 = vld [vmem:[%s10429_s0 + $0x138] sm:$0xff] }
  0x22   :  { %6223 = vmatmul.msk.bf16.gmra.mxu0 %vm347_vm1, %v7023_v13  ;;  %1073 = vperm.xlu2 %7263, %v946_v19  }
  0x23   :  { %1078 = vperm.xlu0 %7261, %v947_v27   ;;  %6261 = vmatmul.msk.bf16.vlgmr.msra.gmra.mxu2 %vm347_vm1, %v7061_v20 }
  0x29   :  { %1083 = vperm.xlu1 %7262, %v948_v23   ;;  %v984_v23 = vld [vmem:[%s10432_s3 + $0x188] sm:$0xff] }
  0x2a   :  { %1088 = vperm.xlu2 %7263, %v949_v21  }
  0x2b   :  { %1093 = vperm.xlu0 %7261, %v950_v29  }
  0x31   :  { %1098 = vperm.xlu1 %7262, %v951_v26  }
  0x32   :  { %6224 = vmatmul.msk.bf16.gmra.mxu0 %vm347_vm1, %v7024_v17  ;;  %1103 = vperm.xlu2 %7263, %v952_v25   ;;  %v7031_v17 = vld [vmem:[%s10429_s0 + $0x48] sm:$0xff] }
  0x33   :  { %1108 = vperm.xlu0 %7261, %v953_v34  }
  0x39   :  { %1113 = vperm.xlu1 %7262, %v954_v30  }
  0x3a   :  { %1118 = vperm.xlu2 %7263, %v955_v28  }
  0x3b   :  { %1123 = vperm.xlu0 %7261, %v956_v36  }
  0x41   :  { %1128 = vperm.xlu1 %7262, %v957_v33   ;;  %v983_v33 = vld [vmem:[%s10432_s3 + $0x180] sm:$0xff] }
  0x42   :  { %6225 = vmatmul.msk.bf16.gmra.mxu0 %vm347_vm1, %v7025_v24  ;;  %1133 = vperm.xlu2 %7263, %v958_v32   ;;  %v980_v24 = vld [vmem:[%s10432_s3 + $0x168] sm:$0xff]  ;;  %v987_v32 = vld [vmem:[%s10432_s3 + $0x1a0] sm:$0xff] }
  0x43   :  { %1138 = vperm.xlu0 %7261, %v959_v41  }
  0x49   :  { %1143 = vperm.xlu1 %7262, %v960_v37   ;;  %v7072_v37 = vld [vmem:[%s10433_s4 + $0x40] sm:$0xff] }
  0x4a   :  { %1148 = vperm.xlu2 %7263, %v961_v35   ;;  %1790 = vmatpush.bf16.msrb.mxu2 %v7072_v37 }
  0x4b   :  { %1153 = vperm.xlu0 %7261, %v962_v45  }
  0x51   :  { %1158 = vperm.xlu1 %7262, %v963_v40   ;;  %v7032_v40 = vld [vmem:[%s10429_s0 + $0x50] sm:$0xff] }
  0x52   :  { %6226 = vmatmul.msk.bf16.gmra.mxu0 %vm347_vm1, %v7026_v31  ;;  %1163 = vperm.xlu2 %7263, %v964_v39   ;;  %v988_v31 = vld [vmem:[%s10432_s3 + $0x1a8] sm:$0xff] }
  0x53   :  { %1168 = vperm.xlu0 %7261, %v965_v48  }
  0x59   :  { %1173 = vperm.xlu1 %7262, %v966_v44  }
  0x5a   :  { %1178 = vperm.xlu2 %7263, %v967_v43   ;;  %v986_v43 = vld [vmem:[%s10432_s3 + $0x198] sm:$0xff] }
  0x5b   :  { %1183 = vperm.xlu0 %7261, %v968_v52  }
  0x61   :  { %1188 = vperm.xlu1 %7262, %v969_v47  }
  0x62   :  { %6227 = vmatmul.msk.bf16.gmra.mxu0 %vm347_vm1, %v7027_v38  ;;  %1193 = vperm.xlu2 %7263, %v970_v46  }
  0x63   :  { %1198 = vperm.xlu0 %7261, %v971_v55  }
  0x64   :  { %v1039_v26 = vpop.permute.xlu2 %1038 }
  0x69   :  { %1203 = vperm.xlu1 %7262, %v972_v51  }
  0x6a   :  { %1208 = vperm.xlu2 %7263, %v973_v50  }
  0x6b   :  { %1213 = vperm.xlu0 %7261, %v974_v3  }
  0x6c   :  { %v1044_v38 = vpop.permute.xlu2 %1043 }
  0x71   :  { %1218 = vperm.xlu1 %7262, %v975_v54   ;;  %v989_v54 = vld [vmem:[%s10432_s3 + $0x1b0] sm:$0xff] }
  0x72   :  { %6228 = vmatmul.msk.bf16.gmra.mxu0 %vm347_vm1, %v7028_v42  ;;  %1223 = vperm.xlu2 %7263, %v976_v53  }
  0x73   :  { %1228 = vperm.xlu0 %7261, %v977_v11  }
  0x74   :  { %v1019_v0 = vpop.permute.xlu0 %1018  ;;  %v1059_v50 = vpop.permute.xlu2 %1058 }
  0x79   :  { %1233 = vperm.xlu1 %7262, %v978_v2  }
  0x7a   :  { %1238 = vperm.xlu2 %7263, %v979_v1  }
  0x7b   :  { %v1029_v21 = vpop.permute.xlu1 %1028  ;;  %1243 = vperm.xlu0 %7261, %v980_v24  }
  0x7c   :  { %v1024_v13 = vpop.permute.xlu0 %1023  ;;  %v8275_v1 = vpop.permute.xlu2 %1073 }
  0x81   :  { %1248 = vperm.xlu1 %7262, %v981_v10  }
  0x82   :  { %6229 = vmatmul.msk.bf16.gmra.mxu0 %vm347_vm1, %v7029_v49  ;;  %1253 = vperm.xlu2 %7263, %v982_v9  }
  0x83   :  { %v1034_v35 = vpop.permute.xlu1 %1033  ;;  %1258 = vperm.xlu0 %7261, %v983_v33  }
  0x84   :  { %v8287_v10 = vpop.permute.xlu2 %1088 }
  0x85   :  { %v1049_v45 = vpop.permute.xlu0 %1048 }
  0x89   :  { %1263 = vperm.xlu1 %7262, %v984_v23  }
  0x8a   :  { %1268 = vperm.xlu2 %7263, %v985_v22  }
  0x8b   :  { %1273 = vperm.xlu0 %7261, %v986_v43   ;;  %v1054_v47 = vpop.permute.xlu1 %1053 }
  0x8d   :  { %v1064_v53 = vpop.permute.xlu0 %1063 }
  0x8f   :  { %v484_v61 = vpop.f32.mrf.mxu0 }
  0x90   :  { %v690_v62 = vmul.f32 %v8176_v56, %v484_v61 }
  0x91   :  { %1278 = vperm.xlu1 %7262, %v987_v32  }
  0x92   :  { %v773_v4 = vadd.f32 %v8184_v58, %v690_v62  ;;  %6230 = vmatmul.msk.bf16.gmra.mxu0 %vm347_vm1, %v7030_v59  ;;  %1283 = vperm.xlu2 %7263, %v988_v31   ;;  %v7033_v59 = vld [vmem:[%s10429_s0 + $0x58] sm:$0xff] }
  0x93   :  { %1288 = vperm.xlu0 %7261, %v989_v54   ;;  %v8271_v60 = vpop.permute.xlu1 %1068 }
  0x94   :  { %v854_v5 = vmax.f32 %v773_v4, 0.0 }
  0x95   :  { %v8280_v4 = vpop.permute.xlu0 %1078 }
  0x96   :  { %v1421_v6 = vmul.f32 %v1019_v0, %v854_v5 }
  0x97   :  { %v486_v7 = vpop.f32.mrf.mxu0 }
  0x98   :  { %1503 = vst.msk [vmem:[#allocation2] sm:$0xff] %vm1502_vm2, %v1421_v6  ;;  %v691_v8 = vmul.f32 %v8176_v56, %v486_v7 }
  0x9a   :  { %v774_v12 = vadd.f32 %v8184_v58, %v691_v8 }
  0x9b   :  { %v8284_v8 = vpop.permute.xlu1 %1083 }
  0x9c   :  { %v855_v14 = vmax.f32 %v774_v12, 0.0 }
  0x9e   :  { %v1422_v16 = vmul.f32 %v1024_v13, %v855_v14  ;;  %v7034_v13 = vld [vmem:[%s10429_s0 + $0x60] sm:$0xff] }
  0x9f   :  { %v489_v18 = vpop.f32.mrf.mxu0 }
  0xa0   :  { %1504 = vst.msk [vmem:[#allocation2 + $0x8] sm:$0xff] %vm1502_vm2, %v1422_v16  ;;  %v692_v19 = vmul.f32 %v8176_v56, %v489_v18  ;;  %v8292_v16 = vpop.permute.xlu0 %1093 }
  0xa2   :  { %v775_v25 = vadd.f32 %v8184_v58, %v692_v19  ;;  %6231 = vmatmul.msk.bf16.gmra.mxu0 %vm347_vm1, %v7031_v17 }
  0xa4   :  { %v856_v27 = vmax.f32 %v775_v25, 0.0 }
  0xa6   :  { %v1423_v28 = vmul.f32 %v1029_v21, %v856_v27 }
  0xa7   :  { %v491_v29 = vpop.f32.mrf.mxu0  ;;  %v1638_v15 = vld [vmem:[#allocation2 + $0x1] ss:$2 sm:$0xff] }
  0xa8   :  { %1505 = vst.msk [vmem:[#allocation2 + $0x10] sm:$0xff] %vm1502_vm2, %v1423_v28  ;;  %v693_v30 = vmul.f32 %v8176_v56, %v491_v29  ;;  %v8303_v28 = vpop.permute.xlu2 %1103  ;;  %v8310_v33 = vpop.permute.xlu0 %1108 }
  0xaa   :  { %v776_v34 = vadd.f32 %v8184_v58, %v693_v30  ;;  %v7082_v30 = vld [vmem:[%s10433_s4 + $0x40] sm:$0xff] }
  0xab   :  { %1976 = vmatpush.bf16.msra.mxu3 %v7082_v30 }
  0xac   :  { %v857_v36 = vmax.f32 %v776_v34, 0.0 }
  0xae   :  { %v1424_v39 = vmul.f32 %v1034_v35, %v857_v36 }
  0xaf   :  { %v494_v41 = vpop.f32.mrf.mxu0  ;;  %v1640_v14 = vld [vmem:[#allocation2 + $0x2] ss:$2 sm:$0xff] }
  0xb0   :  { %1506 = vst.msk [vmem:[#allocation2 + $0x18] sm:$0xff] %vm1502_vm2, %v1424_v39  ;;  %v694_v42 = vmul.f32 %v8176_v56, %v494_v41  ;;  %v7035_v39 = vld [vmem:[%s10429_s0 + $0x68] sm:$0xff] }
  0xb2   :  { %v777_v44 = vadd.f32 %v8184_v58, %v694_v42  ;;  %6232 = vmatmul.msk.bf16.gmra.mxu0 %vm347_vm1, %v7032_v40 }
  0xb4   :  { %v858_v46 = vmax.f32 %v777_v44, 0.0 }
  0xb6   :  { %v1425_v48 = vmul.f32 %v1039_v26, %v858_v46  ;;  %v8299_v26 = vpop.permute.xlu1 %1098  ;;  %v8318_v46 = vpop.permute.xlu2 %1118 }
  0xb7   :  { %v496_v49 = vpop.f32.mrf.mxu0 }
  0xb8   :  { %1507 = vst.msk [vmem:[#allocation2 + $0x20] sm:$0xff] %vm1502_vm2, %v1425_v48  ;;  %v695_v51 = vmul.f32 %v8176_v56, %v496_v49 }
  0xba   :  { %v778_v52 = vadd.f32 %v8184_v58, %v695_v51 }
  0xbc   :  { %v859_v55 = vmax.f32 %v778_v52, 0.0  ;;  %v8325_v52 = vpop.permute.xlu0 %1123 }
  0xbe   :  { %v1426_v57 = vmul.f32 %v1044_v38, %v859_v55  ;;  %v8313_v36 = vpop.permute.xlu1 %1113 }
  0xbf   :  { %v499_v61 = vpop.f32.mrf.mxu0  ;;  %v1802_v62 = vld [vmem:[#allocation2 + $0x13] ss:$2 sm:$0xff]  ;;  %v1646_v37 = vld [vmem:[#allocation2 + $0x14] ss:$2 sm:$0xff] }
  0xc0   :  { %1508 = vst.msk [vmem:[#allocation2 + $0x28] sm:$0xff] %vm1502_vm2, %v1426_v57  ;;  %v696_v63 = vmul.f32 %v8176_v56, %v499_v61  ;;  %v1803_v0 = vpack.c.bf16 %v1802_v62, %v1802_v62  ;;  %v1644_v40 = vld [vmem:[#allocation2 + $0x13] ss:$2 sm:$0xff]  ;;  %v1642_v41 = vld [vmem:[#allocation2 + $0x12] ss:$2 sm:$0xff]  ;;  %v8337_v62 = vpop.permute.xlu2 %1133 }
  0xc1   :  { %v7083_v57 = vld [vmem:[%s10434_s5] sm:$0xff] }
  0xc2   :  { %v779_v2 = vadd.f32 %v8184_v58, %v696_v63  ;;  %6233 = vmatmul.msk.bf16.gmra.mxu0 %vm347_vm1, %v7033_v59  ;;  %6304 = vmatmul.msk.bf16.vlgmr.msrb.gmra.mxu3 %vm1502_vm2, %v1803_v0 }
  0xc3   :  { %2006 = vmatpush.bf16.msrb.mxu3 %v7083_v57 }
  0xc4   :  { %v860_v3 = vmax.f32 %v779_v2, 0.0  ;;  %v8340_v2 = vpop.permute.xlu0 %1138 }
  0xc6   :  { %v1427_v5 = vmul.f32 %v1049_v45, %v860_v3  ;;  %v8330_v55 = vpop.permute.xlu1 %1128  ;;  %v7036_v3 = vld [vmem:[%s10429_s0 + $0x70] sm:$0xff] }
  0xc7   :  { %v501_v6 = vpop.f32.mrf.mxu0 }
  0xc8   :  { %1509 = vst.msk [vmem:[#allocation2 + $0x30] sm:$0xff] %vm1502_vm2, %v1427_v5  ;;  %v697_v7 = vmul.f32 %v8176_v56, %v501_v6 }
  0xca   :  { %v780_v9 = vadd.f32 %v8184_v58, %v697_v7 }
  0xcc   :  { %v861_v11 = vmax.f32 %v780_v9, 0.0 }
  0xce   :  { %v1428_v12 = vmul.f32 %v1054_v47, %v861_v11 }
  0xcf   :  { %v504_v17 = vpop.f32.mrf.mxu0  ;;  %v1831_v18 = vld [vmem:[#allocation2 + $0x26] ss:$2 sm:$0xff]  ;;  %v1830_v19 = vld [vmem:[#allocation2 + $0x25] ss:$2 sm:$0xff] }
  0xd0   :  { %v1652_v20 = vld [vmem:[#allocation2 + $0x26] ss:$2 sm:$0xff]  ;;  %1510 = vst.msk [vmem:[#allocation2 + $0x38] sm:$0xff] %vm1502_vm2, %v1428_v12  ;;  %v698_v21 = vmul.f32 %v8176_v56, %v504_v17  ;;  %v7269_v22 = vpack.i.bf16 %v1640_v14, %v1831_v18  ;;  %v7264_v23 = vpack.i.bf16 %v1638_v15, %v1830_v19  ;;  %v1650_v5 = vld [vmem:[#allocation2 + $0x25] ss:$2 sm:$0xff]  ;;  %v8348_v15 = vpop.permute.xlu1 %1143 }
  0xd1   :  { %v1694_v24 = vpack.c.bf16 %v1652_v20, %v1652_v20  ;;  %v1648_v9 = vld [vmem:[#allocation2 + $0x24] ss:$2 sm:$0xff]  ;;  %v8357_v20 = vpop.permute.xlu0 %1153 }
  0xd2   :  { %v781_v25 = vadd.f32 %v8184_v58, %v698_v21  ;;  %6234 = vmatmul.msk.bf16.gmra.mxu0 %vm347_vm1, %v7034_v13  ;;  %7270 = vrot.lane.b32.xlu2 %v7269_v22, %s7935_s23 }
  0xd3   :  { %7265 = vrot.lane.b32.xlu1 %v7264_v23, %s7936_s24  ;;  %6299 = vmatmul.msk.bf16.vlgmr.msrb.gmra.mxu2 %vm1502_vm2, %v1694_v24  ;;  %v7093_v23 = vld [vmem:[%s10434_s5] sm:$0xff] }
  0xd4   :  { %v862_v27 = vmax.f32 %v781_v25, 0.0 }
  0xd6   :  { %v1429_v29 = vmul.f32 %v1059_v50, %v862_v27 }
  0xd7   :  { %v506_v31 = vpop.f32.mrf.mxu0 }
  0xd8   :  { %1511 = vst.msk [vmem:[#allocation2 + $0x40] sm:$0xff] %vm1502_vm2, %v1429_v29  ;;  %v699_v32 = vmul.f32 %v8176_v56, %v506_v31  ;;  %v8366_v29 = vpop.permute.xlu1 %1158 }
  0xda   :  { %v782_v34 = vadd.f32 %v8184_v58, %v699_v32  ;;  %v7037_v32 = vld [vmem:[%s10429_s0 + $0x78] sm:$0xff] }
  0xdc   :  { %v863_v35 = vmax.f32 %v782_v34, 0.0 }
  0xde   :  { %v1430_v38 = vmul.f32 %v1064_v53, %v863_v35 }
  0xdf   :  { %v509_v42 = vpop.f32.mrf.mxu0  ;;  %v1837_v43 = vld [vmem:[#allocation2 + $0x38] ss:$2 sm:$0xff]  ;;  %v1835_v44 = vld [vmem:[#allocation2 + $0x37] ss:$2 sm:$0xff] }
  0xe0   :  { %v1833_v45 = vld [vmem:[#allocation2 + $0x36] ss:$2 sm:$0xff]  ;;  %1512 = vst.msk [vmem:[#allocation2 + $0x48] sm:$0xff] %vm1502_vm2, %v1430_v38  ;;  %v700_v47 = vmul.f32 %v8176_v56, %v509_v42  ;;  %v7284_v48 = vpack.i.bf16 %v1646_v37, %v1837_v43  ;;  %v7279_v49 = vpack.i.bf16 %v1644_v40, %v1835_v44  ;;  %v8376_v37 = vpop.permute.xlu0 %1168  ;;  %v8380_v40 = vpop.permute.xlu1 %1173 }
  0xe1   :  { %v7274_v50 = vpack.i.bf16 %v1642_v41, %v1833_v45  ;;  %v1986_v41 = vld [vmem:[#allocation2 + $0x37] ss:$2 sm:$0xff] }
  0xe2   :  { %v783_v51 = vadd.f32 %v8184_v58, %v700_v47  ;;  %6235 = vmatmul.msk.bf16.gmra.mxu0 %vm347_vm1, %v7035_v39  ;;  %7285 = vrot.lane.b32.xlu2 %v7284_v48, %s7937_s29  ;;  %v1987_v45 = vpack.c.bf16 %v1986_v41, %v1986_v41 }
  0xe3   :  { %7280 = vrot.lane.b32.xlu1 %v7279_v49, %s7938_s30  ;;  %7275 = vrot.lane.b32.xlu0 %v7274_v50, %s7939_s13 }
  0xe4   :  { %v864_v53 = vmax.f32 %v783_v51, 0.0 }
  0xe6   :  { %v1431_v54 = vmul.f32 %v8271_v60, %v864_v53 }
  0xe7   :  { %v511_v59 = vpop.f32.mrf.mxu0 }
  0xe8   :  { %1513 = vst.msk [vmem:[#allocation2 + $0x50] sm:$0xff] %vm1502_vm2, %v1431_v54  ;;  %v701_v61 = vmul.f32 %v8176_v56, %v511_v59  ;;  %v8389_v48 = vpop.permute.xlu0 %1183  ;;  %v8392_v51 = vpop.permute.xlu1 %1188 }
  0xea   :  { %v784_v63 = vadd.f32 %v8184_v58, %v701_v61 }
  0xec   :  { %v865_v0 = vmax.f32 %v784_v63, 0.0 }
  0xee   :  { %v1432_v60 = vmul.f32 %v8275_v1, %v865_v0  ;;  %v8354_v1 = vpop.permute.xlu2 %1148 }
  0xef   :  { %v514_v6 = vpop.f32.mrf.mxu0  ;;  %v1841_v7 = vld [vmem:[#allocation2 + $0x49] ss:$2 sm:$0xff]  ;;  %v1839_v11 = vld [vmem:[#allocation2 + $0x48] ss:$2 sm:$0xff] }
  0xf0   :  { %1514 = vst.msk [vmem:[#allocation2 + $0x58] sm:$0xff] %vm1502_vm2, %v1432_v60  ;;  %v702_v12 = vmul.f32 %v8176_v56, %v514_v6  ;;  %v7294_v13 = vpack.i.bf16 %v1650_v5, %v1841_v7  ;;  %v7289_v14 = vpack.i.bf16 %v1648_v9, %v1839_v11  ;;  %v8403_v63 = vpop.permute.xlu0 %1198  ;;  %v2014_v60 = vld [vmem:[#allocation2 + $0x49] ss:$2 sm:$0xff]  ;;  %v684_v9 = vpop.f32.mrf.mxu3 }
  0xf1   :  { %v8407_v11 = vpop.permute.xlu1 %1203 }
  0xf2   :  { %v785_v17 = vadd.f32 %v8184_v58, %v702_v12  ;;  %6236 = vmatmul.msk.bf16.gmra.mxu0 %vm347_vm1, %v7036_v3  ;;  %7295 = vrot.lane.b32.xlu1 %v7294_v13, %s7940_s17 }
  0xf3   :  { %7290 = vrot.lane.b32.xlu0 %v7289_v14, %s7941_s18 }
  0xf4   :  { %v866_v18 = vmax.f32 %v785_v17, 0.0 }
  0xf6   :  { %v1433_v19 = vmul.f32 %v8280_v4, %v866_v18  ;;  %v8368_v30 = vpop.permute.xlu2 %1163 }
  0xf7   :  { %v516_v21 = vpop.f32.mrf.mxu0  ;;  %v1843_v22 = vld [vmem:[#allocation2 + $0x4a] ss:$2 sm:$0xff] }
  0xf8   :  { %1515 = vst.msk [vmem:[#allocation2 + $0x60] sm:$0xff] %vm1502_vm2, %v1433_v19  ;;  %v703_v24 = vmul.f32 %v8176_v56, %v516_v21  ;;  %v1880_v25 = vpack.c.bf16 %v1843_v22, %v1843_v22  ;;  %v2015_v5 = vld [vmem:[#allocation2 + $0x4a] ss:$2 sm:$0xff] }
  0xfa   :  { %v786_v27 = vadd.f32 %v8184_v58, %v703_v24  ;;  %6341 = vmatmul.msk.bf16.vlgmr.msra.gmra.mxu3 %vm1502_vm2, %v1880_v25  ;;  %v1214_v24 = vpop.permute.xlu0 %1213  ;;  %v7102_v25 = vld [vmem:[%s10433_s4 + $0x40] sm:$0xff] }
  0xfb   :  { %2190 = vmatpush.bf16.msra.mxu3 %v7093_v23  ;;  %v7039_v23 = vld [vmem:[%s10429_s0 + $0x88] sm:$0xff] }
  0xfc   :  { %v867_v4 = vmax.f32 %v786_v27, 0.0 }
  0xfe   :  { %v1434_v31 = vmul.f32 %v8284_v8, %v867_v4  ;;  %v8383_v43 = vpop.permute.xlu2 %1178  ;;  %v686_v4 = vpop.f32.mrf.mxu3 }
  0xff   :  { %v519_v34 = vpop.f32.mrf.mxu0  ;;  %v7081_v4 = vld [vmem:[%s10433_s4 + $0x38] sm:$0xff] }
 0x100   :  { %1516 = vst.msk [vmem:[#allocation2 + $0x68] sm:$0xff] %vm1502_vm2, %v1434_v31  ;;  %v704_v35 = vmul.f32 %v8176_v56, %v519_v34  ;;  %1956 = vmatpush.bf16.msra.mxu2 %v7081_v4 }
 0x102   :  { %v787_v38 = vadd.f32 %v8184_v58, %v704_v35  ;;  %6237 = vmatmul.msk.bf16.gmra.mxu0 %vm347_vm1, %v7037_v32  ;;  %v8429_v32 = vpop.permute.xlu1 %1218 }
 0x104   :  { %v868_v39 = vmax.f32 %v787_v38, 0.0 }
 0x106   :  { %v1435_v8 = vmul.f32 %v8287_v10, %v868_v39  ;;  %v7038_v10 = vld [vmem:[%s10429_s0 + $0x80] sm:$0xff]  ;;  %v8399_v57 = vpop.permute.xlu2 %1193 }
 0x107   :  { %v521_v42 = vpop.f32.mrf.mxu0  ;;  %v2021_v35 = vld [vmem:[#allocation2 + $0x5c] ss:$2 sm:$0xff]  ;;  %v2019_v41 = vld [vmem:[#allocation2 + $0x5b] ss:$2 sm:$0xff] }
 0x108   :  { %1517 = vst.msk [vmem:[#allocation2 + $0x70] sm:$0xff] %vm1502_vm2, %v1435_v8  ;;  %v705_v44 = vmul.f32 %v8176_v56, %v521_v42  ;;  %v2017_v8 = vld [vmem:[#allocation2 + $0x5a] ss:$2 sm:$0xff] }
 0x10a   :  { %v788_v47 = vadd.f32 %v8184_v58, %v705_v44  ;;  %6346 = vmatmul.msk.bf16.vlgmr.msrb.gmra.mxu3 %vm1502_vm2, %v1987_v45 }
 0x10b   :  { %2344 = vmatpush.bf16.msrb.mxu3 %v7102_v25 }
 0x10c   :  { %v869_v49 = vmax.f32 %v788_v47, 0.0 }
 0x10e   :  { %v1436_v50 = vmul.f32 %v8292_v16, %v869_v49  ;;  %v2170_v16 = vld [vmem:[#allocation2 + $0x5b] ss:$2 sm:$0xff]  ;;  %v8417_v19 = vpop.permute.xlu2 %1208 }
 0x10f   :  { %v524_v53 = vpop.f32.mrf.mxu0  ;;  %v2171_v13 = vpack.c.bf16 %v2170_v16, %v2170_v16 }
 0x110   :  { %1518 = vst.msk [vmem:[#allocation2 + $0x78] sm:$0xff] %vm1502_vm2, %v1436_v50  ;;  %v706_v54 = vmul.f32 %v8176_v56, %v524_v53 }
 0x112   :  { %v789_v59 = vadd.f32 %v8184_v58, %v706_v54  ;;  %6238 = vmatmul.msk.bf16.gmra.mxu0 %vm347_vm1, %v7038_v10  ;;  %v8438_v54 = vpop.permute.xlu0 %1228 }
 0x114   :  { %v870_v61 = vmax.f32 %v789_v59, 0.0  ;;  %v7942_v59 = vmov 0.0  }
 0x115   :  { %1611 = vst.msk [vmem:[#allocation4] sm:$0xff] %vm1584_vm3, %v7942_v59 }
 0x116   :  { %v1437_v0 = vmul.f32 %v8299_v26, %v870_v61  ;;  %v7058_v26 = vld [vmem:[%s10429_s0 + $0x120] sm:$0xff]  ;;  %v8433_v38 = vpop.permute.xlu2 %1223  ;;  %1585 = vst.msk [vmem:[#allocation3] sm:$0xff] %vm1584_vm3, %v7942_v59  ;;  %v8450_v61 = vpop.permute.xlu1 %1233 }
 0x117   :  { %v526_v3 = vpop.f32.mrf.mxu0  ;;  %v2199_v6 = vld [vmem:[#allocation2 + $0x6e] ss:$2 sm:$0xff]  ;;  %v2198_v7 = vld [vmem:[#allocation2 + $0x6d] ss:$2 sm:$0xff]  ;;  %6258 = vmatmul.msk.bf16.vlgmr.msra.gmra.mxu1 %vm347_vm1, %v7058_v26  ;;  %1586 = vst.msk [vmem:[#allocation3 + $0x8] sm:$0xff] %vm1584_vm3, %v7942_v59 }
 0x118   :  { %1519 = vst.msk [vmem:[#allocation2 + $0x80] sm:$0xff] %vm1502_vm2, %v1437_v0  ;;  %v707_v12 = vmul.f32 %v8176_v56, %v526_v3  ;;  %v7304_v14 = vpack.i.bf16 %v2199_v6, %v2015_v5  ;;  %v7299_v17 = vpack.i.bf16 %v2198_v7, %v2014_v60  ;;  %v7040_v60 = vld [vmem:[%s10429_s0 + $0x90] sm:$0xff]  ;;  %v991_v5 = vld [vmem:[%s10432_s3 + $0x1c0] sm:$0xff] }
 0x119   :  { %1587 = vst.msk [vmem:[#allocation3 + $0x10] sm:$0xff] %vm1584_vm3, %v7942_v59 }
 0x11a   :  { %v790_v18 = vadd.f32 %v8184_v58, %v707_v12  ;;  %6388 = vmatmul.msk.bf16.vlgmr.msra.gmra.mxu3 %vm1502_vm2, %v2171_v13  ;;  %7305 = vrot.lane.b32.xlu0 %v7304_v14, %s7935_s23  ;;  %1588 = vst.msk [vmem:[#allocation3 + $0x18] sm:$0xff] %vm1584_vm3, %v7942_v59  ;;  %v8475_v9 = vpop.permute.xlu0 %1243 }
 0x11b   :  { %7300 = vrot.lane.b32.xlu2 %v7299_v17, %s7936_s24  ;;  %1589 = vst.msk [vmem:[#allocation3 + $0x20] sm:$0xff] %vm1584_vm3, %v7942_v59  ;;  %v2025_v17 = vld [vmem:[#allocation2 + $0x6d] ss:$2 sm:$0xff] }
 0x11c   :  { %v871_v21 = vmax.f32 %v790_v18, 0.0  ;;  %1590 = vst.msk [vmem:[#allocation3 + $0x28] sm:$0xff] %vm1584_vm3, %v7942_v59  ;;  %v2023_v18 = vld [vmem:[#allocation2 + $0x6c] ss:$2 sm:$0xff] }
 0x11d   :  { %1591 = vst.msk [vmem:[#allocation3 + $0x30] sm:$0xff] %vm1584_vm3, %v7942_v59 }
 0x11e   :  { %v1438_v22 = vmul.f32 %v8303_v28, %v871_v21  ;;  %v8467_v6 = vpop.permute.xlu2 %1238  ;;  %1592 = vst.msk [vmem:[#allocation3 + $0x38] sm:$0xff] %vm1584_vm3, %v7942_v59  ;;  %v8485_v13 = vpop.permute.xlu1 %1248 }
 0x11f   :  { %v529_v27 = vpop.f32.mrf.mxu0  ;;  %1593 = vst.msk [vmem:[#allocation3 + $0x40] sm:$0xff] %vm1584_vm3, %v7942_v59 }
 0x120   :  { %1520 = vst.msk [vmem:[#allocation2 + $0x88] sm:$0xff] %vm1502_vm2, %v1438_v22  ;;  %v708_v31 = vmul.f32 %v8176_v56, %v529_v27  ;;  %v7071_v27 = vld [vmem:[%s10433_s4 + $0x38] sm:$0xff] }
 0x121   :  { %1594 = vst.msk [vmem:[#allocation3 + $0x48] sm:$0xff] %vm1584_vm3, %v7942_v59  ;;  %1770 = vmatpush.bf16.msrb.mxu1 %v7071_v27 }
 0x122   :  { %v791_v28 = vadd.f32 %v8184_v58, %v708_v31  ;;  %6239 = vmatmul.msk.bf16.gmra.mxu0 %vm347_vm1, %v7039_v23  ;;  %1595 = vst.msk [vmem:[#allocation3 + $0x50] sm:$0xff] %vm1584_vm3, %v7942_v59 }
 0x123   :  { %1596 = vst.msk [vmem:[#allocation3 + $0x58] sm:$0xff] %vm1584_vm3, %v7942_v59 }
 0x124   :  { %v872_v34 = vmax.f32 %v791_v28, 0.0  ;;  %1597 = vst.msk [vmem:[#allocation3 + $0x60] sm:$0xff] %vm1584_vm3, %v7942_v59 }
 0x125   :  { %1598 = vst.msk [vmem:[#allocation3 + $0x68] sm:$0xff] %vm1584_vm3, %v7942_v59 }
 0x126   :  { %v1439_v39 = vmul.f32 %v8310_v33, %v872_v34  ;;  %v8505_v31 = vpop.permute.xlu2 %1253  ;;  %1599 = vst.msk [vmem:[#allocation3 + $0x70] sm:$0xff] %vm1584_vm3, %v7942_v59 }
 0x127   :  { %v531_v42 = vpop.f32.mrf.mxu0  ;;  %v2205_v44 = vld [vmem:[#allocation2 + $0x80] ss:$2 sm:$0xff]  ;;  %v2203_v45 = vld [vmem:[#allocation2 + $0x7f] ss:$2 sm:$0xff]  ;;  %1600 = vst.msk [vmem:[#allocation3 + $0x78] sm:$0xff] %vm1584_vm3, %v7942_v59 }
 0x128   :  { %v2201_v47 = vld [vmem:[#allocation2 + $0x7e] ss:$2 sm:$0xff]  ;;  %1521 = vst.msk [vmem:[#allocation2 + $0x90] sm:$0xff] %vm1502_vm2, %v1439_v39  ;;  %v709_v49 = vmul.f32 %v8176_v56, %v531_v42  ;;  %v7319_v50 = vpack.i.bf16 %v2205_v44, %v2021_v35  ;;  %v7314_v10 = vpack.i.bf16 %v2203_v45, %v2019_v41  ;;  %v8515_v35 = vpop.permute.xlu0 %1258  ;;  %v7041_v42 = vld [vmem:[%s10429_s0 + $0x98] sm:$0xff] }
 0x129   :  { %v7309_v53 = vpack.i.bf16 %v2201_v47, %v2017_v8  ;;  %1601 = vst.msk [vmem:[#allocation3 + $0x80] sm:$0xff] %vm1584_vm3, %v7942_v59  ;;  %v7070_v39 = vld [vmem:[%s10433_s4 + $0x30] sm:$0xff]  ;;  %v990_v45 = vld [vmem:[%s10432_s3 + $0x1b8] sm:$0xff] }
 0x12a   :  { %v792_v33 = vadd.f32 %v8184_v58, %v709_v49  ;;  %7320 = vrot.lane.b32.xlu0 %v7319_v50, %s7937_s29  ;;  %7315 = vrot.lane.b32.xlu2 %v7314_v10, %s7938_s30  ;;  %1602 = vst.msk [vmem:[#allocation3 + $0x88] sm:$0xff] %vm1584_vm3, %v7942_v59  ;;  %v7080_v41 = vld [vmem:[%s10433_s4 + $0x30] sm:$0xff]  ;;  %v8538_v49 = vpop.permute.xlu1 %1263  ;;  %v7069_v10 = vld [vmem:[%s10433_s4 + $0x28] sm:$0xff] }
 0x12b   :  { %7310 = vrot.lane.b32.xlu1 %v7309_v53, %s7939_s13  ;;  %1603 = vst.msk [vmem:[#allocation3 + $0x90] sm:$0xff] %vm1584_vm3, %v7942_v59  ;;  %1957 = vmatpush.bf16.msra.mxu2 %v7080_v41  ;;  %v7079_v53 = vld [vmem:[%s10433_s4 + $0x28] sm:$0xff] }
 0x12c   :  { %v873_v16 = vmax.f32 %v792_v33, 0.0  ;;  %1604 = vst.msk [vmem:[#allocation3 + $0x98] sm:$0xff] %vm1584_vm3, %v7942_v59  ;;  %1771 = vmatpush.bf16.msrb.mxu1 %v7070_v39  ;;  %v7065_v41 = vld [vmem:[%s10433_s4 + $0x8] sm:$0xff] }
 0x12d   :  { %1605 = vst.msk [vmem:[#allocation3 + $0xa0] sm:$0xff] %vm1584_vm3, %v7942_v59 }
 0x12e   :  { %v1440_v0 = vmul.f32 %v8313_v36, %v873_v16  ;;  %v8552_v16 = vpop.f32.mrf.mxu2  ;;  %1606 = vst.msk [vmem:[#allocation3 + $0xa8] sm:$0xff] %vm1584_vm3, %v7942_v59 }
 0x12f   :  { %v534_v3 = vpop.f32.mrf.mxu0  ;;  %1607 = vst.msk [vmem:[#allocation3 + $0xb0] sm:$0xff] %vm1584_vm3, %v7942_v59  ;;  %1958 = vmatpush.bf16.msra.mxu2 %v7079_v53 }
 0x130   :  { %1522 = vst.msk [vmem:[#allocation2 + $0x98] sm:$0xff] %vm1502_vm2, %v1440_v0  ;;  %v710_v36 = vmul.f32 %v8176_v56, %v534_v3  ;;  %v7078_v0 = vld [vmem:[%s10433_s4 + $0x20] sm:$0xff]  ;;  %1772 = vmatpush.bf16.msrb.mxu1 %v7069_v10 }
 0x131   :  { %1608 = vst.msk [vmem:[#allocation3 + $0xb8] sm:$0xff] %vm1584_vm3, %v7942_v59 }
 0x132   :  { %v793_v7 = vadd.f32 %v8184_v58, %v710_v36  ;;  %6240 = vmatmul.msk.bf16.gmra.mxu0 %vm347_vm1, %v7040_v60  ;;  %1298 = vperm.xlu0 %7261, %v991_v5   ;;  %v8562_v60 = vpop.permute.xlu2 %1268  ;;  %v7068_v5 = vld [vmem:[%s10433_s4 + $0x20] sm:$0xff]  ;;  %1609 = vst.msk [vmem:[#allocation3 + $0xc0] sm:$0xff] %vm1584_vm3, %v7942_v59 }
 0x133   :  { %1610 = vst.msk [vmem:[#allocation3 + $0xc8] sm:$0xff] %vm1584_vm3, %v7942_v59  ;;  %1959 = vmatpush.bf16.msra.mxu2 %v7078_v0 }
 0x134   :  { %v874_v12 = vmax.f32 %v793_v7, 0.0  ;;  %1773 = vmatpush.bf16.msrb.mxu1 %v7068_v5  ;;  %1612 = vst.msk [vmem:[#allocation4 + $0x8] sm:$0xff] %vm1584_vm3, %v7942_v59 }
 0x135   :  { %1613 = vst.msk [vmem:[#allocation4 + $0x10] sm:$0xff] %vm1584_vm3, %v7942_v59 }
 0x136   :  { %v1441_v14 = vmul.f32 %v8318_v46, %v874_v12  ;;  %v7059_v46 = vld [vmem:[%s10429_s0 + $0x128] sm:$0xff]  ;;  %v8572_v12 = vpop.permute.xlu0 %1273  ;;  %1614 = vst.msk [vmem:[#allocation4 + $0x18] sm:$0xff] %vm1584_vm3, %v7942_v59 }
 0x137   :  { %v536_v26 = vpop.f32.mrf.mxu0  ;;  %v2209_v21 = vld [vmem:[#allocation2 + $0x91] ss:$2 sm:$0xff]  ;;  %v2207_v22 = vld [vmem:[#allocation2 + $0x90] ss:$2 sm:$0xff]  ;;  %6259 = vmatmul.msk.bf16.gmra.mxu1 %vm347_vm1, %v7059_v46  ;;  %1615 = vst.msk [vmem:[#allocation4 + $0x20] sm:$0xff] %vm1584_vm3, %v7942_v59 }
 0x138   :  { %1523 = vst.msk [vmem:[#allocation2 + $0xa0] sm:$0xff] %vm1502_vm2, %v1441_v14  ;;  %v711_v23 = vmul.f32 %v8176_v56, %v536_v26  ;;  %v7329_v24 = vpack.i.bf16 %v2209_v21, %v2025_v17  ;;  %v7324_v25 = vpack.i.bf16 %v2207_v22, %v2023_v18  ;;  %v7060_v17 = vld [vmem:[%s10429_s0 + $0x130] sm:$0xff]  ;;  %v7077_v18 = vld [vmem:[%s10433_s4 + $0x18] sm:$0xff]  ;;  %v8589_v26 = vpop.permute.xlu1 %1278  ;;  %v681_v22 = vpop.f32.mrf.mxu2  ;;  %v7042_v46 = vld [vmem:[%s10429_s0 + $0xa0] sm:$0xff] }
 0x139   :  { %1960 = vmatpush.bf16.msra.mxu2 %v7077_v18  ;;  %v7076_v21 = vld [vmem:[%s10433_s4 + $0x10] sm:$0xff]  ;;  %1616 = vst.msk [vmem:[#allocation4 + $0x28] sm:$0xff] %vm1584_vm3, %v7942_v59 }
 0x13a   :  { %v794_v28 = vadd.f32 %v8184_v58, %v711_v23  ;;  %7330 = vrot.lane.b32.xlu2 %v7329_v24, %s7940_s17  ;;  %7325 = vrot.lane.b32.xlu1 %v7324_v25, %s7941_s18  ;;  %v7066_v23 = vld [vmem:[%s10433_s4 + $0x10] sm:$0xff]  ;;  %v8606_v25 = vpop.permute.xlu2 %1283  ;;  %1617 = vst.msk [vmem:[#allocation4 + $0x30] sm:$0xff] %vm1584_vm3, %v7942_v59 }
 0x13b   :  { %1618 = vst.msk [vmem:[#allocation4 + $0x38] sm:$0xff] %vm1584_vm3, %v7942_v59 }
 0x13c   :  { %v875_v34 = vmax.f32 %v794_v28, 0.0  ;;  %v7075_v28 = vld [vmem:[%s10433_s4 + $0x8] sm:$0xff]  ;;  %1619 = vst.msk [vmem:[#allocation4 + $0x40] sm:$0xff] %vm1584_vm3, %v7942_v59 }
 0x13d   :  { %1961 = vmatpush.bf16.msra.mxu2 %v7076_v21  ;;  %1620 = vst.msk [vmem:[#allocation4 + $0x48] sm:$0xff] %vm1584_vm3, %v7942_v59 }
 0x13e   :  { %v1442_v8 = vmul.f32 %v8325_v52, %v875_v34  ;;  %v8621_v34 = vpop.permute.xlu0 %1288  ;;  %1621 = vst.msk [vmem:[#allocation4 + $0x50] sm:$0xff] %vm1584_vm3, %v7942_v59 }
 0x13f   :  { %v539_v44 = vpop.f32.mrf.mxu0  ;;  %v2211_v47 = vld [vmem:[#allocation2 + $0x92] ss:$2 sm:$0xff]  ;;  %1622 = vst.msk [vmem:[#allocation4 + $0x58] sm:$0xff] %vm1584_vm3, %v7942_v59 }
 0x140   :  { %1524 = vst.msk [vmem:[#allocation2 + $0xa8] sm:$0xff] %vm1502_vm2, %v1442_v8  ;;  %v712_v52 = vmul.f32 %v8176_v56, %v539_v44  ;;  %v2248_v50 = vpack.c.bf16 %v2211_v47, %v2211_v47  ;;  %v7064_v47 = vld [vmem:[%s10433_s4] sm:$0xff] }
 0x141   :  { %1962 = vmatpush.bf16.msra.mxu2 %v7075_v28  ;;  %1623 = vst.msk [vmem:[#allocation4 + $0x60] sm:$0xff] %vm1584_vm3, %v7942_v59 }
 0x142   :  { %v795_v33 = vadd.f32 %v8184_v58, %v712_v52  ;;  %6241 = vmatmul.msk.bf16.gmra.mxu0 %vm347_vm1, %v7041_v42  ;;  %1293 = vperm.xlu2 %7263, %v990_v45   ;;  %v7074_v42 = vld [vmem:[%s10433_s4] sm:$0xff]  ;;  %1624 = vst.msk [vmem:[#allocation4 + $0x68] sm:$0xff] %vm1584_vm3, %v7942_v59  ;;  %v7271_v53 = vpop.permute.xlu2 %7270 }
 0x143   :  { %6425 = vmatmul.msk.bf16.vlgmr.msrb.gmra.mxu3 %vm1502_vm2, %v2248_v50  ;;  %1625 = vst.msk [vmem:[#allocation4 + $0x70] sm:$0xff] %vm1584_vm3, %v7942_v59  ;;  %v7272_v28 = vunpack.i.l.bf16 %v7271_v53 }
 0x144   :  { %v876_v3 = vmax.f32 %v795_v33, 0.0  ;;  %1626 = vst.msk [vmem:[#allocation4 + $0x78] sm:$0xff] %vm1584_vm3, %v7942_v59 }
 0x145   :  { %v1824_v36 = vpop.f32.mrf.mxu3  ;;  %v7266_v44 = vpop.permute.xlu1 %7265  ;;  %1963 = vmatpush.bf16.msra.mxu2 %v7074_v42  ;;  %1627 = vst.msk [vmem:[#allocation4 + $0x80] sm:$0xff] %vm1584_vm3, %v7942_v59 }
 0x146   :  { %v1443_v7 = vmul.f32 %v8330_v55, %v876_v3  ;;  %1828 = vst.msk [vmem:[#allocation4] sm:$0xff] %vm1584_vm3, %v1824_v36  ;;  %v7067_v55 = vld [vmem:[%s10433_s4 + $0x18] sm:$0xff]  ;;  %v7268_v33 = vunpack.i.h.bf16 %v7266_v44  ;;  %v7267_v5 = vunpack.i.l.bf16 %v7266_v44 }
 0x147   :  { %v541_v14 = vpop.f32.mrf.mxu0  ;;  %6260 = vmatmul.msk.bf16.gmra.mxu1 %vm347_vm1, %v7060_v17  ;;  %1628 = vst.msk [vmem:[#allocation4 + $0x88] sm:$0xff] %vm1584_vm3, %v7942_v59 }
 0x148   :  { %1525 = vst.msk [vmem:[#allocation2 + $0xb0] sm:$0xff] %vm1502_vm2, %v1443_v7  ;;  %1774 = vmatpush.bf16.msrb.mxu1 %v7067_v55  ;;  %v713_v27 = vmul.f32 %v8176_v56, %v541_v14  ;;  %v1636_v14 = vld [vmem:[#allocation2] ss:$2 sm:$0xff] }
 0x149   :  { %1629 = vst.msk [vmem:[#allocation4 + $0x90] sm:$0xff] %vm1584_vm3, %v7942_v59  ;;  %v1681_v18 = vsel %vm1502_vm2, %v1636_v14, %v7268_v33  ;;  %v1829_v55 = vld [vmem:[#allocation2 + $0x24] ss:$2 sm:$0xff] }
 0x14a   :  { %v796_v8 = vadd.f32 %v8184_v58, %v713_v27  ;;  %1630 = vst.msk [vmem:[#allocation4 + $0x98] sm:$0xff] %vm1584_vm3, %v7942_v59  ;;  %v7286_v42 = vpop.permute.xlu2 %7285 }
 0x14b   :  { %1631 = vst.msk [vmem:[#allocation4 + $0xa0] sm:$0xff] %vm1584_vm3, %v7942_v59  ;;  %v7288_v33 = vunpack.i.h.bf16 %v7286_v42 }
 0x14c   :  { %1775 = vmatpush.bf16.msrb.mxu1 %v7066_v23  ;;  %v877_v50 = vmax.f32 %v796_v8, 0.0  ;;  %1632 = vst.msk [vmem:[#allocation4 + $0xa8] sm:$0xff] %vm1584_vm3, %v7942_v59 }
 0x14d   :  { %v1826_v24 = vpop.f32.mrf.mxu3  ;;  %1633 = vst.msk [vmem:[#allocation4 + $0xb0] sm:$0xff] %vm1584_vm3, %v7942_v59 }
 0x14e   :  { %v1444_v17 = vmul.f32 %v8337_v62, %v877_v50  ;;  %v7273_v24 = vunpack.i.h.bf16 %v7271_v53 }
 0x14f   :  { %v544_v4 = vpop.f32.mrf.mxu0 }
 0x150   :  { %v714_v39 = vmul.f32 %v8176_v56, %v544_v4  ;;  %1776 = vmatpush.bf16.msrb.mxu1 %v7065_v41  ;;  %1526 = vst.msk [vmem:[#allocation2 + $0xb8] sm:$0xff] %vm1502_vm2, %v1444_v17  ;;  %v1682_v41 = vsel %vm1584_vm3, %v1681_v18, %v7273_v24  ;;  %v2382_v18 = vld [vmem:[#allocation2 + $0x91] ss:$2 sm:$0xff] }
 0x152   :  { %6242 = vmatmul.msk.bf16.gmra.mxu0 %vm347_vm1, %v7042_v46  ;;  %v797_v45 = vadd.f32 %v8184_v58, %v714_v39  ;;  %v1872_v46 = vsel %vm1502_vm2, %v1829_v55, %v7267_v5 }
 0x153   :  { %v1873_v59 = vsel %vm1584_vm3, %v1872_v46, %v7272_v28 }
 0x154   :  { %v878_v0 = vmax.f32 %v797_v45, 0.0  ;;  %1777 = vmatpush.bf16.msrb.mxu1 %v7064_v47 }
 0x155   :  { %v7276_v36 = vpop.permute.xlu0 %7275  ;;  %v7281_v22 = vpop.permute.xlu1 %7280 }
 0x156   :  { %v8648_v52 = vpop.f32.mrf.mxu2  ;;  %v1445_v21 = vmul.f32 %v8340_v2, %v878_v0  ;;  %v7278_v27 = vunpack.i.h.bf16 %v7276_v36  ;;  %v7277_v4 = vunpack.i.l.bf16 %v7276_v36  ;;  %v7043_v2 = vld [vmem:[%s10429_s0 + $0xa8] sm:$0xff]  ;;  %v7283_v44 = vunpack.i.h.bf16 %v7281_v22 }
 0x157   :  { %v546_v10 = vpop.f32.mrf.mxu0  ;;  %v7282_v45 = vunpack.i.l.bf16 %v7281_v22  ;;  %v7287_v36 = vunpack.i.l.bf16 %v7286_v42  ;;  %v2383_v22 = vld [vmem:[#allocation2 + $0x92] ss:$2 sm:$0xff]  ;;  %v8709_v42 = vld [vmem:[%s10431_s2 + $0x1] ss:$0 sm:$0xff] }
 0x158   :  { %v715_v3 = vmul.f32 %v8176_v56, %v546_v10  ;;  %1527 = vst.msk [vmem:[#allocation2 + $0xc0] sm:$0xff] %vm1502_vm2, %v1445_v21  ;;  %v1684_v50 = vsel %vm1683_vm4, %v1682_v41, %v7278_v27  ;;  %v1874_v10 = vsel %vm1683_vm4, %v1873_v59, %v7277_v4 }
 0x159   :  { %v1686_v0 = vsel %vm1685_vm5, %v1684_v50, %v7283_v44  ;;  %v2389_v50 = vld [vmem:[#allocation2 + $0xa4] ss:$2 sm:$0xff] }
 0x15a   :  { %v798_v7 = vadd.f32 %v8184_v58, %v715_v3  ;;  %v1688_v4 = vsel %vm1687_vm6, %v1686_v0, %v7288_v33  ;;  %v2387_v33 = vld [vmem:[#allocation2 + $0xa3] ss:$2 sm:$0xff]  ;;  %v2385_v0 = vld [vmem:[#allocation2 + $0xa2] ss:$2 sm:$0xff] }
 0x15c   :  { %v879_v23 = vmax.f32 %v798_v7, 0.0 }
 0x15e   :  { %v1446_v62 = vmul.f32 %v8348_v15, %v879_v23  ;;  %v1794_v39 = vpop.f32.mrf.mxu2  ;;  %v7092_v15 = vld [vmem:[%s10433_s4 + $0x40] sm:$0xff] }
 0x15f   :  { %v549_v8 = vpop.f32.mrf.mxu0  ;;  %2160 = vmatpush.bf16.msrb.mxu2 %v7092_v15  ;;  %v2567_v23 = vld [vmem:[#allocation2 + $0xb6] ss:$2 sm:$0xff]  ;;  %v2566_v24 = vld [vmem:[#allocation2 + $0xb5] ss:$2 sm:$0xff] }
 0x160   :  { %v716_v47 = vmul.f32 %v8176_v56, %v549_v8  ;;  %1528 = vst.msk [vmem:[#allocation2 + $0xc8] sm:$0xff] %vm1502_vm2, %v1446_v62  ;;  %v1875_v56 = vsel %vm1685_vm5, %v1874_v10, %v7282_v45  ;;  %v7339_v28 = vpack.i.bf16 %v2567_v23, %v2383_v22  ;;  %v7334_v62 = vpack.i.bf16 %v2566_v24, %v2382_v18  ;;  %v994_v22 = vld [vmem:[%s10432_s3 + $0x1d8] sm:$0xff] }
 0x161   :  { %v1876_v46 = vsel %vm1687_vm6, %v1875_v56, %v7287_v36  ;;  %v2027_v23 = vld [vmem:[#allocation2 + $0x6e] ss:$2 sm:$0xff] }
 0x162   :  { %v799_v53 = vadd.f32 %v8184_v58, %v716_v47  ;;  %6243 = vmatmul.msk.bf16.gmra.mxu0 %vm347_vm1, %v7043_v2  ;;  %7340 = vrot.lane.b32.xlu1 %v7339_v28, %s7935_s23 }
 0x163   :  { %7335 = vrot.lane.b32.xlu0 %v7334_v62, %s7936_s24 }
 0x164   :  { %v880_v3 = vmax.f32 %v799_v53, 0.0  ;;  %v7296_v5 = vpop.permute.xlu1 %7295  ;;  %v7044_v53 = vld [vmem:[%s10429_s0 + $0xb0] sm:$0xff] }
 0x165   :  { %v7297_v7 = vunpack.i.l.bf16 %v7296_v5  ;;  %v7291_v14 = vpop.permute.xlu0 %7290  ;;  %v7298_v58 = vunpack.i.h.bf16 %v7296_v5 }
 0x166   :  { %v1447_v17 = vmul.f32 %v8354_v1, %v880_v3  ;;  %v7293_v55 = vunpack.i.h.bf16 %v7291_v14  ;;  %v7292_v21 = vunpack.i.l.bf16 %v7291_v14  ;;  %v8699_v1 = vld [vmem:[%s10431_s2] ss:$0 sm:$0xff] }
 0x167   :  { %v551_v27 = vpop.f32.mrf.mxu0 }
 0x168   :  { %1529 = vst.msk [vmem:[#allocation2 + $0xd0] sm:$0xff] %vm1502_vm2, %v1447_v17  ;;  %v1877_v39 = vsel %vm1689_vm7, %v1876_v46, %v7292_v21  ;;  %v717_v2 = vmul.f32 %v8699_v1, %v551_v27  ;;  %v1690_v41 = vsel %vm1689_vm7, %v1688_v4, %v7293_v55  ;;  %v7091_v46 = vld [vmem:[%s10433_s4 + $0x38] sm:$0xff]  ;;  %v2064_v4 = vpack.c.bf16 %v2027_v23, %v2027_v23 }
 0x169   :  { %v1878_v8 = vsel %vm1691_vm8, %v1877_v39, %v7297_v7  ;;  %v1692_v45 = vsel %vm1691_vm8, %v1690_v41, %v7298_v58  ;;  %v7101_v27 = vld [vmem:[%s10433_s4 + $0x38] sm:$0xff]  ;;  %2140 = vmatpush.bf16.msra.mxu1 %v7091_v46  ;;  %v997_v41 = vld [vmem:[%s10432_s3 + $0x1f0] sm:$0xff]  ;;  %v7046_v46 = vld [vmem:[%s10429_s0 + $0xc0] sm:$0xff] }
 0x16a   :  { %v800_v44 = vadd.f32 %v8709_v42, %v717_v2  ;;  %v1879_v59 = vpack.c.bf16 %v1878_v8, %v1878_v8  ;;  %v1693_v47 = vpack.c.bf16 %v1692_v45, %v1692_v45  ;;  %v7045_v2 = vld [vmem:[%s10429_s0 + $0xb8] sm:$0xff] }
 0x16b   :  { %v2393_v8 = vld [vmem:[#allocation2 + $0xb5] ss:$2 sm:$0xff] }
 0x16c   :  { %v881_v15 = vmax.f32 %v800_v44, 0.0  ;;  %1964 = vmatmul.bf16.vlgmr.msra.gmra.mxu2 %v1879_v59  ;;  %1778 = vmatmul.bf16.vlgmr.msrb.gmra.mxu1 %v1693_v47  ;;  %v2391_v59 = vld [vmem:[#allocation2 + $0xb4] ss:$2 sm:$0xff] }
 0x16d   :  { %2324 = vmatpush.bf16.msra.mxu2 %v7101_v27 }
 0x16e   :  { %v1448_v10 = vmul.f32 %v8357_v20, %v881_v15 }
 0x16f   :  { %v554_v56 = vpop.f32.mrf.mxu0  ;;  %v2573_v3 = vld [vmem:[#allocation2 + $0xc8] ss:$2 sm:$0xff]  ;;  %v2571_v5 = vld [vmem:[#allocation2 + $0xc7] ss:$2 sm:$0xff] }
 0x170   :  { %v2569_v36 = vld [vmem:[#allocation2 + $0xc6] ss:$2 sm:$0xff]  ;;  %1530 = vst.msk [vmem:[#allocation2 + $0xd8] sm:$0xff] %vm1502_vm2, %v1448_v10  ;;  %v718_v7 = vmul.f32 %v8699_v1, %v554_v56  ;;  %v7354_v14 = vpack.i.bf16 %v2573_v3, %v2389_v50  ;;  %v7349_v17 = vpack.i.bf16 %v2571_v5, %v2387_v33 }
 0x171   :  { %v7344_v18 = vpack.i.bf16 %v2569_v36, %v2385_v0  ;;  %v7089_v56 = vld [vmem:[%s10433_s4 + $0x28] sm:$0xff] }
 0x172   :  { %v801_v58 = vadd.f32 %v8709_v42, %v718_v7  ;;  %6244 = vmatmul.msk.bf16.gmra.mxu0 %vm347_vm1, %v7044_v53  ;;  %7355 = vrot.lane.b32.xlu1 %v7354_v14, %s7937_s29  ;;  %v7100_v53 = vld [vmem:[%s10433_s4 + $0x30] sm:$0xff]  ;;  %v7099_v3 = vld [vmem:[%s10433_s4 + $0x28] sm:$0xff] }
 0x173   :  { %7350 = vrot.lane.b32.xlu0 %v7349_v17, %s7938_s30  ;;  %7345 = vrot.lane.b32.xlu2 %v7344_v18, %s7939_s13  ;;  %v993_v14 = vld [vmem:[%s10432_s3 + $0x1d0] sm:$0xff]  ;;  %v992_v18 = vld [vmem:[%s10432_s3 + $0x1c8] sm:$0xff] }
 0x174   :  { %v882_v20 = vmax.f32 %v801_v58, 0.0  ;;  %2325 = vmatpush.bf16.msra.mxu2 %v7100_v53  ;;  %v7088_v58 = vld [vmem:[%s10433_s4 + $0x20] sm:$0xff] }
 0x176   :  { %v1449_v55 = vmul.f32 %v8366_v29, %v882_v20 }
 0x177   :  { %v556_v21 = vpop.f32.mrf.mxu0 }
 0x178   :  { %1531 = vst.msk [vmem:[#allocation2 + $0xe0] sm:$0xff] %vm1502_vm2, %v1449_v55  ;;  %v719_v24 = vmul.f32 %v8699_v1, %v556_v21  ;;  %2326 = vmatpush.bf16.msra.mxu2 %v7099_v3  ;;  %v7087_v21 = vld [vmem:[%s10433_s4 + $0x18] sm:$0xff] }
 0x17a   :  { %v802_v29 = vadd.f32 %v8709_v42, %v719_v24  ;;  %1313 = vperm.xlu1 %7262, %v994_v22   ;;  %v7097_v22 = vld [vmem:[%s10433_s4 + $0x18] sm:$0xff] }
 0x17c   :  { %v883_v28 = vmax.f32 %v802_v29, 0.0  ;;  %6383 = vmatmul.msk.bf16.vlgmr.msrb.gmra.mxu2 %vm1502_vm2, %v2064_v4  ;;  %v996_v29 = vld [vmem:[%s10432_s3 + $0x1e8] sm:$0xff] }
 0x17d   :  { %v8738_v62 = vpop.f32.mrf.mxu3 }
 0x17e   :  { %v1450_v39 = vmul.f32 %v8368_v30, %v883_v28  ;;  %v7090_v30 = vld [vmem:[%s10433_s4 + $0x30] sm:$0xff]  ;;  %v995_v28 = vld [vmem:[%s10432_s3 + $0x1e0] sm:$0xff] }
 0x17f   :  { %v559_v44 = vpop.f32.mrf.mxu0  ;;  %v2577_v45 = vld [vmem:[#allocation2 + $0xd9] ss:$2 sm:$0xff]  ;;  %v2575_v47 = vld [vmem:[#allocation2 + $0xd8] ss:$2 sm:$0xff]  ;;  %2141 = vmatpush.bf16.msra.mxu1 %v7090_v30  ;;  %v7301_v30 = vpop.permute.xlu2 %7300 }
 0x180   :  { %1532 = vst.msk [vmem:[#allocation2 + $0xe8] sm:$0xff] %vm1502_vm2, %v1450_v39  ;;  %v720_v15 = vmul.f32 %v8699_v1, %v559_v44  ;;  %v7364_v50 = vpack.i.bf16 %v2577_v45, %v2393_v8  ;;  %v7359_v10 = vpack.i.bf16 %v2575_v47, %v2391_v59  ;;  %v7096_v39 = vld [vmem:[%s10433_s4 + $0x10] sm:$0xff]  ;;  %v7085_v8 = vld [vmem:[%s10433_s4 + $0x8] sm:$0xff] }
 0x181   :  { %v7095_v44 = vld [vmem:[%s10433_s4 + $0x8] sm:$0xff] }
 0x182   :  { %v803_v33 = vadd.f32 %v8709_v42, %v720_v15  ;;  %6245 = vmatmul.msk.bf16.gmra.mxu0 %vm347_vm1, %v7045_v2  ;;  %1328 = vperm.xlu1 %7262, %v997_v41  }
 0x183   :  { %7365 = vrot.lane.b32.xlu0 %v7364_v50, %s7940_s17  ;;  %7360 = vrot.lane.b32.xlu2 %v7359_v10, %s7941_s18  ;;  %v7084_v50 = vld [vmem:[%s10433_s4] sm:$0xff] }
 0x184   :  { %v884_v0 = vmax.f32 %v803_v33, 0.0  ;;  %2142 = vmatpush.bf16.msra.mxu1 %v7089_v56  ;;  %v7094_v10 = vld [vmem:[%s10433_s4] sm:$0xff]  ;;  %v7047_v56 = vld [vmem:[%s10429_s0 + $0xc8] sm:$0xff] }
 0x185   :  { %v1980_v5 = vpop.f32.mrf.mxu3 }
 0x186   :  { %v1451_v36 = vmul.f32 %v8376_v37, %v884_v0  ;;  %v7098_v37 = vld [vmem:[%s10433_s4 + $0x20] sm:$0xff] }
 0x187   :  { %v561_v7 = vpop.f32.mrf.mxu0  ;;  %2327 = vmatpush.bf16.msra.mxu2 %v7098_v37 }
 0x188   :  { %1533 = vst.msk [vmem:[#allocation2 + $0xf0] sm:$0xff] %vm1502_vm2, %v1451_v36  ;;  %v721_v17 = vmul.f32 %v8699_v1, %v561_v7  ;;  %2143 = vmatpush.bf16.msra.mxu1 %v7088_v58 }
 0x18a   :  { %v804_v20 = vadd.f32 %v8709_v42, %v721_v17  ;;  %v7302_v17 = vunpack.i.l.bf16 %v7301_v30 }
 0x18b   :  { %1308 = vperm.xlu0 %7261, %v993_v14   ;;  %1303 = vperm.xlu2 %7263, %v992_v18   ;;  %v7303_v14 = vunpack.i.h.bf16 %v7301_v30  ;;  %v7316_v18 = vpop.permute.xlu2 %7315 }
 0x18c   :  { %v885_v55 = vmax.f32 %v804_v20, 0.0  ;;  %2144 = vmatpush.bf16.msra.mxu1 %v7087_v21  ;;  %2328 = vmatpush.bf16.msra.mxu2 %v7097_v22  ;;  %v7306_v3 = vpop.permute.xlu0 %7305  ;;  %v7317_v30 = vunpack.i.l.bf16 %v7316_v18 }
 0x18d   :  { %v2008_v23 = vpop.f32.mrf.mxu3  ;;  %v7308_v58 = vunpack.i.h.bf16 %v7306_v3 }
 0x18e   :  { %v1452_v24 = vmul.f32 %v8380_v40, %v885_v55  ;;  %2012 = vst.msk [vmem:[#allocation4 + $0xa] sm:$0xff] %vm1584_vm3, %v2008_v23  ;;  %v7086_v40 = vld [vmem:[%s10433_s4 + $0x10] sm:$0xff] }
 0x18f   :  { %v564_v27 = vpop.f32.mrf.mxu0  ;;  %v2197_v55 = vld [vmem:[#allocation2 + $0x6c] ss:$2 sm:$0xff] }
 0x190   :  { %1534 = vst.msk [vmem:[#allocation2 + $0xf8] sm:$0xff] %vm1502_vm2, %v1452_v24  ;;  %v722_v4 = vmul.f32 %v8699_v1, %v564_v27  ;;  %2145 = vmatpush.bf16.msra.mxu1 %v7086_v40  ;;  %2329 = vmatpush.bf16.msra.mxu2 %v7096_v39  ;;  %v2013_v23 = vld [vmem:[#allocation2 + $0x48] ss:$2 sm:$0xff]  ;;  %v2240_v24 = vsel %vm1502_vm2, %v2197_v55, %v7303_v14 }
 0x191   :  { %v2056_v27 = vsel %vm1502_vm2, %v2013_v23, %v7302_v17  ;;  %v7048_v55 = vld [vmem:[%s10429_s0 + $0xd0] sm:$0xff] }
 0x192   :  { %v805_v2 = vadd.f32 %v8709_v42, %v722_v4  ;;  %6246 = vmatmul.msk.bf16.gmra.mxu0 %vm347_vm1, %v7046_v46 }
 0x193   :  { %1323 = vperm.xlu0 %7261, %v996_v29   ;;  %1318 = vperm.xlu2 %7263, %v995_v28   ;;  %v2241_v29 = vsel %vm1584_vm3, %v2240_v24, %v7308_v58  ;;  %v2750_v28 = vld [vmem:[#allocation2 + $0xd9] ss:$2 sm:$0xff] }
 0x194   :  { %v886_v41 = vmax.f32 %v805_v2, 0.0  ;;  %2146 = vmatpush.bf16.msra.mxu1 %v7085_v8  ;;  %2330 = vmatpush.bf16.msra.mxu2 %v7095_v44 }
 0x195   :  { %v2010_v45 = vpop.f32.mrf.mxu3 }
 0x196   :  { %v1453_v59 = vmul.f32 %v8383_v43, %v886_v41  ;;  %v2751_v41 = vld [vmem:[#allocation2 + $0xda] ss:$2 sm:$0xff] }
 0x197   :  { %v566_v47 = vpop.f32.mrf.mxu0 }
 0x198   :  { %1535 = vst.msk [vmem:[#allocation2 + $0x100] sm:$0xff] %vm1502_vm2, %v1453_v59  ;;  %v723_v15 = vmul.f32 %v8699_v1, %v566_v47  ;;  %2147 = vmatpush.bf16.msra.mxu1 %v7084_v50  ;;  %2331 = vmatpush.bf16.msra.mxu2 %v7094_v10  ;;  %v7113_v50 = vld [vmem:[%s10434_s5] sm:$0xff]  ;;  %v7318_v10 = vunpack.i.h.bf16 %v7316_v18 }
 0x19a   :  { %v806_v53 = vadd.f32 %v8709_v42, %v723_v15 }
 0x19c   :  { %v887_v33 = vmax.f32 %v806_v53, 0.0  ;;  %v7321_v53 = vpop.permute.xlu0 %7320  ;;  %2558 = vmatpush.bf16.msrb.mxu2 %v7113_v50 }
 0x19d   :  { %v2192_v43 = vpop.f32.mrf.mxu3  ;;  %v7311_v36 = vpop.permute.xlu1 %7310 }
 0x19e   :  { %v1454_v0 = vmul.f32 %v8389_v48, %v887_v33  ;;  %2196 = vst.msk [vmem:[#allocation4 + $0x14] sm:$0xff] %vm1584_vm3, %v2192_v43  ;;  %v7307_v48 = vunpack.i.l.bf16 %v7306_v3  ;;  %v7313_v20 = vunpack.i.h.bf16 %v7311_v36  ;;  %v7312_v21 = vunpack.i.l.bf16 %v7311_v36  ;;  %v7331_v33 = vpop.permute.xlu2 %7330 }
 0x19f   :  { %v569_v5 = vpop.f32.mrf.mxu0  ;;  %v7323_v3 = vunpack.i.h.bf16 %v7321_v53  ;;  %v7333_v14 = vunpack.i.h.bf16 %v7331_v33  ;;  %v7332_v58 = vunpack.i.l.bf16 %v7331_v33 }
 0x1a0   :  { %1536 = vst.msk [vmem:[#allocation2 + $0x108] sm:$0xff] %vm1502_vm2, %v1454_v0  ;;  %v724_v7 = vmul.f32 %v8699_v1, %v569_v5  ;;  %v2057_v40 = vsel %vm1584_vm3, %v2056_v27, %v7307_v48  ;;  %v2242_v39 = vsel %vm1683_vm4, %v2241_v29, %v7313_v20  ;;  %v7322_v5 = vunpack.i.l.bf16 %v7321_v53  ;;  %v7122_v53 = vld [vmem:[%s10433_s4 + $0x40] sm:$0xff] }
 0x1a1   :  { %v2058_v45 = vsel %vm1683_vm4, %v2057_v40, %v7312_v21  ;;  %v2243_v0 = vsel %vm1685_vm5, %v2242_v39, %v7318_v10  ;;  %v8859_v21 = vpop.f32.mrf.mxu1 }
 0x1a2   :  { %v807_v37 = vadd.f32 %v8709_v42, %v724_v7  ;;  %6247 = vmatmul.msk.bf16.gmra.mxu0 %vm347_vm1, %v7047_v56  ;;  %v2059_v56 = vsel %vm1685_vm5, %v2058_v45, %v7317_v30  ;;  %v2244_v20 = vsel %vm1687_vm6, %v2243_v0, %v7323_v3  ;;  %v2354_v3 = vld [vmem:[#allocation2 + $0x7f] ss:$2 sm:$0xff] }
 0x1a3   :  { %v2060_v48 = vsel %vm1687_vm6, %v2059_v56, %v7322_v5  ;;  %v7049_v56 = vld [vmem:[%s10429_s0 + $0xd8] sm:$0xff] }
 0x1a4   :  { %v888_v22 = vmax.f32 %v807_v37, 0.0 }
 0x1a5   :  { %v2194_v46 = vpop.f32.mrf.mxu3 }
 0x1a6   :  { %v1455_v4 = vmul.f32 %v8392_v51, %v888_v22  ;;  %v7103_v51 = vld [vmem:[%s10434_s5] sm:$0xff] }
 0x1a7   :  { %v571_v2 = vpop.f32.mrf.mxu0  ;;  %v2935_v8 = vld [vmem:[#allocation2 + $0xfe] ss:$2 sm:$0xff]  ;;  %v2934_v44 = vld [vmem:[#allocation2 + $0xfd] ss:$2 sm:$0xff]  ;;  %2374 = vmatpush.bf16.msrb.mxu1 %v7103_v51 }
 0x1a8   :  { %1537 = vst.msk [vmem:[#allocation2 + $0x110] sm:$0xff] %vm1502_vm2, %v1455_v4  ;;  %v725_v59 = vmul.f32 %v8699_v1, %v571_v2  ;;  %v7374_v47 = vpack.i.bf16 %v2935_v8, %v2751_v41  ;;  %v7369_v15 = vpack.i.bf16 %v2934_v44, %v2750_v28  ;;  %v2757_v2 = vld [vmem:[#allocation2 + $0xec] ss:$2 sm:$0xff]  ;;  %v2755_v41 = vld [vmem:[#allocation2 + $0xeb] ss:$2 sm:$0xff] }
 0x1a9   :  { %v2753_v8 = vld [vmem:[#allocation2 + $0xea] ss:$2 sm:$0xff]  ;;  %v8872_v30 = vpop.f32.mrf.mxu1 }
 0x1aa   :  { %v808_v43 = vadd.f32 %v8709_v42, %v725_v59  ;;  %7375 = vrot.lane.b32.xlu2 %v7374_v47, %s7935_s23  ;;  %7370 = vrot.lane.b32.xlu1 %v7369_v15, %s7936_s24 }
 0x1ac   :  { %v889_v36 = vmax.f32 %v808_v43, 0.0  ;;  %v7326_v7 = vpop.permute.xlu1 %7325 }
 0x1ad   :  { %v7328_v17 = vunpack.i.h.bf16 %v7326_v7  ;;  %v7327_v18 = vunpack.i.l.bf16 %v7326_v7  ;;  %v2538_v7 = vld [vmem:[#allocation2 + $0xa3] ss:$2 sm:$0xff] }
 0x1ae   :  { %v1456_v37 = vmul.f32 %v8399_v57, %v889_v36  ;;  %v998_v36 = vld [vmem:[%s10432_s3 + $0x1f8] sm:$0xff] }
 0x1af   :  { %v2245_v22 = vsel %vm1689_vm7, %v2244_v20, %v7328_v17  ;;  %v2061_v23 = vsel %vm1689_vm7, %v2060_v48, %v7327_v18  ;;  %v574_v24 = vpop.f32.mrf.mxu0  ;;  %v1000_v17 = vld [vmem:[%s10432_s3 + $0x208] sm:$0xff]  ;;  %v2355_v18 = vpack.c.bf16 %v2354_v3, %v2354_v3  ;;  %v2539_v48 = vpack.c.bf16 %v2538_v7, %v2538_v7  ;;  %v7107_v3 = vld [vmem:[%s10433_s4 + $0x18] sm:$0xff] }
 0x1b0   :  { %1538 = vst.msk [vmem:[#allocation2 + $0x118] sm:$0xff] %vm1502_vm2, %v1456_v37  ;;  %v726_v46 = vmul.f32 %v8699_v1, %v574_v24  ;;  %v2062_v57 = vsel %vm1691_vm8, %v2061_v23, %v7332_v58  ;;  %v2246_v27 = vsel %vm1691_vm8, %v2245_v22, %v7333_v14  ;;  %v7121_v58 = vld [vmem:[%s10433_s4 + $0x38] sm:$0xff]  ;;  %v2761_v24 = vld [vmem:[#allocation2 + $0xfd] ss:$2 sm:$0xff] }
 0x1b1   :  { %v2063_v29 = vpack.c.bf16 %v2062_v57, %v2062_v57  ;;  %v2247_v4 = vpack.c.bf16 %v2246_v27, %v2246_v27  ;;  %v1003_v27 = vld [vmem:[%s10432_s3 + $0x220] sm:$0xff] }
 0x1b2   :  { %v809_v28 = vadd.f32 %v8709_v42, %v726_v46  ;;  %6248 = vmatmul.msk.bf16.gmra.mxu0 %vm347_vm1, %v7048_v55  ;;  %v2759_v46 = vld [vmem:[#allocation2 + $0xfc] ss:$2 sm:$0xff] }
 0x1b3   :  { %2148 = vmatmul.bf16.vlgmr.msra.gmra.mxu1 %v2063_v29  ;;  %2332 = vmatmul.bf16.vlgmr.msra.gmra.mxu2 %v2247_v4 }
 0x1b4   :  { %v890_v40 = vmax.f32 %v809_v28, 0.0  ;;  %2712 = vmatpush.bf16.msra.mxu2 %v7122_v53  ;;  %v8904_v20 = vpop.f32.mrf.mxu1 }
 0x1b6   :  { %v1457_v39 = vmul.f32 %v8403_v63, %v890_v40  ;;  %v7112_v63 = vld [vmem:[%s10433_s4 + $0x40] sm:$0xff] }
 0x1b7   :  { %v576_v44 = vpop.f32.mrf.mxu0  ;;  %v2941_v45 = vld [vmem:[#allocation2 + $0x110] ss:$2 sm:$0xff]  ;;  %v2939_v59 = vld [vmem:[#allocation2 + $0x10f] ss:$2 sm:$0xff]  ;;  %2528 = vmatpush.bf16.msra.mxu1 %v7112_v63 }
 0x1b8   :  { %v2937_v47 = vld [vmem:[#allocation2 + $0x10e] ss:$2 sm:$0xff]  ;;  %1539 = vst.msk [vmem:[#allocation2 + $0x120] sm:$0xff] %vm1502_vm2, %v1457_v39  ;;  %v727_v15 = vmul.f32 %v8699_v1, %v576_v44  ;;  %v7389_v51 = vpack.i.bf16 %v2941_v45, %v2757_v2  ;;  %v7384_v50 = vpack.i.bf16 %v2939_v59, %v2755_v41  ;;  %v7109_v2 = vld [vmem:[%s10433_s4 + $0x28] sm:$0xff] }
 0x1b9   :  { %v7379_v10 = vpack.i.bf16 %v2937_v47, %v2753_v8  ;;  %v7110_v39 = vld [vmem:[%s10433_s4 + $0x30] sm:$0xff]  ;;  %v7119_v8 = vld [vmem:[%s10433_s4 + $0x28] sm:$0xff]  ;;  %v7050_v45 = vld [vmem:[%s10429_s0 + $0xe0] sm:$0xff] }
 0x1ba   :  { %v810_v33 = vadd.f32 %v8709_v42, %v727_v15  ;;  %7390 = vrot.lane.b32.xlu2 %v7389_v51, %s7937_s29  ;;  %7385 = vrot.lane.b32.xlu1 %v7384_v50, %s7938_s30  ;;  %v2395_v59 = vld [vmem:[#allocation2 + $0xb6] ss:$2 sm:$0xff] }
 0x1bb   :  { %7380 = vrot.lane.b32.xlu0 %v7379_v10, %s7939_s13  ;;  %v999_v15 = vld [vmem:[%s10432_s3 + $0x200] sm:$0xff]  ;;  %v1002_v10 = vld [vmem:[%s10432_s3 + $0x218] sm:$0xff]  ;;  %v2432_v53 = vpack.c.bf16 %v2395_v59, %v2395_v59 }
 0x1bc   :  { %v891_v43 = vmax.f32 %v810_v33, 0.0  ;;  %v8926_v41 = vpop.f32.mrf.mxu1  ;;  %v2579_v51 = vld [vmem:[#allocation2 + $0xda] ss:$2 sm:$0xff] }
 0x1bd   :  { %v7108_v63 = vld [vmem:[%s10433_s4 + $0x20] sm:$0xff] }
 0x1be   :  { %v1458_v0 = vmul.f32 %v8407_v11, %v891_v43  ;;  %v7111_v11 = vld [vmem:[%s10433_s4 + $0x38] sm:$0xff]  ;;  %v7118_v33 = vld [vmem:[%s10433_s4 + $0x20] sm:$0xff] }
 0x1bf   :  { %v579_v5 = vpop.f32.mrf.mxu0  ;;  %2508 = vmatpush.bf16.msra.mxu3 %v7111_v11 }
 0x1c0   :  { %1540 = vst.msk [vmem:[#allocation2 + $0x128] sm:$0xff] %vm1502_vm2, %v1458_v0  ;;  %v728_v14 = vmul.f32 %v8699_v1, %v579_v5  ;;  %v2616_v0 = vpack.c.bf16 %v2579_v51, %v2579_v51  ;;  %v7117_v5 = vld [vmem:[%s10433_s4 + $0x18] sm:$0xff] }
 0x1c1   :  { %v2381_v51 = vld [vmem:[#allocation2 + $0x90] ss:$2 sm:$0xff] }
 0x1c2   :  { %v811_v37 = vadd.f32 %v8709_v42, %v728_v14  ;;  %6249 = vmatmul.msk.bf16.gmra.mxu0 %vm347_vm1, %v7049_v56  ;;  %1333 = vperm.xlu2 %7263, %v998_v36  }
 0x1c3   :  { %1343 = vperm.xlu1 %7262, %v1000_v17   ;;  %6430 = vmatmul.msk.bf16.vlgmr.msrb.gmra.mxu1 %vm1502_vm2, %v2355_v18  ;;  %v1001_v17 = vld [vmem:[%s10432_s3 + $0x210] sm:$0xff] }
 0x1c4   :  { %v892_v55 = vmax.f32 %v811_v37, 0.0  ;;  %6472 = vmatmul.msk.bf16.vlgmr.msrb.gmra.mxu2 %vm1502_vm2, %v2539_v48  ;;  %2692 = vmatpush.bf16.msrb.mxu1 %v7121_v58  ;;  %v8958_v7 = vpop.f32.mrf.mxu1  ;;  %v7106_v18 = vld [vmem:[%s10433_s4 + $0x10] sm:$0xff]  ;;  %v8971_v58 = vpop.permute.xlu0 %1298 }
 0x1c5   :  { %2509 = vmatpush.bf16.msra.mxu3 %v7110_v39 }
 0x1c6   :  { %v1459_v22 = vmul.f32 %v8417_v19, %v892_v55  ;;  %v8909_v23 = vpop.f32.mrf.mxu3  ;;  %v7120_v19 = vld [vmem:[%s10433_s4 + $0x30] sm:$0xff]  ;;  %v7105_v55 = vld [vmem:[%s10433_s4 + $0x8] sm:$0xff] }
 0x1c7   :  { %v581_v57 = vpop.f32.mrf.mxu0  ;;  %v2945_v29 = vld [vmem:[#allocation2 + $0x121] ss:$2 sm:$0xff]  ;;  %v2943_v4 = vld [vmem:[#allocation2 + $0x120] ss:$2 sm:$0xff] }
 0x1c8   :  { %1541 = vst.msk [vmem:[#allocation2 + $0x130] sm:$0xff] %vm1502_vm2, %v1459_v22  ;;  %v7399_v28 = vpack.i.bf16 %v2945_v29, %v2761_v24  ;;  %v7394_v40 = vpack.i.bf16 %v2943_v4, %v2759_v46  ;;  %2693 = vmatpush.bf16.msrb.mxu1 %v7120_v19  ;;  %v7115_v22 = vld [vmem:[%s10433_s4 + $0x8] sm:$0xff]  ;;  %v7104_v4 = vld [vmem:[%s10433_s4] sm:$0xff] }
 0x1c9   :  { %2510 = vmatpush.bf16.msra.mxu3 %v7109_v2  ;;  %v7051_v46 = vld [vmem:[%s10429_s0 + $0xe8] sm:$0xff] }
 0x1ca   :  { %1358 = vperm.xlu2 %7263, %v1003_v27   ;;  %7395 = vrot.lane.b32.xlu0 %v7394_v40, %s7941_s18 }
 0x1cb   :  { %7400 = vrot.lane.b32.xlu1 %v7399_v28, %s7940_s17  ;;  %v8991_v28 = vpop.permute.xlu2 %1293 }
 0x1cc   :  { %2694 = vmatpush.bf16.msrb.mxu1 %v7119_v8  ;;  %v8986_v29 = vpop.f32.mrf.mxu1 }
 0x1cd   :  { %2511 = vmatpush.bf16.msra.mxu3 %v7108_v63 }
 0x1ce   :  { %v2348_v44 = vpop.f32.mrf.mxu3 }
 0x1cf   :  { %v584_v47 = vpop.f32.mrf.mxu0 }
 0x1d0   :  { %v730_v50 = vmul.f32 %v8699_v1, %v584_v47  ;;  %2695 = vmatpush.bf16.msrb.mxu1 %v7118_v33 }
 0x1d1   :  { %2512 = vmatpush.bf16.msra.mxu3 %v7107_v3 }
 0x1d2   :  { %v813_v43 = vadd.f32 %v8709_v42, %v730_v50  ;;  %6250 = vmatmul.msk.bf16.gmra.mxu0 %vm347_vm1, %v7050_v45  ;;  %1338 = vperm.xlu0 %7261, %v999_v15   ;;  %v2565_v50 = vld [vmem:[#allocation2 + $0xb4] ss:$2 sm:$0xff] }
 0x1d3   :  { %1353 = vperm.xlu1 %7262, %v1002_v10   ;;  %6467 = vmatmul.msk.bf16.vlgmr.msra.gmra.mxu1 %vm1502_vm2, %v2432_v53  ;;  %v7346_v63 = vpop.permute.xlu2 %7345 }
 0x1d4   :  { %v894_v56 = vmax.f32 %v813_v43, 0.0  ;;  %6509 = vmatmul.msk.bf16.vlgmr.msra.gmra.mxu2 %vm1502_vm2, %v2616_v0  ;;  %2696 = vmatpush.bf16.msrb.mxu1 %v7117_v5  ;;  %v7341_v2 = vpop.permute.xlu1 %7340  ;;  %v9006_v43 = vld [vmem:[%s10435_s6] ss:$0 sm:$0xff]  ;;  %v9013_v5 = vld [vmem:[%s10435_s6 + $0x1] ss:$0 sm:$0xff] }
 0x1d5   :  { %2513 = vmatpush.bf16.msra.mxu3 %v7106_v18  ;;  %v7336_v40 = vpop.permute.xlu0 %7335  ;;  %v7343_v47 = vunpack.i.h.bf16 %v7341_v2  ;;  %v7342_v15 = vunpack.i.l.bf16 %v7341_v2  ;;  %v7347_v18 = vunpack.i.l.bf16 %v7346_v63  ;;  %v7133_v2 = vld [vmem:[%s10434_s5] sm:$0xff] }
 0x1d6   :  { %v1461_v36 = vmul.f32 %v8429_v32, %v894_v56  ;;  %v7116_v32 = vld [vmem:[%s10433_s4 + $0x10] sm:$0xff]  ;;  %v7338_v8 = vunpack.i.h.bf16 %v7336_v40  ;;  %v7337_v44 = vunpack.i.l.bf16 %v7336_v40 }
 0x1d7   :  { %v586_v14 = vpop.f32.mrf.mxu0 }
 0x1d8   :  { %1543 = vst.msk [vmem:[#allocation2 + $0x140] sm:$0xff] %vm1502_vm2, %v1461_v36  ;;  %v731_v11 = vmul.f32 %v8699_v1, %v586_v14  ;;  %2697 = vmatpush.bf16.msrb.mxu1 %v7116_v32  ;;  %v2424_v53 = vsel %vm1502_vm2, %v2381_v51, %v7337_v44  ;;  %v2608_v33 = vsel %vm1502_vm2, %v2565_v50, %v7338_v8  ;;  %v7348_v36 = vunpack.i.h.bf16 %v7346_v63 }
 0x1d9   :  { %2514 = vmatpush.bf16.msra.mxu3 %v7105_v55  ;;  %v2425_v14 = vsel %vm1584_vm3, %v2424_v53, %v7342_v15 }
 0x1da   :  { %v814_v37 = vadd.f32 %v8709_v42, %v731_v11  ;;  %1348 = vperm.xlu0 %7261, %v1001_v17   ;;  %v2609_v17 = vsel %vm1584_vm3, %v2608_v33, %v7343_v47 }
 0x1dc   :  { %v895_v48 = vmax.f32 %v814_v37, 0.0  ;;  %2698 = vmatpush.bf16.msrb.mxu1 %v7115_v22 }
 0x1dd   :  { %2515 = vmatpush.bf16.msra.mxu3 %v7104_v4 }
 0x1de   :  { %v1462_v24 = vmul.f32 %v8433_v38, %v895_v48  ;;  %v7114_v38 = vld [vmem:[%s10433_s4] sm:$0xff] }
 0x1df   :  { %v589_v57 = vpop.f32.mrf.mxu0 }
 0x1e0   :  { %1544 = vst.msk [vmem:[#allocation2 + $0x148] sm:$0xff] %vm1502_vm2, %v1462_v24  ;;  %v732_v27 = vmul.f32 %v8699_v1, %v589_v57  ;;  %2699 = vmatpush.bf16.msrb.mxu1 %v7114_v38  ;;  %v2426_v24 = vsel %vm1683_vm4, %v2425_v14, %v7347_v18 }
 0x1e2   :  { %v815_v39 = vadd.f32 %v8709_v42, %v732_v27  ;;  %6251 = vmatmul.msk.bf16.gmra.mxu0 %vm347_vm1, %v7051_v46  ;;  %v2610_v46 = vsel %vm1683_vm4, %v2609_v17, %v7348_v36 }
 0x1e4   :  { %v896_v19 = vmax.f32 %v815_v39, 0.0  ;;  %v7356_v32 = vpop.permute.xlu1 %7355  ;;  %2926 = vmatpush.bf16.msra.mxu1 %v7133_v2  ;;  %v2906_v2 = vld [vmem:[#allocation2 + $0xeb] ss:$2 sm:$0xff] }
 0x1e5   :  { %v7358_v38 = vunpack.i.h.bf16 %v7356_v32  ;;  %v7357_v40 = vunpack.i.l.bf16 %v7356_v32 }
 0x1e6   :  { %v1463_v45 = vmul.f32 %v8438_v54, %v896_v19  ;;  %v7351_v54 = vpop.permute.xlu0 %7350  ;;  %v7123_v19 = vld [vmem:[%s10434_s5] sm:$0xff] }
 0x1e7   :  { %v591_v59 = vpop.f32.mrf.mxu0  ;;  %v7353_v37 = vunpack.i.h.bf16 %v7351_v54  ;;  %v7352_v48 = vunpack.i.l.bf16 %v7351_v54  ;;  %2742 = vmatpush.bf16.msrb.mxu3 %v7123_v19  ;;  %v2722_v19 = vld [vmem:[#allocation2 + $0xc7] ss:$2 sm:$0xff] }
 0x1e8   :  { %1545 = vst.msk [vmem:[#allocation2 + $0x150] sm:$0xff] %vm1502_vm2, %v1463_v45  ;;  %v733_v10 = vmul.f32 %v8699_v1, %v591_v59  ;;  %v7361_v59 = vpop.permute.xlu2 %7360 }
 0x1e9   :  { %v1779_v56 = vpop.f32.mrf.mxu1  ;;  %v2427_v8 = vsel %vm1685_vm5, %v2426_v24, %v7352_v48  ;;  %v2611_v44 = vsel %vm1685_vm5, %v2610_v46, %v7353_v37  ;;  %v7363_v53 = vunpack.i.h.bf16 %v7361_v59  ;;  %v7362_v33 = vunpack.i.l.bf16 %v7361_v59  ;;  %v7053_v46 = vld [vmem:[%s10429_s0 + $0xf8] sm:$0xff] }
 0x1ea   :  { %v816_v0 = vadd.f32 %v8709_v42, %v733_v10  ;;  %v1793_v3 = vadd.f32 %v8648_v52, %v1779_v56  ;;  %v7052_v52 = vld [vmem:[%s10429_s0 + $0xf0] sm:$0xff]  ;;  %v2428_v51 = vsel %vm1687_vm6, %v2427_v8, %v7357_v40  ;;  %v2612_v50 = vsel %vm1687_vm6, %v2611_v44, %v7358_v38  ;;  %v7132_v38 = vld [vmem:[%s10433_s4 + $0x40] sm:$0xff]  ;;  %v7131_v59 = vld [vmem:[%s10433_s4 + $0x38] sm:$0xff] }
 0x1eb   :  { %v2429_v14 = vsel %vm1689_vm7, %v2428_v51, %v7362_v33  ;;  %v2613_v17 = vsel %vm1689_vm7, %v2612_v50, %v7363_v53  ;;  %v7142_v40 = vld [vmem:[%s10433_s4 + $0x40] sm:$0xff]  ;;  %2876 = vmatpush.bf16.msrb.mxu2 %v7131_v59  ;;  %v7126_v59 = vld [vmem:[%s10433_s4 + $0x10] sm:$0xff] }
 0x1ec   :  { %v897_v11 = vmax.f32 %v816_v0, 0.0  ;;  %v1797_v55 = vmul.f32 %v9006_v43, %v1793_v3 }
 0x1ee   :  { %v1464_v22 = vmul.f32 %v8450_v61, %v897_v11  ;;  %v1799_v57 = vadd.f32 %v9013_v5, %v1797_v55 }
 0x1ef   :  { %v1965_v27 = vpop.f32.mrf.mxu2  ;;  %v594_v4 = vpop.f32.mrf.mxu0  ;;  %v3120_v53 = vld [vmem:[#allocation2 + $0x145] ss:$2 sm:$0xff] }
 0x1f0   :  { %1546 = vst.msk [vmem:[#allocation2 + $0x158] sm:$0xff] %vm1502_vm2, %v1464_v22  ;;  %v1979_v39 = vadd.f32 %v8738_v62, %v1965_v27  ;;  %v734_v61 = vmul.f32 %v8699_v1, %v594_v4  ;;  %v1800_v45 = vmax.f32 %v1799_v57, 0.0 }
 0x1f1   :  { %v1781_v15 = vpop.f32.mrf.mxu1 }
 0x1f2   :  { %v1982_v47 = vmul.f32 %v9006_v43, %v1979_v39  ;;  %v817_v62 = vadd.f32 %v8709_v42, %v734_v61  ;;  %6252 = vmatmul.msk.bf16.gmra.mxu0 %vm347_vm1, %v7052_v52  ;;  %1801 = vst.msk [vmem:[#allocation3 + $0xb] sm:$0xff] %vm1584_vm3, %v1800_v45  ;;  %v2907_v15 = vpack.c.bf16 %v2906_v2, %v2906_v2 }
 0x1f4   :  { %v1983_v10 = vadd.f32 %v9013_v5, %v1982_v47  ;;  %v898_v63 = vmax.f32 %v817_v62, 0.0  ;;  %v7141_v47 = vld [vmem:[%s10433_s4 + $0x38] sm:$0xff]  ;;  %v2723_v62 = vpack.c.bf16 %v2722_v19, %v2722_v19 }
 0x1f5   :  { %v7366_v54 = vpop.permute.xlu0 %7365 }
 0x1f6   :  { %v1984_v0 = vmax.f32 %v1983_v10, 0.0  ;;  %v1465_v56 = vmul.f32 %v8467_v6, %v898_v63  ;;  %v7368_v3 = vunpack.i.h.bf16 %v7366_v54  ;;  %v7367_v36 = vunpack.i.l.bf16 %v7366_v54  ;;  %v7054_v10 = vld [vmem:[%s10429_s0 + $0x100] sm:$0xff] }
 0x1f7   :  { %v1967_v11 = vpop.f32.mrf.mxu2  ;;  %v596_v18 = vpop.f32.mrf.mxu0 }
 0x1f8   :  { %1985 = vst.msk [vmem:[#allocation3 + $0x15] sm:$0xff] %vm1584_vm3, %v1984_v0  ;;  %v2430_v32 = vsel %vm1691_vm8, %v2429_v14, %v7367_v36  ;;  %v2614_v37 = vsel %vm1691_vm8, %v2613_v17, %v7368_v3  ;;  %v735_v48 = vmul.f32 %v8699_v1, %v596_v18  ;;  %v9092_v3 = vpop.permute.xlu1 %1313  ;;  %v7129_v14 = vld [vmem:[%s10433_s4 + $0x28] sm:$0xff] }
 0x1f9   :  { %1547 = vst.msk [vmem:[#allocation2 + $0x160] sm:$0xff] %vm1502_vm2, %v1465_v56  ;;  %v2431_v55 = vpack.c.bf16 %v2430_v32, %v2430_v32  ;;  %v2615_v6 = vpack.c.bf16 %v2614_v37, %v2614_v37  ;;  %v7130_v56 = vld [vmem:[%s10433_s4 + $0x30] sm:$0xff]  ;;  %v7139_v17 = vld [vmem:[%s10433_s4 + $0x28] sm:$0xff] }
 0x1fa   :  { %v818_v22 = vadd.f32 %v8709_v42, %v735_v48  ;;  %2877 = vmatpush.bf16.msrb.mxu2 %v7130_v56  ;;  %v2763_v32 = vld [vmem:[#allocation2 + $0xfe] ss:$2 sm:$0xff] }
 0x1fb   :  { %2516 = vmatmul.bf16.vlgmr.msra.gmra.mxu3 %v2431_v55  ;;  %2700 = vmatmul.bf16.vlgmr.msrb.gmra.mxu1 %v2615_v6  ;;  %v2947_v37 = vld [vmem:[#allocation2 + $0x122] ss:$2 sm:$0xff] }
 0x1fc   :  { %v899_v52 = vmax.f32 %v818_v22, 0.0  ;;  %2896 = vmatpush.bf16.msra.mxu3 %v7132_v38  ;;  %3080 = vmatpush.bf16.msrb.mxu1 %v7142_v40  ;;  %v3122_v55 = vld [vmem:[#allocation2 + $0x146] ss:$2 sm:$0xff] }
 0x1fd   :  { %v9126_v19 = vpop.permute.xlu0 %1308 }
 0x1fe   :  { %v1466_v24 = vmul.f32 %v8475_v9, %v899_v52  ;;  %2878 = vmatpush.bf16.msrb.mxu2 %v7129_v14  ;;  %v7134_v14 = vld [vmem:[%s10433_s4] sm:$0xff] }
 0x1ff   :  { %v9056_v57 = vpop.f32.mrf.mxu2  ;;  %v599_v27 = vpop.f32.mrf.mxu0 }
 0x200   :  { %1548 = vst.msk [vmem:[#allocation2 + $0x168] sm:$0xff] %vm1502_vm2, %v1466_v24  ;;  %v736_v4 = vmul.f32 %v8699_v1, %v599_v27  ;;  %v2800_v24 = vpack.c.bf16 %v2763_v32, %v2763_v32  ;;  %v7128_v27 = vld [vmem:[%s10433_s4 + $0x20] sm:$0xff]  ;;  %v9116_v38 = vpop.permute.xlu1 %1328 }
 0x202   :  { %v819_v9 = vadd.f32 %v8709_v42, %v736_v4  ;;  %6253 = vmatmul.msk.bf16.gmra.mxu0 %vm347_vm1, %v7053_v46  ;;  %v2984_v46 = vpack.c.bf16 %v2947_v37, %v2947_v37  ;;  %2879 = vmatpush.bf16.msrb.mxu2 %v7128_v27 }
 0x204   :  { %v900_v39 = vmax.f32 %v819_v9, 0.0  ;;  %v7127_v9 = vld [vmem:[%s10433_s4 + $0x18] sm:$0xff] }
 0x206   :  { %v1467_v61 = vmul.f32 %v8485_v13, %v900_v39  ;;  %v7137_v39 = vld [vmem:[%s10433_s4 + $0x18] sm:$0xff]  ;;  %2880 = vmatpush.bf16.msrb.mxu2 %v7127_v9 }
 0x207   :  { %v2164_v8 = vpop.f32.mrf.mxu2  ;;  %v601_v44 = vpop.f32.mrf.mxu0 }
 0x208   :  { %1549 = vst.msk [vmem:[#allocation2 + $0x170] sm:$0xff] %vm1502_vm2, %v1467_v61  ;;  %v737_v45 = vmul.f32 %v8699_v1, %v601_v44  ;;  %v9124_v61 = vpop.permute.xlu2 %1303  ;;  %v7055_v8 = vld [vmem:[%s10429_s0 + $0x108] sm:$0xff] }
 0x20a   :  { %v820_v13 = vadd.f32 %v8709_v42, %v737_v45  ;;  %2881 = vmatpush.bf16.msrb.mxu2 %v7126_v59 }
 0x20b   :  { %6514 = vmatmul.msk.bf16.vlgmr.msrb.gmra.mxu3 %vm1502_vm2, %v2723_v62  ;;  %6556 = vmatmul.msk.bf16.vlgmr.msra.gmra.mxu1 %vm1502_vm2, %v2907_v15 }
 0x20c   :  { %v901_v51 = vmax.f32 %v820_v13, 0.0  ;;  %3060 = vmatpush.bf16.msrb.mxu3 %v7141_v47  ;;  %v7136_v47 = vld [vmem:[%s10433_s4 + $0x10] sm:$0xff]  ;;  %v7135_v13 = vld [vmem:[%s10433_s4 + $0x8] sm:$0xff] }
 0x20e   :  { %v1468_v50 = vmul.f32 %v8505_v31, %v901_v51  ;;  %v7140_v31 = vld [vmem:[%s10433_s4 + $0x30] sm:$0xff] }
 0x20f   :  { %v604_v63 = vpop.f32.mrf.mxu0  ;;  %v3305_v33 = vld [vmem:[#allocation2 + $0x169] ss:$2 sm:$0xff] }
 0x210   :  { %1550 = vst.msk [vmem:[#allocation2 + $0x178] sm:$0xff] %vm1502_vm2, %v1468_v50  ;;  %v738_v54 = vmul.f32 %v8699_v1, %v604_v63  ;;  %v7404_v0 = vpack.i.bf16 %v3305_v33, %v3120_v53  ;;  %3061 = vmatpush.bf16.msrb.mxu3 %v7140_v31  ;;  %v3126_v50 = vld [vmem:[#allocation2 + $0x157] ss:$2 sm:$0xff]  ;;  %v3124_v53 = vld [vmem:[#allocation2 + $0x156] ss:$2 sm:$0xff] }
 0x212   :  { %v821_v36 = vadd.f32 %v8709_v42, %v738_v54  ;;  %6254 = vmatmul.msk.bf16.gmra.mxu0 %vm347_vm1, %v7054_v10  ;;  %7405 = vrot.lane.b32.xlu1 %v7404_v0, %s7936_s24  ;;  %v9149_v10 = vpop.permute.xlu2 %1318  ;;  %v9151_v54 = vpop.permute.xlu0 %1323  ;;  %v9157_v0 = vld [vmem:[%s10431_s2] ss:$0 sm:$0xff] }
 0x214   :  { %v902_v11 = vmax.f32 %v821_v36, 0.0  ;;  %3062 = vmatpush.bf16.msrb.mxu3 %v7139_v17  ;;  %v7124_v36 = vld [vmem:[%s10433_s4] sm:$0xff] }
 0x215   :  { %v9169_v17 = vld [vmem:[%s10431_s2 + $0x1] ss:$0 sm:$0xff] }
 0x216   :  { %v1469_v18 = vmul.f32 %v8515_v35, %v902_v11  ;;  %v7138_v35 = vld [vmem:[%s10433_s4 + $0x20] sm:$0xff] }
 0x217   :  { %v606_v48 = vpop.f32.mrf.mxu0  ;;  %v3306_v6 = vld [vmem:[#allocation2 + $0x16a] ss:$2 sm:$0xff] }
 0x218   :  { %1551 = vst.msk [vmem:[#allocation2 + $0x180] sm:$0xff] %vm1502_vm2, %v1469_v18  ;;  %v739_v22 = vmul.f32 %v8699_v1, %v606_v48  ;;  %v7409_v52 = vpack.i.bf16 %v3306_v6, %v3122_v55  ;;  %3063 = vmatpush.bf16.msrb.mxu3 %v7138_v35  ;;  %v7056_v55 = vld [vmem:[%s10429_s0 + $0x110] sm:$0xff] }
 0x21a   :  { %v822_v4 = vadd.f32 %v8709_v42, %v739_v22  ;;  %7410 = vrot.lane.b32.xlu1 %v7409_v52, %s7935_s23  ;;  %v7376_v6 = vpop.permute.xlu2 %7375 }
 0x21b   :  { %6551 = vmatmul.msk.bf16.vlgmr.msra.gmra.mxu3 %vm1502_vm2, %v2800_v24  ;;  %6593 = vmatmul.msk.bf16.vlgmr.msrb.gmra.mxu1 %vm1502_vm2, %v2984_v46  ;;  %v3128_v46 = vld [vmem:[#allocation2 + $0x158] ss:$2 sm:$0xff] }
 0x21c   :  { %v903_v40 = vmax.f32 %v822_v4, 0.0  ;;  %3064 = vmatpush.bf16.msrb.mxu3 %v7137_v39  ;;  %v7371_v62 = vpop.permute.xlu1 %7370  ;;  %v2749_v39 = vld [vmem:[#allocation2 + $0xd8] ss:$2 sm:$0xff] }
 0x21d   :  { %v7373_v22 = vunpack.i.h.bf16 %v7371_v62  ;;  %v7372_v52 = vunpack.i.l.bf16 %v7371_v62  ;;  %v7377_v62 = vunpack.i.l.bf16 %v7376_v6 }
 0x21e   :  { %v1470_v2 = vmul.f32 %v8538_v49, %v903_v40 }
 0x21f   :  { %v609_v44 = vpop.f32.mrf.mxu0 }
 0x220   :  { %1552 = vst.msk [vmem:[#allocation2 + $0x188] sm:$0xff] %vm1502_vm2, %v1470_v2  ;;  %v740_v45 = vmul.f32 %v8699_v1, %v609_v44  ;;  %3065 = vmatpush.bf16.msrb.mxu3 %v7136_v47  ;;  %v7125_v1 = vld [vmem:[%s10433_s4 + $0x8] sm:$0xff]  ;;  %v2792_v44 = vsel %vm1502_vm2, %v2749_v39, %v7372_v52 }
 0x221   :  { %2882 = vmatpush.bf16.msrb.mxu2 %v7125_v1  ;;  %v2933_v2 = vld [vmem:[#allocation2 + $0xfc] ss:$2 sm:$0xff] }
 0x222   :  { %v823_v49 = vadd.f32 %v8709_v42, %v740_v45  ;;  %6255 = vmatmul.msk.bf16.gmra.mxu0 %vm347_vm1, %v7055_v8  ;;  %v2976_v45 = vsel %vm1502_vm2, %v2933_v2, %v7373_v22 }
 0x224   :  { %v904_v15 = vmax.f32 %v823_v49, 0.0  ;;  %3066 = vmatpush.bf16.msrb.mxu3 %v7135_v13  ;;  %v7378_v49 = vunpack.i.h.bf16 %v7376_v6 }
 0x225   :  { %2883 = vmatpush.bf16.msrb.mxu2 %v7124_v36 }
 0x226   :  { %v1471_v51 = vmul.f32 %v8562_v60, %v904_v15 }
 0x227   :  { %v611_v42 = vpop.f32.mrf.mxu0  ;;  %v3310_v63 = vld [vmem:[#allocation2 + $0x17b] ss:$2 sm:$0xff]  ;;  %v3308_v33 = vld [vmem:[#allocation2 + $0x17a] ss:$2 sm:$0xff] }
 0x228   :  { %1553 = vst.msk [vmem:[#allocation2 + $0x190] sm:$0xff] %vm1502_vm2, %v1471_v51  ;;  %v741_v56 = vmul.f32 %v9157_v0, %v611_v42  ;;  %v7419_v31 = vpack.i.bf16 %v3310_v63, %v3126_v50  ;;  %v7414_v60 = vpack.i.bf16 %v3308_v33, %v3124_v53  ;;  %v3312_v37 = vld [vmem:[#allocation2 + $0x17c] ss:$2 sm:$0xff]  ;;  %3067 = vmatpush.bf16.msrb.mxu3 %v7134_v14  ;;  %v3132_v33 = vld [vmem:[#allocation2 + $0x169] ss:$2 sm:$0xff] }
 0x229   :  { %v7424_v40 = vpack.i.bf16 %v3312_v37, %v3128_v46  ;;  %v2793_v50 = vsel %vm1584_vm3, %v2792_v44, %v7377_v62  ;;  %v2977_v42 = vsel %vm1584_vm3, %v2976_v45, %v7378_v49 }
 0x22a   :  { %v824_v11 = vadd.f32 %v9169_v17, %v741_v56  ;;  %7420 = vrot.lane.b32.xlu0 %v7419_v31, %s7938_s30  ;;  %7415 = vrot.lane.b32.xlu2 %v7414_v60, %s7939_s13  ;;  %v3130_v56 = vld [vmem:[#allocation2 + $0x168] ss:$2 sm:$0xff] }
 0x22c   :  { %v905_v18 = vmax.f32 %v824_v11, 0.0  ;;  %v9174_v32 = vpop.permute.xlu1 %7385 }
 0x22d   :  { %v7381_v27 = vpop.permute.xlu0 %7380  ;;  %v7387_v51 = vunpack.i.l.bf16 %v9174_v32  ;;  %v7388_v31 = vunpack.i.h.bf16 %v9174_v32 }
 0x22e   :  { %v1472_v48 = vmul.f32 %v8572_v12, %v905_v18  ;;  %v1006_v12 = vld [vmem:[%s10432_s3 + $0x238] sm:$0xff]  ;;  %v7382_v59 = vunpack.i.l.bf16 %v7381_v27  ;;  %v7383_v15 = vunpack.i.h.bf16 %v7381_v27  ;;  %v1004_v18 = vld [vmem:[%s10432_s3 + $0x228] sm:$0xff] }
 0x22f   :  { %v614_v24 = vpop.f32.mrf.mxu0 }
 0x230   :  { %1554 = vst.msk [vmem:[#allocation2 + $0x198] sm:$0xff] %vm1502_vm2, %v1472_v48  ;;  %v742_v35 = vmul.f32 %v9157_v0, %v614_v24  ;;  %v2149_v4 = vpop.f32.mrf.mxu1  ;;  %v2794_v60 = vsel %vm1683_vm4, %v2793_v50, %v7382_v59  ;;  %v7153_v24 = vld [vmem:[%s10434_s5] sm:$0xff] }
 0x231   :  { %v2163_v9 = vadd.f32 %v9056_v57, %v2149_v4  ;;  %v2795_v27 = vsel %vm1685_vm5, %v2794_v60, %v7387_v51  ;;  %3297 = vmatpush.bf16.msra.mxu3 %v7153_v24  ;;  %v7057_v51 = vld [vmem:[%s10429_s0 + $0x118] sm:$0xff] }
 0x232   :  { %v825_v8 = vadd.f32 %v9169_v17, %v742_v35  ;;  %6256 = vmatmul.msk.bf16.gmra.mxu0 %vm347_vm1, %v7056_v55  ;;  %7425 = vrot.lane.b32.xlu0 %v7424_v40, %s7937_s29  ;;  %v7391_v55 = vpop.permute.xlu2 %7390  ;;  %v3090_v24 = vld [vmem:[#allocation2 + $0x10f] ss:$2 sm:$0xff] }
 0x233   :  { %v2166_v47 = vmul.f32 %v9006_v43, %v2163_v9  ;;  %1373 = vperm.xlu2 %7263, %v1006_v12   ;;  %v7392_v4 = vunpack.i.l.bf16 %v7391_v55  ;;  %v7393_v9 = vunpack.i.h.bf16 %v7391_v55 }
 0x234   :  { %v906_v57 = vmax.f32 %v825_v8, 0.0 }
 0x235   :  { %v2167_v1 = vadd.f32 %v9013_v5, %v2166_v47  ;;  %v9193_v13 = vpop.permute.xlu1 %1343  ;;  %v2796_v45 = vsel %vm1687_vm6, %v2795_v27, %v7392_v4 }
 0x236   :  { %v1473_v63 = vmul.f32 %v8589_v26, %v906_v57  ;;  %v2333_v53 = vpop.f32.mrf.mxu2  ;;  %v2978_v26 = vsel %vm1683_vm4, %v2977_v42, %v7383_v15 }
 0x237   :  { %v2168_v36 = vmax.f32 %v2167_v1, 0.0  ;;  %v2347_v14 = vadd.f32 %v8909_v23, %v2333_v53  ;;  %v616_v11 = vpop.f32.mrf.mxu0  ;;  %v3316_v37 = vld [vmem:[#allocation2 + $0x18d] ss:$2 sm:$0xff]  ;;  %v3314_v48 = vld [vmem:[#allocation2 + $0x18c] ss:$2 sm:$0xff]  ;;  %v2979_v40 = vsel %vm1685_vm5, %v2978_v26, %v7388_v31 }
 0x238   :  { %1555 = vst.msk [vmem:[#allocation2 + $0x1a0] sm:$0xff] %vm1502_vm2, %v1473_v63  ;;  %v743_v6 = vmul.f32 %v9157_v0, %v616_v11  ;;  %v2151_v32 = vpop.f32.mrf.mxu1  ;;  %v7434_v22 = vpack.i.bf16 %v3316_v37, %v3132_v33  ;;  %v7429_v52 = vpack.i.bf16 %v3314_v48, %v3130_v56  ;;  %v7143_v23 = vld [vmem:[%s10434_s5] sm:$0xff]  ;;  %v2980_v57 = vsel %vm1687_vm6, %v2979_v40, %v7393_v9  ;;  %v1005_v56 = vld [vmem:[%s10432_s3 + $0x230] sm:$0xff] }
 0x239   :  { %2169 = vst.msk [vmem:[#allocation3 + $0x1f] sm:$0xff] %vm1584_vm3, %v2168_v36  ;;  %v2350_v46 = vmul.f32 %v9006_v43, %v2347_v14  ;;  %3110 = vmatpush.bf16.msra.mxu2 %v7143_v23  ;;  %v7152_v32 = vld [vmem:[%s10433_s4 + $0x40] sm:$0xff] }
 0x23a   :  { %v826_v35 = vadd.f32 %v9169_v17, %v743_v6  ;;  %1363 = vperm.xlu0 %7261, %v1004_v18   ;;  %7430 = vrot.lane.b32.xlu1 %v7429_v52, %s7941_s18 }
 0x23b   :  { %v2351_v12 = vadd.f32 %v9013_v5, %v2350_v46  ;;  %7435 = vrot.lane.b32.xlu2 %v7434_v22, %s7940_s17  ;;  %v7162_v22 = vld [vmem:[%s10433_s4 + $0x40] sm:$0xff] }
 0x23c   :  { %v907_v39 = vmax.f32 %v826_v35, 0.0  ;;  %v7396_v2 = vpop.permute.xlu0 %7395  ;;  %v3277_v35 = vld [vmem:[#allocation2 + $0x157] ss:$2 sm:$0xff] }
 0x23d   :  { %v2352_v8 = vmax.f32 %v2351_v12, 0.0  ;;  %v7401_v44 = vpop.permute.xlu1 %7400  ;;  %v7398_v59 = vunpack.i.h.bf16 %v7396_v2  ;;  %v7397_v47 = vunpack.i.l.bf16 %v7396_v2  ;;  %v3091_v12 = vpack.c.bf16 %v3090_v24, %v3090_v24 }
 0x23e   :  { %v1474_v49 = vmul.f32 %v8606_v25, %v907_v39  ;;  %v7403_v62 = vunpack.i.h.bf16 %v7401_v44  ;;  %v7402_v15 = vunpack.i.l.bf16 %v7401_v44  ;;  %v2335_v1 = vpop.f32.mrf.mxu2  ;;  %v1007_v25 = vld [vmem:[%s10432_s3 + $0x240] sm:$0xff]  ;;  %v3278_v39 = vpack.c.bf16 %v3277_v35, %v3277_v35 }
 0x23f   :  { %2353 = vst.msk [vmem:[#allocation3 + $0x29] sm:$0xff] %vm1584_vm3, %v2352_v8  ;;  %v2981_v50 = vsel %vm1689_vm7, %v2980_v57, %v7398_v59  ;;  %v2797_v42 = vsel %vm1689_vm7, %v2796_v45, %v7397_v47  ;;  %v619_v63 = vpop.f32.mrf.mxu0  ;;  %v3489_v45 = vld [vmem:[#allocation2 + $0x18d] ss:$2 sm:$0xff] }
 0x240   :  { %1556 = vst.msk [vmem:[#allocation2 + $0x1a8] sm:$0xff] %vm1502_vm2, %v1474_v49  ;;  %v744_v53 = vmul.f32 %v9157_v0, %v619_v63  ;;  %v2376_v33 = vpop.f32.mrf.mxu1  ;;  %v2798_v31 = vsel %vm1691_vm8, %v2797_v42, %v7402_v15  ;;  %v2982_v60 = vsel %vm1691_vm8, %v2981_v50, %v7403_v62  ;;  %v3490_v42 = vld [vmem:[#allocation2 + $0x18e] ss:$2 sm:$0xff] }
 0x241   :  { %2380 = vst.msk [vmem:[#allocation4 + $0x1e] sm:$0xff] %vm1584_vm3, %v2376_v33  ;;  %v2799_v36 = vpack.c.bf16 %v2798_v31, %v2798_v31  ;;  %v2983_v14 = vpack.c.bf16 %v2982_v60, %v2982_v60 }
 0x242   :  { %v827_v11 = vadd.f32 %v9169_v17, %v744_v53  ;;  %6257 = vmatmul.msk.bf16.gmra.mxu0 %vm347_vm1, %v7057_v51  ;;  %1378 = vperm.xlu0 %7261, %v1007_v25   ;;  %v3134_v51 = vld [vmem:[#allocation2 + $0x16a] ss:$2 sm:$0xff] }
 0x243   :  { %1368 = vperm.xlu1 %7262, %v1005_v56   ;;  %2884 = vmatmul.bf16.vlgmr.msrb.gmra.mxu2 %v2799_v36  ;;  %v3318_v25 = vld [vmem:[#allocation2 + $0x18e] ss:$2 sm:$0xff]  ;;  %v3171_v56 = vpack.c.bf16 %v3134_v51, %v3134_v51  ;;  %v1008_v51 = vld [vmem:[%s10432_s3 + $0x248] sm:$0xff] }
 0x244   :  { %v908_v18 = vmax.f32 %v827_v11, 0.0  ;;  %3068 = vmatmul.bf16.vlgmr.msrb.gmra.mxu3 %v2983_v14  ;;  %3267 = vmatpush.bf16.msrb.mxu2 %v7152_v32  ;;  %v3355_v60 = vpack.c.bf16 %v3318_v25, %v3318_v25 }
 0x245   :  { %3451 = vmatpush.bf16.msrb.mxu3 %v7162_v22 }
 0x246   :  { %v1475_v37 = vmul.f32 %v8621_v34, %v908_v18 }
 0x247   :  { %v2560_v48 = vpop.f32.mrf.mxu2  ;;  %v621_v55 = vpop.f32.mrf.mxu0  ;;  %v3492_v32 = vld [vmem:[#allocation2 + $0x19e] ss:$2 sm:$0xff] }
 0x248   :  { %1557 = vst.msk [vmem:[#allocation2 + $0x1b0] sm:$0xff] %vm1502_vm2, %v1475_v37  ;;  %v745_v26 = vmul.f32 %v9157_v0, %v621_v55  ;;  %v2378_v6 = vpop.f32.mrf.mxu1  ;;  %v3494_v55 = vld [vmem:[#allocation2 + $0x19f] ss:$2 sm:$0xff]  ;;  %v3496_v35 = vld [vmem:[#allocation2 + $0x1a0] ss:$2 sm:$0xff] }
 0x249   :  { %2564 = vst.msk [vmem:[#allocation4 + $0x28] sm:$0xff] %vm1584_vm3, %v2560_v48 }
 0x24a   :  { %v828_v52 = vadd.f32 %v9169_v17, %v745_v26 }
 0x24c   :  { %v909_v34 = vmax.f32 %v828_v52, 0.0 }
 0x24e   :  { %v1476_v23 = vmul.f32 %v8991_v28, %v909_v34 }
 0x24f   :  { %v2562_v46 = vpop.f32.mrf.mxu2  ;;  %v624_v27 = vpop.f32.mrf.mxu0 }
 0x250   :  { %1558 = vst.msk [vmem:[#allocation2 + $0x1b8] sm:$0xff] %vm1502_vm2, %v1476_v23  ;;  %v746_v4 = vmul.f32 %v9157_v0, %v624_v27  ;;  %v9258_v40 = vpop.f32.mrf.mxu1 }
 0x252   :  { %v829_v9 = vadd.f32 %v9169_v17, %v746_v4 }
 0x253   :  { %6598 = vmatmul.msk.bf16.vlgmr.msra.gmra.mxu2 %vm1502_vm2, %v3091_v12 }
 0x254   :  { %v910_v2 = vmax.f32 %v829_v9, 0.0  ;;  %6640 = vmatmul.msk.bf16.vlgmr.msra.gmra.mxu3 %vm1502_vm2, %v3278_v39  ;;  %v7151_v39 = vld [vmem:[%s10433_s4 + $0x38] sm:$0xff] }
 0x255   :  { %3247 = vmatpush.bf16.msra.mxu1 %v7151_v39  ;;  %v1011_v39 = vld [vmem:[%s10432_s3 + $0x260] sm:$0xff] }
 0x256   :  { %v1477_v28 = vmul.f32 %v8971_v58, %v910_v2 }
 0x257   :  { %v2714_v8 = vpop.f32.mrf.mxu2  ;;  %v626_v44 = vpop.f32.mrf.mxu0  ;;  %v3673_v59 = vld [vmem:[#allocation2 + $0x1b1] ss:$2 sm:$0xff] }
 0x258   :  { %1559 = vst.msk [vmem:[#allocation2 + $0x1c0] sm:$0xff] %vm1502_vm2, %v1477_v28  ;;  %v747_v47 = vmul.f32 %v9157_v0, %v626_v44  ;;  %v2532_v49 = vpop.f32.mrf.mxu1  ;;  %v7439_v62 = vpack.i.bf16 %v3673_v59, %v3489_v45  ;;  %v7161_v28 = vld [vmem:[%s10433_s4 + $0x38] sm:$0xff] }
 0x259   :  { %3431 = vmatpush.bf16.msra.mxu2 %v7161_v28  ;;  %v7156_v28 = vld [vmem:[%s10433_s4 + $0x10] sm:$0xff] }
 0x25a   :  { %v830_v15 = vadd.f32 %v9169_v17, %v747_v47  ;;  %7440 = vrot.lane.b32.xlu2 %v7439_v62, %s7936_s24  ;;  %v3500_v62 = vld [vmem:[#allocation2 + $0x1b1] ss:$2 sm:$0xff] }
 0x25c   :  { %v911_v57 = vmax.f32 %v830_v15, 0.0 }
 0x25e   :  { %v1478_v1 = vmul.f32 %v9124_v61, %v911_v57 }
 0x25f   :  { %v2716_v50 = vpop.f32.mrf.mxu2  ;;  %v629_v58 = vpop.f32.mrf.mxu0  ;;  %v3674_v63 = vld [vmem:[#allocation2 + $0x1b2] ss:$2 sm:$0xff] }
 0x260   :  { %1560 = vst.msk [vmem:[#allocation2 + $0x1c8] sm:$0xff] %vm1502_vm2, %v1478_v1  ;;  %v748_v53 = vmul.f32 %v9157_v0, %v629_v58  ;;  %v7444_v33 = vpack.i.bf16 %v3674_v63, %v3490_v42 }
 0x262   :  { %v831_v31 = vadd.f32 %v9169_v17, %v748_v53  ;;  %7445 = vrot.lane.b32.xlu2 %v7444_v33, %s7935_s23  ;;  %v7150_v53 = vld [vmem:[%s10433_s4 + $0x30] sm:$0xff] }
 0x263   :  { %6635 = vmatmul.msk.bf16.vlgmr.msrb.gmra.mxu2 %vm1502_vm2, %v3171_v56  ;;  %3248 = vmatpush.bf16.msra.mxu1 %v7150_v53 }
 0x264   :  { %v912_v61 = vmax.f32 %v831_v31, 0.0  ;;  %6677 = vmatmul.msk.bf16.vlgmr.msrb.gmra.mxu3 %vm1502_vm2, %v3355_v60  ;;  %v1334_v31 = vpop.permute.xlu2 %1333 }
 0x266   :  { %v1479_v36 = vmul.f32 %v9126_v19, %v912_v61  ;;  %v7149_v61 = vld [vmem:[%s10433_s4 + $0x28] sm:$0xff] }
 0x267   :  { %v631_v14 = vpop.f32.mrf.mxu0  ;;  %3249 = vmatpush.bf16.msra.mxu1 %v7149_v61 }
 0x268   :  { %1561 = vst.msk [vmem:[#allocation2 + $0x1d0] sm:$0xff] %vm1502_vm2, %v1479_v36  ;;  %v749_v11 = vmul.f32 %v9157_v0, %v631_v14 }
 0x26a   :  { %v832_v18 = vadd.f32 %v9169_v17, %v749_v11 }
 0x26c   :  { %v913_v37 = vmax.f32 %v832_v18, 0.0 }
 0x26e   :  { %v1480_v48 = vmul.f32 %v9092_v3, %v913_v37  ;;  %v1010_v37 = vld [vmem:[%s10432_s3 + $0x258] sm:$0xff] }
 0x26f   :  { %v634_v26 = vpop.f32.mrf.mxu0  ;;  %v3678_v6 = vld [vmem:[#allocation2 + $0x1c3] ss:$2 sm:$0xff]  ;;  %v3676_v22 = vld [vmem:[#allocation2 + $0x1c2] ss:$2 sm:$0xff] }
 0x270   :  { %1562 = vst.msk [vmem:[#allocation2 + $0x1d8] sm:$0xff] %vm1502_vm2, %v1480_v48  ;;  %v750_v52 = vmul.f32 %v9157_v0, %v634_v26  ;;  %v7454_v19 = vpack.i.bf16 %v3678_v6, %v3494_v55  ;;  %v7449_v34 = vpack.i.bf16 %v3676_v22, %v3492_v32  ;;  %v3680_v46 = vld [vmem:[#allocation2 + $0x1c4] ss:$2 sm:$0xff]  ;;  %v7148_v6 = vld [vmem:[%s10433_s4 + $0x20] sm:$0xff]  ;;  %v1339_v22 = vpop.permute.xlu0 %1338 }
 0x271   :  { %v7459_v9 = vpack.i.bf16 %v3680_v46, %v3496_v35  ;;  %v1012_v48 = vld [vmem:[%s10432_s3 + $0x268] sm:$0xff]  ;;  %v7158_v32 = vld [vmem:[%s10433_s4 + $0x20] sm:$0xff]  ;;  %3250 = vmatpush.bf16.msra.mxu1 %v7148_v6  ;;  %v1013_v35 = vld [vmem:[%s10432_s3 + $0x270] sm:$0xff]  ;;  %v762_v6 = vmul.f32 %v9157_v0, %v8859_v21 }
 0x272   :  { %v833_v23 = vadd.f32 %v9169_v17, %v750_v52  ;;  %7455 = vrot.lane.b32.xlu1 %v7454_v19, %s7938_s30  ;;  %7450 = vrot.lane.b32.xlu0 %v7449_v34, %s7939_s13  ;;  %v7147_v19 = vld [vmem:[%s10433_s4 + $0x18] sm:$0xff]  ;;  %v7173_v21 = vld [vmem:[%s10434_s5] sm:$0xff] }
 0x274   :  { %v914_v24 = vmax.f32 %v833_v23, 0.0  ;;  %v7157_v23 = vld [vmem:[%s10433_s4 + $0x18] sm:$0xff] }
 0x275   :  { %3251 = vmatpush.bf16.msra.mxu1 %v7147_v19 }
 0x276   :  { %v1481_v3 = vmul.f32 %v9149_v10, %v914_v24  ;;  %v9350_v24 = vpop.permute.xlu2 %1358 }
 0x277   :  { %v636_v27 = vpop.f32.mrf.mxu0 }
 0x278   :  { %1563 = vst.msk [vmem:[#allocation2 + $0x1e0] sm:$0xff] %vm1502_vm2, %v1481_v3  ;;  %v751_v4 = vmul.f32 %v9157_v0, %v636_v27  ;;  %v2701_v12 = vpop.f32.mrf.mxu1 }
 0x279   :  { %v2715_v2 = vadd.f32 %v2714_v8, %v2701_v12  ;;  %v3498_v8 = vld [vmem:[#allocation2 + $0x1b0] ss:$2 sm:$0xff] }
 0x27a   :  { %v834_v44 = vadd.f32 %v9169_v17, %v751_v4  ;;  %7460 = vrot.lane.b32.xlu1 %v7459_v9, %s7937_s29  ;;  %v9356_v4 = vpop.permute.xlu1 %1353 }
 0x27b   :  { %v2718_v10 = vmul.f32 %v9006_v43, %v2715_v2  ;;  %v7146_v2 = vld [vmem:[%s10433_s4 + $0x10] sm:$0xff] }
 0x27c   :  { %v915_v45 = vmax.f32 %v834_v44, 0.0  ;;  %3252 = vmatpush.bf16.msra.mxu1 %v7146_v2 }
 0x27d   :  { %v2719_v59 = vadd.f32 %v9013_v5, %v2718_v10  ;;  %v7145_v10 = vld [vmem:[%s10433_s4 + $0x8] sm:$0xff] }
 0x27e   :  { %v1482_v47 = vmul.f32 %v9151_v54, %v915_v45  ;;  %v2517_v49 = vpop.f32.mrf.mxu3  ;;  %v1349_v45 = vpop.permute.xlu0 %1348 }
 0x27f   :  { %v2720_v15 = vmax.f32 %v2719_v59, 0.0  ;;  %v2531_v57 = vadd.f32 %v9258_v40, %v2517_v49  ;;  %v639_v1 = vpop.f32.mrf.mxu0  ;;  %v3684_v50 = vld [vmem:[#allocation2 + $0x1d5] ss:$2 sm:$0xff]  ;;  %v3682_v58 = vld [vmem:[#allocation2 + $0x1d4] ss:$2 sm:$0xff]  ;;  %v7160_v40 = vld [vmem:[%s10433_s4 + $0x30] sm:$0xff] }
 0x280   :  { %1564 = vst.msk [vmem:[#allocation2 + $0x1e8] sm:$0xff] %vm1502_vm2, %v1482_v47  ;;  %v752_v42 = vmul.f32 %v9157_v0, %v639_v1  ;;  %v2703_v63 = vpop.f32.mrf.mxu1  ;;  %v7469_v25 = vpack.i.bf16 %v3684_v50, %v3500_v62  ;;  %v7464_v54 = vpack.i.bf16 %v3682_v58, %v3498_v8  ;;  %3432 = vmatpush.bf16.msra.mxu2 %v7160_v40  ;;  %v7155_v47 = vld [vmem:[%s10433_s4 + $0x8] sm:$0xff]  ;;  %v7144_v50 = vld [vmem:[%s10433_s4] sm:$0xff] }
 0x281   :  { %2721 = vst.msk [vmem:[#allocation3 + $0x3d] sm:$0xff] %vm1584_vm3, %v2720_v15  ;;  %v2534_v33 = vmul.f32 %v9006_v43, %v2531_v57  ;;  %v7159_v43 = vld [vmem:[%s10433_s4 + $0x28] sm:$0xff]  ;;  %3253 = vmatpush.bf16.msra.mxu1 %v7145_v10  ;;  %v7154_v58 = vld [vmem:[%s10433_s4] sm:$0xff] }
 0x282   :  { %v835_v56 = vadd.f32 %v9169_v17, %v752_v42  ;;  %1383 = vperm.xlu1 %7262, %v1008_v51   ;;  %7470 = vrot.lane.b32.xlu0 %v7469_v25, %s7940_s17  ;;  %v3858_v19 = vld [vmem:[#allocation2 + $0x1d6] ss:$2 sm:$0xff] }
 0x283   :  { %v2535_v60 = vadd.f32 %v9013_v5, %v2534_v33  ;;  %7465 = vrot.lane.b32.xlu2 %v7464_v54, %s7941_s18 }
 0x284   :  { %v916_v36 = vmax.f32 %v835_v56, 0.0  ;;  %3433 = vmatpush.bf16.msra.mxu2 %v7159_v43  ;;  %v9376_v49 = vpop.permute.xlu2 %7415  ;;  %v7406_v57 = vpop.permute.xlu1 %7405  ;;  %v3857_v56 = vld [vmem:[#allocation2 + $0x1d5] ss:$2 sm:$0xff] }
 0x285   :  { %v2536_v14 = vmax.f32 %v2535_v60, 0.0  ;;  %3254 = vmatpush.bf16.msra.mxu1 %v7144_v50 }
 0x286   :  { %v1483_v11 = vmul.f32 %v9116_v38, %v916_v36  ;;  %v2519_v18 = vpop.f32.mrf.mxu3  ;;  %v1009_v38 = vld [vmem:[%s10432_s3 + $0x250] sm:$0xff] }
 0x287   :  { %2537 = vst.msk [vmem:[#allocation3 + $0x33] sm:$0xff] %vm1584_vm3, %v2536_v14  ;;  %v641_v5 = vpop.f32.mrf.mxu0 }
 0x288   :  { %1565 = vst.msk [vmem:[#allocation2 + $0x1f0] sm:$0xff] %vm1502_vm2, %v1483_v11  ;;  %v753_v55 = vmul.f32 %v9157_v0, %v641_v5  ;;  %v2928_v26 = vpop.f32.mrf.mxu1  ;;  %3434 = vmatpush.bf16.msra.mxu2 %v7158_v32  ;;  %v7408_v11 = vunpack.i.h.bf16 %v7406_v57  ;;  %v3304_v32 = vld [vmem:[#allocation2 + $0x168] ss:$2 sm:$0xff] }
 0x289   :  { %2932 = vst.msk [vmem:[#allocation4 + $0x3c] sm:$0xff] %vm1584_vm3, %v2928_v26 }
 0x28a   :  { %v836_v52 = vadd.f32 %v9169_v17, %v753_v55  ;;  %1393 = vperm.xlu1 %7262, %v1010_v37   ;;  %1403 = vperm.xlu0 %7261, %v1012_v48   ;;  %v3118_v55 = vld [vmem:[#allocation2 + $0x144] ss:$2 sm:$0xff] }
 0x28b   :  { %1388 = vperm.xlu2 %7263, %v1009_v38  }
 0x28c   :  { %v917_v34 = vmax.f32 %v836_v52, 0.0  ;;  %3435 = vmatpush.bf16.msra.mxu2 %v7157_v23  ;;  %v7411_v43 = vpop.permute.xlu1 %7410 }
 0x28d   :  { %v9392_v40 = vpop.permute.xlu2 %1373  ;;  %v7413_v37 = vunpack.i.h.bf16 %v7411_v43  ;;  %v7412_v48 = vunpack.i.l.bf16 %v7411_v43 }
 0x28e   :  { %v1484_v46 = vmul.f32 %v1334_v31, %v917_v34  ;;  %v2744_v3 = vpop.f32.mrf.mxu3 }
 0x28f   :  { %2748 = vst.msk [vmem:[#allocation4 + $0x32] sm:$0xff] %vm1584_vm3, %v2744_v3  ;;  %v644_v27 = vpop.f32.mrf.mxu0 }
 0x290   :  { %1566 = vst.msk [vmem:[#allocation2 + $0x1f8] sm:$0xff] %vm1502_vm2, %v1484_v46  ;;  %v754_v12 = vmul.f32 %v9157_v0, %v644_v27  ;;  %v2930_v9 = vpop.f32.mrf.mxu1  ;;  %3436 = vmatpush.bf16.msra.mxu2 %v7156_v28  ;;  %v3347_v46 = vsel %vm1502_vm2, %v3304_v32, %v7408_v11  ;;  %v3860_v32 = vld [vmem:[#allocation2 + $0x1e6] ss:$2 sm:$0xff] }
 0x292   :  { %v837_v44 = vadd.f32 %v9169_v17, %v754_v12  ;;  %1408 = vperm.xlu1 %7262, %v1013_v35   ;;  %v7163_v35 = vld [vmem:[%s10434_s5] sm:$0xff]  ;;  %v3348_v12 = vsel %vm1584_vm3, %v3347_v46, %v7413_v37 }
 0x293   :  { %1398 = vperm.xlu2 %7263, %v1011_v39   ;;  %3481 = vmatpush.bf16.msrb.mxu1 %v7163_v35 }
 0x294   :  { %v918_v59 = vmax.f32 %v837_v44, 0.0  ;;  %3437 = vmatpush.bf16.msra.mxu2 %v7155_v47  ;;  %v7417_v44 = vunpack.i.l.bf16 %v9376_v49  ;;  %v845_v47 = vadd.f32 %v9169_v17, %v762_v6  ;;  %v3862_v6 = vld [vmem:[#allocation2 + $0x1e7] ss:$2 sm:$0xff] }
 0x295   :  { %v7436_v39 = vpop.permute.xlu2 %7435 }
 0x296   :  { %v1485_v62 = vmul.f32 %v1339_v22, %v918_v59  ;;  %v2746_v8 = vpop.f32.mrf.mxu3  ;;  %v7418_v22 = vunpack.i.h.bf16 %v9376_v49 }
 0x297   :  { %v646_v15 = vpop.f32.mrf.mxu0 }
 0x298   :  { %1567 = vst.msk [vmem:[#allocation2 + $0x200] sm:$0xff] %vm1502_vm2, %v1485_v62  ;;  %v755_v1 = vmul.f32 %v9157_v0, %v646_v15  ;;  %v9380_v51 = vpop.f32.mrf.mxu1  ;;  %3438 = vmatpush.bf16.msra.mxu2 %v7154_v58  ;;  %v7438_v62 = vunpack.i.h.bf16 %v7436_v39  ;;  %v3349_v15 = vsel %vm1683_vm4, %v3348_v12, %v7418_v22  ;;  %v3461_v12 = vld [vmem:[#allocation2 + $0x17b] ss:$2 sm:$0xff] }
 0x29a   :  { %v838_v42 = vadd.f32 %v9169_v17, %v755_v1 }
 0x29c   :  { %v919_v63 = vmax.f32 %v838_v42, 0.0  ;;  %v7421_v25 = vpop.permute.xlu0 %7420  ;;  %3665 = vmatpush.bf16.msrb.mxu2 %v7173_v21 }
 0x29d   :  { %v7423_v2 = vunpack.i.h.bf16 %v7421_v25  ;;  %v7422_v28 = vunpack.i.l.bf16 %v7421_v25  ;;  %v7437_v25 = vunpack.i.l.bf16 %v7436_v39 }
 0x29e   :  { %v1486_v54 = vmul.f32 %v9193_v13, %v919_v63  ;;  %v9390_v53 = vpop.f32.mrf.mxu3  ;;  %v7407_v13 = vunpack.i.l.bf16 %v7406_v57 }
 0x29f   :  { %v649_v33 = vpop.f32.mrf.mxu0  ;;  %v4041_v31 = vld [vmem:[#allocation2 + $0x1f9] ss:$2 sm:$0xff]  ;;  %v3350_v58 = vsel %vm1685_vm5, %v3349_v15, %v7423_v2  ;;  %v3864_v2 = vld [vmem:[#allocation2 + $0x1e8] ss:$2 sm:$0xff] }
 0x2a0   :  { %1568 = vst.msk [vmem:[#allocation2 + $0x208] sm:$0xff] %vm1502_vm2, %v1486_v54  ;;  %v756_v60 = vmul.f32 %v9157_v0, %v649_v33  ;;  %v3084_v61 = vpop.f32.mrf.mxu1  ;;  %v7474_v36 = vpack.i.bf16 %v4041_v31, %v3857_v56  ;;  %v3163_v23 = vsel %vm1502_vm2, %v3118_v55, %v7407_v13 }
 0x2a1   :  { %v3164_v9 = vsel %vm1584_vm3, %v3163_v23, %v7412_v48 }
 0x2a2   :  { %v839_v14 = vadd.f32 %v9169_v17, %v756_v60  ;;  %7475 = vrot.lane.b32.xlu0 %v7474_v36, %s7936_s24  ;;  %v3165_v8 = vsel %vm1683_vm4, %v3164_v9, %v7417_v44  ;;  %v3645_v9 = vld [vmem:[#allocation2 + $0x19f] ss:$2 sm:$0xff] }
 0x2a3   :  { %v3166_v49 = vsel %vm1685_vm5, %v3165_v8, %v7422_v28  ;;  %v7170_v28 = vld [vmem:[%s10433_s4 + $0x30] sm:$0xff] }
 0x2a4   :  { %v920_v18 = vmax.f32 %v839_v14, 0.0  ;;  %v7426_v5 = vpop.permute.xlu0 %7425 }
 0x2a5   :  { %v7428_v10 = vunpack.i.h.bf16 %v7426_v5 }
 0x2a6   :  { %v1487_v26 = vmul.f32 %v1349_v45, %v920_v18  ;;  %v2900_v38 = vpop.f32.mrf.mxu3  ;;  %v7427_v45 = vunpack.i.l.bf16 %v7426_v5  ;;  %v926_v18 = vmax.f32 %v845_v47, 0.0  ;;  %v7182_v5 = vld [vmem:[%s10433_s4 + $0x40] sm:$0xff]  ;;  %v3646_v47 = vpack.c.bf16 %v3645_v9, %v3645_v9 }
 0x2a7   :  { %v651_v52 = vpop.f32.mrf.mxu0  ;;  %v4042_v34 = vld [vmem:[#allocation2 + $0x1fa] ss:$2 sm:$0xff]  ;;  %v3351_v33 = vsel %vm1687_vm6, %v3350_v58, %v7428_v10  ;;  %v3868_v58 = vld [vmem:[#allocation2 + $0x1f9] ss:$2 sm:$0xff] }
 0x2a8   :  { %1569 = vst.msk [vmem:[#allocation2 + $0x210] sm:$0xff] %vm1502_vm2, %v1487_v26  ;;  %v757_v3 = vmul.f32 %v9157_v0, %v651_v52  ;;  %v7479_v27 = vpack.i.bf16 %v4042_v34, %v3858_v19  ;;  %v3167_v54 = vsel %vm1687_vm6, %v3166_v49, %v7427_v45  ;;  %v7181_v45 = vld [vmem:[%s10433_s4 + $0x38] sm:$0xff]  ;;  %v7164_v9 = vld [vmem:[%s10433_s4] sm:$0xff] }
 0x2aa   :  { %v840_v59 = vadd.f32 %v9169_v17, %v757_v3  ;;  %7480 = vrot.lane.b32.xlu0 %v7479_v27, %s7935_s23  ;;  %v7171_v3 = vld [vmem:[%s10433_s4 + $0x38] sm:$0xff] }
 0x2ab   :  { %3615 = vmatpush.bf16.msra.mxu3 %v7171_v3 }
 0x2ac   :  { %v921_v57 = vmax.f32 %v840_v59, 0.0  ;;  %v1364_v1 = vpop.permute.xlu0 %1363  ;;  %v7431_v50 = vpop.permute.xlu1 %7430  ;;  %v3462_v59 = vpack.c.bf16 %v3461_v12, %v3461_v12 }
 0x2ad   :  { %v7433_v42 = vunpack.i.h.bf16 %v7431_v50  ;;  %v7432_v63 = vunpack.i.l.bf16 %v7431_v50 }
 0x2ae   :  { %v1488_v56 = vmul.f32 %v9356_v4, %v921_v57  ;;  %v7172_v4 = vld [vmem:[%s10433_s4 + $0x40] sm:$0xff] }
 0x2af   :  { %v3352_v31 = vsel %vm1689_vm7, %v3351_v33, %v7433_v42  ;;  %v3168_v60 = vsel %vm1689_vm7, %v3167_v54, %v7432_v63  ;;  %v654_v61 = vpop.f32.mrf.mxu0  ;;  %3616 = vmatpush.bf16.msra.mxu3 %v7170_v28  ;;  %v3866_v33 = vld [vmem:[#allocation2 + $0x1f8] ss:$2 sm:$0xff] }
 0x2b0   :  { %1570 = vst.msk [vmem:[#allocation2 + $0x218] sm:$0xff] %vm1502_vm2, %v1488_v56  ;;  %v758_v36 = vmul.f32 %v9157_v0, %v654_v61  ;;  %v3169_v43 = vsel %vm1691_vm8, %v3168_v60, %v7437_v25  ;;  %v3353_v14 = vsel %vm1691_vm8, %v3352_v31, %v7438_v62  ;;  %v7169_v62 = vld [vmem:[%s10433_s4 + $0x28] sm:$0xff] }
 0x2b1   :  { %v3170_v11 = vpack.c.bf16 %v3169_v43, %v3169_v43  ;;  %v3354_v13 = vpack.c.bf16 %v3353_v14, %v3353_v14  ;;  %v7168_v43 = vld [vmem:[%s10433_s4 + $0x20] sm:$0xff] }
 0x2b2   :  { %v841_v37 = vadd.f32 %v9169_v17, %v758_v36 }
 0x2b3   :  { %3255 = vmatmul.bf16.vlgmr.msra.gmra.mxu1 %v3170_v11  ;;  %3439 = vmatmul.bf16.vlgmr.msra.gmra.mxu2 %v3354_v13 }
 0x2b4   :  { %v922_v48 = vmax.f32 %v841_v37, 0.0  ;;  %v1379_v55 = vpop.permute.xlu0 %1378  ;;  %3635 = vmatpush.bf16.msra.mxu1 %v7172_v4  ;;  %3819 = vmatpush.bf16.msra.mxu2 %v7182_v5  ;;  %v9490_v4 = vld [vmem:[%s10435_s6 + $0x1] ss:$0 sm:$0xff]  ;;  %v7167_v37 = vld [vmem:[%s10433_s4 + $0x18] sm:$0xff] }
 0x2b5   :  { %v1493_v26 = vmul.f32 %v1379_v55, %v926_v18  ;;  %v1369_v57 = vpop.permute.xlu1 %1368  ;;  %3617 = vmatpush.bf16.msra.mxu3 %v7169_v62  ;;  %v9485_v18 = vpop.permute.xlu2 %7440 }
 0x2b6   :  { %v1489_v38 = vmul.f32 %v9350_v24, %v922_v48 }
 0x2b7   :  { %1575 = vst.msk [vmem:[#allocation2 + $0x240] sm:$0xff] %vm1502_vm2, %v1493_v26  ;;  %v656_v22 = vpop.f32.mrf.mxu0  ;;  %v4046_v52 = vld [vmem:[#allocation2 + $0x20b] ss:$2 sm:$0xff]  ;;  %v4044_v19 = vld [vmem:[#allocation2 + $0x20a] ss:$2 sm:$0xff] }
 0x2b8   :  { %1571 = vst.msk [vmem:[#allocation2 + $0x220] sm:$0xff] %vm1502_vm2, %v1489_v38  ;;  %v759_v34 = vmul.f32 %v9157_v0, %v656_v22  ;;  %v7489_v23 = vpack.i.bf16 %v4046_v52, %v3862_v6  ;;  %v7484_v46 = vpack.i.bf16 %v4044_v19, %v3860_v32  ;;  %v4048_v35 = vld [vmem:[#allocation2 + $0x20c] ss:$2 sm:$0xff] }
 0x2b9   :  { %v7494_v10 = vpack.i.bf16 %v4048_v35, %v3864_v2  ;;  %3618 = vmatpush.bf16.msra.mxu3 %v7168_v43  ;;  %v7178_v38 = vld [vmem:[%s10433_s4 + $0x20] sm:$0xff]  ;;  %v7176_v35 = vld [vmem:[%s10433_s4 + $0x10] sm:$0xff]  ;;  %v764_v2 = vmul.f32 %v9157_v0, %v8904_v20 }
 0x2ba   :  { %v842_v27 = vadd.f32 %v9169_v17, %v759_v34  ;;  %7490 = vrot.lane.b32.xlu2 %v7489_v23, %s7938_s30  ;;  %7485 = vrot.lane.b32.xlu1 %v7484_v46, %s7939_s13  ;;  %v3502_v52 = vld [vmem:[#allocation2 + $0x1b2] ss:$2 sm:$0xff]  ;;  %v7166_v23 = vld [vmem:[%s10433_s4 + $0x10] sm:$0xff] }
 0x2bb   :  { %v3686_v19 = vld [vmem:[#allocation2 + $0x1d6] ss:$2 sm:$0xff]  ;;  %v3539_v46 = vpack.c.bf16 %v3502_v52, %v3502_v52 }
 0x2bc   :  { %v923_v24 = vmax.f32 %v842_v27, 0.0  ;;  %v3723_v3 = vpack.c.bf16 %v3686_v19, %v3686_v19  ;;  %v7165_v27 = vld [vmem:[%s10433_s4 + $0x8] sm:$0xff] }
 0x2bd   :  { %3619 = vmatpush.bf16.msra.mxu3 %v7167_v37 }
 0x2be   :  { %v1490_v21 = vmul.f32 %v1364_v1, %v923_v24  ;;  %v7180_v1 = vld [vmem:[%s10433_s4 + $0x30] sm:$0xff]  ;;  %v7446_v24 = vpop.permute.xlu2 %7445 }
 0x2bf   :  { %v659_v39 = vpop.f32.mrf.mxu0 }
 0x2c0   :  { %1572 = vst.msk [vmem:[#allocation2 + $0x228] sm:$0xff] %vm1502_vm2, %v1490_v21  ;;  %v760_v44 = vmul.f32 %v9157_v0, %v659_v39  ;;  %v7175_v39 = vld [vmem:[%s10433_s4 + $0x8] sm:$0xff] }
 0x2c1   :  { %3620 = vmatpush.bf16.msra.mxu3 %v7166_v23 }
 0x2c2   :  { %v843_v8 = vadd.f32 %v9169_v17, %v760_v44  ;;  %7495 = vrot.lane.b32.xlu2 %v7494_v10, %s7937_s29  ;;  %v7174_v44 = vld [vmem:[%s10433_s4] sm:$0xff]  ;;  %v847_v10 = vadd.f32 %v9169_v17, %v764_v2 }
 0x2c3   :  { %6682 = vmatmul.msk.bf16.vlgmr.msrb.gmra.mxu1 %vm1502_vm2, %v3462_v59  ;;  %6724 = vmatmul.msk.bf16.vlgmr.msrb.gmra.mxu2 %vm1502_vm2, %v3646_v47  ;;  %v766_v47 = vmul.f32 %v9157_v0, %v8958_v7  ;;  %v7443_v7 = vunpack.i.h.bf16 %v9485_v18 }
 0x2c4   :  { %v924_v15 = vmax.f32 %v843_v8, 0.0  ;;  %3799 = vmatpush.bf16.msrb.mxu1 %v7181_v45  ;;  %v928_v62 = vmax.f32 %v847_v10, 0.0 }
 0x2c5   :  { %3621 = vmatpush.bf16.msra.mxu3 %v7165_v27  ;;  %v849_v20 = vadd.f32 %v9169_v17, %v766_v47 }
 0x2c6   :  { %v1491_v50 = vmul.f32 %v1369_v57, %v924_v15  ;;  %v2885_v49 = vpop.f32.mrf.mxu2 }
 0x2c7   :  { %v2899_v42 = vadd.f32 %v9390_v53, %v2885_v49  ;;  %v3069_v63 = vpop.f32.mrf.mxu3  ;;  %v661_v25 = vpop.f32.mrf.mxu0  ;;  %v4052_v54 = vld [vmem:[#allocation2 + $0x21d] ss:$2 sm:$0xff]  ;;  %v4050_v56 = vld [vmem:[#allocation2 + $0x21c] ss:$2 sm:$0xff]  ;;  %v9475_v53 = vld [vmem:[%s10435_s6] ss:$0 sm:$0xff] }
 0x2c8   :  { %1573 = vst.msk [vmem:[#allocation2 + $0x230] sm:$0xff] %vm1502_vm2, %v1491_v50  ;;  %v3083_v31 = vadd.f32 %v9380_v51, %v3069_v63  ;;  %v761_v60 = vmul.f32 %v9157_v0, %v661_v25  ;;  %v7504_v61 = vpack.i.bf16 %v4052_v54, %v3868_v58  ;;  %v7499_v36 = vpack.i.bf16 %v4050_v56, %v3866_v33  ;;  %v7179_v51 = vld [vmem:[%s10433_s4 + $0x28] sm:$0xff]  ;;  %v7183_v49 = vld [vmem:[%s10434_s5] sm:$0xff] }
 0x2c9   :  { %v2902_v14 = vmul.f32 %v9475_v53, %v2899_v42  ;;  %3800 = vmatpush.bf16.msrb.mxu1 %v7180_v1  ;;  %3622 = vmatpush.bf16.msra.mxu3 %v7164_v9  ;;  %v7193_v58 = vld [vmem:[%s10434_s5] sm:$0xff]  ;;  %v7442_v0 = vunpack.i.l.bf16 %v9485_v18  ;;  %v7447_v63 = vunpack.i.l.bf16 %v7446_v24  ;;  %v930_v33 = vmax.f32 %v849_v20, 0.0 }
 0x2ca   :  { %v3086_v11 = vmul.f32 %v9475_v53, %v3083_v31  ;;  %v844_v13 = vadd.f32 %v9169_v17, %v761_v60  ;;  %7505 = vrot.lane.b32.xlu1 %v7504_v61, %s7940_s17  ;;  %7500 = vrot.lane.b32.xlu0 %v7499_v36, %s7941_s18  ;;  %v7448_v17 = vunpack.i.h.bf16 %v7446_v24  ;;  %v7902_v25 = vld [vmem:[%s10431_s2] ss:$0 sm:$0xff] }
 0x2cb   :  { %v2903_v5 = vadd.f32 %v9490_v4, %v2902_v14  ;;  %v763_v54 = vmul.f32 %v7902_v25, %v8872_v30  ;;  %v3488_v56 = vld [vmem:[#allocation2 + $0x18c] ss:$2 sm:$0xff]  ;;  %v7903_v30 = vld [vmem:[%s10431_s2 + $0x1] ss:$0 sm:$0xff]  ;;  %v767_v52 = vmul.f32 %v7902_v25, %v8986_v29  ;;  %v765_v23 = vmul.f32 %v7902_v25, %v8926_v41 }
 0x2cc   :  { %v3087_v48 = vadd.f32 %v9490_v4, %v3086_v11  ;;  %v925_v55 = vmax.f32 %v844_v13, 0.0  ;;  %v3672_v31 = vld [vmem:[#allocation2 + $0x1b0] ss:$2 sm:$0xff]  ;;  %v3531_v36 = vsel %vm1502_vm2, %v3488_v56, %v7442_v0 }
 0x2cd   :  { %v2904_v26 = vmax.f32 %v2903_v5, 0.0  ;;  %3801 = vmatpush.bf16.msrb.mxu1 %v7179_v51  ;;  %3849 = vmatpush.bf16.msrb.mxu3 %v7183_v49  ;;  %v3715_v43 = vsel %vm1502_vm2, %v3672_v31, %v7443_v7  ;;  %v3532_v11 = vsel %vm1584_vm3, %v3531_v36, %v7447_v63  ;;  %v4226_v63 = vld [vmem:[#allocation2 + $0x21e] ss:$2 sm:$0xff] }
 0x2ce   :  { %v3088_v6 = vmax.f32 %v3087_v48, 0.0  ;;  %v1492_v32 = vmul.f32 %v9392_v40, %v925_v55  ;;  %v2887_v22 = vpop.f32.mrf.mxu2  ;;  %v7177_v40 = vld [vmem:[%s10433_s4 + $0x18] sm:$0xff]  ;;  %v3716_v51 = vsel %vm1584_vm3, %v3715_v43, %v7448_v17  ;;  %v846_v55 = vadd.f32 %v7903_v30, %v763_v54  ;;  %v7190_v36 = vld [vmem:[%s10433_s4 + $0x30] sm:$0xff] }
 0x2cf   :  { %2905 = vst.msk [vmem:[#allocation3 + $0x47] sm:$0xff] %vm1584_vm3, %v2904_v26  ;;  %v3071_v34 = vpop.f32.mrf.mxu3 }
 0x2d0   :  { %3089 = vst.msk [vmem:[#allocation3 + $0x51] sm:$0xff] %vm1584_vm3, %v3088_v6 }
 0x2d1   :  { %1574 = vst.msk [vmem:[#allocation2 + $0x238] sm:$0xff] %vm1502_vm2, %v1492_v32  ;;  %3802 = vmatpush.bf16.msrb.mxu1 %v7178_v38 }
 0x2d3   :  { %6719 = vmatmul.msk.bf16.vlgmr.msra.gmra.mxu1 %vm1502_vm2, %v3539_v46  ;;  %6761 = vmatmul.msk.bf16.vlgmr.msra.gmra.mxu2 %vm1502_vm2, %v3723_v3 }
 0x2d5   :  { %3803 = vmatpush.bf16.msrb.mxu1 %v7177_v40  ;;  %v927_v40 = vmax.f32 %v846_v55, 0.0  ;;  %v7201_v55 = vld [vmem:[%s10433_s4 + $0x38] sm:$0xff] }
 0x2d6   :  { %v3112_v21 = vpop.f32.mrf.mxu2 }
 0x2d7   :  { %3116 = vst.msk [vmem:[#allocation4 + $0x46] sm:$0xff] %vm1584_vm3, %v3112_v21  ;;  %v3299_v12 = vpop.f32.mrf.mxu3 }
 0x2d8   :  { %3303 = vst.msk [vmem:[#allocation4 + $0x64] sm:$0xff] %vm1584_vm3, %v3299_v12 }
 0x2d9   :  { %3804 = vmatpush.bf16.msrb.mxu1 %v7176_v35 }
 0x2dd   :  { %v9528_v28 = vpop.permute.xlu2 %7465  ;;  %3805 = vmatpush.bf16.msrb.mxu1 %v7175_v39  ;;  %v850_v39 = vadd.f32 %v7903_v30, %v767_v52  ;;  %v4605_v52 = vld [vmem:[#allocation3 + $0x9] sm:$0xff] }
 0x2de   :  { %v3114_v45 = vpop.f32.mrf.mxu2  ;;  %v7468_v27 = vunpack.i.h.bf16 %v9528_v28  ;;  %v7467_v24 = vunpack.i.l.bf16 %v9528_v28  ;;  %v7192_v28 = vld [vmem:[%s10433_s4 + $0x40] sm:$0xff] }
 0x2df   :  { %v3301_v59 = vpop.f32.mrf.mxu3  ;;  %v848_v45 = vadd.f32 %v7903_v30, %v765_v23 }
 0x2e0   :  { %v7202_v59 = vld [vmem:[%s10433_s4 + $0x40] sm:$0xff] }
 0x2e1   :  { %3806 = vmatpush.bf16.msrb.mxu1 %v7174_v44  ;;  %v929_v20 = vmax.f32 %v848_v45, 0.0 }
 0x2e4   :  { %v7456_v8 = vpop.permute.xlu1 %7455  ;;  %v7451_v42 = vpop.permute.xlu0 %7450 }
 0x2e5   :  { %v1389_v15 = vpop.permute.xlu2 %1388  ;;  %4033 = vmatpush.bf16.msra.mxu1 %v7193_v58  ;;  %v7453_v60 = vunpack.i.h.bf16 %v7451_v42  ;;  %v7452_v61 = vunpack.i.l.bf16 %v7451_v42  ;;  %v7458_v18 = vunpack.i.h.bf16 %v7456_v8  ;;  %v7457_v5 = vunpack.i.l.bf16 %v7456_v8  ;;  %v4225_v42 = vld [vmem:[#allocation2 + $0x21d] ss:$2 sm:$0xff] }
 0x2e6   :  { %v1495_v57 = vmul.f32 %v1389_v15, %v928_v62  ;;  %v9537_v1 = vpop.f32.mrf.mxu2  ;;  %v768_v8 = vmul.f32 %v7902_v25, %v8552_v16  ;;  %v931_v15 = vmax.f32 %v850_v39, 0.0  ;;  %v7191_v25 = vld [vmem:[%s10433_s4 + $0x38] sm:$0xff] }
 0x2e7   :  { %v9539_v50 = vpop.f32.mrf.mxu3  ;;  %v3717_v26 = vsel %vm1683_vm4, %v3716_v51, %v7453_v60  ;;  %v3533_v38 = vsel %vm1683_vm4, %v3532_v11, %v7452_v61  ;;  %v3829_v60 = vld [vmem:[#allocation2 + $0x1c3] ss:$2 sm:$0xff]  ;;  %3983 = vmatpush.bf16.msrb.mxu2 %v7191_v25  ;;  %v4228_v11 = vld [vmem:[#allocation2 + $0x22e] ss:$2 sm:$0xff] }
 0x2e8   :  { %1577 = vst.msk [vmem:[#allocation2 + $0x250] sm:$0xff] %vm1502_vm2, %v1495_v57  ;;  %v3534_v19 = vsel %vm1685_vm5, %v3533_v38, %v7457_v5  ;;  %v3718_v34 = vsel %vm1685_vm5, %v3717_v26, %v7458_v18  ;;  %v851_v58 = vadd.f32 %v7903_v30, %v768_v8  ;;  %v4013_v61 = vld [vmem:[#allocation2 + $0x1e7] ss:$2 sm:$0xff]  ;;  %v3830_v26 = vpack.c.bf16 %v3829_v60, %v3829_v60 }
 0x2e9   :  { %v4230_v51 = vld [vmem:[#allocation2 + $0x22f] ss:$2 sm:$0xff]  ;;  %v4014_v38 = vpack.c.bf16 %v4013_v61, %v4013_v61  ;;  %v4607_v8 = vld [vmem:[#allocation3 + $0x19] sm:$0xff] }
 0x2ea   :  { %v932_v16 = vmax.f32 %v851_v58, 0.0  ;;  %v4641_v39 = vld [vmem:[#allocation3 + $0xc] sm:$0xff]  ;;  %v4654_v58 = vld [vmem:[#allocation3 + $0x15] sm:$0xff] }
 0x2eb   :  { %3984 = vmatpush.bf16.msrb.mxu2 %v7190_v36  ;;  %v4619_v25 = vld [vmem:[#allocation3 + $0x1a] sm:$0xff]  ;;  %v7184_v36 = vld [vmem:[%s10433_s4] sm:$0xff] }
 0x2ec   :  { %v7461_v14 = vpop.permute.xlu1 %7460 }
 0x2ed   :  { %v1399_v13 = vpop.permute.xlu2 %1398  ;;  %v7463_v6 = vunpack.i.h.bf16 %v7461_v14  ;;  %v7462_v32 = vunpack.i.l.bf16 %v7461_v14  ;;  %v4232_v14 = vld [vmem:[#allocation2 + $0x230] ss:$2 sm:$0xff] }
 0x2ee   :  { %v1497_v37 = vmul.f32 %v1399_v13, %v930_v33  ;;  %v3271_v48 = vpop.f32.mrf.mxu2 }
 0x2ef   :  { %v3455_v22 = vpop.f32.mrf.mxu3  ;;  %v3535_v46 = vsel %vm1687_vm6, %v3534_v19, %v7462_v32  ;;  %v3719_v3 = vsel %vm1687_vm6, %v3718_v34, %v7463_v6  ;;  %v7189_v6 = vld [vmem:[%s10433_s4 + $0x28] sm:$0xff]  ;;  %v7200_v32 = vld [vmem:[%s10433_s4 + $0x30] sm:$0xff] }
 0x2f0   :  { %1579 = vst.msk [vmem:[#allocation2 + $0x260] sm:$0xff] %vm1502_vm2, %v1497_v37  ;;  %v3536_v2 = vsel %vm1689_vm7, %v3535_v46, %v7467_v24  ;;  %v3720_v44 = vsel %vm1689_vm7, %v3719_v3, %v7468_v27  ;;  %v4604_v22 = vld [vmem:[#allocation3 + $0x1] sm:$0xff]  ;;  %3985 = vmatpush.bf16.msrb.mxu2 %v7189_v6  ;;  %v7199_v24 = vld [vmem:[%s10433_s4 + $0x28] sm:$0xff]  ;;  %v7203_v6 = vld [vmem:[%s10434_s5] sm:$0xff] }
 0x2f1   :  { %v7544_v3 = vpack.i.bf16 %v4605_v52, %v4604_v22 }
 0x2f4   :  { %v1384_v35 = vpop.permute.xlu1 %1383  ;;  %v7471_v21 = vpop.permute.xlu0 %7470 }
 0x2f5   :  { %v1494_v12 = vmul.f32 %v1384_v35, %v927_v40  ;;  %v7473_v9 = vunpack.i.h.bf16 %v7471_v21  ;;  %v7472_v29 = vunpack.i.l.bf16 %v7471_v21  ;;  %v4642_v35 = vld [vmem:[#allocation3 + $0x14] sm:$0xff] }
 0x2f6   :  { %v4618_v21 = vld [vmem:[#allocation3 + $0x12] sm:$0xff] }
 0x2f7   :  { %1576 = vst.msk [vmem:[#allocation2 + $0x248] sm:$0xff] %vm1502_vm2, %v1494_v12  ;;  %v3537_v41 = vsel %vm1691_vm8, %v3536_v2, %v7472_v29  ;;  %v3721_v10 = vsel %vm1691_vm8, %v3720_v44, %v7473_v9  ;;  %v4617_v12 = vld [vmem:[#allocation3 + $0xa] sm:$0xff]  ;;  %v4616_v9 = vld [vmem:[#allocation3 + $0x2] sm:$0xff]  ;;  %v3870_v29 = vld [vmem:[#allocation2 + $0x1fa] ss:$2 sm:$0xff]  ;;  %v7559_v44 = vpack.i.bf16 %v4642_v35, %v4641_v39 }
 0x2f8   :  { %v3538_v47 = vpack.c.bf16 %v3537_v41, %v3537_v41  ;;  %v3722_v62 = vpack.c.bf16 %v3721_v10, %v3721_v10  ;;  %v4054_v2 = vld [vmem:[#allocation2 + $0x21e] ss:$2 sm:$0xff]  ;;  %v7554_v41 = vpack.i.bf16 %v4618_v21, %v4617_v12  ;;  %v7549_v10 = vpack.i.bf16 %v4617_v12, %v4616_v9 }
 0x2f9   :  { %v3907_v45 = vpack.c.bf16 %v3870_v29, %v3870_v29  ;;  %v3856_v9 = vld [vmem:[#allocation2 + $0x1d4] ss:$2 sm:$0xff] }
 0x2fa   :  { %3623 = vmatmul.bf16.vlgmr.msra.gmra.mxu3 %v3538_v47  ;;  %3807 = vmatmul.bf16.vlgmr.msrb.gmra.mxu1 %v3722_v62  ;;  %v7198_v47 = vld [vmem:[%s10433_s4 + $0x20] sm:$0xff]  ;;  %v7187_v62 = vld [vmem:[%s10433_s4 + $0x18] sm:$0xff] }
 0x2fb   :  { %4003 = vmatpush.bf16.msra.mxu3 %v7192_v28  ;;  %4187 = vmatpush.bf16.msrb.mxu1 %v7202_v59  ;;  %v4091_v28 = vpack.c.bf16 %v4054_v2, %v4054_v2  ;;  %v7188_v59 = vld [vmem:[%s10433_s4 + $0x20] sm:$0xff] }
 0x2fc   :  { %v1394_v57 = vpop.permute.xlu1 %1393  ;;  %v1404_v49 = vpop.permute.xlu0 %1403  ;;  %3986 = vmatpush.bf16.msrb.mxu2 %v7188_v59 }
 0x2fd   :  { %v1496_v7 = vmul.f32 %v1394_v57, %v929_v20  ;;  %v1498_v0 = vmul.f32 %v1404_v49, %v931_v15  ;;  %v4655_v15 = vld [vmem:[#allocation3 + $0x1d] sm:$0xff]  ;;  %v7197_v20 = vld [vmem:[%s10433_s4 + $0x18] sm:$0xff]  ;;  %v4606_v49 = vld [vmem:[#allocation3 + $0x11] sm:$0xff] }
 0x2fe   :  { %v4409_v17 = vld [vmem:[#allocation2 + $0x241] ss:$2 sm:$0xff]  ;;  %v4410_v54 = vld [vmem:[#allocation2 + $0x242] ss:$2 sm:$0xff] }
 0x2ff   :  { %1578 = vst.msk [vmem:[#allocation2 + $0x258] sm:$0xff] %vm1502_vm2, %v1496_v7  ;;  %v7509_v33 = vpack.i.bf16 %v4409_v17, %v4225_v42  ;;  %v7514_v56 = vpack.i.bf16 %v4410_v54, %v4226_v63  ;;  %v4236_v19 = vld [vmem:[#allocation2 + $0x241] ss:$2 sm:$0xff]  ;;  %v4234_v23 = vld [vmem:[#allocation2 + $0x240] ss:$2 sm:$0xff]  ;;  %v7574_v7 = vpack.i.bf16 %v4607_v8, %v4606_v49 }
 0x300   :  { %1580 = vst.msk [vmem:[#allocation2 + $0x268] sm:$0xff] %vm1502_vm2, %v1498_v0  ;;  %v4643_v57 = vld [vmem:[#allocation3 + $0x1c] sm:$0xff]  ;;  %v7569_v0 = vpack.i.bf16 %v4655_v15, %v4654_v58  ;;  %3987 = vmatpush.bf16.msrb.mxu2 %v7187_v62 }
 0x301   :  { %7510 = vrot.lane.b32.xlu2 %v7509_v33, %s7936_s24  ;;  %7515 = vrot.lane.b32.xlu0 %v7514_v56, %s7935_s23  ;;  %v7186_v42 = vld [vmem:[%s10433_s4 + $0x10] sm:$0xff]  ;;  %v7564_v17 = vpack.i.bf16 %v4643_v57, %v4642_v35  ;;  %v7185_v54 = vld [vmem:[%s10433_s4 + $0x8] sm:$0xff]  ;;  %v4621_v35 = vld [vmem:[#allocation3 + $0x2a] sm:$0xff] }
 0x302   :  { %v7196_v63 = vld [vmem:[%s10433_s4 + $0x10] sm:$0xff] }
 0x303   :  { %v4644_v33 = vld [vmem:[#allocation3 + $0x24] sm:$0xff] }
 0x304   :  { %v1409_v31 = vpop.permute.xlu1 %1408  ;;  %3988 = vmatpush.bf16.msrb.mxu2 %v7186_v42  ;;  %v9644_v56 = vld [vmem:[#allocation3 + $0x22] sm:$0xff]  ;;  %v7589_v60 = vpack.i.bf16 %v4644_v33, %v4643_v57 }
 0x305   :  { %v1499_v43 = vmul.f32 %v1409_v31, %v932_v16  ;;  %v7195_v16 = vld [vmem:[%s10433_s4 + $0x8] sm:$0xff]  ;;  %v7584_v61 = vpack.i.bf16 %v9644_v56, %v4619_v25 }
 0x306   :  { %v4416_v13 = vld [vmem:[#allocation2 + $0x254] ss:$2 sm:$0xff]  ;;  %v4414_v18 = vld [vmem:[#allocation2 + $0x253] ss:$2 sm:$0xff] }
 0x307   :  { %v4412_v5 = vld [vmem:[#allocation2 + $0x252] ss:$2 sm:$0xff]  ;;  %1581 = vst.msk [vmem:[#allocation2 + $0x270] sm:$0xff] %vm1502_vm2, %v1499_v43  ;;  %v7529_v37 = vpack.i.bf16 %v4416_v13, %v4232_v14  ;;  %v7524_v48 = vpack.i.bf16 %v4414_v18, %v4230_v51  ;;  %v7579_v43 = vpack.i.bf16 %v4619_v25, %v4618_v21  ;;  %v4608_v18 = vld [vmem:[#allocation3 + $0x21] sm:$0xff] }
 0x308   :  { %v7519_v30 = vpack.i.bf16 %v4412_v5, %v4228_v11  ;;  %3989 = vmatpush.bf16.msrb.mxu2 %v7185_v54  ;;  %v7194_v14 = vld [vmem:[%s10433_s4] sm:$0xff]  ;;  %v4656_v5 = vld [vmem:[#allocation3 + $0x25] sm:$0xff] }
 0x309   :  { %7530 = vrot.lane.b32.xlu0 %v7529_v37, %s7937_s29  ;;  %7525 = vrot.lane.b32.xlu2 %v7524_v48, %s7938_s30  ;;  %v4609_v51 = vld [vmem:[#allocation3 + $0x29] sm:$0xff] }
 0x30a   :  { %7520 = vrot.lane.b32.xlu1 %v7519_v30, %s7939_s13  ;;  %6766 = vmatmul.msk.bf16.vlgmr.msrb.gmra.mxu3 %vm1502_vm2, %v3830_v26  ;;  %v4657_v11 = vld [vmem:[#allocation3 + $0x2d] sm:$0xff]  ;;  %v7604_v48 = vpack.i.bf16 %v4609_v51, %v4608_v18  ;;  %v4659_v51 = vld [vmem:[#allocation3 + $0x3d] sm:$0xff] }
 0x30b   :  { %6808 = vmatmul.msk.bf16.vlgmr.msra.gmra.mxu1 %vm1502_vm2, %v4014_v38  ;;  %4167 = vmatpush.bf16.msrb.mxu3 %v7201_v55  ;;  %v4645_v13 = vld [vmem:[#allocation3 + $0x2c] sm:$0xff]  ;;  %v7599_v30 = vpack.i.bf16 %v4657_v11, %v4656_v5 }
 0x30c   :  { %3990 = vmatpush.bf16.msrb.mxu2 %v7184_v36  ;;  %v7594_v38 = vpack.i.bf16 %v4645_v13, %v4644_v33  ;;  %v4610_v33 = vld [vmem:[#allocation3 + $0x31] sm:$0xff] }
 0x30e   :  { %v4420_v34 = vld [vmem:[#allocation2 + $0x265] ss:$2 sm:$0xff]  ;;  %v4418_v46 = vld [vmem:[#allocation2 + $0x264] ss:$2 sm:$0xff] }
 0x30f   :  { %v7539_v40 = vpack.i.bf16 %v4420_v34, %v4236_v19  ;;  %v7534_v27 = vpack.i.bf16 %v4418_v46, %v4234_v23  ;;  %4168 = vmatpush.bf16.msrb.mxu3 %v7200_v32  ;;  %v7213_v32 = vld [vmem:[%s10434_s5] sm:$0xff] }
 0x310   :  { %4217 = vmatpush.bf16.msra.mxu2 %v7203_v6 }
 0x311   :  { %7545 = vrot.lane.b32.xlu0 %v7544_v3, %s7935_s23  ;;  %7540 = vrot.lane.b32.xlu2 %v7539_v40, %s7940_s17  ;;  %v9670_v3 = vld [vmem:[#allocation3 + $0x34] sm:$0xff] }
 0x312   :  { %7535 = vrot.lane.b32.xlu1 %v7534_v27, %s7941_s18  ;;  %v9672_v40 = vld [vmem:[#allocation3 + $0x32] sm:$0xff]  ;;  %v7619_v39 = vpack.i.bf16 %v9670_v3, %v4645_v13 }
 0x313   :  { %4169 = vmatpush.bf16.msrb.mxu3 %v7199_v24 }
 0x314   :  { %v7476_v31 = vpop.permute.xlu0 %7475  ;;  %v7491_v37 = vpop.permute.xlu2 %7490 }
 0x315   :  { %v7478_v19 = vunpack.i.h.bf16 %v7476_v31  ;;  %v7477_v34 = vunpack.i.l.bf16 %v7476_v31  ;;  %v7493_v15 = vunpack.i.h.bf16 %v7491_v37 }
 0x317   :  { %4170 = vmatpush.bf16.msrb.mxu3 %v7198_v47  ;;  %v7609_v47 = vpack.i.bf16 %v4621_v35, %v9644_v56  ;;  %v4611_v56 = vld [vmem:[#allocation3 + $0x39] sm:$0xff] }
 0x318   :  { %v7634_v18 = vpack.i.bf16 %v4611_v56, %v4610_v33  ;;  %v4615_v56 = vld [vmem:[#allocation3 + $0x59] sm:$0xff] }
 0x319   :  { %7560 = vrot.lane.b32.xlu0 %v7559_v44, %s7935_s23  ;;  %7555 = vrot.lane.b32.xlu2 %v7554_v41, %s7941_s18  ;;  %v7614_v44 = vpack.i.bf16 %v9672_v40, %v4621_v35  ;;  %v3899_v41 = vsel %vm1502_vm2, %v3856_v9, %v7477_v34  ;;  %v4624_v34 = vld [vmem:[#allocation3 + $0x42] sm:$0xff] }
 0x31a   :  { %7550 = vrot.lane.b32.xlu1 %v7549_v10, %s7938_s30  ;;  %6803 = vmatmul.msk.bf16.vlgmr.msra.gmra.mxu3 %vm1502_vm2, %v3907_v45  ;;  %v7211_v35 = vld [vmem:[%s10433_s4 + $0x38] sm:$0xff] }
 0x31b   :  { %6845 = vmatmul.msk.bf16.vlgmr.msrb.gmra.mxu1 %vm1502_vm2, %v4091_v28  ;;  %4171 = vmatpush.bf16.msrb.mxu3 %v7197_v20  ;;  %v4660_v9 = vld [vmem:[#allocation3 + $0x45] sm:$0xff] }
 0x31c   :  { %v7481_v55 = vpop.permute.xlu0 %7480  ;;  %v7496_v20 = vpop.permute.xlu2 %7495  ;;  %4351 = vmatpush.bf16.msra.mxu1 %v7211_v35  ;;  %v7215_v35 = vld [vmem:[%s10433_s4 + $0x8] sm:$0xff] }
 0x31d   :  { %v7483_v23 = vunpack.i.h.bf16 %v7481_v55  ;;  %v7482_v27 = vunpack.i.l.bf16 %v7481_v55  ;;  %v7497_v42 = vunpack.i.l.bf16 %v7496_v20 }
 0x31f   :  { %4172 = vmatpush.bf16.msrb.mxu3 %v7196_v63  ;;  %v3900_v59 = vsel %vm1584_vm3, %v3899_v41, %v7482_v27 }
 0x321   :  { %7575 = vrot.lane.b32.xlu0 %v7574_v7, %s7935_s23  ;;  %7570 = vrot.lane.b32.xlu2 %v7569_v0, %s7941_s18  ;;  %v7498_v0 = vunpack.i.h.bf16 %v7496_v20  ;;  %v4650_v20 = vld [vmem:[#allocation3 + $0x54] sm:$0xff] }
 0x322   :  { %7565 = vrot.lane.b32.xlu1 %v7564_v17, %s7938_s30 }
 0x323   :  { %4173 = vmatpush.bf16.msrb.mxu3 %v7195_v16  ;;  %v4658_v16 = vld [vmem:[#allocation3 + $0x35] sm:$0xff] }
 0x324   :  { %v7629_v5 = vpack.i.bf16 %v4659_v51, %v4658_v16  ;;  %v4614_v16 = vld [vmem:[#allocation3 + $0x51] sm:$0xff]  ;;  %v4238_v51 = vld [vmem:[#allocation2 + $0x242] ss:$2 sm:$0xff] }
 0x327   :  { %4174 = vmatpush.bf16.msrb.mxu3 %v7194_v14 }
 0x329   :  { %7590 = vrot.lane.b32.xlu0 %v7589_v60, %s7935_s23  ;;  %7585 = vrot.lane.b32.xlu2 %v7584_v61, %s7941_s18 }
 0x32a   :  { %7580 = vrot.lane.b32.xlu1 %v7579_v43, %s7938_s30 }
 0x32b   :  { %4401 = vmatpush.bf16.msra.mxu3 %v7213_v32 }
 0x32c   :  { %v7486_v22 = vpop.permute.xlu1 %7485 }
 0x32d   :  { %v7488_v24 = vunpack.i.h.bf16 %v7486_v22  ;;  %v7487_v21 = vunpack.i.l.bf16 %v7486_v22  ;;  %v7212_v22 = vld [vmem:[%s10433_s4 + $0x40] sm:$0xff] }
 0x32f   :  { %v3901_v57 = vsel %vm1683_vm4, %v3900_v59, %v7487_v21  ;;  %v4612_v21 = vld [vmem:[#allocation3 + $0x41] sm:$0xff] }
 0x330   :  { %v3256_v26 = vpop.f32.mrf.mxu1 }
 0x331   :  { %v3270_v52 = vadd.f32 %v9537_v1, %v3256_v26  ;;  %7605 = vrot.lane.b32.xlu0 %v7604_v48, %s7935_s23  ;;  %7600 = vrot.lane.b32.xlu2 %v7599_v30, %s7941_s18  ;;  %v4040_v1 = vld [vmem:[#allocation2 + $0x1f8] ss:$2 sm:$0xff] }
 0x332   :  { %7595 = vrot.lane.b32.xlu1 %v7594_v38, %s7938_s30  ;;  %v4083_v29 = vsel %vm1502_vm2, %v4040_v1, %v7478_v19  ;;  %v7222_v38 = vld [vmem:[%s10433_s4 + $0x40] sm:$0xff]  ;;  %v4648_v19 = vld [vmem:[#allocation3 + $0x44] sm:$0xff] }
 0x333   :  { %v3273_v46 = vmul.f32 %v9475_v53, %v3270_v52  ;;  %v4084_v10 = vsel %vm1584_vm3, %v4083_v29, %v7483_v23  ;;  %v4623_v23 = vld [vmem:[#allocation3 + $0x3a] sm:$0xff]  ;;  %v4661_v29 = vld [vmem:[#allocation3 + $0x4d] sm:$0xff] }
 0x334   :  { %v4085_v62 = vsel %vm1683_vm4, %v4084_v10, %v7488_v24  ;;  %v7644_v27 = vpack.i.bf16 %v4624_v34, %v4623_v23  ;;  %v7639_v1 = vpack.i.bf16 %v4623_v23, %v9672_v40  ;;  %v4649_v40 = vld [vmem:[#allocation3 + $0x4c] sm:$0xff]  ;;  %v7659_v10 = vpack.i.bf16 %v4661_v29, %v4660_v9  ;;  %v7216_v23 = vld [vmem:[%s10433_s4 + $0x10] sm:$0xff] }
 0x335   :  { %v3274_v12 = vadd.f32 %v9490_v4, %v3273_v46  ;;  %v4086_v58 = vsel %vm1685_vm5, %v4085_v62, %v7493_v15  ;;  %v7654_v59 = vpack.i.bf16 %v4649_v40, %v4648_v19  ;;  %v7221_v62 = vld [vmem:[%s10433_s4 + $0x38] sm:$0xff]  ;;  %v7209_v15 = vld [vmem:[%s10433_s4 + $0x28] sm:$0xff] }
 0x336   :  { %v3440_v2 = vpop.f32.mrf.mxu2  ;;  %v4087_v36 = vsel %vm1687_vm6, %v4086_v58, %v7498_v0  ;;  %v7220_v58 = vld [vmem:[%s10433_s4 + $0x30] sm:$0xff]  ;;  %v7679_v0 = vpack.i.bf16 %v4650_v20, %v4649_v40  ;;  %v9812_v9 = vld [vmem:[%s10436_s7 + $0x18] sm:$0xff]  ;;  %v7204_v40 = vld [vmem:[%s10433_s4] sm:$0xff] }
 0x337   :  { %v3275_v45 = vmax.f32 %v3274_v12, 0.0  ;;  %v3454_v28 = vadd.f32 %v9539_v50, %v3440_v2  ;;  %v7492_v50 = vunpack.i.l.bf16 %v7491_v37  ;;  %v4647_v37 = vld [vmem:[#allocation3 + $0x3c] sm:$0xff]  ;;  %v4613_v12 = vld [vmem:[#allocation3 + $0x49] sm:$0xff] }
 0x338   :  { %v3258_v8 = vpop.f32.mrf.mxu1  ;;  %v7624_v26 = vpack.i.bf16 %v4647_v37, %v9670_v3  ;;  %v7649_v3 = vpack.i.bf16 %v4648_v19, %v4647_v37  ;;  %v7664_v41 = vpack.i.bf16 %v4613_v12, %v4612_v21 }
 0x339   :  { %3276 = vst.msk [vmem:[#allocation3 + $0x6f] sm:$0xff] %vm1584_vm3, %v3275_v45  ;;  %v3457_v49 = vmul.f32 %v9475_v53, %v3454_v28  ;;  %7620 = vrot.lane.b32.xlu0 %v7619_v39, %s7935_s23  ;;  %7615 = vrot.lane.b32.xlu2 %v7614_v44, %s7941_s18  ;;  %v3902_v17 = vsel %vm1685_vm5, %v3901_v57, %v7492_v50  ;;  %v7210_v39 = vld [vmem:[%s10433_s4 + $0x30] sm:$0xff]  ;;  %v4625_v57 = vld [vmem:[#allocation3 + $0x4a] sm:$0xff] }
 0x33a   :  { %7610 = vrot.lane.b32.xlu1 %v7609_v47, %s7938_s30  ;;  %v3903_v11 = vsel %vm1687_vm6, %v3902_v17, %v7497_v42  ;;  %v4381_v44 = vld [vmem:[#allocation2 + $0x22f] ss:$2 sm:$0xff]  ;;  %4352 = vmatpush.bf16.msra.mxu1 %v7210_v39 }
 0x33b   :  { %v3458_v7 = vadd.f32 %v9490_v4, %v3457_v49  ;;  %v4197_v45 = vld [vmem:[#allocation2 + $0x20b] ss:$2 sm:$0xff]  ;;  %v4382_v47 = vpack.c.bf16 %v4381_v44, %v4381_v44  ;;  %v4626_v49 = vld [vmem:[#allocation3 + $0x52] sm:$0xff] }
 0x33c   :  { %v7506_v63 = vpop.permute.xlu1 %7505  ;;  %v7501_v54 = vpop.permute.xlu0 %7500  ;;  %v4198_v8 = vpack.c.bf16 %v4197_v45, %v4197_v45  ;;  %v7674_v42 = vpack.i.bf16 %v4626_v49, %v4625_v57 }
 0x33d   :  { %v3459_v25 = vmax.f32 %v3458_v7, 0.0  ;;  %v7508_v31 = vunpack.i.h.bf16 %v7506_v63  ;;  %v7507_v60 = vunpack.i.l.bf16 %v7506_v63  ;;  %v7503_v61 = vunpack.i.h.bf16 %v7501_v54  ;;  %v9743_v7 = vld [vmem:[%s10436_s7 + $0x38] sm:$0xff] }
 0x33e   :  { %v7502_v43 = vunpack.i.l.bf16 %v7501_v54  ;;  %v3442_v14 = vpop.f32.mrf.mxu2  ;;  %4353 = vmatpush.bf16.msra.mxu1 %v7209_v15  ;;  %v7669_v63 = vpack.i.bf16 %v4625_v57, %v4624_v34  ;;  %v7219_v54 = vld [vmem:[%s10433_s4 + $0x28] sm:$0xff]  ;;  %v7206_v34 = vld [vmem:[%s10433_s4 + $0x10] sm:$0xff] }
 0x33f   :  { %3460 = vst.msk [vmem:[#allocation3 + $0x79] sm:$0xff] %vm1584_vm3, %v3459_v25  ;;  %v4088_v13 = vsel %vm1689_vm7, %v4087_v36, %v7503_v61  ;;  %v4662_v25 = vld [vmem:[#allocation3 + $0x55] sm:$0xff]  ;;  %v4422_v36 = vld [vmem:[#allocation2 + $0x266] ss:$2 sm:$0xff] }
 0x340   :  { %v4089_v48 = vsel %vm1691_vm8, %v4088_v13, %v7508_v31  ;;  %v3904_v30 = vsel %vm1689_vm7, %v3903_v11, %v7502_v43  ;;  %v3483_v55 = vpop.f32.mrf.mxu1  ;;  %v4663_v31 = vld [vmem:[#allocation3 + $0x5d] sm:$0xff]  ;;  %v7694_v43 = vpack.i.bf16 %v4615_v56, %v4614_v16  ;;  %v7208_v13 = vld [vmem:[%s10433_s4 + $0x20] sm:$0xff]  ;;  %v4459_v37 = vpack.c.bf16 %v4422_v36, %v4422_v36  ;;  %v9876_v36 = vld [vmem:[%s10436_s7 + $0x78] sm:$0xff] }
 0x341   :  { %v4090_v6 = vpack.c.bf16 %v4089_v48, %v4089_v48  ;;  %v3905_v32 = vsel %vm1691_vm8, %v3904_v30, %v7507_v60  ;;  %3487 = vst.msk [vmem:[#allocation4 + $0x6e] sm:$0xff] %vm1584_vm3, %v3483_v55  ;;  %7635 = vrot.lane.b32.xlu0 %v7634_v18, %s7935_s23  ;;  %7630 = vrot.lane.b32.xlu2 %v7629_v5, %s7941_s18  ;;  %v4651_v60 = vld [vmem:[#allocation3 + $0x5c] sm:$0xff]  ;;  %v7218_v18 = vld [vmem:[%s10433_s4 + $0x20] sm:$0xff]  ;;  %v7207_v30 = vld [vmem:[%s10433_s4 + $0x18] sm:$0xff] }
 0x342   :  { %v3906_v52 = vpack.c.bf16 %v3905_v32, %v3905_v32  ;;  %7625 = vrot.lane.b32.xlu1 %v7624_v26, %s7938_s30  ;;  %v7689_v14 = vpack.i.bf16 %v4663_v31, %v4662_v25  ;;  %v7684_v11 = vpack.i.bf16 %v4651_v60, %v4650_v20  ;;  %v9763_v5 = vld [vmem:[%s10436_s7 + $0x30] sm:$0xff]  ;;  %v4275_v48 = vpack.c.bf16 %v4238_v51, %v4238_v51  ;;  %v5378_v21 = vld [vmem:[#allocation3 + $0x69] sm:$0xff]  ;;  %v9847_v20 = vld [vmem:[%s10436_s7 + $0x8] sm:$0xff] }
 0x343   :  { %4175 = vmatmul.bf16.vlgmr.msrb.gmra.mxu3 %v4090_v6  ;;  %4354 = vmatpush.bf16.msra.mxu1 %v7208_v13  ;;  %v4627_v26 = vld [vmem:[#allocation3 + $0x5a] sm:$0xff]  ;;  %v4652_v6 = vld [vmem:[#allocation3 + $0x64] sm:$0xff]  ;;  %v4665_v12 = vld [vmem:[#allocation3 + $0x6d] sm:$0xff] }
 0x344   :  { %3991 = vmatmul.bf16.vlgmr.msrb.gmra.mxu2 %v3906_v52  ;;  %4555 = vmatpush.bf16.msrb.mxu3 %v7222_v38  ;;  %v7217_v38 = vld [vmem:[%s10433_s4 + $0x18] sm:$0xff]  ;;  %v7709_v52 = vpack.i.bf16 %v4652_v6, %v4651_v60  ;;  %v4224_v51 = vld [vmem:[#allocation2 + $0x21c] ss:$2 sm:$0xff] }
 0x345   :  { %4371 = vmatpush.bf16.msrb.mxu2 %v7212_v22  ;;  %v9778_v32 = vld [vmem:[#allocation3 + $0x62] sm:$0xff]  ;;  %v9784_v22 = vld [vmem:[%s10436_s7 + $0x28] sm:$0xff]  ;;  %v4653_v39 = vld [vmem:[#allocation3 + $0x6c] sm:$0xff] }
 0x346   :  { %v3667_v46 = vpop.f32.mrf.mxu2  ;;  %v7704_v19 = vpack.i.bf16 %v9778_v32, %v4627_v26  ;;  %v7714_v45 = vpack.i.bf16 %v4653_v39, %v4652_v6  ;;  %v9841_v15 = vld [vmem:[#allocation3 + $0x72] sm:$0xff]  ;;  %v5389_v57 = vld [vmem:[#allocation3 + $0x6a] sm:$0xff] }
 0x347   :  { %3671 = vst.msk [vmem:[#allocation4 + $0x78] sm:$0xff] %vm1584_vm3, %v3667_v46  ;;  %4355 = vmatpush.bf16.msra.mxu1 %v7207_v30  ;;  %v7699_v46 = vpack.i.bf16 %v4627_v26, %v4626_v49  ;;  %v5379_v26 = vld [vmem:[#allocation3 + $0x71] sm:$0xff] }
 0x348   :  { %v3485_v24 = vpop.f32.mrf.mxu1 }
 0x349   :  { %7650 = vrot.lane.b32.xlu0 %v7649_v3, %s7935_s23  ;;  %7645 = vrot.lane.b32.xlu2 %v7644_v27, %s7941_s18  ;;  %v9797_v3 = vld [vmem:[%s10436_s7 + $0x20] sm:$0xff]  ;;  %v7205_v27 = vld [vmem:[%s10433_s4 + $0x8] sm:$0xff]  ;;  %v5377_v24 = vld [vmem:[#allocation3 + $0x61] sm:$0xff] }
 0x34a   :  { %7640 = vrot.lane.b32.xlu1 %v7639_v1, %s7938_s30  ;;  %v4664_v1 = vld [vmem:[#allocation3 + $0x65] sm:$0xff] }
 0x34b   :  { %4356 = vmatpush.bf16.msra.mxu1 %v7206_v34  ;;  %v7719_v44 = vpack.i.bf16 %v4665_v12, %v4664_v1 }
 0x34e   :  { %v3669_v2 = vpop.f32.mrf.mxu2 }
 0x34f   :  { %4357 = vmatpush.bf16.msra.mxu1 %v7205_v27  ;;  %v7724_v2 = vpack.i.bf16 %v5378_v21, %v5377_v24 }
 0x350   :  { %v9722_v28 = vpop.f32.mrf.mxu1 }
 0x351   :  { %7665 = vrot.lane.b32.xlu0 %v7664_v41, %s7935_s23  ;;  %7660 = vrot.lane.b32.xlu2 %v7659_v10, %s7941_s18  ;;  %v7214_v41 = vld [vmem:[%s10433_s4] sm:$0xff] }
 0x352   :  { %7655 = vrot.lane.b32.xlu1 %v7654_v59, %s7938_s30  ;;  %v7223_v10 = vld [vmem:[%s10434_s5] sm:$0xff]  ;;  %v9829_v59 = vld [vmem:[%s10436_s7 + $0x10] sm:$0xff]  ;;  %s7943_s5 = smov [#allocation5]  }
 0x353   :  { %6892 = vmatmul.msk.bf16.vlgmr.msra.gmra.mxu3 %vm1502_vm2, %v4382_v47  ;;  %4358 = vmatpush.bf16.msra.mxu1 %v7204_v40  ;;  %s6043_s2 = sshll.u32 %s7943_s5, 4  ;;  %s6044_s2 = int_to_ptr.vmem [resolvable:$true] %s6043_s2 }
 0x354   :  { %6850 = vmatmul.msk.bf16.vlgmr.msra.gmra.mxu2 %vm1502_vm2, %v4198_v8  ;;  %5208 = vmatpush.bf16.msra.mxu3 %v9743_v7  ;;  %v9839_v8 = vld [vmem:[#allocation3 + $0x74] sm:$0xff] }
 0x355   :  { %4535 = vmatpush.bf16.msra.mxu2 %v7221_v62  ;;  %v9837_v62 = vld [vmem:[%s10436_s7 + $0x88] sm:$0xff] }
 0x356   :  { %v9735_v50 = vpop.f32.mrf.mxu2 }
 0x357   :  { %4585 = vmatpush.bf16.msrb.mxu1 %v7223_v10 }
 0x358   :  { %v3639_v17 = vpop.f32.mrf.mxu1  ;;  %5209 = vmatpush.bf16.msra.mxu3 %v9763_v5 }
 0x359   :  { %7680 = vrot.lane.b32.xlu0 %v7679_v0, %s7935_s23  ;;  %7675 = vrot.lane.b32.xlu2 %v7674_v42, %s7941_s18  ;;  %v7739_v0 = vpack.i.bf16 %v9839_v8, %v4653_v39  ;;  %v7734_v42 = vpack.i.bf16 %v9841_v15, %v5389_v57 }
 0x35a   :  { %7670 = vrot.lane.b32.xlu1 %v7669_v63, %s7938_s30  ;;  %4536 = vmatpush.bf16.msra.mxu2 %v7220_v58  ;;  %v7729_v63 = vpack.i.bf16 %v5389_v57, %v9778_v32 }
 0x35b   :  { %v9752_v33 = vpop.permute.xlu2 %7510 }
 0x35c   :  { %5210 = vmatpush.bf16.msra.mxu3 %v9784_v22  ;;  %v7513_v56 = vunpack.i.h.bf16 %v9752_v33  ;;  %v7512_v16 = vunpack.i.l.bf16 %v9752_v33 }
 0x35e   :  { %v3823_v61 = vpop.f32.mrf.mxu2  ;;  %4537 = vmatpush.bf16.msra.mxu2 %v7219_v54  ;;  %v9860_v54 = vld [vmem:[%s10436_s7] sm:$0xff] }
 0x360   :  { %5211 = vmatpush.bf16.msra.mxu3 %v9797_v3 }
 0x361   :  { %7695 = vrot.lane.b32.xlu0 %v7694_v43, %s7935_s23  ;;  %7690 = vrot.lane.b32.xlu2 %v7689_v14, %s7941_s18  ;;  %v5380_v14 = vld [vmem:[#allocation3 + $0x79] sm:$0xff] }
 0x362   :  { %7685 = vrot.lane.b32.xlu1 %v7684_v11, %s7938_s30  ;;  %4538 = vmatpush.bf16.msra.mxu2 %v7218_v18 }
 0x363   :  { %6929 = vmatmul.msk.bf16.vlgmr.msrb.gmra.mxu3 %vm1502_vm2, %v4459_v37  ;;  %v9772_v55 = vpop.permute.xlu2 %7525 }
 0x364   :  { %6887 = vmatmul.msk.bf16.vlgmr.msrb.gmra.mxu2 %vm1502_vm2, %v4275_v48  ;;  %5212 = vmatpush.bf16.msra.mxu3 %v9812_v9  ;;  %v4267_v48 = vsel %vm1502_vm2, %v4224_v51, %v7512_v16  ;;  %v7528_v27 = vunpack.i.h.bf16 %v9772_v55  ;;  %v7527_v24 = vunpack.i.l.bf16 %v9772_v55  ;;  %v9918_v55 = vld [vmem:[%s10436_s7 + $0x68] sm:$0xff]  ;;  %v9931_v16 = vld [vmem:[%s10436_s7 + $0x60] sm:$0xff] }
 0x366   :  { %4539 = vmatpush.bf16.msra.mxu2 %v7217_v38 }
 0x368   :  { %5213 = vmatpush.bf16.msra.mxu3 %v9829_v59 }
 0x369   :  { %7710 = vrot.lane.b32.xlu0 %v7709_v52, %s7935_s23  ;;  %7705 = vrot.lane.b32.xlu2 %v7704_v19, %s7941_s18  ;;  %v7744_v52 = vpack.i.bf16 %v5380_v14, %v5379_v26  ;;  %v9890_v19 = vld [vmem:[%s10436_s7 + $0x70] sm:$0xff] }
 0x36a   :  { %7700 = vrot.lane.b32.xlu1 %v7699_v46, %s7938_s30  ;;  %4540 = vmatpush.bf16.msra.mxu2 %v7216_v23  ;;  %v4592_v14 = vld [vmem:[#allocation3] sm:$0xff] }
 0x36b   :  { %v9814_v29 = vpop.permute.xlu2 %7540 }
 0x36c   :  { %5214 = vmatpush.bf16.msra.mxu3 %v9847_v20 }
 0x36e   :  { %4541 = vmatpush.bf16.msra.mxu2 %v7215_v35  ;;  %v9910_v35 = vld [vmem:[%s10435_s6 + $0x1] ss:$0 sm:$0xff] }
 0x370   :  { %5215 = vmatpush.bf16.msra.mxu3 %v9860_v54 }
 0x371   :  { %7725 = vrot.lane.b32.xlu0 %v7724_v2, %s7935_s23  ;;  %7720 = vrot.lane.b32.xlu2 %v7719_v44, %s7941_s18 }
 0x372   :  { %7715 = vrot.lane.b32.xlu1 %v7714_v45, %s7938_s30  ;;  %4542 = vmatpush.bf16.msra.mxu2 %v7214_v41 }
 0x373   :  { %v7516_v47 = vpop.permute.xlu0 %7515  ;;  %v9850_v49 = vpop.permute.xlu2 %7555 }
 0x374   :  { %v7518_v31 = vunpack.i.h.bf16 %v7516_v47  ;;  %v7517_v60 = vunpack.i.l.bf16 %v7516_v47  ;;  %5840 = vmatpush.bf16.msrb.mxu3 %v9876_v36 }
 0x376   :  { %5292 = vmatpush.bf16.msrb.mxu2 %v9837_v62  ;;  %v4268_v6 = vsel %vm1584_vm3, %v4267_v48, %v7517_v60  ;;  %v7558_v48 = vunpack.i.h.bf16 %v9850_v49 }
 0x377   :  { %v3808_v58 = vpop.f32.mrf.mxu1 }
 0x378   :  { %v3822_v17 = vadd.f32 %v9735_v50, %v3808_v58  ;;  %v9871_v50 = vld [vmem:[%s10436_s7 + $0x80] sm:$0xff]  ;;  %5841 = vmatpush.bf16.msrb.mxu3 %v9890_v19  ;;  %v7543_v58 = vunpack.i.h.bf16 %v9814_v29 }
 0x379   :  { %7740 = vrot.lane.b32.xlu0 %v7739_v0, %s7935_s23  ;;  %7735 = vrot.lane.b32.xlu2 %v7734_v42, %s7941_s18  ;;  %v7542_v0 = vunpack.i.l.bf16 %v9814_v29 }
 0x37a   :  { %v3825_v25 = vmul.f32 %v9475_v53, %v3822_v17  ;;  %7730 = vrot.lane.b32.xlu1 %v7729_v63, %s7938_s30  ;;  %5293 = vmatpush.bf16.msrb.mxu2 %v9871_v50  ;;  %v4408_v53 = vld [vmem:[#allocation2 + $0x240] ss:$2 sm:$0xff] }
 0x37b   :  { %v7531_v61 = vpop.permute.xlu0 %7530  ;;  %v4451_v37 = vsel %vm1502_vm2, %v4408_v53, %v7513_v56  ;;  %v9903_v1 = vpop.permute.xlu2 %7570 }
 0x37c   :  { %v3826_v43 = vadd.f32 %v9490_v4, %v3825_v25  ;;  %v7521_v33 = vpop.permute.xlu1 %7520  ;;  %v4452_v38 = vsel %vm1584_vm3, %v4451_v37, %v7518_v31  ;;  %v7533_v2 = vunpack.i.h.bf16 %v7531_v61  ;;  %v7532_v44 = vunpack.i.l.bf16 %v7531_v61  ;;  %5842 = vmatpush.bf16.msrb.mxu3 %v9918_v55  ;;  %v5423_v37 = vld [vmem:[#allocation3 + $0x75] sm:$0xff] }
 0x37d   :  { %v7523_v11 = vunpack.i.h.bf16 %v7521_v33  ;;  %v7522_v13 = vunpack.i.l.bf16 %v7521_v33  ;;  %v3624_v18 = vpop.f32.mrf.mxu3 }
 0x37e   :  { %v3827_v30 = vmax.f32 %v3826_v43, 0.0  ;;  %v3638_v4 = vadd.f32 %v9722_v28, %v3624_v18  ;;  %v9898_v28 = vld [vmem:[%s10435_s6] ss:$0 sm:$0xff] }
 0x37f   :  { %v3810_v32 = vpop.f32.mrf.mxu1  ;;  %v4453_v34 = vsel %vm1683_vm4, %v4452_v38, %v7523_v11  ;;  %v4269_v23 = vsel %vm1683_vm4, %v4268_v6, %v7522_v13  ;;  %v9944_v11 = vld [vmem:[%s10436_s7 + $0x58] sm:$0xff] }
 0x380   :  { %3828 = vst.msk [vmem:[#allocation3 + $0x8d] sm:$0xff] %vm1584_vm3, %v3827_v30  ;;  %v3641_v46 = vmul.f32 %v9898_v28, %v3638_v4  ;;  %v4454_v12 = vsel %vm1685_vm5, %v4453_v34, %v7528_v27  ;;  %v4270_v39 = vsel %vm1685_vm5, %v4269_v23, %v7527_v24  ;;  %5843 = vmatpush.bf16.msrb.mxu3 %v9931_v16  ;;  %v4593_v13 = vld [vmem:[#allocation3 + $0x8] sm:$0xff]  ;;  %v7557_v30 = vunpack.i.l.bf16 %v9850_v49 }
 0x381   :  { %7745 = vrot.lane.b32.xlu0 %v7744_v52, %s7935_s23  ;;  %v4271_v42 = vsel %vm1687_vm6, %v4270_v39, %v7532_v44  ;;  %v4455_v17 = vsel %vm1687_vm6, %v4454_v12, %v7533_v2  ;;  %v9967_v39 = vld [vmem:[%s10436_s7 + $0x50] sm:$0xff] }
 0x382   :  { %v3642_v21 = vadd.f32 %v9910_v35, %v3641_v46 }
 0x383   :  { %v7546_v40 = vpop.permute.xlu0 %7545  ;;  %v9937_v53 = vpop.permute.xlu2 %7585 }
 0x384   :  { %v3643_v41 = vmax.f32 %v3642_v21, 0.0  ;;  %v7536_v10 = vpop.permute.xlu1 %7535  ;;  %v7548_v43 = vunpack.i.h.bf16 %v7546_v40  ;;  %v7547_v33 = vunpack.i.l.bf16 %v7546_v40  ;;  %5844 = vmatpush.bf16.msrb.mxu3 %v9944_v11 }
 0x385   :  { %v7538_v45 = vunpack.i.h.bf16 %v7536_v10  ;;  %v7537_v47 = vunpack.i.l.bf16 %v7536_v10  ;;  %v3626_v57 = vpop.f32.mrf.mxu3 }
 0x386   :  { %3644 = vst.msk [vmem:[#allocation3 + $0x83] sm:$0xff] %vm1584_vm3, %v3643_v41  ;;  %v4945_v34 = vsel %vm1584_vm3, %v4593_v13, %v7548_v43  ;;  %v5391_v41 = vld [vmem:[#allocation3 + $0x7a] sm:$0xff]  ;;  %v4594_v43 = vld [vmem:[#allocation3 + $0x10] sm:$0xff] }
 0x387   :  { %v4272_v63 = vsel %vm1689_vm7, %v4271_v42, %v7537_v47  ;;  %v4456_v56 = vsel %vm1689_vm7, %v4455_v17, %v7538_v45  ;;  %v9981_v45 = vld [vmem:[%s10436_s7 + $0x48] sm:$0xff]  ;;  %v7754_v42 = vpack.i.bf16 %v5391_v41, %v9841_v15 }
 0x388   :  { %v4273_v25 = vsel %vm1691_vm8, %v4272_v63, %v7542_v0  ;;  %v4457_v31 = vsel %vm1691_vm8, %v4456_v56, %v7543_v58  ;;  %v4035_v29 = vpop.f32.mrf.mxu1  ;;  %5845 = vmatpush.bf16.msrb.mxu3 %v9967_v39  ;;  %v4565_v58 = vld [vmem:[#allocation2 + $0x253] ss:$2 sm:$0xff]  ;;  %v4667_v0 = vld [vmem:[#allocation3 + $0x1e] sm:$0xff] }
 0x389   :  { %v4274_v60 = vpack.c.bf16 %v4273_v25, %v4273_v25  ;;  %v4458_v61 = vpack.c.bf16 %v4457_v31, %v4457_v31  ;;  %4039 = vst.msk [vmem:[#allocation4 + $0x8c] sm:$0xff] %vm1584_vm3, %v4035_v29  ;;  %v4666_v63 = vld [vmem:[#allocation3 + $0x16] sm:$0xff] }
 0x38a   :  { %v9996_v56 = vld [vmem:[%s10436_s7 + $0x40] sm:$0xff]  ;;  %v5018_v25 = vpack.c.bf16 %v4667_v0, %v4666_v63  ;;  %v4595_v13 = vld [vmem:[#allocation3 + $0x18] sm:$0xff] }
 0x38b   :  { %4359 = vmatmul.bf16.vlgmr.msra.gmra.mxu1 %v4274_v60  ;;  %4543 = vmatmul.bf16.vlgmr.msra.gmra.mxu2 %v4458_v61  ;;  %v9939_v51 = vpop.permute.xlu0 %7560  ;;  %v9983_v47 = vpop.permute.xlu2 %7600  ;;  %v7588_v60 = vunpack.i.h.bf16 %v9937_v53  ;;  %v7587_v61 = vunpack.i.l.bf16 %v9937_v53 }
 0x38c   :  { %v7551_v18 = vpop.permute.xlu1 %7550  ;;  %5247 = vmatpush.bf16.msra.mxu1 %v9876_v36  ;;  %5802 = vmatpush.bf16.msra.mxu2 %v9743_v7  ;;  %v4944_v36 = vsel %vm1584_vm3, %v4592_v14, %v7547_v33  ;;  %v7563_v14 = vunpack.i.h.bf16 %v9939_v51 }
 0x38d   :  { %v7553_v4 = vunpack.i.h.bf16 %v7551_v18  ;;  %v7552_v26 = vunpack.i.l.bf16 %v7551_v18  ;;  %v3851_v38 = vpop.f32.mrf.mxu3  ;;  %v5413_v6 = vld [vmem:[#allocation3 + $0x7c] sm:$0xff]  ;;  %v9950_v32 = vld [vmem:[#allocation3 + $0x84] sm:$0xff]  ;;  %5846 = vmatpush.bf16.msrb.mxu3 %v9981_v45 }
 0x38e   :  { %v5424_v52 = vld [vmem:[#allocation3 + $0x7d] sm:$0xff]  ;;  %3855 = vst.msk [vmem:[#allocation4 + $0x82] sm:$0xff] %vm1584_vm3, %v3851_v38  ;;  %v7769_v7 = vpack.i.bf16 %v9950_v32, %v5413_v6  ;;  %v7749_v27 = vpack.i.bf16 %v5413_v6, %v9839_v8  ;;  %v5425_v29 = vld [vmem:[#allocation3 + $0x85] sm:$0xff] }
 0x38f   :  { %v7759_v23 = vpack.i.bf16 %v5424_v52, %v5423_v37  ;;  %v4957_v49 = vsel %vm1685_vm5, %v4945_v34, %v7553_v4  ;;  %v4956_v46 = vsel %vm1685_vm5, %v4944_v36, %v7552_v26  ;;  %v5381_v2 = vld [vmem:[#allocation3 + $0x81] sm:$0xff]  ;;  %v10013_v4 = vld [vmem:[#allocation3 + $0x8c] sm:$0xff] }
 0x390   :  { %v4969_v24 = vsel %vm1689_vm7, %v4957_v49, %v7558_v48  ;;  %v4968_v21 = vsel %vm1689_vm7, %v4956_v46, %v7557_v30  ;;  %v4037_v12 = vpop.f32.mrf.mxu1  ;;  %5248 = vmatpush.bf16.msra.mxu1 %v9890_v19  ;;  %7770 = vrot.lane.b32.xlu0 %v7769_v7, %s7935_s23  ;;  %v5382_v19 = vld [vmem:[#allocation3 + $0x89] sm:$0xff]  ;;  %v4630_v46 = vld [vmem:[#allocation3 + $0x13] sm:$0xff] }
 0x391   :  { %v5016_v40 = vpack.c.bf16 %v4969_v24, %v4968_v21  ;;  %7760 = vrot.lane.b32.xlu2 %v7759_v23, %s7941_s18  ;;  %7750 = vrot.lane.b32.xlu1 %v7749_v27, %s7938_s30  ;;  %v9976_v10 = vld [vmem:[#allocation3 + $0x82] sm:$0xff]  ;;  %v7784_v57 = vpack.i.bf16 %v5382_v19, %v5381_v2  ;;  %v5426_v30 = vld [vmem:[#allocation3 + $0x8d] sm:$0xff]  ;;  %v4981_v27 = vsel %vm1584_vm3, %v4630_v46, %v7563_v14 }
 0x392   :  { %5803 = vmatpush.bf16.msra.mxu2 %v9763_v5  ;;  %5847 = vmatpush.bf16.msrb.mxu3 %v9996_v56  ;;  %v7779_v38 = vpack.i.bf16 %v5426_v30, %v5425_v29  ;;  %v10039_v19 = vld [vmem:[#allocation3 + $0x8a] sm:$0xff] }
 0x393   :  { %5216 = vmatmul.bf16.vlgmr.msra.gmra.mxu3 %v5016_v40  ;;  %v7576_v8 = vpop.permute.xlu0 %7575  ;;  %v10020_v6 = vpop.permute.xlu2 %7615  ;;  %v7573_v40 = vunpack.i.h.bf16 %v9903_v1 }
 0x394   :  { %v9973_v44 = vpop.permute.xlu1 %7565  ;;  %5249 = vmatpush.bf16.msra.mxu1 %v9918_v55  ;;  %v7764_v55 = vpack.i.bf16 %v9976_v10, %v5391_v41  ;;  %v7578_v31 = vunpack.i.h.bf16 %v7576_v8  ;;  %v7577_v15 = vunpack.i.l.bf16 %v7576_v8  ;;  %v7572_v8 = vunpack.i.l.bf16 %v9903_v1 }
 0x395   :  { %v3853_v5 = vpop.f32.mrf.mxu3  ;;  %v7567_v52 = vunpack.i.l.bf16 %v9973_v44  ;;  %v7618_v63 = vunpack.i.h.bf16 %v10020_v6 }
 0x396   :  { %5804 = vmatpush.bf16.msra.mxu2 %v9784_v22  ;;  %v4566_v22 = vpack.c.bf16 %v4565_v58, %v4565_v58  ;;  %v4947_v26 = vsel %vm1584_vm3, %v4595_v13, %v7578_v31  ;;  %v4946_v53 = vsel %vm1584_vm3, %v4594_v43, %v7577_v15  ;;  %v4669_v5 = vld [vmem:[#allocation3 + $0x2e] sm:$0xff]  ;;  %v4668_v58 = vld [vmem:[#allocation3 + $0x26] sm:$0xff] }
 0x398   :  { %v9989_v17 = vpop.f32.mrf.mxu1  ;;  %5250 = vmatpush.bf16.msra.mxu1 %v9931_v16  ;;  %7785 = vrot.lane.b32.xlu0 %v7784_v57, %s7935_s23  ;;  %v7789_v57 = vpack.i.bf16 %v10039_v19, %v9976_v10 }
 0x399   :  { %7765 = vrot.lane.b32.xlu2 %v7764_v55, %s7941_s18  ;;  %7755 = vrot.lane.b32.xlu1 %v7754_v42, %s7938_s30 }
 0x39a   :  { %5805 = vmatpush.bf16.msra.mxu2 %v9797_v3  ;;  %v7562_v3 = vunpack.i.l.bf16 %v9939_v51  ;;  %v7568_v51 = vunpack.i.h.bf16 %v9973_v44 }
 0x39b   :  { %6934 = vmatmul.msk.bf16.vlgmr.msrb.gmra.mxu1 %vm1502_vm2, %v4566_v22  ;;  %7007 = vmatmul.msk.bf16.vlgmr.msrb.gmra.mxu2 %vm1584_vm3, %v5018_v25  ;;  %v10004_v16 = vpop.permute.xlu0 %7590  ;;  %v10047_v0 = vpop.permute.xlu2 %7630  ;;  %v4596_v22 = vld [vmem:[#allocation3 + $0x20] sm:$0xff]  ;;  %v4597_v25 = vld [vmem:[#allocation3 + $0x28] sm:$0xff] }
 0x39c   :  { %v7581_v33 = vpop.permute.xlu1 %7580  ;;  %5251 = vmatpush.bf16.msra.mxu1 %v9944_v11  ;;  %v7774_v11 = vpack.i.bf16 %v10013_v4, %v9950_v32  ;;  %v4629_v32 = vld [vmem:[#allocation3 + $0xb] sm:$0xff]  ;;  %v4993_v21 = vsel %vm1685_vm5, %v4981_v27, %v7568_v51  ;;  %v7602_v51 = vunpack.i.l.bf16 %v9983_v47 }
 0x39d   :  { %v7583_v18 = vunpack.i.h.bf16 %v7581_v33  ;;  %v7582_v37 = vunpack.i.l.bf16 %v7581_v33  ;;  %v10011_v48 = vpop.f32.mrf.mxu3  ;;  %v4980_v24 = vsel %vm1584_vm3, %v4629_v32, %v7562_v3  ;;  %v5005_v41 = vsel %vm1689_vm7, %v4993_v21, %v7573_v40  ;;  %v4599_v40 = vld [vmem:[#allocation3 + $0x38] sm:$0xff] }
 0x39e   :  { %5806 = vmatpush.bf16.msra.mxu2 %v9812_v9  ;;  %v4992_v12 = vsel %vm1685_vm5, %v4980_v24, %v7567_v52 }
 0x39f   :  { %v4959_v34 = vsel %vm1685_vm5, %v4947_v26, %v7583_v18  ;;  %v4958_v36 = vsel %vm1685_vm5, %v4946_v53, %v7582_v37  ;;  %v4631_v18 = vld [vmem:[#allocation3 + $0x1b] sm:$0xff] }
 0x3a0   :  { %v4191_v7 = vpop.f32.mrf.mxu1  ;;  %5252 = vmatpush.bf16.msra.mxu1 %v9967_v39  ;;  %v4970_v23 = vsel %vm1689_vm7, %v4958_v36, %v7587_v61  ;;  %v4971_v49 = vsel %vm1689_vm7, %v4959_v34, %v7588_v60 }
 0x3a1   :  { %7780 = vrot.lane.b32.xlu2 %v7779_v38, %s7941_s18  ;;  %7775 = vrot.lane.b32.xlu1 %v7774_v11, %s7938_s30  ;;  %v5019_v9 = vpack.c.bf16 %v4971_v49, %v4970_v23  ;;  %v4670_v7 = vld [vmem:[#allocation3 + $0x36] sm:$0xff]  ;;  %v4671_v23 = vld [vmem:[#allocation3 + $0x3e] sm:$0xff] }
 0x3a2   :  { %5807 = vmatpush.bf16.msra.mxu2 %v9829_v59  ;;  %v5004_v59 = vsel %vm1689_vm7, %v4992_v12, %v7572_v8  ;;  %v5024_v32 = vpack.c.bf16 %v4671_v23, %v4670_v7 }
 0x3a3   :  { %5221 = vmatmul.bf16.gmra.mxu3 %v5019_v9  ;;  %v7606_v39 = vpop.permute.xlu0 %7605  ;;  %v5017_v1 = vpack.c.bf16 %v5005_v41, %v5004_v59  ;;  %v7646_v26 = vpop.permute.xlu2 %7645 }
 0x3a4   :  { %v7596_v2 = vpop.permute.xlu1 %7595  ;;  %5253 = vmatpush.bf16.msra.mxu1 %v9981_v45  ;;  %v5021_v45 = vpack.c.bf16 %v4669_v5, %v4668_v58  ;;  %v7608_v55 = vunpack.i.h.bf16 %v7606_v39  ;;  %v7607_v42 = vunpack.i.l.bf16 %v7606_v39  ;;  %v7648_v21 = vunpack.i.h.bf16 %v7646_v26  ;;  %v4598_v39 = vld [vmem:[#allocation3 + $0x30] sm:$0xff] }
 0x3a5   :  { %v4007_v44 = vpop.f32.mrf.mxu3  ;;  %v7598_v61 = vunpack.i.h.bf16 %v7596_v2  ;;  %v7597_v43 = vunpack.i.l.bf16 %v7596_v2  ;;  %v7647_v12 = vunpack.i.l.bf16 %v7646_v26 }
 0x3a6   :  { %5808 = vmatpush.bf16.msra.mxu2 %v9847_v20  ;;  %v4949_v29 = vsel %vm1584_vm3, %v4597_v25, %v7608_v55  ;;  %v4948_v60 = vsel %vm1584_vm3, %v4596_v22, %v7607_v42 }
 0x3a8   :  { %5254 = vmatpush.bf16.msra.mxu1 %v9996_v56  ;;  %v7617_v56 = vunpack.i.l.bf16 %v10020_v6  ;;  %v7603_v6 = vunpack.i.h.bf16 %v9983_v47 }
 0x3a9   :  { %7790 = vrot.lane.b32.xlu1 %v7789_v57, %s7938_s30 }
 0x3aa   :  { %5809 = vmatpush.bf16.msra.mxu2 %v9860_v54  ;;  %v7592_v54 = vunpack.i.l.bf16 %v10004_v16 }
 0x3ab   :  { %5255 = vmatmul.bf16.vlgmr.msra.gmra.mxu1 %v5017_v1  ;;  %7008 = vmatmul.msk.bf16.gmra.mxu2 %vm1584_vm3, %v5021_v45  ;;  %v10053_v20 = vpop.permute.xlu0 %7620  ;;  %v10077_v47 = vpop.permute.xlu2 %7660 }
 0x3ac   :  { %5884 = vmatpush.bf16.msrb.mxu1 %v9837_v62  ;;  %v7611_v10 = vpop.permute.xlu1 %7610  ;;  %v7593_v62 = vunpack.i.h.bf16 %v10004_v16  ;;  %v4982_v16 = vsel %vm1584_vm3, %v4631_v18, %v7592_v54  ;;  %v7623_v44 = vunpack.i.h.bf16 %v10053_v20  ;;  %v7622_v41 = vunpack.i.l.bf16 %v10053_v20 }
 0x3ad   :  { %v7613_v31 = vunpack.i.h.bf16 %v7611_v10  ;;  %v7612_v15 = vunpack.i.l.bf16 %v7611_v10  ;;  %v4994_v38 = vsel %vm1685_vm5, %v4982_v16, %v7597_v43  ;;  %v4633_v10 = vld [vmem:[#allocation3 + $0x2b] sm:$0xff]  ;;  %v7632_v54 = vunpack.i.l.bf16 %v10047_v0 }
 0x3ae   :  { %v5006_v34 = vsel %vm1689_vm7, %v4994_v38, %v7602_v51  ;;  %v4984_v20 = vsel %vm1584_vm3, %v4633_v10, %v7622_v41  ;;  %v4635_v41 = vld [vmem:[#allocation3 + $0x3b] sm:$0xff]  ;;  %v7662_v10 = vunpack.i.l.bf16 %v10077_v47 }
 0x3af   :  { %v4961_v33 = vsel %vm1685_vm5, %v4949_v29, %v7613_v31  ;;  %v4960_v14 = vsel %vm1685_vm5, %v4948_v60, %v7612_v15 }
 0x3b0   :  { %5885 = vmatpush.bf16.msrb.mxu1 %v9871_v50  ;;  %v4972_v3 = vsel %vm1689_vm7, %v4960_v14, %v7617_v56  ;;  %v4973_v13 = vsel %vm1689_vm7, %v4961_v33, %v7618_v63  ;;  %v4632_v50 = vld [vmem:[#allocation3 + $0x23] sm:$0xff]  ;;  %v4634_v63 = vld [vmem:[#allocation3 + $0x33] sm:$0xff] }
 0x3b1   :  { %v5022_v37 = vpack.c.bf16 %v4973_v13, %v4972_v3  ;;  %v4983_v30 = vsel %vm1584_vm3, %v4632_v50, %v7593_v62  ;;  %v4985_v22 = vsel %vm1584_vm3, %v4634_v63, %v7623_v44  ;;  %v7633_v62 = vunpack.i.h.bf16 %v10047_v0  ;;  %v4672_v33 = vld [vmem:[#allocation3 + $0x46] sm:$0xff]  ;;  %v4673_v14 = vld [vmem:[#allocation3 + $0x4e] sm:$0xff] }
 0x3b2   :  { %v4995_v53 = vsel %vm1685_vm5, %v4983_v30, %v7598_v61  ;;  %v5027_v16 = vpack.c.bf16 %v4673_v14, %v4672_v33 }
 0x3b3   :  { %5226 = vmatmul.bf16.gmra.mxu3 %v5022_v37  ;;  %v7636_v11 = vpop.permute.xlu0 %7635  ;;  %v5007_v36 = vsel %vm1689_vm7, %v4995_v53, %v7603_v6  ;;  %v7676_v3 = vpop.permute.xlu2 %7675 }
 0x3b4   :  { %v7626_v52 = vpop.permute.xlu1 %7625  ;;  %v5020_v49 = vpack.c.bf16 %v5007_v36, %v5006_v34  ;;  %v7638_v46 = vunpack.i.h.bf16 %v7636_v11  ;;  %v7637_v9 = vunpack.i.l.bf16 %v7636_v11  ;;  %v7678_v11 = vunpack.i.h.bf16 %v7676_v3  ;;  %v4601_v34 = vld [vmem:[#allocation3 + $0x48] sm:$0xff] }
 0x3b5   :  { %v7628_v57 = vunpack.i.h.bf16 %v7626_v52  ;;  %v7627_v58 = vunpack.i.l.bf16 %v7626_v52  ;;  %v7677_v6 = vunpack.i.l.bf16 %v7676_v3  ;;  %v4600_v52 = vld [vmem:[#allocation3 + $0x40] sm:$0xff] }
 0x3b6   :  { %v4951_v59 = vsel %vm1584_vm3, %v4599_v40, %v7638_v46  ;;  %v4950_v5 = vsel %vm1584_vm3, %v4598_v39, %v7637_v9 }
 0x3b7   :  { %v4997_v25 = vsel %vm1685_vm5, %v4985_v22, %v7628_v57  ;;  %v4996_v31 = vsel %vm1685_vm5, %v4984_v20, %v7627_v58 }
 0x3b8   :  { %v5008_v61 = vsel %vm1689_vm7, %v4996_v31, %v7632_v54  ;;  %v5009_v43 = vsel %vm1689_vm7, %v4997_v25, %v7633_v62  ;;  %v4674_v25 = vld [vmem:[#allocation3 + $0x56] sm:$0xff]  ;;  %v4675_v31 = vld [vmem:[#allocation3 + $0x5e] sm:$0xff] }
 0x3b9   :  { %v5023_v30 = vpack.c.bf16 %v5009_v43, %v5008_v61 }
 0x3bb   :  { %5260 = vmatmul.bf16.gmra.mxu1 %v5020_v49  ;;  %7009 = vmatmul.msk.bf16.gmra.mxu2 %vm1584_vm3, %v5024_v32  ;;  %v10075_v27 = vpop.permute.xlu0 %7650 }
 0x3bc   :  { %v7641_v24 = vpop.permute.xlu1 %7640  ;;  %v7652_v32 = vunpack.i.l.bf16 %v10075_v27 }
 0x3bd   :  { %v7643_v8 = vunpack.i.h.bf16 %v7641_v24  ;;  %v7642_v2 = vunpack.i.l.bf16 %v7641_v24 }
 0x3bf   :  { %v4963_v1 = vsel %vm1685_vm5, %v4951_v59, %v7643_v8  ;;  %v4962_v45 = vsel %vm1685_vm5, %v4950_v5, %v7642_v2  ;;  %v4636_v59 = vld [vmem:[#allocation3 + $0x43] sm:$0xff]  ;;  %v10114_v5 = vpop.permute.xlu2 %7690 }
 0x3c0   :  { %v4974_v55 = vsel %vm1689_vm7, %v4962_v45, %v7647_v12  ;;  %v4975_v42 = vsel %vm1689_vm7, %v4963_v1, %v7648_v21  ;;  %v4986_v1 = vsel %vm1584_vm3, %v4635_v41, %v7652_v32 }
 0x3c1   :  { %v5025_v56 = vpack.c.bf16 %v4975_v42, %v4974_v55  ;;  %v7663_v42 = vunpack.i.h.bf16 %v10077_v47 }
 0x3c3   :  { %5231 = vmatmul.bf16.gmra.mxu3 %v5025_v56  ;;  %v7666_v15 = vpop.permute.xlu0 %7665 }
 0x3c4   :  { %v7656_v29 = vpop.permute.xlu1 %7655  ;;  %v7668_v26 = vunpack.i.h.bf16 %v7666_v15  ;;  %v7667_v0 = vunpack.i.l.bf16 %v7666_v15 }
 0x3c5   :  { %v7658_v12 = vunpack.i.h.bf16 %v7656_v29  ;;  %v7657_v39 = vunpack.i.l.bf16 %v7656_v29 }
 0x3c6   :  { %v4176_v60 = vpop.f32.mrf.mxu3  ;;  %v4953_v46 = vsel %vm1584_vm3, %v4601_v34, %v7668_v26  ;;  %v4952_v9 = vsel %vm1584_vm3, %v4600_v52, %v7667_v0 }
 0x3c7   :  { %v3992_v13 = vpop.f32.mrf.mxu2  ;;  %v4190_v18 = vadd.f32 %v9989_v17, %v4176_v60  ;;  %v4998_v55 = vsel %vm1685_vm5, %v4986_v1, %v7657_v39  ;;  %v4638_v39 = vld [vmem:[#allocation3 + $0x53] sm:$0xff] }
 0x3c8   :  { %v4006_v50 = vadd.f32 %v10011_v48, %v3992_v13  ;;  %v7653_v48 = vunpack.i.h.bf16 %v10075_v27  ;;  %v5010_v22 = vsel %vm1689_vm7, %v4998_v55, %v7662_v10  ;;  %v5030_v13 = vpack.c.bf16 %v4675_v31, %v4674_v25 }
 0x3c9   :  { %v4193_v37 = vmul.f32 %v9898_v28, %v4190_v18  ;;  %v7706_v18 = vpop.permute.xlu2 %7705 }
 0x3ca   :  { %v4009_v53 = vmul.f32 %v9898_v28, %v4006_v50  ;;  %v4987_v58 = vsel %vm1584_vm3, %v4636_v59, %v7653_v48  ;;  %v7708_v50 = vunpack.i.h.bf16 %v7706_v18 }
 0x3cb   :  { %v4194_v38 = vadd.f32 %v9910_v35, %v4193_v37  ;;  %5265 = vmatmul.bf16.gmra.mxu1 %v5023_v30  ;;  %7010 = vmatmul.msk.bf16.gmra.mxu2 %vm1584_vm3, %v5027_v16  ;;  %v10103_v7 = vpop.permute.xlu0 %7680  ;;  %v4999_v45 = vsel %vm1685_vm5, %v4987_v58, %v7658_v12  ;;  %v7707_v37 = vunpack.i.l.bf16 %v7706_v18  ;;  %v4602_v30 = vld [vmem:[#allocation3 + $0x50] sm:$0xff]  ;;  %v7692_v58 = vunpack.i.l.bf16 %v10114_v5 }
 0x3cc   :  { %v4010_v51 = vadd.f32 %v9910_v35, %v4009_v53  ;;  %v7671_v17 = vpop.permute.xlu1 %7670  ;;  %v5011_v20 = vsel %vm1689_vm7, %v4999_v45, %v7663_v42  ;;  %v4637_v12 = vld [vmem:[#allocation3 + $0x4b] sm:$0xff] }
 0x3cd   :  { %v4195_v36 = vmax.f32 %v4194_v38, 0.0  ;;  %v7673_v23 = vunpack.i.h.bf16 %v7671_v17  ;;  %v7672_v49 = vunpack.i.l.bf16 %v7671_v17  ;;  %v5026_v33 = vpack.c.bf16 %v5011_v20, %v5010_v22  ;;  %v4677_v22 = vld [vmem:[#allocation3 + $0x6e] sm:$0xff] }
 0x3ce   :  { %v4011_v24 = vmax.f32 %v4010_v51, 0.0  ;;  %v4178_v21 = vpop.f32.mrf.mxu3  ;;  %v7682_v51 = vunpack.i.l.bf16 %v10103_v7 }
 0x3cf   :  { %4196 = vst.msk [vmem:[#allocation3 + $0xa1] sm:$0xff] %vm1584_vm3, %v4195_v36  ;;  %v4965_v40 = vsel %vm1685_vm5, %v4953_v46, %v7673_v23  ;;  %v4964_v8 = vsel %vm1685_vm5, %v4952_v9, %v7672_v49  ;;  %v3994_v2 = vpop.f32.mrf.mxu2 }
 0x3d0   :  { %4012 = vst.msk [vmem:[#allocation3 + $0x97] sm:$0xff] %vm1584_vm3, %v4011_v24  ;;  %v4976_v44 = vsel %vm1689_vm7, %v4964_v8, %v7677_v6  ;;  %v4977_v27 = vsel %vm1689_vm7, %v4965_v40, %v7678_v11  ;;  %v7683_v6 = vunpack.i.h.bf16 %v10103_v7 }
 0x3d1   :  { %v5028_v57 = vpack.c.bf16 %v4977_v27, %v4976_v44  ;;  %v4988_v44 = vsel %vm1584_vm3, %v4637_v12, %v7682_v51  ;;  %v7721_v20 = vpop.permute.xlu2 %7720 }
 0x3d2   :  { %v4989_v2 = vsel %vm1584_vm3, %v4638_v39, %v7683_v6  ;;  %v7723_v6 = vunpack.i.h.bf16 %v7721_v20  ;;  %v7722_v51 = vunpack.i.l.bf16 %v7721_v20 }
 0x3d3   :  { %5236 = vmatmul.bf16.gmra.mxu3 %v5028_v57  ;;  %v7696_v15 = vpop.permute.xlu0 %7695  ;;  %v7693_v57 = vunpack.i.h.bf16 %v10114_v5 }
 0x3d4   :  { %v10122_v63 = vpop.permute.xlu1 %7685  ;;  %v7698_v14 = vunpack.i.h.bf16 %v7696_v15  ;;  %v7697_v3 = vunpack.i.l.bf16 %v7696_v15 }
 0x3d5   :  { %v7688_v36 = vunpack.i.h.bf16 %v10122_v63  ;;  %v7687_v23 = vunpack.i.l.bf16 %v10122_v63 }
 0x3d6   :  { %v4403_v56 = vpop.f32.mrf.mxu3  ;;  %v4954_v48 = vsel %vm1584_vm3, %v4602_v30, %v7697_v3  ;;  %v10156_v45 = vld [vmem:[#allocation3 + $0xa2] sm:$0xff] }
 0x3d7   :  { %v4219_v62 = vpop.f32.mrf.mxu2  ;;  %4407 = vst.msk [vmem:[#allocation4 + $0xa0] sm:$0xff] %vm1584_vm3, %v4403_v56  ;;  %v5416_v54 = vld [vmem:[#allocation3 + $0x94] sm:$0xff]  ;;  %v10127_v60 = vld [vmem:[#allocation3 + $0x9c] sm:$0xff]  ;;  %v5001_v41 = vsel %vm1685_vm5, %v4989_v2, %v7688_v36  ;;  %v5000_v59 = vsel %vm1685_vm5, %v4988_v44, %v7687_v23  ;;  %v4676_v56 = vld [vmem:[#allocation3 + $0x66] sm:$0xff] }
 0x3d8   :  { %v5394_v29 = vld [vmem:[#allocation3 + $0x92] sm:$0xff]  ;;  %4223 = vst.msk [vmem:[#allocation4 + $0x96] sm:$0xff] %vm1584_vm3, %v4219_v62  ;;  %v7799_v47 = vpack.i.bf16 %v5416_v54, %v10013_v4  ;;  %v7809_v43 = vpack.i.bf16 %v10127_v60, %v5416_v54  ;;  %v5428_v11 = vld [vmem:[#allocation3 + $0x9d] sm:$0xff]  ;;  %v5012_v42 = vsel %vm1689_vm7, %v5000_v59, %v7692_v58  ;;  %v5013_v10 = vsel %vm1689_vm7, %v5001_v41, %v7693_v57 }
 0x3d9   :  { %v7794_v61 = vpack.i.bf16 %v5394_v29, %v10039_v19  ;;  %v4603_v4 = vld [vmem:[#allocation3 + $0x58] sm:$0xff]  ;;  %v5029_v31 = vpack.c.bf16 %v5013_v10, %v5012_v42  ;;  %v5033_v5 = vpack.c.bf16 %v4677_v22, %v4676_v56  ;;  %v5366_v30 = vld [vmem:[#allocation3 + $0x60] sm:$0xff] }
 0x3da   :  { %7800 = vrot.lane.b32.xlu0 %v7799_v47, %s7935_s23  ;;  %7810 = vrot.lane.b32.xlu1 %v7809_v43, %s7938_s30  ;;  %v5383_v16 = vld [vmem:[#allocation3 + $0x91] sm:$0xff]  ;;  %v5384_v53 = vld [vmem:[#allocation3 + $0x99] sm:$0xff]  ;;  %v4955_v17 = vsel %vm1584_vm3, %v4603_v4, %v7698_v14  ;;  %v4640_v47 = vld [vmem:[#allocation3 + $0x63] sm:$0xff] }
 0x3db   :  { %7795 = vrot.lane.b32.xlu2 %v7794_v61, %s7941_s18  ;;  %5270 = vmatmul.bf16.gmra.mxu1 %v5026_v33  ;;  %v5427_v38 = vld [vmem:[#allocation3 + $0x95] sm:$0xff]  ;;  %v7804_v9 = vpack.i.bf16 %v5384_v53, %v5383_v16  ;;  %v7711_v27 = vpop.permute.xlu0 %7710  ;;  %v7736_v16 = vpop.permute.xlu2 %7735  ;;  %v5435_v10 = vld [vmem:[#allocation3 + $0x7e] sm:$0xff] }
 0x3dc   :  { %7011 = vmatmul.msk.bf16.gmra.mxu2 %vm1584_vm3, %v5030_v13  ;;  %v7701_v19 = vpop.permute.xlu1 %7700  ;;  %v5395_v34 = vld [vmem:[#allocation3 + $0x9a] sm:$0xff]  ;;  %v7814_v24 = vpack.i.bf16 %v5428_v11, %v5427_v38  ;;  %v7713_v15 = vunpack.i.h.bf16 %v7711_v27  ;;  %v7712_v62 = vunpack.i.l.bf16 %v7711_v27 }
 0x3dd   :  { %v7703_v26 = vunpack.i.h.bf16 %v7701_v19  ;;  %v7702_v0 = vunpack.i.l.bf16 %v7701_v19  ;;  %v7819_v40 = vpack.i.bf16 %v5395_v34, %v5394_v29  ;;  %v7824_v25 = vpack.i.bf16 %v10156_v45, %v5395_v34  ;;  %v4639_v29 = vld [vmem:[#allocation3 + $0x5b] sm:$0xff] }
 0x3de   :  { %v4405_v52 = vpop.f32.mrf.mxu3  ;;  %v7737_v34 = vunpack.i.l.bf16 %v7736_v16 }
 0x3df   :  { %v4967_v49 = vsel %vm1685_vm5, %v4955_v17, %v7703_v26  ;;  %v4966_v32 = vsel %vm1685_vm5, %v4954_v48, %v7702_v0  ;;  %v4221_v46 = vpop.f32.mrf.mxu2  ;;  %v5367_v26 = vld [vmem:[#allocation3 + $0x68] sm:$0xff]  ;;  %v7738_v52 = vunpack.i.h.bf16 %v7736_v16 }
 0x3e0   :  { %v4978_v21 = vsel %vm1689_vm7, %v4966_v32, %v7707_v37  ;;  %v4979_v7 = vsel %vm1689_vm7, %v4967_v49, %v7708_v50  ;;  %v4991_v50 = vsel %vm1584_vm3, %v4640_v47, %v7713_v15  ;;  %v4990_v37 = vsel %vm1584_vm3, %v4639_v29, %v7712_v62 }
 0x3e1   :  { %v5031_v8 = vpack.c.bf16 %v4979_v7, %v4978_v21 }
 0x3e2   :  { %7805 = vrot.lane.b32.xlu0 %v7804_v9, %s7935_s23  ;;  %7820 = vrot.lane.b32.xlu1 %v7819_v40, %s7938_s30  ;;  %v5400_v40 = vld [vmem:[#allocation3 + $0x6b] sm:$0xff] }
 0x3e3   :  { %7815 = vrot.lane.b32.xlu2 %v7814_v24, %s7941_s18  ;;  %5241 = vmatmul.bf16.gmra.mxu3 %v5031_v8  ;;  %v7726_v54 = vpop.permute.xlu0 %7725  ;;  %v5401_v8 = vld [vmem:[#allocation3 + $0x73] sm:$0xff] }
 0x3e4   :  { %v7716_v1 = vpop.permute.xlu1 %7715  ;;  %v7728_v33 = vunpack.i.h.bf16 %v7726_v54  ;;  %v7727_v14 = vunpack.i.l.bf16 %v7726_v54 }
 0x3e5   :  { %v7718_v3 = vunpack.i.h.bf16 %v7716_v1  ;;  %v7717_v13 = vunpack.i.l.bf16 %v7716_v1 }
 0x3e6   :  { %v10158_v55 = vpop.f32.mrf.mxu3  ;;  %v5690_v0 = vsel %vm1584_vm3, %v5367_v26, %v7728_v33  ;;  %v5689_v53 = vsel %vm1584_vm3, %v5366_v30, %v7727_v14  ;;  %v5368_v33 = vld [vmem:[#allocation3 + $0x70] sm:$0xff]  ;;  %v5369_v14 = vld [vmem:[#allocation3 + $0x78] sm:$0xff] }
 0x3e7   :  { %v10162_v63 = vpop.f32.mrf.mxu2  ;;  %v5003_v38 = vsel %vm1685_vm5, %v4991_v50, %v7718_v3  ;;  %v5002_v11 = vsel %vm1685_vm5, %v4990_v37, %v7717_v13 }
 0x3e8   :  { %v5014_v36 = vsel %vm1689_vm7, %v5002_v11, %v7722_v51  ;;  %v5015_v23 = vsel %vm1689_vm7, %v5003_v38, %v7723_v6 }
 0x3e9   :  { %v5032_v46 = vpack.c.bf16 %v5015_v23, %v5014_v36 }
 0x3eb   :  { %7825 = vrot.lane.b32.xlu2 %v7824_v25, %s7941_s18  ;;  %5275 = vmatmul.bf16.gmra.mxu1 %v5029_v31  ;;  %v7741_v24 = vpop.permute.xlu0 %7740  ;;  %v7761_v21 = vpop.permute.xlu2 %7760 }
 0x3ec   :  { %7012 = vmatmul.msk.bf16.gmra.mxu2 %vm1584_vm3, %v5033_v5  ;;  %v7731_v61 = vpop.permute.xlu1 %7730  ;;  %v7743_v7 = vunpack.i.h.bf16 %v7741_v24  ;;  %v7742_v12 = vunpack.i.l.bf16 %v7741_v24  ;;  %v7763_v27 = vunpack.i.h.bf16 %v7761_v21  ;;  %v7762_v41 = vunpack.i.l.bf16 %v7761_v21  ;;  %v5434_v5 = vld [vmem:[#allocation3 + $0x76] sm:$0xff] }
 0x3ed   :  { %v7733_v4 = vunpack.i.h.bf16 %v7731_v61  ;;  %v7732_v19 = vunpack.i.l.bf16 %v7731_v61  ;;  %v5757_v29 = vpack.c.bf16 %v5435_v10, %v5434_v5 }
 0x3ee   :  { %v4559_v43 = vpop.f32.mrf.mxu3  ;;  %v5723_v59 = vsel %vm1584_vm3, %v5401_v8, %v7743_v7  ;;  %v5722_v57 = vsel %vm1584_vm3, %v5400_v40, %v7742_v12 }
 0x3ef   :  { %v4375_v18 = vpop.f32.mrf.mxu2  ;;  %v5701_v17 = vsel %vm1685_vm5, %v5690_v0, %v7733_v4  ;;  %v5700_v48 = vsel %vm1685_vm5, %v5689_v53, %v7732_v19 }
 0x3f0   :  { %v5712_v49 = vsel %vm1689_vm7, %v5701_v17, %v7738_v52  ;;  %v5711_v32 = vsel %vm1689_vm7, %v5700_v48, %v7737_v34 }
 0x3f1   :  { %v5755_v9 = vpack.c.bf16 %v5712_v49, %v5711_v32  ;;  %v5402_v49 = vld [vmem:[#allocation3 + $0x7b] sm:$0xff] }
 0x3f3   :  { %v7746_v58 = vpop.permute.xlu0 %7745  ;;  %v7766_v56 = vpop.permute.xlu2 %7765 }
 0x3f4   :  { %v7748_v15 = vunpack.i.h.bf16 %v7746_v58  ;;  %v7747_v62 = vunpack.i.l.bf16 %v7746_v58  ;;  %v7768_v43 = vunpack.i.h.bf16 %v7766_v56  ;;  %v7767_v18 = vunpack.i.l.bf16 %v7766_v56 }
 0x3f6   :  { %v5692_v50 = vsel %vm1584_vm3, %v5369_v14, %v7748_v15  ;;  %v5691_v37 = vsel %vm1584_vm3, %v5368_v33, %v7747_v62 }
 0x3fb   :  { %5280 = vmatmul.bf16.gmra.mxu1 %v5032_v46  ;;  %v7781_v51 = vpop.permute.xlu2 %7780 }
 0x3fc   :  { %5810 = vmatmul.bf16.vlgmr.msra.gmra.mxu2 %v5755_v9  ;;  %v7783_v23 = vunpack.i.h.bf16 %v7781_v51  ;;  %v7782_v9 = vunpack.i.l.bf16 %v7781_v51 }
 0x403   :  { %v7751_v39 = vpop.permute.xlu1 %7750 }
 0x404   :  { %v7753_v2 = vunpack.i.h.bf16 %v7751_v39  ;;  %v7752_v44 = vunpack.i.l.bf16 %v7751_v39 }
 0x406   :  { %v5734_v1 = vsel %vm1685_vm5, %v5723_v59, %v7753_v2  ;;  %v5733_v42 = vsel %vm1685_vm5, %v5722_v57, %v7752_v44  ;;  %v5437_v44 = vld [vmem:[#allocation3 + $0x8e] sm:$0xff] }
 0x407   :  { %v5745_v22 = vsel %vm1689_vm7, %v5734_v1, %v7763_v27  ;;  %v5744_v20 = vsel %vm1689_vm7, %v5733_v42, %v7762_v41 }
 0x408   :  { %v5756_v25 = vpack.c.bf16 %v5745_v22, %v5744_v20  ;;  %v4360_v31 = vpop.f32.mrf.mxu1  ;;  %v5949_v20 = vld [vmem:[%s10438_s9] sm:$0xf] }
 0x409   :  { %v4374_v54 = vadd.f32 %v10162_v63, %v4360_v31  ;;  %v7771_v63 = vpop.permute.xlu0 %7770  ;;  %5951 = vst [vmem:[#allocation1] ss:$4 sm:$0xff] %v5949_v20 }
 0x40a   :  { %5848 = vmatmul.bf16.vlgmr.msrb.gmra.mxu3 %v5756_v25  ;;  %v7773_v17 = vunpack.i.h.bf16 %v7771_v63  ;;  %v7772_v48 = vunpack.i.l.bf16 %v7771_v63 }
 0x40b   :  { %v4377_v47 = vmul.f32 %v9898_v28, %v4374_v54  ;;  %v7756_v61 = vpop.permute.xlu1 %7755  ;;  %7013 = vmatmul.msk.bf16.vlgmr.msrb.gmra.mxu1 %vm1584_vm3, %v5757_v29  ;;  %v5385_v29 = vld [vmem:[#allocation3 + $0xa1] sm:$0xff] }
 0x40c   :  { %v7758_v3 = vunpack.i.h.bf16 %v7756_v61  ;;  %v7757_v13 = vunpack.i.l.bf16 %v7756_v61  ;;  %v5724_v21 = vsel %vm1584_vm3, %v5402_v49, %v7772_v48 }
 0x40d   :  { %v4378_v30 = vadd.f32 %v9910_v35, %v4377_v47 }
 0x40e   :  { %v5703_v4 = vsel %vm1685_vm5, %v5692_v50, %v7758_v3  ;;  %v5702_v19 = vsel %vm1685_vm5, %v5691_v37, %v7757_v13  ;;  %v4544_v16 = vpop.f32.mrf.mxu2  ;;  %v5439_v3 = vld [vmem:[#allocation3 + $0x9e] sm:$0xff] }
 0x40f   :  { %v4379_v26 = vmax.f32 %v4378_v30, 0.0  ;;  %v4558_v0 = vadd.f32 %v10158_v55, %v4544_v16  ;;  %v5713_v53 = vsel %vm1689_vm7, %v5702_v19, %v7767_v18  ;;  %v5714_v38 = vsel %vm1689_vm7, %v5703_v4, %v7768_v43  ;;  %v5403_v55 = vld [vmem:[#allocation3 + $0x83] sm:$0xff]  ;;  %v5438_v43 = vld [vmem:[#allocation3 + $0x96] sm:$0xff] }
 0x410   :  { %v4362_v11 = vpop.f32.mrf.mxu1  ;;  %v5758_v6 = vpack.c.bf16 %v5714_v38, %v5713_v53  ;;  %v5725_v24 = vsel %vm1584_vm3, %v5403_v55, %v7773_v17  ;;  %v5432_v18 = vld [vmem:[#allocation3 + $0xbd] sm:$0xff]  ;;  %v5763_v63 = vpack.c.bf16 %v5439_v3, %v5438_v43  ;;  %v1015_v43 = vld [vmem:[%s10432_s3 + $0x280] sm:$0xff] }
 0x411   :  { %4380 = vst.msk [vmem:[#allocation3 + $0xab] sm:$0xff] %vm1584_vm3, %v4379_v26  ;;  %v4561_v52 = vmul.f32 %v9898_v28, %v4558_v0  ;;  %v7786_v16 = vpop.permute.xlu0 %7785  ;;  %v5071_v26 = vld [vmem:[#allocation4 + $0x8] sm:$0xff]  ;;  %v5433_v11 = vld [vmem:[#allocation3 + $0xc5] sm:$0xff]  ;;  %v5074_v3 = vld [vmem:[#allocation4 + $0x20] sm:$0xff] }
 0x412   :  { %5815 = vmatmul.bf16.gmra.mxu2 %v5758_v6  ;;  %v5422_v17 = vld [vmem:[#allocation3 + $0xc4] sm:$0xff] }
 0x413   :  { %v4562_v34 = vadd.f32 %v9910_v35, %v4561_v52  ;;  %v7776_v36 = vpop.permute.xlu1 %7775  ;;  %v5436_v35 = vld [vmem:[#allocation3 + $0x86] sm:$0xff] }
 0x414   :  { %v7778_v32 = vunpack.i.h.bf16 %v7776_v36  ;;  %v7777_v46 = vunpack.i.l.bf16 %v7776_v36  ;;  %v5760_v1 = vpack.c.bf16 %v5437_v44, %v5436_v35  ;;  %v7787_v36 = vunpack.i.l.bf16 %v7786_v16  ;;  %v5072_v44 = vld [vmem:[#allocation4 + $0x10] sm:$0xff] }
 0x415   :  { %v4563_v7 = vmax.f32 %v4562_v34, 0.0  ;;  %v7788_v34 = vunpack.i.h.bf16 %v7786_v16 }
 0x416   :  { %v5736_v12 = vsel %vm1685_vm5, %v5725_v24, %v7778_v32  ;;  %v5735_v39 = vsel %vm1685_vm5, %v5724_v21, %v7777_v46  ;;  %v4546_v28 = vpop.f32.mrf.mxu2  ;;  %v10203_v40 = vpop.f32.mrf.mxu3  ;;  %v5370_v24 = vld [vmem:[#allocation3 + $0x80] sm:$0xff]  ;;  %v5371_v21 = vld [vmem:[#allocation3 + $0x88] sm:$0xff] }
 0x417   :  { %4564 = vst.msk [vmem:[#allocation3 + $0xb5] sm:$0xff] %vm1584_vm3, %v4563_v7  ;;  %v5746_v8 = vsel %vm1689_vm7, %v5735_v39, %v7782_v9  ;;  %v5747_v2 = vsel %vm1689_vm7, %v5736_v12, %v7783_v23  ;;  %v5694_v12 = vsel %vm1584_vm3, %v5371_v21, %v7788_v34  ;;  %v5693_v39 = vsel %vm1584_vm3, %v5370_v24, %v7787_v36 }
 0x418   :  { %v4587_v27 = vpop.f32.mrf.mxu1  ;;  %v5759_v41 = vpack.c.bf16 %v5747_v2, %v5746_v8  ;;  %v5429_v59 = vld [vmem:[#allocation3 + $0xa5] sm:$0xff]  ;;  %v5430_v57 = vld [vmem:[#allocation3 + $0xad] sm:$0xff] }
 0x419   :  { %v5418_v58 = vld [vmem:[#allocation3 + $0xa4] sm:$0xff]  ;;  %4591 = vst.msk [vmem:[#allocation4 + $0xaa] sm:$0xff] %vm1584_vm3, %v4587_v27  ;;  %v7839_v42 = vpack.i.bf16 %v5430_v57, %v5429_v59  ;;  %v5419_v10 = vld [vmem:[#allocation3 + $0xac] sm:$0xff] }
 0x41a   :  { %v7829_v56 = vpack.i.bf16 %v5418_v58, %v10127_v60  ;;  %5853 = vmatmul.bf16.gmra.mxu3 %v5759_v41  ;;  %v7834_v22 = vpack.i.bf16 %v5419_v10, %v5418_v58  ;;  %v5397_v60 = vld [vmem:[#allocation3 + $0xaa] sm:$0xff] }
 0x41b   :  { %7014 = vmatmul.msk.bf16.gmra.mxu1 %vm1584_vm3, %v5760_v1  ;;  %7840 = vrot.lane.b32.xlu2 %v7839_v42, %s7941_s18  ;;  %v5386_v15 = vld [vmem:[#allocation3 + $0xa9] sm:$0xff]  ;;  %v7849_v47 = vpack.i.bf16 %v5397_v60, %v10156_v45  ;;  %v7791_v6 = vpop.permute.xlu1 %7790 }
 0x41c   :  { %7835 = vrot.lane.b32.xlu1 %v7834_v22, %s7938_s30  ;;  %7830 = vrot.lane.b32.xlu0 %v7829_v56, %s7935_s23  ;;  %v7844_v61 = vpack.i.bf16 %v5386_v15, %v5385_v29  ;;  %v7793_v55 = vunpack.i.h.bf16 %v7791_v6  ;;  %v7792_v32 = vunpack.i.l.bf16 %v7791_v6  ;;  %v5440_v56 = vld [vmem:[#allocation3 + $0xa6] sm:$0xff] }
 0x41d   :  { %v1014_v22 = vld [vmem:[%s10432_s3 + $0x278] sm:$0xff] }
 0x41e   :  { %v5219_v25 = vpop.f32.mrf.mxu3  ;;  %v10217_v31 = vpop.f32.mrf.mxu2  ;;  %v5398_v5 = vld [vmem:[#allocation3 + $0xb2] sm:$0xff]  ;;  %v5421_v37 = vld [vmem:[#allocation3 + $0xbc] sm:$0xff]  ;;  %v5705_v8 = vsel %vm1685_vm5, %v5694_v12, %v7793_v55  ;;  %v5704_v2 = vsel %vm1685_vm5, %v5693_v39, %v7792_v32  ;;  %v5073_v15 = vld [vmem:[#allocation4 + $0x18] sm:$0xff] }
 0x41f   :  { %v7854_v54 = vpack.i.bf16 %v5398_v5, %v5397_v60  ;;  %v5431_v13 = vld [vmem:[#allocation3 + $0xb5] sm:$0xff]  ;;  %v5220_v51 = vadd.f32 %v5219_v25, %v5071_v26  ;;  %v7879_v46 = vpack.i.bf16 %v5422_v17, %v5398_v5  ;;  %v5404_v6 = vld [vmem:[#allocation3 + $0x8b] sm:$0xff] }
 0x420   :  { %v4589_v62 = vpop.f32.mrf.mxu1  ;;  %v5420_v50 = vld [vmem:[#allocation3 + $0xb4] sm:$0xff]  ;;  %v7869_v45 = vpack.i.bf16 %v5432_v18, %v5431_v13 }
 0x421   :  { %v7864_v4 = vpack.i.bf16 %v5421_v37, %v5420_v50  ;;  %v7859_v19 = vpack.i.bf16 %v5420_v50, %v5419_v10  ;;  %v5399_v38 = vld [vmem:[#allocation3 + $0xba] sm:$0xff]  ;;  %v5387_v48 = vld [vmem:[#allocation3 + $0xb1] sm:$0xff] }
 0x422   :  { %v7884_v49 = vpack.i.bf16 %v5433_v11, %v5399_v38  ;;  %v7874_v9 = vpack.i.bf16 %v5421_v37, %v5387_v48  ;;  %v5441_v59 = vld [vmem:[#allocation3 + $0xae] sm:$0xff]  ;;  %v5442_v18 = vld [vmem:[#allocation3 + $0xb6] sm:$0xff]  ;;  %v5443_v50 = vld [vmem:[#allocation3 + $0xbe] sm:$0xff] }
 0x423   :  { %7855 = vrot.lane.b32.xlu2 %v7854_v54, %s7941_s18  ;;  %v5766_v25 = vpack.c.bf16 %v5441_v59, %v5440_v56  ;;  %v5952_v5 = vld.sshfl [vmem:[#allocation1] sm:$0xff pattern:$0x73625140] }
 0x424   :  { %7850 = vrot.lane.b32.xlu1 %v7849_v47, %s7938_s30  ;;  %7845 = vrot.lane.b32.xlu0 %v7844_v61, %s7935_s23 }
 0x426   :  { %v5222_v33 = vpop.f32.mrf.mxu3  ;;  %v10223_v14 = vpop.f32.mrf.mxu2 }
 0x427   :  { %v5223_v57 = vadd.f32 %v5222_v33, %v5072_v44  ;;  %v5372_v44 = vld [vmem:[#allocation3 + $0x90] sm:$0xff] }
 0x428   :  { %v10225_v30 = vpop.f32.mrf.mxu1 }
 0x42b   :  { %7015 = vmatmul.msk.bf16.gmra.mxu1 %vm1584_vm3, %v5763_v63  ;;  %7870 = vrot.lane.b32.xlu2 %v7869_v45, %s7941_s18 }
 0x42c   :  { %7865 = vrot.lane.b32.xlu1 %v7864_v4, %s7938_s30  ;;  %7860 = vrot.lane.b32.xlu0 %v7859_v19, %s7935_s23  ;;  %v5769_v19 = vpack.c.bf16 %v5443_v50, %v5442_v18 }
 0x42e   :  { %v5224_v0 = vpop.f32.mrf.mxu3  ;;  %v5300_v53 = vpop.f32.mrf.mxu2 }
 0x42f   :  { %v5225_v54 = vadd.f32 %v5224_v0, %v5073_v15 }
 0x430   :  { %v5258_v52 = vpop.f32.mrf.mxu1 }
 0x431   :  { %v10231_v23 = vadd.f32 %v5258_v52, %v5220_v51  ;;  %v5405_v51 = vld [vmem:[#allocation3 + $0x93] sm:$0xff] }
 0x433   :  { %7885 = vrot.lane.b32.xlu2 %v7884_v49, %s7941_s18 }
 0x434   :  { %7880 = vrot.lane.b32.xlu1 %v7879_v46, %s7938_s30  ;;  %7875 = vrot.lane.b32.xlu0 %v7874_v9, %s7935_s23 }
 0x435   :  { %v7796_v7 = vpop.permute.xlu2 %7795 }
 0x436   :  { %v7798_v28 = vunpack.i.h.bf16 %v7796_v7  ;;  %v7797_v35 = vunpack.i.l.bf16 %v7796_v7  ;;  %v5227_v27 = vpop.f32.mrf.mxu3  ;;  %v5302_v41 = vpop.f32.mrf.mxu2 }
 0x437   :  { %v5228_v37 = vadd.f32 %v5227_v27, %v5074_v3  ;;  %v5373_v27 = vld [vmem:[#allocation3 + $0x98] sm:$0xff] }
 0x438   :  { %v5715_v58 = vsel %vm1689_vm7, %v5704_v2, %v7797_v35  ;;  %v5716_v1 = vsel %vm1689_vm7, %v5705_v8, %v7798_v28  ;;  %v5261_v42 = vpop.f32.mrf.mxu1 }
 0x439   :  { %v5761_v10 = vpack.c.bf16 %v5716_v1, %v5715_v58  ;;  %v5262_v20 = vadd.f32 %v5261_v42, %v5223_v57 }
 0x43b   :  { %5820 = vmatmul.bf16.gmra.mxu2 %v5761_v10  ;;  %v10245_v60 = vadd.f32 %v5300_v53, %v5262_v20  ;;  %7016 = vmatmul.msk.bf16.gmra.mxu1 %vm1584_vm3, %v5766_v25 }
 0x43c   :  { %1413 = vperm.xlu2 %7263, %v1014_v22   ;;  %5954 = vrot.lane.b32.xlu0 %v5952_v5, %s7935_s23 }
 0x43d   :  { %v7816_v45 = vpop.permute.xlu2 %7815 }
 0x43e   :  { %v5305_v62 = vpop.f32.mrf.mxu2  ;;  %v10249_v29 = vpop.f32.mrf.mxu3  ;;  %v7818_v34 = vunpack.i.h.bf16 %v7816_v45  ;;  %v7817_v36 = vunpack.i.l.bf16 %v7816_v45  ;;  %v5080_v45 = vld [vmem:[#allocation4 + $0x50] sm:$0xff] }
 0x440   :  { %v5263_v47 = vpop.f32.mrf.mxu1 }
 0x441   :  { %v5264_v61 = vadd.f32 %v5263_v47, %v5225_v54 }
 0x443   :  { %v10254_v33 = vadd.f32 %v5302_v41, %v5264_v61 }
 0x444   :  { %1418 = vperm.xlu0 %7261, %v1015_v43  }
 0x445   :  { %v7826_v12 = vpop.permute.xlu2 %7825 }
 0x446   :  { %v10256_v13 = vpop.f32.mrf.mxu2  ;;  %v10258_v16 = vpop.f32.mrf.mxu3  ;;  %v7828_v58 = vunpack.i.h.bf16 %v7826_v12  ;;  %v7827_v1 = vunpack.i.l.bf16 %v7826_v12 }
 0x448   :  { %v5266_v63 = vpop.f32.mrf.mxu1 }
 0x449   :  { %v5267_v4 = vadd.f32 %v5266_v63, %v5228_v37 }
 0x44b   :  { %v10260_v26 = vadd.f32 %v5305_v62, %v5267_v4  ;;  %7017 = vmatmul.msk.bf16.gmra.mxu1 %vm1584_vm3, %v5769_v19 }
 0x44c   :  { %v7801_v0 = vpop.permute.xlu0 %7800  ;;  %v7811_v11 = vpop.permute.xlu1 %7810 }
 0x44d   :  { %v7803_v53 = vunpack.i.h.bf16 %v7801_v0  ;;  %v7802_v38 = vunpack.i.l.bf16 %v7801_v0  ;;  %v7813_v17 = vunpack.i.h.bf16 %v7811_v11  ;;  %v7812_v48 = vunpack.i.l.bf16 %v7811_v11  ;;  %v5079_v0 = vld [vmem:[#allocation4 + $0x48] sm:$0xff] }
 0x44e   :  { %v10263_v52 = vpop.f32.mrf.mxu2  ;;  %v5234_v39 = vpop.f32.mrf.mxu3 }
 0x44f   :  { %v5727_v49 = vsel %vm1584_vm3, %v5405_v51, %v7803_v53  ;;  %v5726_v55 = vsel %vm1584_vm3, %v5404_v6, %v7802_v38  ;;  %v5078_v53 = vld [vmem:[#allocation4 + $0x40] sm:$0xff] }
 0x450   :  { %v5738_v32 = vsel %vm1685_vm5, %v5727_v49, %v7813_v17  ;;  %v5737_v46 = vsel %vm1685_vm5, %v5726_v55, %v7812_v48  ;;  %v10269_v9 = vpop.f32.mrf.mxu1  ;;  %v5081_v17 = vld [vmem:[#allocation4 + $0x58] sm:$0xff] }
 0x451   :  { %v5748_v24 = vsel %vm1689_vm7, %v5737_v46, %v7817_v36  ;;  %v5749_v21 = vsel %vm1689_vm7, %v5738_v32, %v7818_v34  ;;  %v5077_v34 = vld [vmem:[#allocation4 + $0x38] sm:$0xff]  ;;  %v5076_v46 = vld [vmem:[#allocation4 + $0x30] sm:$0xff] }
 0x452   :  { %v5762_v7 = vpack.c.bf16 %v5749_v21, %v5748_v24  ;;  %v5235_v55 = vadd.f32 %v5234_v39, %v5077_v34 }
 0x454   :  { %v7806_v28 = vpop.permute.xlu0 %7805  ;;  %5858 = vmatmul.bf16.gmra.mxu3 %v5762_v7  ;;  %v7821_v2 = vpop.permute.xlu1 %7820  ;;  %v5233_v7 = vadd.f32 %v10258_v16, %v5076_v46  ;;  %v5406_v46 = vld [vmem:[#allocation3 + $0x9b] sm:$0xff] }
 0x455   :  { %v7808_v35 = vunpack.i.h.bf16 %v7806_v28  ;;  %v7807_v8 = vunpack.i.l.bf16 %v7806_v28  ;;  %v7823_v41 = vunpack.i.h.bf16 %v7821_v2  ;;  %v7822_v59 = vunpack.i.l.bf16 %v7821_v2 }
 0x456   :  { %v5312_v57 = vpop.f32.mrf.mxu2  ;;  %v5237_v62 = vpop.f32.mrf.mxu3 }
 0x457   :  { %v5696_v42 = vsel %vm1584_vm3, %v5373_v27, %v7808_v35  ;;  %v5695_v10 = vsel %vm1584_vm3, %v5372_v44, %v7807_v8  ;;  %v5238_v51 = vadd.f32 %v5237_v62, %v5078_v53  ;;  %v10287_v35 = vld [vmem:[%s10437_s8] ss:$0 sm:$0xff]  ;;  %v5075_v8 = vld [vmem:[#allocation4 + $0x28] sm:$0xff] }
 0x458   :  { %v5707_v56 = vsel %vm1685_vm5, %v5696_v42, %v7823_v41  ;;  %v5706_v22 = vsel %vm1685_vm5, %v5695_v10, %v7822_v59  ;;  %v5271_v20 = vpop.f32.mrf.mxu1  ;;  %v5230_v27 = vadd.f32 %v10249_v29, %v5075_v8  ;;  %v5070_v29 = vld [vmem:[#allocation4] sm:$0xff] }
 0x459   :  { %v5717_v25 = vsel %vm1689_vm7, %v5706_v22, %v7827_v1  ;;  %v5718_v5 = vsel %vm1689_vm7, %v5707_v56, %v7828_v58  ;;  %v5272_v41 = vadd.f32 %v5271_v20, %v5233_v7  ;;  %v10297_v22 = vld [vmem:[%s10437_s8 + $0x1] ss:$0 sm:$0xff] }
 0x45a   :  { %v5764_v15 = vpack.c.bf16 %v5718_v5, %v5717_v25  ;;  %v5269_v1 = vadd.f32 %v10269_v9, %v5230_v27  ;;  %v5218_v9 = vadd.f32 %v10203_v40, %v5070_v29  ;;  %v5774_v27 = vld [vmem:[#allocation4 + $0x68] sm:$0xff] }
 0x45b   :  { %v5311_v20 = vadd.f32 %v10263_v52, %v5272_v41 }
 0x45c   :  { %5825 = vmatmul.bf16.gmra.mxu2 %v5764_v15  ;;  %v5308_v62 = vadd.f32 %v10256_v13, %v5269_v1 }
 0x45d   :  { %v5333_v52 = vmul.f32 %v10287_v35, %v5311_v20 }
 0x45e   :  { %v5239_v43 = vpop.f32.mrf.mxu3 }
 0x45f   :  { %v5315_v54 = vpop.f32.mrf.mxu2  ;;  %v5240_v38 = vadd.f32 %v5239_v43, %v5079_v0 }
 0x460   :  { %v5273_v47 = vpop.f32.mrf.mxu1 }
 0x461   :  { %v5274_v12 = vadd.f32 %v5273_v47, %v5235_v55  ;;  %v5257_v47 = vadd.f32 %v10225_v30, %v5218_v9  ;;  %v5298_v30 = vadd.f32 %v10223_v14, %v10231_v23  ;;  %v5330_v14 = vmul.f32 %v10287_v35, %v10254_v33 }
 0x463   :  { %v5313_v16 = vadd.f32 %v5312_v57, %v5274_v12  ;;  %v5344_v29 = vadd.f32 %v10297_v22, %v5330_v14 }
 0x466   :  { %v5242_v37 = vpop.f32.mrf.mxu3 }
 0x467   :  { %v5317_v61 = vpop.f32.mrf.mxu2  ;;  %v5243_v19 = vadd.f32 %v5242_v37, %v5080_v45  ;;  %v5332_v37 = vmul.f32 %v10287_v35, %v5308_v62 }
 0x468   :  { %v5276_v3 = vpop.f32.mrf.mxu1 }
 0x469   :  { %v5277_v32 = vadd.f32 %v5276_v3, %v5238_v51 }
 0x46b   :  { %v5316_v39 = vadd.f32 %v5315_v54, %v5277_v32  ;;  %v5334_v54 = vmul.f32 %v10287_v35, %v5313_v16 }
 0x46d   :  { %v5335_v5 = vmul.f32 %v10287_v35, %v5316_v39  ;;  %v5348_v13 = vadd.f32 %v10297_v22, %v5334_v54 }
 0x46e   :  { %v5244_v48 = vpop.f32.mrf.mxu3 }
 0x46f   :  { %v5320_v50 = vpop.f32.mrf.mxu2  ;;  %v5245_v24 = vadd.f32 %v5244_v48, %v5081_v17  ;;  %v5347_v48 = vadd.f32 %v10297_v22, %v5333_v52 }
 0x470   :  { %v5278_v18 = vpop.f32.mrf.mxu1 }
 0x471   :  { %v5279_v36 = vadd.f32 %v5278_v18, %v5240_v38  ;;  %v5349_v18 = vadd.f32 %v10297_v22, %v5335_v5  ;;  %v5331_v38 = vmul.f32 %v10287_v35, %v10260_v26  ;;  %v5360_v26 = vmax.f32 %v5348_v13, 0.0 }
 0x473   :  { %v5318_v2 = vadd.f32 %v5317_v61, %v5279_v36  ;;  %v5361_v17 = vmax.f32 %v5349_v18, 0.0  ;;  %v5374_v18 = vld [vmem:[#allocation3 + $0xa0] sm:$0xff] }
 0x475   :  { %v10279_v63 = vpop.permute.xlu2 %7840  ;;  %v5336_v42 = vmul.f32 %v10287_v35, %v5318_v2  ;;  %v5329_v2 = vmul.f32 %v10287_v35, %v10245_v60  ;;  %v5328_v60 = vmul.f32 %v10287_v35, %v5298_v30 }
 0x476   :  { %v7843_v7 = vunpack.i.h.bf16 %v10279_v63  ;;  %v7842_v12 = vunpack.i.l.bf16 %v10279_v63  ;;  %v5359_v63 = vmax.f32 %v5347_v48, 0.0 }
 0x477   :  { %v5322_v11 = vpop.f32.mrf.mxu2  ;;  %v5350_v3 = vadd.f32 %v10297_v22, %v5336_v42 }
 0x478   :  { %v5281_v4 = vpop.f32.mrf.mxu1 }
 0x479   :  { %v5282_v6 = vadd.f32 %v5281_v4, %v5243_v19  ;;  %v5296_v4 = vadd.f32 %v10217_v31, %v5257_v47  ;;  %v5362_v53 = vmax.f32 %v5350_v3, 0.0 }
 0x47b   :  { %v5321_v21 = vadd.f32 %v5320_v50, %v5282_v6  ;;  %v5773_v50 = vld [vmem:[#allocation4 + $0x60] sm:$0xff]  ;;  %v5327_v42 = vmul.f32 %v10287_v35, %v5296_v4 }
 0x47d   :  { %v10281_v49 = vpop.permute.xlu2 %7855  ;;  %v5337_v59 = vmul.f32 %v10287_v35, %v5321_v21  ;;  %v5346_v21 = vadd.f32 %v10297_v22, %v5332_v37  ;;  %v5342_v37 = vadd.f32 %v10297_v22, %v5328_v60 }
 0x47e   :  { %v7858_v13 = vunpack.i.h.bf16 %v10281_v49  ;;  %v7857_v4 = vunpack.i.l.bf16 %v10281_v49 }
 0x47f   :  { %v5811_v10 = vpop.f32.mrf.mxu2  ;;  %v5351_v15 = vadd.f32 %v10297_v22, %v5337_v59 }
 0x480   :  { %v5283_v28 = vpop.f32.mrf.mxu1  ;;  %v5812_v45 = vadd.f32 %v5811_v10, %v5773_v50  ;;  %v5375_v50 = vld [vmem:[#allocation3 + $0xa8] sm:$0xff] }
 0x481   :  { %v5284_v44 = vadd.f32 %v5283_v28, %v5245_v24  ;;  %v5363_v40 = vmax.f32 %v5351_v15, 0.0  ;;  %v5407_v24 = vld [vmem:[#allocation3 + $0xa3] sm:$0xff] }
 0x483   :  { %v5323_v58 = vadd.f32 %v5322_v11, %v5284_v44 }
 0x485   :  { %v5338_v56 = vmul.f32 %v10287_v35, %v5323_v58  ;;  %v10299_v25 = vpop.permute.xlu2 %7870  ;;  %v5345_v58 = vadd.f32 %v10297_v22, %v5331_v38  ;;  %v5775_v38 = vld [vmem:[#allocation4 + $0x70] sm:$0xff] }
 0x487   :  { %v5352_v57 = vadd.f32 %v10297_v22, %v5338_v56  ;;  %v5813_v34 = vpop.f32.mrf.mxu2  ;;  %v5358_v56 = vmax.f32 %v5346_v21, 0.0 }
 0x488   :  { %v5887_v43 = vpop.f32.mrf.mxu1  ;;  %v5814_v1 = vadd.f32 %v5813_v34, %v5774_v27  ;;  %v7873_v27 = vunpack.i.h.bf16 %v10299_v25 }
 0x489   :  { %v5364_v61 = vmax.f32 %v5352_v57, 0.0  ;;  %v5343_v57 = vadd.f32 %v10297_v22, %v5329_v2 }
 0x48b   :  { %5989 = vmatpush.msra.mxu3 %v5364_v61  ;;  %v5357_v61 = vmax.f32 %v5345_v58, 0.0 }
 0x48d   :  { %v5849_v19 = vpop.f32.mrf.mxu3  ;;  %v10317_v0 = vpop.permute.xlu2 %7885  ;;  %5990 = vmatpush.msra.mxu3 %v5363_v40  ;;  %v5356_v40 = vmax.f32 %v5344_v29, 0.0 }
 0x48e   :  { %v5850_v11 = vadd.f32 %v5849_v19, %v5812_v45  ;;  %v7836_v6 = vpop.permute.xlu1 %7835  ;;  %v7831_v51 = vpop.permute.xlu0 %7830  ;;  %v5341_v45 = vadd.f32 %v10297_v22, %v5327_v42 }
 0x48f   :  { %v7838_v36 = vunpack.i.h.bf16 %v7836_v6  ;;  %v7837_v31 = vunpack.i.l.bf16 %v7836_v6  ;;  %v7833_v55 = vunpack.i.h.bf16 %v7831_v51  ;;  %v7832_v32 = vunpack.i.l.bf16 %v7831_v51  ;;  %5991 = vmatpush.msra.mxu3 %v5362_v53  ;;  %v5444_v53 = vld [vmem:[#allocation3 + $0xc6] sm:$0xff] }
 0x490   :  { %v10324_v23 = vadd.f32 %v5887_v43, %v5850_v11  ;;  %v5889_v41 = vpop.f32.mrf.mxu1  ;;  %v5355_v51 = vmax.f32 %v5343_v57, 0.0 }
 0x491   :  { %v5729_v28 = vsel %vm1584_vm3, %v5407_v24, %v7833_v55  ;;  %v5728_v8 = vsel %vm1584_vm3, %v5406_v46, %v7832_v32  ;;  %5992 = vmatpush.msra.mxu3 %v5361_v17  ;;  %v5772_v17 = vpack.c.bf16 %v5444_v53, %v5444_v53  ;;  %v5354_v32 = vmax.f32 %v5342_v37, 0.0 }
 0x492   :  { %v5739_v33 = vsel %vm1685_vm5, %v5728_v8, %v7837_v31  ;;  %v5740_v44 = vsel %vm1685_vm5, %v5729_v28, %v7838_v36 }
 0x493   :  { %5993 = vmatpush.msra.mxu3 %v5360_v26  ;;  %v5750_v39 = vsel %vm1689_vm7, %v5739_v33, %v7842_v12  ;;  %v5751_v59 = vsel %vm1689_vm7, %v5740_v44, %v7843_v7  ;;  %7018 = vmatmul.msk.bf16.gmra.mxu1 %vm1584_vm3, %v5772_v17  ;;  %v5353_v7 = vmax.f32 %v5341_v45, 0.0  ;;  %v5408_v33 = vld [vmem:[#allocation3 + $0xab] sm:$0xff]  ;;  %v5409_v44 = vld [vmem:[#allocation3 + $0xb3] sm:$0xff] }
 0x494   :  { %v5765_v16 = vpack.c.bf16 %v5751_v59, %v5750_v39 }
 0x495   :  { %v5851_v10 = vpop.f32.mrf.mxu3  ;;  %5994 = vmatpush.msra.mxu3 %v5359_v63  ;;  %v5816_v15 = vpop.f32.mrf.mxu2  ;;  %v5776_v63 = vld [vmem:[#allocation4 + $0x78] sm:$0xff] }
 0x496   :  { %v5852_v20 = vadd.f32 %v5851_v10, %v5814_v1  ;;  %5863 = vmatmul.bf16.gmra.mxu3 %v5765_v16  ;;  %v1414_v5 = vpop.permute.xlu2 %1413  ;;  %v7851_v9 = vpop.permute.xlu1 %7850  ;;  %v5817_v48 = vadd.f32 %v5816_v15, %v5775_v38  ;;  %v5953_v38 = vld.sshfl [vmem:[#allocation1 + $0x8] sm:$0xff pattern:$0x73625140] }
 0x497   :  { %v7853_v62 = vunpack.i.h.bf16 %v7851_v9  ;;  %v7852_v54 = vunpack.i.l.bf16 %v7851_v9  ;;  %v7846_v47 = vpop.permute.xlu0 %7845  ;;  %5995 = vmatpush.msra.mxu3 %v5358_v56  ;;  %5956 = vrot.lane.b32.xlu1 %v5953_v38, %s7935_s23 }
 0x498   :  { %v10342_v43 = vadd.f32 %v5889_v41, %v5852_v20  ;;  %v7848_v3 = vunpack.i.h.bf16 %v7846_v47  ;;  %v7847_v52 = vunpack.i.l.bf16 %v7846_v47  ;;  %v5892_v31 = vpop.f32.mrf.mxu1  ;;  %v7872_v41 = vunpack.i.l.bf16 %v10299_v25 }
 0x499   :  { %5996 = vmatpush.msra.mxu3 %v5357_v61  ;;  %v7887_v47 = vunpack.i.l.bf16 %v10317_v0 }
 0x49a   :  { %v5697_v30 = vsel %vm1584_vm3, %v5374_v18, %v7847_v52  ;;  %v5698_v19 = vsel %vm1584_vm3, %v5375_v50, %v7848_v3  ;;  %v5410_v52 = vld [vmem:[#allocation3 + $0xbb] sm:$0xff] }
 0x49b   :  { %5997 = vmatpush.msra.mxu3 %v5356_v40  ;;  %v5708_v11 = vsel %vm1685_vm5, %v5697_v30, %v7852_v54  ;;  %v5709_v6 = vsel %vm1685_vm5, %v5698_v19, %v7853_v62  ;;  %v5376_v54 = vld [vmem:[#allocation3 + $0xb0] sm:$0xff] }
 0x49c   :  { %v5719_v34 = vsel %vm1689_vm7, %v5708_v11, %v7857_v4  ;;  %v5720_v36 = vsel %vm1689_vm7, %v5709_v6, %v7858_v13  ;;  %v7888_v4 = vunpack.i.h.bf16 %v10317_v0  ;;  %v5777_v6 = vld [vmem:[#allocation4 + $0x80] sm:$0xff] }
 0x49d   :  { %v5854_v49 = vpop.f32.mrf.mxu3  ;;  %v5767_v55 = vpack.c.bf16 %v5720_v36, %v5719_v34  ;;  %5998 = vmatpush.msra.mxu3 %v5355_v51  ;;  %v5818_v2 = vpop.f32.mrf.mxu2 }
 0x49e   :  { %v5855_v14 = vadd.f32 %v5854_v49, %v5817_v48  ;;  %v7866_v46 = vpop.permute.xlu1 %7865  ;;  %v5819_v16 = vadd.f32 %v5818_v2, %v5776_v63  ;;  %v5781_v63 = vld [vmem:[#allocation4 + $0xa0] sm:$0xff] }
 0x49f   :  { %v7868_v24 = vunpack.i.h.bf16 %v7866_v46  ;;  %v7867_v26 = vunpack.i.l.bf16 %v7866_v46  ;;  %v7861_v21 = vpop.permute.xlu0 %7860  ;;  %5830 = vmatmul.bf16.gmra.mxu2 %v5767_v55  ;;  %5999 = vmatpush.msra.mxu3 %v5354_v32 }
 0x4a0   :  { %v10355_v12 = vadd.f32 %v5892_v31, %v5855_v14  ;;  %v7863_v28 = vunpack.i.h.bf16 %v7861_v21  ;;  %v7862_v8 = vunpack.i.l.bf16 %v7861_v21  ;;  %v5894_v5 = vpop.f32.mrf.mxu1 }
 0x4a1   :  { %6000 = vmatpush.msra.mxu3 %v5353_v7 }
 0x4a2   :  { %v5731_v39 = vsel %vm1584_vm3, %v5409_v44, %v7863_v28  ;;  %v5730_v59 = vsel %vm1584_vm3, %v5408_v33, %v7862_v8 }
 0x4a3   :  { %v5741_v58 = vsel %vm1685_vm5, %v5730_v59, %v7867_v26  ;;  %v5742_v1 = vsel %vm1685_vm5, %v5731_v39, %v7868_v24 }
 0x4a4   :  { %v5752_v42 = vsel %vm1689_vm7, %v5741_v58, %v7872_v41  ;;  %v5753_v60 = vsel %vm1689_vm7, %v5742_v1, %v7873_v27  ;;  %v5782_v27 = vld [vmem:[#allocation4 + $0xa8] sm:$0xff] }
 0x4a5   :  { %v5856_v10 = vpop.f32.mrf.mxu3  ;;  %v5768_v56 = vpack.c.bf16 %v5753_v60, %v5752_v42 }
 0x4a6   :  { %v5857_v29 = vadd.f32 %v5856_v10, %v5819_v16  ;;  %v7881_v20 = vpop.permute.xlu1 %7880  ;;  %v5780_v16 = vld [vmem:[#allocation4 + $0x98] sm:$0xff]  ;;  %v5779_v10 = vld [vmem:[#allocation4 + $0x90] sm:$0xff] }
 0x4a7   :  { %v7882_v25 = vunpack.i.l.bf16 %v7881_v20  ;;  %v7876_v9 = vpop.permute.xlu0 %7875  ;;  %5868 = vmatmul.bf16.gmra.mxu3 %v5768_v56  ;;  %v7883_v3 = vunpack.i.h.bf16 %v7881_v20  ;;  %v5783_v56 = vld [vmem:[#allocation4 + $0xb0] sm:$0xff] }
 0x4a8   :  { %v10365_v57 = vadd.f32 %v5894_v5, %v5857_v29  ;;  %v7878_v15 = vunpack.i.h.bf16 %v7876_v9  ;;  %v7877_v62 = vunpack.i.l.bf16 %v7876_v9  ;;  %v5897_v34 = vpop.f32.mrf.mxu1  ;;  %v5778_v9 = vld [vmem:[#allocation4 + $0x88] sm:$0xff] }
 0x4aa   :  { %v5699_v61 = vsel %vm1584_vm3, %v5376_v54, %v7877_v62  ;;  %v5732_v50 = vsel %vm1584_vm3, %v5410_v52, %v7878_v15  ;;  %v5365_v54 = vld [vmem:[%s10438_s9] sm:$0x3] }
 0x4ab   :  { %v5710_v18 = vsel %vm1685_vm5, %v5699_v61, %v7882_v25  ;;  %v5743_v13 = vsel %vm1685_vm5, %v5732_v50, %v7883_v3 }
 0x4ac   :  { %v5721_v40 = vsel %vm1689_vm7, %v5710_v18, %v7887_v47  ;;  %v5754_v30 = vsel %vm1689_vm7, %v5743_v13, %v7888_v4 }
 0x4ad   :  { %v5770_v37 = vpack.c.bf16 %v5721_v40, %v5721_v40  ;;  %v5771_v19 = vpack.c.bf16 %v5754_v30, %v5754_v30 }
 0x4af   :  { %v10372_v45 = vpop.permute.xlu0 %5954  ;;  %5835 = vmatmul.bf16.gmra.mxu2 %v5770_v37 }
 0x4b0   :  { %v5899_v31 = vpop.f32.mrf.mxu1 }
 0x4b7   :  { %v1419_v53 = vpop.permute.xlu0 %1418  ;;  %5873 = vmatmul.bf16.gmra.mxu3 %v5771_v19 }
 0x4b8   :  { %v5902_v49 = vpop.f32.mrf.mxu1 }
 0x4be   :  { %v5821_v11 = vpop.f32.mrf.mxu2 }
 0x4bf   :  { %v5822_v51 = vadd.f32 %v5821_v11, %v5777_v6 }
 0x4c0   :  { %v5904_v55 = vpop.f32.mrf.mxu1 }
 0x4c6   :  { %v5823_v32 = vpop.f32.mrf.mxu2 }
 0x4c7   :  { %v5824_v47 = vadd.f32 %v5823_v32, %v5778_v9  ;;  %7020 = vmatmul.msk.f32.vlgmr.msra.gmra.mxu3 %vm1689_vm7, %v5365_v54 }
 0x4c8   :  { %v5907_v0 = vpop.f32.mrf.mxu1 }
 0x4d0   :  { %v5909_v24 = vpop.f32.mrf.mxu1 }
 0x4d7   :  { %v5859_v17 = vpop.f32.mrf.mxu3 }
 0x4d8   :  { %v5860_v48 = vadd.f32 %v5859_v17, %v5822_v51 }
 0x4da   :  { %v5898_v36 = vadd.f32 %v5897_v34, %v5860_v48 }
 0x4df   :  { %v5826_v14 = vpop.f32.mrf.mxu2  ;;  %v5861_v46 = vpop.f32.mrf.mxu3 }
 0x4e0   :  { %v5827_v29 = vadd.f32 %v5826_v14, %v5779_v10  ;;  %v5862_v18 = vadd.f32 %v5861_v46, %v5824_v47  ;;  %v5919_v14 = vmul.f32 %v10287_v35, %v10365_v57  ;;  %v5916_v57 = vmul.f32 %v10287_v35, %v10324_v23  ;;  %v6008_v23 = vld [vmem:[%s10439_s10 + $0x18] sm:$0xff] }
 0x4e2   :  { %v5900_v19 = vadd.f32 %v5899_v31, %v5862_v18  ;;  %v5920_v31 = vmul.f32 %v10287_v35, %v5898_v36  ;;  %v5917_v36 = vmul.f32 %v10287_v35, %v10342_v43 }
 0x4e4   :  { %v5921_v34 = vmul.f32 %v10287_v35, %v5900_v19 }
 0x4e7   :  { %v5828_v21 = vpop.f32.mrf.mxu2 }
 0x4e8   :  { %v5829_v42 = vadd.f32 %v5828_v21, %v5780_v16 }
 0x509   :  { %v5957_v43 = vpop.permute.xlu1 %5956 }
 0x510   :  { %v5912_v7 = vpop.f32.mrf.mxu1 }
 0x518   :  { %v5914_v2 = vpop.f32.mrf.mxu1 }
 0x519   :  { %v5864_v26 = vpop.f32.mrf.mxu3 }
 0x51a   :  { %v5865_v61 = vadd.f32 %v5864_v26, %v5827_v29  ;;  %v5918_v26 = vmul.f32 %v10287_v35, %v10355_v12 }
 0x51c   :  { %v5903_v13 = vadd.f32 %v5902_v49, %v5865_v61 }
 0x51e   :  { %v5922_v51 = vmul.f32 %v10287_v35, %v5903_v13 }
 0x521   :  { %v5866_v28 = vpop.f32.mrf.mxu3 }
 0x522   :  { %v5831_v8 = vpop.f32.mrf.mxu2  ;;  %v5867_v20 = vadd.f32 %v5866_v28, %v5829_v42  ;;  %v7895_v42 = vld [vmem:[%s10440_s11] ss:$0 sm:$0xff] }
 0x523   :  { %v5832_v58 = vadd.f32 %v5831_v8, %v5781_v63  ;;  %v5930_v8 = vadd.f32 %v10297_v22, %v5919_v14  ;;  %v6007_v63 = vld [vmem:[%s10439_s10 + $0x10] sm:$0xff] }
 0x524   :  { %v5905_v50 = vadd.f32 %v5904_v55, %v5867_v20 }
 0x525   :  { %v5941_v12 = vmax.f32 %v5930_v8, 0.0 }
 0x526   :  { %v5923_v53 = vmul.f32 %v10287_v35, %v5905_v50 }
 0x528   :  { %v5934_v55 = vadd.f32 %v10297_v22, %v5923_v53 }
 0x52a   :  { %v5833_v33 = vpop.f32.mrf.mxu2  ;;  %v5869_v44 = vpop.f32.mrf.mxu3  ;;  %v5945_v46 = vmax.f32 %v5934_v55, 0.0 }
 0x52b   :  { %v5834_v59 = vadd.f32 %v5833_v33, %v5782_v27  ;;  %v5870_v60 = vadd.f32 %v5869_v44, %v5832_v58  ;;  %v5929_v33 = vadd.f32 %v10297_v22, %v5918_v26  ;;  %v5928_v44 = vadd.f32 %v10297_v22, %v5917_v36 }
 0x52d   :  { %v5908_v3 = vadd.f32 %v5907_v0, %v5870_v60  ;;  %v5933_v0 = vadd.f32 %v10297_v22, %v5922_v51  ;;  %v5940_v27 = vmax.f32 %v5929_v33, 0.0 }
 0x52f   :  { %v5924_v4 = vmul.f32 %v10287_v35, %v5908_v3  ;;  %v5944_v21 = vmax.f32 %v5933_v0, 0.0 }
 0x531   :  { %v5935_v48 = vadd.f32 %v10297_v22, %v5924_v4 }
 0x532   :  { %v5836_v41 = vpop.f32.mrf.mxu2  ;;  %v5871_v39 = vpop.f32.mrf.mxu3 }
 0x533   :  { %v5872_v1 = vadd.f32 %v5871_v39, %v5834_v59  ;;  %v5837_v5 = vadd.f32 %v5836_v41, %v5783_v56  ;;  %v5946_v32 = vmax.f32 %v5935_v48, 0.0  ;;  %v5927_v41 = vadd.f32 %v10297_v22, %v5916_v57 }
 0x534   :  { %v5939_v39 = vmax.f32 %v5928_v44, 0.0 }
 0x535   :  { %v5910_v25 = vadd.f32 %v5909_v24, %v5872_v1  ;;  %v5932_v24 = vadd.f32 %v10297_v22, %v5921_v34  ;;  %v5938_v59 = vmax.f32 %v5927_v41, 0.0 }
 0x537   :  { %v5925_v40 = vmul.f32 %v10287_v35, %v5910_v25  ;;  %v5943_v28 = vmax.f32 %v5932_v24, 0.0 }
 0x539   :  { %v5936_v11 = vadd.f32 %v10297_v22, %v5925_v40 }
 0x53a   :  { %v5838_v15 = vpop.f32.mrf.mxu2  ;;  %v5874_v62 = vpop.f32.mrf.mxu3 }
 0x53b   :  { %v5875_v52 = vadd.f32 %v5874_v62, %v5837_v5  ;;  %v5947_v49 = vmax.f32 %v5936_v11, 0.0 }
 0x53d   :  { %v5913_v37 = vadd.f32 %v5912_v7, %v5875_v52  ;;  %v5931_v7 = vadd.f32 %v10297_v22, %v5920_v31 }
 0x53f   :  { %v5926_v30 = vmul.f32 %v10287_v35, %v5913_v37  ;;  %v5942_v2 = vmax.f32 %v5931_v7, 0.0  ;;  %v5958_v35 = vsel %vm1584_vm3, %v10372_v45, %v5957_v43  ;;  %v6005_v45 = vld [vmem:[%s10439_s10] sm:$0xff] }
 0x541   :  { %v5937_v38 = vadd.f32 %v10297_v22, %v5926_v30  ;;  %v6006_v22 = vld [vmem:[%s10439_s10 + $0x8] sm:$0xff] }
 0x542   :  { %v5876_v6 = vpop.f32.mrf.mxu3 }
 0x543   :  { %v5948_v17 = vmax.f32 %v5937_v38, 0.0 }
 0x545   :  { %5967 = vmatpush.msrb.mxu2 %v5948_v17 }
 0x547   :  { %5968 = vmatpush.msrb.mxu2 %v5947_v49 }
 0x549   :  { %5969 = vmatpush.msrb.mxu2 %v5946_v32 }
 0x54a   :  { %v6002_v58 = vpop.f32.mrf.mxu3 }
 0x54b   :  { %5970 = vmatpush.msrb.mxu2 %v5945_v46 }
 0x54d   :  { %5971 = vmatpush.msrb.mxu2 %v5944_v21 }
 0x54f   :  { %5972 = vmatpush.msrb.mxu2 %v5943_v28 }
 0x551   :  { %5973 = vmatpush.msrb.mxu2 %v5942_v2 }
 0x553   :  { %5974 = vmatpush.msrb.mxu2 %v5941_v12 }
 0x555   :  { %5975 = vmatpush.msrb.mxu2 %v5940_v27 }
 0x557   :  { %5976 = vmatpush.msrb.mxu2 %v5939_v39 }
 0x559   :  { %5977 = vmatpush.msrb.mxu2 %v5938_v59 }
 0x55a   :  { %7019 = vmatmul.msk.f32.vlgmr.msrb.gmra.mxu2 %vm5959_vm9, %v5958_v35 }
 0x55b   :  { %6028 = vmatpush.msra.mxu2 %v6008_v23 }
 0x55d   :  { %6029 = vmatpush.msra.mxu2 %v6007_v63 }
 0x55f   :  { %6030 = vmatpush.msra.mxu2 %v6006_v22 }
 0x561   :  { %6031 = vmatpush.msra.mxu2 %v6005_v45 }
 0x5dd   :  { %v5979_v1 = vpop.f32.mrf.mxu2 }
 0x5de   :  { %v6003_v16 = vadd.f32 %v6002_v58, %v5979_v1 }
 0x5e0   :  { %7021 = vmatmul.msk.f32.vlgmr.msra.gmra.mxu2 %vm1584_vm3, %v6003_v16 }
 0x663   :  { %v6033_v60 = vpop.f32.mrf.mxu2 }
 0x664   :  { %v6034_v10 = vadd.f32 %v7895_v42, %v6033_v60 }
 0x666   :  { %6037 = vst.msk [vmem:[#allocation5] sm:$0x3] %vm6036_vm10, %v6034_v10 }
 0x667   :  { %6048 = dma.vmem_to_hbm [thread:$0]  %s6044_s2, 32, %s6046_s14, [#allocation6]  }
 0x668   :  { %7932 = dma.done.wait [#allocation6], 32  }
 0x669   :  { %7933 = vsyncadd [#allocation6], 4294967264 }
 0x66a   :  { %6053 = vsyncpa [#allocation6], 1 }

</bundles_post_ra>
